<compile_context>
chip_gen: v7x
topology: tpu7x:2x2x1
jax: 0.10.0
libtpu: 0.0.40
codegen_flags: <defaults>
</compile_context>

<pallas_src>
import functools
import math

import numpy as np
import jax
import jax.numpy as jnp
from jax import lax
from jax.experimental import pallas as pl
from jax.experimental.pallas import tpu as pltpu


# ----------------------------------------------------------------------------
# Fused forward kernel (one grid step == one batch element)
# ----------------------------------------------------------------------------
def _fused_forward_kernel(
    # per-batch inputs
    x_ref,            # [1, H, W, in_ch]
    tp0_ref,          # [1, 1, C2]  silu(temb) @ t_w + t_b  (mid0)
    tp1_ref,          # [1, 1, C2]                           (mid1)
    # shared (VMEM-resident, fetched once) constants / weights
    pool_ref,         # [Hm*Wm, H*W] 2x2 average-pooling matrix
    w_in_ref, b_in_ref,        # [9, in_ch, C1], [1, C1]
    w_dn_ref, b_dn_ref,        # [9, C1, C2],    [1, C2]
    w_a1_ref, b_a1_ref, w_a2_ref, b_a2_ref,   # mid0 res block
    w_b1_ref, b_b1_ref, w_b2_ref, b_b2_ref,   # mid1 res block
    w_m2_ref, b_m2_ref,        # hooked middle[2] conv
    w_h1_ref, b_h1_ref, w_h2_ref, b_h2_ref,   # reward MLP head
    # output
    o_ref,            # [1, 1, 1]
    # scratch (VMEM halo buffers)
    padx_ref,         # [H+2, W+2, in_ch]
    pada_ref,         # [H+2, W+2, C1]
    padb_ref,         # [Hm+2, Wm+2, C2]
    *, H, W, in_ch, C1, C2,
):
    Hm, Wm = H // 2, W // 2

    def silu(v):
        return v * jax.nn.sigmoid(v)

    def conv3x3(pad_ref, w_ref, b_ref, hh, ww, cout):
        # pad_ref: zero-halo VMEM buffer [hh+2, ww+2, cin] (interior written).
        xp = pad_ref[...]
        cin = xp.shape[-1]
        acc = jnp.zeros((hh * ww, cout), jnp.float32)
        for k in range(9):                       # 9 shifted MXU dots, all in VMEM
            ky, kx = divmod(k, 3)
            patch = xp[ky:ky + hh, kx:kx + ww, :].reshape(hh * ww, cin)
            acc = acc + jnp.dot(patch, w_ref[k],
                                preferred_element_type=jnp.float32)
        return acc + b_ref[...]                  # [hh*ww, cout]

    # Zero the halo buffers every step (cheap; keeps borders == 0 and stays
    # correct even if the "parallel" batch axis is split across cores).
    padx_ref[...] = jnp.zeros_like(padx_ref)
    pada_ref[...] = jnp.zeros_like(pada_ref)
    padb_ref[...] = jnp.zeros_like(padb_ref)

    # ---- conv_in : in_ch -> C1 (SAME) ---------------------------------------
    padx_ref[1:H + 1, 1:W + 1, :] = x_ref[0]
    xin = padx_ref[...]
    if in_ch == 1:
        # Cin == 1: 9 shifted scale-adds on the VPU (no K=1 MXU matmuls).
        acc = jnp.zeros((H, W, C1), jnp.float32)
        for k in range(9):
            ky, kx = divmod(k, 3)
            acc = acc + xin[ky:ky + H, kx:kx + W, :] * w_in_ref[k]
        h = acc.reshape(H * W, C1) + b_in_ref[...]
    else:
        acc = jnp.zeros((H * W, C1), jnp.float32)
        for k in range(9):
            ky, kx = divmod(k, 3)
            patch = xin[ky:ky + H, kx:kx + W, :].reshape(H * W, in_ch)
            acc = acc + jnp.dot(patch, w_in_ref[k],
                                preferred_element_type=jnp.float32)
        h = acc + b_in_ref[...]

    # ---- down conv : C1 -> C2, SiLU, 2x2 avg-pool (pool == one MXU dot) -----
    pada_ref[1:H + 1, 1:W + 1, :] = h.reshape(H, W, C1)
    h = silu(conv3x3(pada_ref, w_dn_ref, b_dn_ref, H, W, C2))       # [H*W, C2]
    x_mid = jnp.dot(pool_ref[...], h,
                    preferred_element_type=jnp.float32)             # [Hm*Wm, C2]

    # ---- middle res block 0 ---------------------------------------------------
    padb_ref[1:Hm + 1, 1:Wm + 1, :] = silu(x_mid).reshape(Hm, Wm, C2)
    r = conv3x3(padb_ref, w_a1_ref, b_a1_ref, Hm, Wm, C2) + tp0_ref[0]
    padb_ref[1:Hm + 1, 1:Wm + 1, :] = silu(r).reshape(Hm, Wm, C2)
    x_mid = x_mid + conv3x3(padb_ref, w_a2_ref, b_a2_ref, Hm, Wm, C2)

    # ---- middle res block 1 ---------------------------------------------------
    padb_ref[1:Hm + 1, 1:Wm + 1, :] = silu(x_mid).reshape(Hm, Wm, C2)
    r = conv3x3(padb_ref, w_b1_ref, b_b1_ref, Hm, Wm, C2) + tp1_ref[0]
    padb_ref[1:Hm + 1, 1:Wm + 1, :] = silu(r).reshape(Hm, Wm, C2)
    x_mid = x_mid + conv3x3(padb_ref, w_b2_ref, b_b2_ref, Hm, Wm, C2)

    # ---- middle[2] conv (the hooked layer -> feats) ---------------------------
    padb_ref[1:Hm + 1, 1:Wm + 1, :] = x_mid.reshape(Hm, Wm, C2)
    feats = conv3x3(padb_ref, w_m2_ref, b_m2_ref, Hm, Wm, C2)       # [Hm*Wm, C2]

    # ---- reward head: mean-pool -> L2 normalise -> Linear/ReLU/Linear ---------
    pooled = jnp.mean(feats, axis=0, keepdims=True)                 # [1, C2]
    nrm = jnp.sqrt(jnp.sum(pooled * pooled, axis=1, keepdims=True))
    pooled = pooled / (nrm + 1e-6)                                  # norm(dim=1)+1e-6
    hid = jnp.dot(pooled, w_h1_ref[...],
                  preferred_element_type=jnp.float32) + b_h1_ref[...]
    hid = jnp.maximum(hid, 0.0)
    out = jnp.dot(hid, w_h2_ref[...],
                  preferred_element_type=jnp.float32) + b_h2_ref[...]
    o_ref[...] = out.reshape(1, 1, 1)


# ----------------------------------------------------------------------------
# Wrapper
# ----------------------------------------------------------------------------
def _make_pool_matrix(H, W):
    """Constant [Hm*Wm, H*W] matrix implementing 2x2 average pooling."""
    Hm, Wm = H // 2, W // 2
    m = np.zeros((Hm * Wm, H * W), np.float32)
    for i in range(Hm):
        for j in range(Wm):
            r = i * Wm + j
            for dy in (0, 1):
                for dx in (0, 1):
                    m[r, (2 * i + dy) * W + (2 * j + dx)] = 0.25
    return jnp.asarray(m)


def sinusoidal_embedding(t, dim):
    half = dim // 2
    freqs = jnp.exp(-math.log(10000.0) * jnp.arange(half, dtype=jnp.float32) / half)
    args = t.astype(jnp.float32)[:, None] * freqs[None, :]
    return jnp.concatenate([jnp.sin(args), jnp.cos(args)], axis=-1)


def forward_pallas(params, x_nchw, t):
    """x_nchw: [B, in_ch, H, W], t: [B] int -> rewards [B] (float32)."""
    x = jnp.transpose(x_nchw, (0, 2, 3, 1)).astype(jnp.float32)   # NCHW -> NHWC
    B, H, W, in_ch = x.shape
    C1 = params["conv_in_w"].shape[-1]          # ch
    C2 = params["down_w"].shape[-1]             # 2*ch
    Hm, Wm = H // 2, W // 2

    # Timestep-embedding MLP in plain JAX (a few hundred FLOPs; linear1/linear2
    # are zeroed per the reference __init__, so only the ResBlock time-bias
    # survives — kept anyway for structural fidelity).
    temb = sinusoidal_embedding(t, C1)
    temb = jax.nn.silu(temb @ params["linear1_w"] + params["linear1_b"])
    temb = temb @ params["linear2_w"] + params["linear2_b"]
    st = jax.nn.silu(temb)
    tp0 = (st @ params["mid0"]["t_w"] + params["mid0"]["t_b"]).reshape(B, 1, C2)
    tp1 = (st @ params["mid1"]["t_w"] + params["mid1"]["t_b"]).reshape(B, 1, C2)

    pool_mat = _make_pool_matrix(H, W)

    def tap(w):   # [3,3,cin,cout] -> [9,cin,cout]
        return w.reshape(9, w.shape[2], w.shape[3])

    def row(b):   # [c] -> [1,c]
        return b.reshape(1, -1)

    weights = [
        tap(params["conv_in_w"]),    row(params["conv_in_b"]),
        tap(params["down_w"]),       row(params["down_b"]),
        tap(params["mid0"]["c1_w"]), row(params["mid0"]["c1_b"]),
        tap(params["mid0"]["c2_w"]), row(params["mid0"]["c2_b"]),
        tap(params["mid1"]["c1_w"]), row(params["mid1"]["c1_b"]),
        tap(params["mid1"]["c2_w"]), row(params["mid1"]["c2_b"]),
        tap(params["mid2_w"]),       row(params["mid2_b"]),
        params["head_w1"],           row(params["head_b1"]),
        params["head_w2"],           row(params["head_b2"]),
    ]

    # Whole-array blocks with constant index maps: fetched into VMEM once
    # (block index never changes), double-buffer reservation is negligible.
    def const_spec(a):
        nd = a.ndim
        return pl.BlockSpec(a.shape, lambda b, _nd=nd: (0,) * _nd)

    in_specs = [
        pl.BlockSpec((1, H, W, in_ch), lambda b: (b, 0, 0, 0)),
        pl.BlockSpec((1, 1, C2), lambda b: (b, 0, 0)),
        pl.BlockSpec((1, 1, C2), lambda b: (b, 0, 0)),
        const_spec(pool_mat),
    ] + [const_spec(w) for w in weights]

    kernel = functools.partial(_fused_forward_kernel,
                               H=H, W=W, in_ch=in_ch, C1=C1, C2=C2)

    out = pl.pallas_call(
        kernel,
        out_shape=jax.ShapeDtypeStruct((B, 1, 1), jnp.float32),
        grid=(B,),
        in_specs=in_specs,
        out_specs=pl.BlockSpec((1, 1, 1), lambda b: (b, 0, 0)),
        scratch_shapes=[
            pltpu.VMEM((H + 2, W + 2, in_ch), jnp.float32),   # padded input
            pltpu.VMEM((H + 2, W + 2, C1), jnp.float32),      # padded conv_in out
            pltpu.VMEM((Hm + 2, Wm + 2, C2), jnp.float32),    # padded mid acts
        ],
        compiler_params=pltpu.CompilerParams(
            dimension_semantics=("parallel",)),
    )(x, tp0, tp1, pool_mat, *weights)
    return out[:, 0, 0]


# ----------------------------------------------------------------------------
# Pure-JAX reference (for correctness check)
# ----------------------------------------------------------------------------
def _conv_ref(x, w, b, pre_silu=False, post_silu=False):
    if pre_silu:
        x = jax.nn.silu(x)
    y = lax.conv_general_dilated(x, w, (1, 1), "SAME",
                                 dimension_numbers=("NHWC", "HWIO", "NHWC")) + b
    if post_silu:
        y = jax.nn.silu(y)
    return y


def _res_block_ref(x, temb, p):
    h = _conv_ref(x, p["c1_w"], p["c1_b"], pre_silu=True)
    h = h + (jax.nn.silu(temb) @ p["t_w"] + p["t_b"])[:, None, None, :]
    h = _conv_ref(h, p["c2_w"], p["c2_b"], pre_silu=True)
    return x + h


def _avg_pool_2x2(x):
    B, H, W, C = x.shape
    return x.reshape(B, H // 2, 2, W // 2, 2, C).mean(axis=(2, 4))


def forward_ref(params, x_nchw, t):
    x = jnp.transpose(x_nchw, (0, 2, 3, 1)).astype(jnp.float32)
    ch = params["conv_in_w"].shape[-1]
    temb = sinusoidal_embedding(t, ch)
    temb = jax.nn.silu(temb @ params["linear1_w"] + params["linear1_b"])
    temb = temb @ params["linear2_w"] + params["linear2_b"]
    h = _conv_ref(x, params["conv_in_w"], params["conv_in_b"])
    h = _conv_ref(h, params["down_w"], params["down_b"], post_silu=True)
    h = _avg_pool_2x2(h)
    h = _res_block_ref(h, temb, params["mid0"])
    h = _res_block_ref(h, temb, params["mid1"])
    feats = _conv_ref(h, params["mid2_w"], params["mid2_b"])
    pooled = feats.mean(axis=(1, 2))
    pooled = pooled / (jnp.linalg.norm(pooled, axis=1, keepdims=True) + 1e-6)
    hh = jnp.maximum(pooled @ params["head_w1"] + params["head_b1"], 0.0)
    return (hh @ params["head_w2"] + params["head_b2"])[:, 0]


# ----------------------------------------------------------------------------
# Parameter setup
# ----------------------------------------------------------------------------
def init_params(key, *, ch, in_ch, hidden):
    ks = iter(jax.random.split(key, 32))

    def conv_w(k, cin, cout):
        return jax.random.normal(k, (3, 3, cin, cout), jnp.float32) / math.sqrt(9 * cin)

    def lin_w(k, cin, cout):
        return jax.random.normal(k, (cin, cout), jnp.float32) / math.sqrt(cin)

    def small_b(k, c):
        return 0.01 * jax.random.normal(k, (c,), jnp.float32)

    temb_dim = 4 * ch
    p = {}
    # unet.linear1 / unet.linear2 are explicitly zeroed in LinearRewardModel.__init__
    p["linear1_w"] = jnp.zeros((ch, temb_dim), jnp.float32)
    p["linear1_b"] = jnp.zeros((temb_dim,), jnp.float32)
    p["linear2_w"] = jnp.zeros((temb_dim, temb_dim), jnp.float32)
    p["linear2_b"] = jnp.zeros((temb_dim,), jnp.float32)

    p["conv_in_w"] = conv_w(next(ks), in_ch, ch)
    p["conv_in_b"] = small_b(next(ks), ch)
    p["down_w"] = conv_w(next(ks), ch, 2 * ch)
    p["down_b"] = small_b(next(ks), 2 * ch)
    for name in ("mid0", "mid1"):
        p[name] = {
            "c1_w": conv_w(next(ks), 2 * ch, 2 * ch),
            "c1_b": small_b(next(ks), 2 * ch),
            "t_w": lin_w(next(ks), temb_dim, 2 * ch),
            "t_b": small_b(next(ks), 2 * ch),
            "c2_w": conv_w(next(ks), 2 * ch, 2 * ch),
            "c2_b": small_b(next(ks), 2 * ch),
        }
    p["mid2_w"] = conv_w(next(ks), 2 * ch, 2 * ch)
    p["mid2_b"] = small_b(next(ks), 2 * ch)
    p["head_w1"] = lin_w(next(ks), 2 * ch, hidden)
    p["head_b1"] = small_b(next(ks), hidden)
    p["head_w2"] = lin_w(next(ks), hidden, 1)
    p["head_b2"] = small_b(next(ks), 1)
    return p


if __name__ == "__main__":
    key = jax.random.PRNGKey(0)
    kx, kp = jax.random.split(key)
    B, in_ch, H, W, ch, hidden = 2, 1, 16, 16, 32, 64
    x = jax.random.normal(kx, (B, in_ch, H, W), jnp.float32)      # NCHW, like PyTorch
    t = jnp.array([3, 7], dtype=jnp.int32)
    params = init_params(kp, ch=ch, in_ch=in_ch, hidden=hidden)

    fwd = jax.jit(forward_pallas)
    out = jax.block_until_ready(fwd(params, x, t))
    ref = jax.block_until_ready(forward_ref(params, x, t))

    assert out.shape == (B,), out.shape
    assert jnp.allclose(out, ref, rtol=1e-3, atol=1e-3), (out, ref)
    print("KERNEL_OK")
</pallas_src>

<mosaic_0001>
module attributes {stable_mosaic.version = 11 : i64} {
  func.func @_fused_forward_kernel(%arg0: i32, %arg1: memref<1x16x16x1xf32, #tpu.memory_space<vmem>>, %arg2: memref<1x1x64xf32, #tpu.memory_space<vmem>>, %arg3: memref<1x1x64xf32, #tpu.memory_space<vmem>>, %arg4: memref<64x256xf32, #tpu.memory_space<vmem>>, %arg5: memref<9x1x32xf32, #tpu.memory_space<vmem>>, %arg6: memref<1x32xf32, #tpu.memory_space<vmem>>, %arg7: memref<9x32x64xf32, #tpu.memory_space<vmem>>, %arg8: memref<1x64xf32, #tpu.memory_space<vmem>>, %arg9: memref<9x64x64xf32, #tpu.memory_space<vmem>>, %arg10: memref<1x64xf32, #tpu.memory_space<vmem>>, %arg11: memref<9x64x64xf32, #tpu.memory_space<vmem>>, %arg12: memref<1x64xf32, #tpu.memory_space<vmem>>, %arg13: memref<9x64x64xf32, #tpu.memory_space<vmem>>, %arg14: memref<1x64xf32, #tpu.memory_space<vmem>>, %arg15: memref<9x64x64xf32, #tpu.memory_space<vmem>>, %arg16: memref<1x64xf32, #tpu.memory_space<vmem>>, %arg17: memref<9x64x64xf32, #tpu.memory_space<vmem>>, %arg18: memref<1x64xf32, #tpu.memory_space<vmem>>, %arg19: memref<64x64xf32, #tpu.memory_space<vmem>>, %arg20: memref<1x64xf32, #tpu.memory_space<vmem>>, %arg21: memref<64x1xf32, #tpu.memory_space<vmem>>, %arg22: memref<1x1xf32, #tpu.memory_space<vmem>>, %arg23: memref<1x1x1xf32, #tpu.memory_space<vmem>>, %arg24: memref<18x18x1xf32, #tpu.memory_space<vmem>>, %arg25: memref<18x18x32xf32, #tpu.memory_space<vmem>>, %arg26: memref<10x10x64xf32, #tpu.memory_space<vmem>>) attributes {dimension_semantics = [#tpu.dimension_semantics<parallel>], iteration_bounds = array<i64: 2>, scalar_prefetch = 0 : i64, scratch_operands = 3 : i64, tpu.core_type = #tpu.core_type<tc>, window_params = [{transform_indices = @transform_0, window_bounds = array<i64: 1, 16, 16, 1>}, {transform_indices = @transform_1, window_bounds = array<i64: 1, 1, 64>}, {transform_indices = @transform_2, window_bounds = array<i64: 1, 1, 64>}, {pipeline_mode = #tpu.pipeline_mode<synchronous>, transform_indices = @transform_3, window_bounds = array<i64: 64, 256>}, {pipeline_mode = #tpu.pipeline_mode<synchronous>, transform_indices = @transform_4, window_bounds = array<i64: 9, 1, 32>}, {pipeline_mode = #tpu.pipeline_mode<synchronous>, transform_indices = @transform_5, window_bounds = array<i64: 1, 32>}, {pipeline_mode = #tpu.pipeline_mode<synchronous>, transform_indices = @transform_6, window_bounds = array<i64: 9, 32, 64>}, {pipeline_mode = #tpu.pipeline_mode<synchronous>, transform_indices = @transform_7, window_bounds = array<i64: 1, 64>}, {pipeline_mode = #tpu.pipeline_mode<synchronous>, transform_indices = @transform_8, window_bounds = array<i64: 9, 64, 64>}, {pipeline_mode = #tpu.pipeline_mode<synchronous>, transform_indices = @transform_9, window_bounds = array<i64: 1, 64>}, {pipeline_mode = #tpu.pipeline_mode<synchronous>, transform_indices = @transform_10, window_bounds = array<i64: 9, 64, 64>}, {pipeline_mode = #tpu.pipeline_mode<synchronous>, transform_indices = @transform_11, window_bounds = array<i64: 1, 64>}, {pipeline_mode = #tpu.pipeline_mode<synchronous>, transform_indices = @transform_12, window_bounds = array<i64: 9, 64, 64>}, {pipeline_mode = #tpu.pipeline_mode<synchronous>, transform_indices = @transform_13, window_bounds = array<i64: 1, 64>}, {pipeline_mode = #tpu.pipeline_mode<synchronous>, transform_indices = @transform_14, window_bounds = array<i64: 9, 64, 64>}, {pipeline_mode = #tpu.pipeline_mode<synchronous>, transform_indices = @transform_15, window_bounds = array<i64: 1, 64>}, {pipeline_mode = #tpu.pipeline_mode<synchronous>, transform_indices = @transform_16, window_bounds = array<i64: 9, 64, 64>}, {pipeline_mode = #tpu.pipeline_mode<synchronous>, transform_indices = @transform_17, window_bounds = array<i64: 1, 64>}, {pipeline_mode = #tpu.pipeline_mode<synchronous>, transform_indices = @transform_18, window_bounds = array<i64: 64, 64>}, {pipeline_mode = #tpu.pipeline_mode<synchronous>, transform_indices = @transform_19, window_bounds = array<i64: 1, 64>}, {pipeline_mode = #tpu.pipeline_mode<synchronous>, transform_indices = @transform_20, window_bounds = array<i64: 64, 1>}, {pipeline_mode = #tpu.pipeline_mode<synchronous>, transform_indices = @transform_21, window_bounds = array<i64: 1, 1>}, {transform_indices = @transform_22, window_bounds = array<i64: 1, 1, 1>}]} {
    %cst = arith.constant 0.000000e+00 : f32
    %0 = vector.broadcast %cst : f32 to vector<18x18x1xf32>
    %c0 = arith.constant 0 : index
    %c0_0 = arith.constant 0 : index
    %c0_1 = arith.constant 0 : index
    %1 = vector.load %arg24[%c0, %c0_0, %c0_1] : memref<18x18x1xf32, #tpu.memory_space<vmem>>, vector<18x18x1xf32>
    tpu.vector_store %arg24[%c0, %c0_0, %c0_1], %0 {strides = array<i32>} : memref<18x18x1xf32, #tpu.memory_space<vmem>>, vector<18x18x1xf32>,
    %cst_2 = arith.constant 0.000000e+00 : f32
    %2 = vector.broadcast %cst_2 : f32 to vector<18x18x32xf32>
    %c0_3 = arith.constant 0 : index
    %c0_4 = arith.constant 0 : index
    %c0_5 = arith.constant 0 : index
    %3 = vector.load %arg25[%c0_3, %c0_4, %c0_5] : memref<18x18x32xf32, #tpu.memory_space<vmem>>, vector<18x18x32xf32>
    tpu.vector_store %arg25[%c0_3, %c0_4, %c0_5], %2 {strides = array<i32>} : memref<18x18x32xf32, #tpu.memory_space<vmem>>, vector<18x18x32xf32>,
    %cst_6 = arith.constant 0.000000e+00 : f32
    %4 = vector.broadcast %cst_6 : f32 to vector<10x10x64xf32>
    %c0_7 = arith.constant 0 : index
    %c0_8 = arith.constant 0 : index
    %c0_9 = arith.constant 0 : index
    %5 = vector.load %arg26[%c0_7, %c0_8, %c0_9] : memref<10x10x64xf32, #tpu.memory_space<vmem>>, vector<10x10x64xf32>
    tpu.vector_store %arg26[%c0_7, %c0_8, %c0_9], %4 {strides = array<i32>} : memref<10x10x64xf32, #tpu.memory_space<vmem>>, vector<10x10x64xf32>,
    %c0_10 = arith.constant 0 : index
    %c0_11 = arith.constant 0 : index
    %c0_12 = arith.constant 0 : index
    %c0_13 = arith.constant 0 : index
    %6 = vector.load %arg1[%c0_10, %c0_11, %c0_12, %c0_13] : memref<1x16x16x1xf32, #tpu.memory_space<vmem>>, vector<1x16x16x1xf32>
    %7 = vector.shape_cast %6 : vector<1x16x16x1xf32> to vector<16x16x1xf32>
    %c1 = arith.constant 1 : index
    %c1_14 = arith.constant 1 : index
    %c0_15 = arith.constant 0 : index
    %8 = vector.load %arg24[%c1, %c1_14, %c0_15] : memref<18x18x1xf32, #tpu.memory_space<vmem>>, vector<16x16x1xf32>
    tpu.vector_store %arg24[%c1, %c1_14, %c0_15], %7 {strides = array<i32>} : memref<18x18x1xf32, #tpu.memory_space<vmem>>, vector<16x16x1xf32>,
    %c0_16 = arith.constant 0 : index
    %c0_17 = arith.constant 0 : index
    %c0_18 = arith.constant 0 : index
    %9 = vector.load %arg24[%c0_16, %c0_17, %c0_18] : memref<18x18x1xf32, #tpu.memory_space<vmem>>, vector<18x18x1xf32>
    %cst_19 = arith.constant 0.000000e+00 : f32
    %10 = vector.broadcast %cst_19 : f32 to vector<16x16x32xf32>
    %11 = vector.extract_strided_slice %9 {offsets = [0, 0, 0], sizes = [16, 16, 1], strides = [1, 1, 1]} : vector<18x18x1xf32> to vector<16x16x1xf32>
    %c0_20 = arith.constant 0 : index
    %c0_21 = arith.constant 0 : index
    %c0_22 = arith.constant 0 : index
    %12 = vector.load %arg5[%c0_20, %c0_21, %c0_22] : memref<9x1x32xf32, #tpu.memory_space<vmem>>, vector<1x1x32xf32>
    %13 = vector.shape_cast %12 : vector<1x1x32xf32> to vector<1x32xf32>
    %14 = vector.shape_cast %13 : vector<1x32xf32> to vector<1x1x32xf32>
    %15 = vector.broadcast %11 : vector<16x16x1xf32> to vector<16x16x32xf32>
    %16 = vector.broadcast %14 : vector<1x1x32xf32> to vector<16x16x32xf32>
    %17 = arith.mulf %15, %16 : vector<16x16x32xf32>
    %18 = arith.addf %10, %17 : vector<16x16x32xf32>
    %19 = vector.extract_strided_slice %9 {offsets = [0, 1, 0], sizes = [16, 16, 1], strides = [1, 1, 1]} : vector<18x18x1xf32> to vector<16x16x1xf32>
    %c1_23 = arith.constant 1 : index
    %c0_24 = arith.constant 0 : index
    %c0_25 = arith.constant 0 : index
    %20 = vector.load %arg5[%c1_23, %c0_24, %c0_25] : memref<9x1x32xf32, #tpu.memory_space<vmem>>, vector<1x1x32xf32>
    %21 = vector.shape_cast %20 : vector<1x1x32xf32> to vector<1x32xf32>
    %22 = vector.shape_cast %21 : vector<1x32xf32> to vector<1x1x32xf32>
    %23 = vector.broadcast %19 : vector<16x16x1xf32> to vector<16x16x32xf32>
    %24 = vector.broadcast %22 : vector<1x1x32xf32> to vector<16x16x32xf32>
    %25 = arith.mulf %23, %24 : vector<16x16x32xf32>
    %26 = arith.addf %18, %25 : vector<16x16x32xf32>
    %27 = vector.extract_strided_slice %9 {offsets = [0, 2, 0], sizes = [16, 16, 1], strides = [1, 1, 1]} : vector<18x18x1xf32> to vector<16x16x1xf32>
    %c2 = arith.constant 2 : index
    %c0_26 = arith.constant 0 : index
    %c0_27 = arith.constant 0 : index
    %28 = vector.load %arg5[%c2, %c0_26, %c0_27] : memref<9x1x32xf32, #tpu.memory_space<vmem>>, vector<1x1x32xf32>
    %29 = vector.shape_cast %28 : vector<1x1x32xf32> to vector<1x32xf32>
    %30 = vector.shape_cast %29 : vector<1x32xf32> to vector<1x1x32xf32>
    %31 = vector.broadcast %27 : vector<16x16x1xf32> to vector<16x16x32xf32>
    %32 = vector.broadcast %30 : vector<1x1x32xf32> to vector<16x16x32xf32>
    %33 = arith.mulf %31, %32 : vector<16x16x32xf32>
    %34 = arith.addf %26, %33 : vector<16x16x32xf32>
    %35 = vector.extract_strided_slice %9 {offsets = [1, 0, 0], sizes = [16, 16, 1], strides = [1, 1, 1]} : vector<18x18x1xf32> to vector<16x16x1xf32>
    %c3 = arith.constant 3 : index
    %c0_28 = arith.constant 0 : index
    %c0_29 = arith.constant 0 : index
    %36 = vector.load %arg5[%c3, %c0_28, %c0_29] : memref<9x1x32xf32, #tpu.memory_space<vmem>>, vector<1x1x32xf32>
    %37 = vector.shape_cast %36 : vector<1x1x32xf32> to vector<1x32xf32>
    %38 = vector.shape_cast %37 : vector<1x32xf32> to vector<1x1x32xf32>
    %39 = vector.broadcast %35 : vector<16x16x1xf32> to vector<16x16x32xf32>
    %40 = vector.broadcast %38 : vector<1x1x32xf32> to vector<16x16x32xf32>
    %41 = arith.mulf %39, %40 : vector<16x16x32xf32>
    %42 = arith.addf %34, %41 : vector<16x16x32xf32>
    %43 = vector.extract_strided_slice %9 {offsets = [1, 1, 0], sizes = [16, 16, 1], strides = [1, 1, 1]} : vector<18x18x1xf32> to vector<16x16x1xf32>
    %c4 = arith.constant 4 : index
    %c0_30 = arith.constant 0 : index
    %c0_31 = arith.constant 0 : index
    %44 = vector.load %arg5[%c4, %c0_30, %c0_31] : memref<9x1x32xf32, #tpu.memory_space<vmem>>, vector<1x1x32xf32>
    %45 = vector.shape_cast %44 : vector<1x1x32xf32> to vector<1x32xf32>
    %46 = vector.shape_cast %45 : vector<1x32xf32> to vector<1x1x32xf32>
    %47 = vector.broadcast %43 : vector<16x16x1xf32> to vector<16x16x32xf32>
    %48 = vector.broadcast %46 : vector<1x1x32xf32> to vector<16x16x32xf32>
    %49 = arith.mulf %47, %48 : vector<16x16x32xf32>
    %50 = arith.addf %42, %49 : vector<16x16x32xf32>
    %51 = vector.extract_strided_slice %9 {offsets = [1, 2, 0], sizes = [16, 16, 1], strides = [1, 1, 1]} : vector<18x18x1xf32> to vector<16x16x1xf32>
    %c5 = arith.constant 5 : index
    %c0_32 = arith.constant 0 : index
    %c0_33 = arith.constant 0 : index
    %52 = vector.load %arg5[%c5, %c0_32, %c0_33] : memref<9x1x32xf32, #tpu.memory_space<vmem>>, vector<1x1x32xf32>
    %53 = vector.shape_cast %52 : vector<1x1x32xf32> to vector<1x32xf32>
    %54 = vector.shape_cast %53 : vector<1x32xf32> to vector<1x1x32xf32>
    %55 = vector.broadcast %51 : vector<16x16x1xf32> to vector<16x16x32xf32>
    %56 = vector.broadcast %54 : vector<1x1x32xf32> to vector<16x16x32xf32>
    %57 = arith.mulf %55, %56 : vector<16x16x32xf32>
    %58 = arith.addf %50, %57 : vector<16x16x32xf32>
    %59 = vector.extract_strided_slice %9 {offsets = [2, 0, 0], sizes = [16, 16, 1], strides = [1, 1, 1]} : vector<18x18x1xf32> to vector<16x16x1xf32>
    %c6 = arith.constant 6 : index
    %c0_34 = arith.constant 0 : index
    %c0_35 = arith.constant 0 : index
    %60 = vector.load %arg5[%c6, %c0_34, %c0_35] : memref<9x1x32xf32, #tpu.memory_space<vmem>>, vector<1x1x32xf32>
    %61 = vector.shape_cast %60 : vector<1x1x32xf32> to vector<1x32xf32>
    %62 = vector.shape_cast %61 : vector<1x32xf32> to vector<1x1x32xf32>
    %63 = vector.broadcast %59 : vector<16x16x1xf32> to vector<16x16x32xf32>
    %64 = vector.broadcast %62 : vector<1x1x32xf32> to vector<16x16x32xf32>
    %65 = arith.mulf %63, %64 : vector<16x16x32xf32>
    %66 = arith.addf %58, %65 : vector<16x16x32xf32>
    %67 = vector.extract_strided_slice %9 {offsets = [2, 1, 0], sizes = [16, 16, 1], strides = [1, 1, 1]} : vector<18x18x1xf32> to vector<16x16x1xf32>
    %c7 = arith.constant 7 : index
    %c0_36 = arith.constant 0 : index
    %c0_37 = arith.constant 0 : index
    %68 = vector.load %arg5[%c7, %c0_36, %c0_37] : memref<9x1x32xf32, #tpu.memory_space<vmem>>, vector<1x1x32xf32>
    %69 = vector.shape_cast %68 : vector<1x1x32xf32> to vector<1x32xf32>
    %70 = vector.shape_cast %69 : vector<1x32xf32> to vector<1x1x32xf32>
    %71 = vector.broadcast %67 : vector<16x16x1xf32> to vector<16x16x32xf32>
    %72 = vector.broadcast %70 : vector<1x1x32xf32> to vector<16x16x32xf32>
    %73 = arith.mulf %71, %72 : vector<16x16x32xf32>
    %74 = arith.addf %66, %73 : vector<16x16x32xf32>
    %75 = vector.extract_strided_slice %9 {offsets = [2, 2, 0], sizes = [16, 16, 1], strides = [1, 1, 1]} : vector<18x18x1xf32> to vector<16x16x1xf32>
    %c8 = arith.constant 8 : index
    %c0_38 = arith.constant 0 : index
    %c0_39 = arith.constant 0 : index
    %76 = vector.load %arg5[%c8, %c0_38, %c0_39] : memref<9x1x32xf32, #tpu.memory_space<vmem>>, vector<1x1x32xf32>
    %77 = vector.shape_cast %76 : vector<1x1x32xf32> to vector<1x32xf32>
    %78 = vector.shape_cast %77 : vector<1x32xf32> to vector<1x1x32xf32>
    %79 = vector.broadcast %75 : vector<16x16x1xf32> to vector<16x16x32xf32>
    %80 = vector.broadcast %78 : vector<1x1x32xf32> to vector<16x16x32xf32>
    %81 = arith.mulf %79, %80 : vector<16x16x32xf32>
    %82 = arith.addf %74, %81 : vector<16x16x32xf32>
    %83 = vector.shape_cast %82 : vector<16x16x32xf32> to vector<256x32xf32>
    %c0_40 = arith.constant 0 : index
    %c0_41 = arith.constant 0 : index
    %84 = vector.load %arg6[%c0_40, %c0_41] : memref<1x32xf32, #tpu.memory_space<vmem>>, vector<1x32xf32>
    %85 = vector.broadcast %84 : vector<1x32xf32> to vector<256x32xf32>
    %86 = arith.addf %83, %85 : vector<256x32xf32>
    %87 = vector.shape_cast %86 : vector<256x32xf32> to vector<16x16x32xf32>
    %c1_42 = arith.constant 1 : index
    %c1_43 = arith.constant 1 : index
    %c0_44 = arith.constant 0 : index
    %88 = vector.load %arg25[%c1_42, %c1_43, %c0_44] : memref<18x18x32xf32, #tpu.memory_space<vmem>>, vector<16x16x32xf32>
    tpu.vector_store %arg25[%c1_42, %c1_43, %c0_44], %87 {strides = array<i32>} : memref<18x18x32xf32, #tpu.memory_space<vmem>>, vector<16x16x32xf32>,
    %c0_45 = arith.constant 0 : index
    %c0_46 = arith.constant 0 : index
    %c0_47 = arith.constant 0 : index
    %89 = vector.load %arg25[%c0_45, %c0_46, %c0_47] : memref<18x18x32xf32, #tpu.memory_space<vmem>>, vector<18x18x32xf32>
    %cst_48 = arith.constant 0.000000e+00 : f32
    %90 = vector.broadcast %cst_48 : f32 to vector<256x64xf32>
    %91 = vector.extract_strided_slice %89 {offsets = [0, 0, 0], sizes = [16, 16, 32], strides = [1, 1, 1]} : vector<18x18x32xf32> to vector<16x16x32xf32>
    %92 = vector.shape_cast %91 : vector<16x16x32xf32> to vector<256x32xf32>
    %c0_49 = arith.constant 0 : index
    %c0_50 = arith.constant 0 : index
    %c0_51 = arith.constant 0 : index
    %93 = vector.load %arg7[%c0_49, %c0_50, %c0_51] : memref<9x32x64xf32, #tpu.memory_space<vmem>>, vector<1x32x64xf32>
    %94 = vector.shape_cast %93 : vector<1x32x64xf32> to vector<32x64xf32>
    %cst_52 = arith.constant dense<0.000000e+00> : vector<256x64xf32>
    %95 = tpu.matmul %92, %94, %cst_52 {dimension_numbers = #tpu.dot_dimension_numbers<[1], [0], [0], [1], [0, 0, 1, 1], [], []>} : vector<256x32xf32>, vector<32x64xf32>, vector<256x64xf32> -> vector<256x64xf32>
    %96 = arith.addf %90, %95 : vector<256x64xf32>
    %97 = vector.extract_strided_slice %89 {offsets = [0, 1, 0], sizes = [16, 16, 32], strides = [1, 1, 1]} : vector<18x18x32xf32> to vector<16x16x32xf32>
    %98 = vector.shape_cast %97 : vector<16x16x32xf32> to vector<256x32xf32>
    %c1_53 = arith.constant 1 : index
    %c0_54 = arith.constant 0 : index
    %c0_55 = arith.constant 0 : index
    %99 = vector.load %arg7[%c1_53, %c0_54, %c0_55] : memref<9x32x64xf32, #tpu.memory_space<vmem>>, vector<1x32x64xf32>
    %100 = vector.shape_cast %99 : vector<1x32x64xf32> to vector<32x64xf32>
    %cst_56 = arith.constant dense<0.000000e+00> : vector<256x64xf32>
    %101 = tpu.matmul %98, %100, %cst_56 {dimension_numbers = #tpu.dot_dimension_numbers<[1], [0], [0], [1], [0, 0, 1, 1], [], []>} : vector<256x32xf32>, vector<32x64xf32>, vector<256x64xf32> -> vector<256x64xf32>
    %102 = arith.addf %96, %101 : vector<256x64xf32>
    %103 = vector.extract_strided_slice %89 {offsets = [0, 2, 0], sizes = [16, 16, 32], strides = [1, 1, 1]} : vector<18x18x32xf32> to vector<16x16x32xf32>
    %104 = vector.shape_cast %103 : vector<16x16x32xf32> to vector<256x32xf32>
    %c2_57 = arith.constant 2 : index
    %c0_58 = arith.constant 0 : index
    %c0_59 = arith.constant 0 : index
    %105 = vector.load %arg7[%c2_57, %c0_58, %c0_59] : memref<9x32x64xf32, #tpu.memory_space<vmem>>, vector<1x32x64xf32>
    %106 = vector.shape_cast %105 : vector<1x32x64xf32> to vector<32x64xf32>
    %cst_60 = arith.constant dense<0.000000e+00> : vector<256x64xf32>
    %107 = tpu.matmul %104, %106, %cst_60 {dimension_numbers = #tpu.dot_dimension_numbers<[1], [0], [0], [1], [0, 0, 1, 1], [], []>} : vector<256x32xf32>, vector<32x64xf32>, vector<256x64xf32> -> vector<256x64xf32>
    %108 = arith.addf %102, %107 : vector<256x64xf32>
    %109 = vector.extract_strided_slice %89 {offsets = [1, 0, 0], sizes = [16, 16, 32], strides = [1, 1, 1]} : vector<18x18x32xf32> to vector<16x16x32xf32>
    %110 = vector.shape_cast %109 : vector<16x16x32xf32> to vector<256x32xf32>
    %c3_61 = arith.constant 3 : index
    %c0_62 = arith.constant 0 : index
    %c0_63 = arith.constant 0 : index
    %111 = vector.load %arg7[%c3_61, %c0_62, %c0_63] : memref<9x32x64xf32, #tpu.memory_space<vmem>>, vector<1x32x64xf32>
    %112 = vector.shape_cast %111 : vector<1x32x64xf32> to vector<32x64xf32>
    %cst_64 = arith.constant dense<0.000000e+00> : vector<256x64xf32>
    %113 = tpu.matmul %110, %112, %cst_64 {dimension_numbers = #tpu.dot_dimension_numbers<[1], [0], [0], [1], [0, 0, 1, 1], [], []>} : vector<256x32xf32>, vector<32x64xf32>, vector<256x64xf32> -> vector<256x64xf32>
    %114 = arith.addf %108, %113 : vector<256x64xf32>
    %115 = vector.extract_strided_slice %89 {offsets = [1, 1, 0], sizes = [16, 16, 32], strides = [1, 1, 1]} : vector<18x18x32xf32> to vector<16x16x32xf32>
    %116 = vector.shape_cast %115 : vector<16x16x32xf32> to vector<256x32xf32>
    %c4_65 = arith.constant 4 : index
    %c0_66 = arith.constant 0 : index
    %c0_67 = arith.constant 0 : index
    %117 = vector.load %arg7[%c4_65, %c0_66, %c0_67] : memref<9x32x64xf32, #tpu.memory_space<vmem>>, vector<1x32x64xf32>
    %118 = vector.shape_cast %117 : vector<1x32x64xf32> to vector<32x64xf32>
    %cst_68 = arith.constant dense<0.000000e+00> : vector<256x64xf32>
    %119 = tpu.matmul %116, %118, %cst_68 {dimension_numbers = #tpu.dot_dimension_numbers<[1], [0], [0], [1], [0, 0, 1, 1], [], []>} : vector<256x32xf32>, vector<32x64xf32>, vector<256x64xf32> -> vector<256x64xf32>
    %120 = arith.addf %114, %119 : vector<256x64xf32>
    %121 = vector.extract_strided_slice %89 {offsets = [1, 2, 0], sizes = [16, 16, 32], strides = [1, 1, 1]} : vector<18x18x32xf32> to vector<16x16x32xf32>
    %122 = vector.shape_cast %121 : vector<16x16x32xf32> to vector<256x32xf32>
    %c5_69 = arith.constant 5 : index
    %c0_70 = arith.constant 0 : index
    %c0_71 = arith.constant 0 : index
    %123 = vector.load %arg7[%c5_69, %c0_70, %c0_71] : memref<9x32x64xf32, #tpu.memory_space<vmem>>, vector<1x32x64xf32>
    %124 = vector.shape_cast %123 : vector<1x32x64xf32> to vector<32x64xf32>
    %cst_72 = arith.constant dense<0.000000e+00> : vector<256x64xf32>
    %125 = tpu.matmul %122, %124, %cst_72 {dimension_numbers = #tpu.dot_dimension_numbers<[1], [0], [0], [1], [0, 0, 1, 1], [], []>} : vector<256x32xf32>, vector<32x64xf32>, vector<256x64xf32> -> vector<256x64xf32>
    %126 = arith.addf %120, %125 : vector<256x64xf32>
    %127 = vector.extract_strided_slice %89 {offsets = [2, 0, 0], sizes = [16, 16, 32], strides = [1, 1, 1]} : vector<18x18x32xf32> to vector<16x16x32xf32>
    %128 = vector.shape_cast %127 : vector<16x16x32xf32> to vector<256x32xf32>
    %c6_73 = arith.constant 6 : index
    %c0_74 = arith.constant 0 : index
    %c0_75 = arith.constant 0 : index
    %129 = vector.load %arg7[%c6_73, %c0_74, %c0_75] : memref<9x32x64xf32, #tpu.memory_space<vmem>>, vector<1x32x64xf32>
    %130 = vector.shape_cast %129 : vector<1x32x64xf32> to vector<32x64xf32>
    %cst_76 = arith.constant dense<0.000000e+00> : vector<256x64xf32>
    %131 = tpu.matmul %128, %130, %cst_76 {dimension_numbers = #tpu.dot_dimension_numbers<[1], [0], [0], [1], [0, 0, 1, 1], [], []>} : vector<256x32xf32>, vector<32x64xf32>, vector<256x64xf32> -> vector<256x64xf32>
    %132 = arith.addf %126, %131 : vector<256x64xf32>
    %133 = vector.extract_strided_slice %89 {offsets = [2, 1, 0], sizes = [16, 16, 32], strides = [1, 1, 1]} : vector<18x18x32xf32> to vector<16x16x32xf32>
    %134 = vector.shape_cast %133 : vector<16x16x32xf32> to vector<256x32xf32>
    %c7_77 = arith.constant 7 : index
    %c0_78 = arith.constant 0 : index
    %c0_79 = arith.constant 0 : index
    %135 = vector.load %arg7[%c7_77, %c0_78, %c0_79] : memref<9x32x64xf32, #tpu.memory_space<vmem>>, vector<1x32x64xf32>
    %136 = vector.shape_cast %135 : vector<1x32x64xf32> to vector<32x64xf32>
    %cst_80 = arith.constant dense<0.000000e+00> : vector<256x64xf32>
    %137 = tpu.matmul %134, %136, %cst_80 {dimension_numbers = #tpu.dot_dimension_numbers<[1], [0], [0], [1], [0, 0, 1, 1], [], []>} : vector<256x32xf32>, vector<32x64xf32>, vector<256x64xf32> -> vector<256x64xf32>
    %138 = arith.addf %132, %137 : vector<256x64xf32>
    %139 = vector.extract_strided_slice %89 {offsets = [2, 2, 0], sizes = [16, 16, 32], strides = [1, 1, 1]} : vector<18x18x32xf32> to vector<16x16x32xf32>
    %140 = vector.shape_cast %139 : vector<16x16x32xf32> to vector<256x32xf32>
    %c8_81 = arith.constant 8 : index
    %c0_82 = arith.constant 0 : index
    %c0_83 = arith.constant 0 : index
    %141 = vector.load %arg7[%c8_81, %c0_82, %c0_83] : memref<9x32x64xf32, #tpu.memory_space<vmem>>, vector<1x32x64xf32>
    %142 = vector.shape_cast %141 : vector<1x32x64xf32> to vector<32x64xf32>
    %cst_84 = arith.constant dense<0.000000e+00> : vector<256x64xf32>
    %143 = tpu.matmul %140, %142, %cst_84 {dimension_numbers = #tpu.dot_dimension_numbers<[1], [0], [0], [1], [0, 0, 1, 1], [], []>} : vector<256x32xf32>, vector<32x64xf32>, vector<256x64xf32> -> vector<256x64xf32>
    %144 = arith.addf %138, %143 : vector<256x64xf32>
    %c0_85 = arith.constant 0 : index
    %c0_86 = arith.constant 0 : index
    %145 = vector.load %arg8[%c0_85, %c0_86] : memref<1x64xf32, #tpu.memory_space<vmem>>, vector<1x64xf32>
    %146 = vector.broadcast %145 : vector<1x64xf32> to vector<256x64xf32>
    %147 = arith.addf %144, %146 : vector<256x64xf32>
    %148 = arith.negf %147 : vector<256x64xf32>
    %149 = math.exp %148 : vector<256x64xf32>
    %cst_87 = arith.constant 1.000000e+00 : f32
    %150 = vector.broadcast %cst_87 : f32 to vector<256x64xf32>
    %151 = arith.addf %150, %149 : vector<256x64xf32>
    %152 = arith.divf %150, %151 : vector<256x64xf32>
    %153 = arith.mulf %147, %152 : vector<256x64xf32>
    %c0_88 = arith.constant 0 : index
    %c0_89 = arith.constant 0 : index
    %154 = vector.load %arg4[%c0_88, %c0_89] : memref<64x256xf32, #tpu.memory_space<vmem>>, vector<64x256xf32>
    %cst_90 = arith.constant dense<0.000000e+00> : vector<64x64xf32>
    %155 = tpu.matmul %154, %153, %cst_90 {dimension_numbers = #tpu.dot_dimension_numbers<[1], [0], [0], [1], [0, 0, 1, 1], [], []>} : vector<64x256xf32>, vector<256x64xf32>, vector<64x64xf32> -> vector<64x64xf32>
    %156 = arith.negf %155 : vector<64x64xf32>
    %157 = math.exp %156 : vector<64x64xf32>
    %cst_91 = arith.constant 1.000000e+00 : f32
    %158 = vector.broadcast %cst_91 : f32 to vector<64x64xf32>
    %159 = arith.addf %158, %157 : vector<64x64xf32>
    %160 = arith.divf %158, %159 : vector<64x64xf32>
    %161 = arith.mulf %155, %160 : vector<64x64xf32>
    %162 = vector.shape_cast %161 : vector<64x64xf32> to vector<8x8x64xf32>
    %c1_92 = arith.constant 1 : index
    %c1_93 = arith.constant 1 : index
    %c0_94 = arith.constant 0 : index
    %163 = vector.load %arg26[%c1_92, %c1_93, %c0_94] : memref<10x10x64xf32, #tpu.memory_space<vmem>>, vector<8x8x64xf32>
    tpu.vector_store %arg26[%c1_92, %c1_93, %c0_94], %162 {strides = array<i32>} : memref<10x10x64xf32, #tpu.memory_space<vmem>>, vector<8x8x64xf32>,
    %c0_95 = arith.constant 0 : index
    %c0_96 = arith.constant 0 : index
    %c0_97 = arith.constant 0 : index
    %164 = vector.load %arg26[%c0_95, %c0_96, %c0_97] : memref<10x10x64xf32, #tpu.memory_space<vmem>>, vector<10x10x64xf32>
    %cst_98 = arith.constant 0.000000e+00 : f32
    %165 = vector.broadcast %cst_98 : f32 to vector<64x64xf32>
    %166 = vector.extract_strided_slice %164 {offsets = [0, 0, 0], sizes = [8, 8, 64], strides = [1, 1, 1]} : vector<10x10x64xf32> to vector<8x8x64xf32>
    %167 = vector.shape_cast %166 : vector<8x8x64xf32> to vector<64x64xf32>
    %c0_99 = arith.constant 0 : index
    %c0_100 = arith.constant 0 : index
    %c0_101 = arith.constant 0 : index
    %168 = vector.load %arg9[%c0_99, %c0_100, %c0_101] : memref<9x64x64xf32, #tpu.memory_space<vmem>>, vector<1x64x64xf32>
    %169 = vector.shape_cast %168 : vector<1x64x64xf32> to vector<64x64xf32>
    %cst_102 = arith.constant dense<0.000000e+00> : vector<64x64xf32>
    %170 = tpu.matmul %167, %169, %cst_102 {dimension_numbers = #tpu.dot_dimension_numbers<[1], [0], [0], [1], [0, 0, 1, 1], [], []>} : vector<64x64xf32>, vector<64x64xf32>, vector<64x64xf32> -> vector<64x64xf32>
    %171 = arith.addf %165, %170 : vector<64x64xf32>
    %172 = vector.extract_strided_slice %164 {offsets = [0, 1, 0], sizes = [8, 8, 64], strides = [1, 1, 1]} : vector<10x10x64xf32> to vector<8x8x64xf32>
    %173 = vector.shape_cast %172 : vector<8x8x64xf32> to vector<64x64xf32>
    %c1_103 = arith.constant 1 : index
    %c0_104 = arith.constant 0 : index
    %c0_105 = arith.constant 0 : index
    %174 = vector.load %arg9[%c1_103, %c0_104, %c0_105] : memref<9x64x64xf32, #tpu.memory_space<vmem>>, vector<1x64x64xf32>
    %175 = vector.shape_cast %174 : vector<1x64x64xf32> to vector<64x64xf32>
    %cst_106 = arith.constant dense<0.000000e+00> : vector<64x64xf32>
    %176 = tpu.matmul %173, %175, %cst_106 {dimension_numbers = #tpu.dot_dimension_numbers<[1], [0], [0], [1], [0, 0, 1, 1], [], []>} : vector<64x64xf32>, vector<64x64xf32>, vector<64x64xf32> -> vector<64x64xf32>
    %177 = arith.addf %171, %176 : vector<64x64xf32>
    %178 = vector.extract_strided_slice %164 {offsets = [0, 2, 0], sizes = [8, 8, 64], strides = [1, 1, 1]} : vector<10x10x64xf32> to vector<8x8x64xf32>
    %179 = vector.shape_cast %178 : vector<8x8x64xf32> to vector<64x64xf32>
    %c2_107 = arith.constant 2 : index
    %c0_108 = arith.constant 0 : index
    %c0_109 = arith.constant 0 : index
    %180 = vector.load %arg9[%c2_107, %c0_108, %c0_109] : memref<9x64x64xf32, #tpu.memory_space<vmem>>, vector<1x64x64xf32>
    %181 = vector.shape_cast %180 : vector<1x64x64xf32> to vector<64x64xf32>
    %cst_110 = arith.constant dense<0.000000e+00> : vector<64x64xf32>
    %182 = tpu.matmul %179, %181, %cst_110 {dimension_numbers = #tpu.dot_dimension_numbers<[1], [0], [0], [1], [0, 0, 1, 1], [], []>} : vector<64x64xf32>, vector<64x64xf32>, vector<64x64xf32> -> vector<64x64xf32>
    %183 = arith.addf %177, %182 : vector<64x64xf32>
    %184 = vector.extract_strided_slice %164 {offsets = [1, 0, 0], sizes = [8, 8, 64], strides = [1, 1, 1]} : vector<10x10x64xf32> to vector<8x8x64xf32>
    %185 = vector.shape_cast %184 : vector<8x8x64xf32> to vector<64x64xf32>
    %c3_111 = arith.constant 3 : index
    %c0_112 = arith.constant 0 : index
    %c0_113 = arith.constant 0 : index
    %186 = vector.load %arg9[%c3_111, %c0_112, %c0_113] : memref<9x64x64xf32, #tpu.memory_space<vmem>>, vector<1x64x64xf32>
    %187 = vector.shape_cast %186 : vector<1x64x64xf32> to vector<64x64xf32>
    %cst_114 = arith.constant dense<0.000000e+00> : vector<64x64xf32>
    %188 = tpu.matmul %185, %187, %cst_114 {dimension_numbers = #tpu.dot_dimension_numbers<[1], [0], [0], [1], [0, 0, 1, 1], [], []>} : vector<64x64xf32>, vector<64x64xf32>, vector<64x64xf32> -> vector<64x64xf32>
    %189 = arith.addf %183, %188 : vector<64x64xf32>
    %190 = vector.extract_strided_slice %164 {offsets = [1, 1, 0], sizes = [8, 8, 64], strides = [1, 1, 1]} : vector<10x10x64xf32> to vector<8x8x64xf32>
    %191 = vector.shape_cast %190 : vector<8x8x64xf32> to vector<64x64xf32>
    %c4_115 = arith.constant 4 : index
    %c0_116 = arith.constant 0 : index
    %c0_117 = arith.constant 0 : index
    %192 = vector.load %arg9[%c4_115, %c0_116, %c0_117] : memref<9x64x64xf32, #tpu.memory_space<vmem>>, vector<1x64x64xf32>
    %193 = vector.shape_cast %192 : vector<1x64x64xf32> to vector<64x64xf32>
    %cst_118 = arith.constant dense<0.000000e+00> : vector<64x64xf32>
    %194 = tpu.matmul %191, %193, %cst_118 {dimension_numbers = #tpu.dot_dimension_numbers<[1], [0], [0], [1], [0, 0, 1, 1], [], []>} : vector<64x64xf32>, vector<64x64xf32>, vector<64x64xf32> -> vector<64x64xf32>
    %195 = arith.addf %189, %194 : vector<64x64xf32>
    %196 = vector.extract_strided_slice %164 {offsets = [1, 2, 0], sizes = [8, 8, 64], strides = [1, 1, 1]} : vector<10x10x64xf32> to vector<8x8x64xf32>
    %197 = vector.shape_cast %196 : vector<8x8x64xf32> to vector<64x64xf32>
    %c5_119 = arith.constant 5 : index
    %c0_120 = arith.constant 0 : index
    %c0_121 = arith.constant 0 : index
    %198 = vector.load %arg9[%c5_119, %c0_120, %c0_121] : memref<9x64x64xf32, #tpu.memory_space<vmem>>, vector<1x64x64xf32>
    %199 = vector.shape_cast %198 : vector<1x64x64xf32> to vector<64x64xf32>
    %cst_122 = arith.constant dense<0.000000e+00> : vector<64x64xf32>
    %200 = tpu.matmul %197, %199, %cst_122 {dimension_numbers = #tpu.dot_dimension_numbers<[1], [0], [0], [1], [0, 0, 1, 1], [], []>} : vector<64x64xf32>, vector<64x64xf32>, vector<64x64xf32> -> vector<64x64xf32>
    %201 = arith.addf %195, %200 : vector<64x64xf32>
    %202 = vector.extract_strided_slice %164 {offsets = [2, 0, 0], sizes = [8, 8, 64], strides = [1, 1, 1]} : vector<10x10x64xf32> to vector<8x8x64xf32>
    %203 = vector.shape_cast %202 : vector<8x8x64xf32> to vector<64x64xf32>
    %c6_123 = arith.constant 6 : index
    %c0_124 = arith.constant 0 : index
    %c0_125 = arith.constant 0 : index
    %204 = vector.load %arg9[%c6_123, %c0_124, %c0_125] : memref<9x64x64xf32, #tpu.memory_space<vmem>>, vector<1x64x64xf32>
    %205 = vector.shape_cast %204 : vector<1x64x64xf32> to vector<64x64xf32>
    %cst_126 = arith.constant dense<0.000000e+00> : vector<64x64xf32>
    %206 = tpu.matmul %203, %205, %cst_126 {dimension_numbers = #tpu.dot_dimension_numbers<[1], [0], [0], [1], [0, 0, 1, 1], [], []>} : vector<64x64xf32>, vector<64x64xf32>, vector<64x64xf32> -> vector<64x64xf32>
    %207 = arith.addf %201, %206 : vector<64x64xf32>
    %208 = vector.extract_strided_slice %164 {offsets = [2, 1, 0], sizes = [8, 8, 64], strides = [1, 1, 1]} : vector<10x10x64xf32> to vector<8x8x64xf32>
    %209 = vector.shape_cast %208 : vector<8x8x64xf32> to vector<64x64xf32>
    %c7_127 = arith.constant 7 : index
    %c0_128 = arith.constant 0 : index
    %c0_129 = arith.constant 0 : index
    %210 = vector.load %arg9[%c7_127, %c0_128, %c0_129] : memref<9x64x64xf32, #tpu.memory_space<vmem>>, vector<1x64x64xf32>
    %211 = vector.shape_cast %210 : vector<1x64x64xf32> to vector<64x64xf32>
    %cst_130 = arith.constant dense<0.000000e+00> : vector<64x64xf32>
    %212 = tpu.matmul %209, %211, %cst_130 {dimension_numbers = #tpu.dot_dimension_numbers<[1], [0], [0], [1], [0, 0, 1, 1], [], []>} : vector<64x64xf32>, vector<64x64xf32>, vector<64x64xf32> -> vector<64x64xf32>
    %213 = arith.addf %207, %212 : vector<64x64xf32>
    %214 = vector.extract_strided_slice %164 {offsets = [2, 2, 0], sizes = [8, 8, 64], strides = [1, 1, 1]} : vector<10x10x64xf32> to vector<8x8x64xf32>
    %215 = vector.shape_cast %214 : vector<8x8x64xf32> to vector<64x64xf32>
    %c8_131 = arith.constant 8 : index
    %c0_132 = arith.constant 0 : index
    %c0_133 = arith.constant 0 : index
    %216 = vector.load %arg9[%c8_131, %c0_132, %c0_133] : memref<9x64x64xf32, #tpu.memory_space<vmem>>, vector<1x64x64xf32>
    %217 = vector.shape_cast %216 : vector<1x64x64xf32> to vector<64x64xf32>
    %cst_134 = arith.constant dense<0.000000e+00> : vector<64x64xf32>
    %218 = tpu.matmul %215, %217, %cst_134 {dimension_numbers = #tpu.dot_dimension_numbers<[1], [0], [0], [1], [0, 0, 1, 1], [], []>} : vector<64x64xf32>, vector<64x64xf32>, vector<64x64xf32> -> vector<64x64xf32>
    %219 = arith.addf %213, %218 : vector<64x64xf32>
    %c0_135 = arith.constant 0 : index
    %c0_136 = arith.constant 0 : index
    %220 = vector.load %arg10[%c0_135, %c0_136] : memref<1x64xf32, #tpu.memory_space<vmem>>, vector<1x64xf32>
    %221 = vector.broadcast %220 : vector<1x64xf32> to vector<64x64xf32>
    %222 = arith.addf %219, %221 : vector<64x64xf32>
    %c0_137 = arith.constant 0 : index
    %c0_138 = arith.constant 0 : index
    %c0_139 = arith.constant 0 : index
    %223 = vector.load %arg2[%c0_137, %c0_138, %c0_139] : memref<1x1x64xf32, #tpu.memory_space<vmem>>, vector<1x1x64xf32>
    %224 = vector.shape_cast %223 : vector<1x1x64xf32> to vector<1x64xf32>
    %225 = vector.broadcast %224 : vector<1x64xf32> to vector<64x64xf32>
    %226 = arith.addf %222, %225 : vector<64x64xf32>
    %227 = arith.negf %226 : vector<64x64xf32>
    %228 = math.exp %227 : vector<64x64xf32>
    %cst_140 = arith.constant 1.000000e+00 : f32
    %229 = vector.broadcast %cst_140 : f32 to vector<64x64xf32>
    %230 = arith.addf %229, %228 : vector<64x64xf32>
    %231 = arith.divf %229, %230 : vector<64x64xf32>
    %232 = arith.mulf %226, %231 : vector<64x64xf32>
    %233 = vector.shape_cast %232 : vector<64x64xf32> to vector<8x8x64xf32>
    %c1_141 = arith.constant 1 : index
    %c1_142 = arith.constant 1 : index
    %c0_143 = arith.constant 0 : index
    %234 = vector.load %arg26[%c1_141, %c1_142, %c0_143] : memref<10x10x64xf32, #tpu.memory_space<vmem>>, vector<8x8x64xf32>
    tpu.vector_store %arg26[%c1_141, %c1_142, %c0_143], %233 {strides = array<i32>} : memref<10x10x64xf32, #tpu.memory_space<vmem>>, vector<8x8x64xf32>,
    %c0_144 = arith.constant 0 : index
    %c0_145 = arith.constant 0 : index
    %c0_146 = arith.constant 0 : index
    %235 = vector.load %arg26[%c0_144, %c0_145, %c0_146] : memref<10x10x64xf32, #tpu.memory_space<vmem>>, vector<10x10x64xf32>
    %cst_147 = arith.constant 0.000000e+00 : f32
    %236 = vector.broadcast %cst_147 : f32 to vector<64x64xf32>
    %237 = vector.extract_strided_slice %235 {offsets = [0, 0, 0], sizes = [8, 8, 64], strides = [1, 1, 1]} : vector<10x10x64xf32> to vector<8x8x64xf32>
    %238 = vector.shape_cast %237 : vector<8x8x64xf32> to vector<64x64xf32>
    %c0_148 = arith.constant 0 : index
    %c0_149 = arith.constant 0 : index
    %c0_150 = arith.constant 0 : index
    %239 = vector.load %arg11[%c0_148, %c0_149, %c0_150] : memref<9x64x64xf32, #tpu.memory_space<vmem>>, vector<1x64x64xf32>
    %240 = vector.shape_cast %239 : vector<1x64x64xf32> to vector<64x64xf32>
    %cst_151 = arith.constant dense<0.000000e+00> : vector<64x64xf32>
    %241 = tpu.matmul %238, %240, %cst_151 {dimension_numbers = #tpu.dot_dimension_numbers<[1], [0], [0], [1], [0, 0, 1, 1], [], []>} : vector<64x64xf32>, vector<64x64xf32>, vector<64x64xf32> -> vector<64x64xf32>
    %242 = arith.addf %236, %241 : vector<64x64xf32>
    %243 = vector.extract_strided_slice %235 {offsets = [0, 1, 0], sizes = [8, 8, 64], strides = [1, 1, 1]} : vector<10x10x64xf32> to vector<8x8x64xf32>
    %244 = vector.shape_cast %243 : vector<8x8x64xf32> to vector<64x64xf32>
    %c1_152 = arith.constant 1 : index
    %c0_153 = arith.constant 0 : index
    %c0_154 = arith.constant 0 : index
    %245 = vector.load %arg11[%c1_152, %c0_153, %c0_154] : memref<9x64x64xf32, #tpu.memory_space<vmem>>, vector<1x64x64xf32>
    %246 = vector.shape_cast %245 : vector<1x64x64xf32> to vector<64x64xf32>
    %cst_155 = arith.constant dense<0.000000e+00> : vector<64x64xf32>
    %247 = tpu.matmul %244, %246, %cst_155 {dimension_numbers = #tpu.dot_dimension_numbers<[1], [0], [0], [1], [0, 0, 1, 1], [], []>} : vector<64x64xf32>, vector<64x64xf32>, vector<64x64xf32> -> vector<64x64xf32>
    %248 = arith.addf %242, %247 : vector<64x64xf32>
    %249 = vector.extract_strided_slice %235 {offsets = [0, 2, 0], sizes = [8, 8, 64], strides = [1, 1, 1]} : vector<10x10x64xf32> to vector<8x8x64xf32>
    %250 = vector.shape_cast %249 : vector<8x8x64xf32> to vector<64x64xf32>
    %c2_156 = arith.constant 2 : index
    %c0_157 = arith.constant 0 : index
    %c0_158 = arith.constant 0 : index
    %251 = vector.load %arg11[%c2_156, %c0_157, %c0_158] : memref<9x64x64xf32, #tpu.memory_space<vmem>>, vector<1x64x64xf32>
    %252 = vector.shape_cast %251 : vector<1x64x64xf32> to vector<64x64xf32>
    %cst_159 = arith.constant dense<0.000000e+00> : vector<64x64xf32>
    %253 = tpu.matmul %250, %252, %cst_159 {dimension_numbers = #tpu.dot_dimension_numbers<[1], [0], [0], [1], [0, 0, 1, 1], [], []>} : vector<64x64xf32>, vector<64x64xf32>, vector<64x64xf32> -> vector<64x64xf32>
    %254 = arith.addf %248, %253 : vector<64x64xf32>
    %255 = vector.extract_strided_slice %235 {offsets = [1, 0, 0], sizes = [8, 8, 64], strides = [1, 1, 1]} : vector<10x10x64xf32> to vector<8x8x64xf32>
    %256 = vector.shape_cast %255 : vector<8x8x64xf32> to vector<64x64xf32>
    %c3_160 = arith.constant 3 : index
    %c0_161 = arith.constant 0 : index
    %c0_162 = arith.constant 0 : index
    %257 = vector.load %arg11[%c3_160, %c0_161, %c0_162] : memref<9x64x64xf32, #tpu.memory_space<vmem>>, vector<1x64x64xf32>
    %258 = vector.shape_cast %257 : vector<1x64x64xf32> to vector<64x64xf32>
    %cst_163 = arith.constant dense<0.000000e+00> : vector<64x64xf32>
    %259 = tpu.matmul %256, %258, %cst_163 {dimension_numbers = #tpu.dot_dimension_numbers<[1], [0], [0], [1], [0, 0, 1, 1], [], []>} : vector<64x64xf32>, vector<64x64xf32>, vector<64x64xf32> -> vector<64x64xf32>
    %260 = arith.addf %254, %259 : vector<64x64xf32>
    %261 = vector.extract_strided_slice %235 {offsets = [1, 1, 0], sizes = [8, 8, 64], strides = [1, 1, 1]} : vector<10x10x64xf32> to vector<8x8x64xf32>
    %262 = vector.shape_cast %261 : vector<8x8x64xf32> to vector<64x64xf32>
    %c4_164 = arith.constant 4 : index
    %c0_165 = arith.constant 0 : index
    %c0_166 = arith.constant 0 : index
    %263 = vector.load %arg11[%c4_164, %c0_165, %c0_166] : memref<9x64x64xf32, #tpu.memory_space<vmem>>, vector<1x64x64xf32>
    %264 = vector.shape_cast %263 : vector<1x64x64xf32> to vector<64x64xf32>
    %cst_167 = arith.constant dense<0.000000e+00> : vector<64x64xf32>
    %265 = tpu.matmul %262, %264, %cst_167 {dimension_numbers = #tpu.dot_dimension_numbers<[1], [0], [0], [1], [0, 0, 1, 1], [], []>} : vector<64x64xf32>, vector<64x64xf32>, vector<64x64xf32> -> vector<64x64xf32>
    %266 = arith.addf %260, %265 : vector<64x64xf32>
    %267 = vector.extract_strided_slice %235 {offsets = [1, 2, 0], sizes = [8, 8, 64], strides = [1, 1, 1]} : vector<10x10x64xf32> to vector<8x8x64xf32>
    %268 = vector.shape_cast %267 : vector<8x8x64xf32> to vector<64x64xf32>
    %c5_168 = arith.constant 5 : index
    %c0_169 = arith.constant 0 : index
    %c0_170 = arith.constant 0 : index
    %269 = vector.load %arg11[%c5_168, %c0_169, %c0_170] : memref<9x64x64xf32, #tpu.memory_space<vmem>>, vector<1x64x64xf32>
    %270 = vector.shape_cast %269 : vector<1x64x64xf32> to vector<64x64xf32>
    %cst_171 = arith.constant dense<0.000000e+00> : vector<64x64xf32>
    %271 = tpu.matmul %268, %270, %cst_171 {dimension_numbers = #tpu.dot_dimension_numbers<[1], [0], [0], [1], [0, 0, 1, 1], [], []>} : vector<64x64xf32>, vector<64x64xf32>, vector<64x64xf32> -> vector<64x64xf32>
    %272 = arith.addf %266, %271 : vector<64x64xf32>
    %273 = vector.extract_strided_slice %235 {offsets = [2, 0, 0], sizes = [8, 8, 64], strides = [1, 1, 1]} : vector<10x10x64xf32> to vector<8x8x64xf32>
    %274 = vector.shape_cast %273 : vector<8x8x64xf32> to vector<64x64xf32>
    %c6_172 = arith.constant 6 : index
    %c0_173 = arith.constant 0 : index
    %c0_174 = arith.constant 0 : index
    %275 = vector.load %arg11[%c6_172, %c0_173, %c0_174] : memref<9x64x64xf32, #tpu.memory_space<vmem>>, vector<1x64x64xf32>
    %276 = vector.shape_cast %275 : vector<1x64x64xf32> to vector<64x64xf32>
    %cst_175 = arith.constant dense<0.000000e+00> : vector<64x64xf32>
    %277 = tpu.matmul %274, %276, %cst_175 {dimension_numbers = #tpu.dot_dimension_numbers<[1], [0], [0], [1], [0, 0, 1, 1], [], []>} : vector<64x64xf32>, vector<64x64xf32>, vector<64x64xf32> -> vector<64x64xf32>
    %278 = arith.addf %272, %277 : vector<64x64xf32>
    %279 = vector.extract_strided_slice %235 {offsets = [2, 1, 0], sizes = [8, 8, 64], strides = [1, 1, 1]} : vector<10x10x64xf32> to vector<8x8x64xf32>
    %280 = vector.shape_cast %279 : vector<8x8x64xf32> to vector<64x64xf32>
    %c7_176 = arith.constant 7 : index
    %c0_177 = arith.constant 0 : index
    %c0_178 = arith.constant 0 : index
    %281 = vector.load %arg11[%c7_176, %c0_177, %c0_178] : memref<9x64x64xf32, #tpu.memory_space<vmem>>, vector<1x64x64xf32>
    %282 = vector.shape_cast %281 : vector<1x64x64xf32> to vector<64x64xf32>
    %cst_179 = arith.constant dense<0.000000e+00> : vector<64x64xf32>
    %283 = tpu.matmul %280, %282, %cst_179 {dimension_numbers = #tpu.dot_dimension_numbers<[1], [0], [0], [1], [0, 0, 1, 1], [], []>} : vector<64x64xf32>, vector<64x64xf32>, vector<64x64xf32> -> vector<64x64xf32>
    %284 = arith.addf %278, %283 : vector<64x64xf32>
    %285 = vector.extract_strided_slice %235 {offsets = [2, 2, 0], sizes = [8, 8, 64], strides = [1, 1, 1]} : vector<10x10x64xf32> to vector<8x8x64xf32>
    %286 = vector.shape_cast %285 : vector<8x8x64xf32> to vector<64x64xf32>
    %c8_180 = arith.constant 8 : index
    %c0_181 = arith.constant 0 : index
    %c0_182 = arith.constant 0 : index
    %287 = vector.load %arg11[%c8_180, %c0_181, %c0_182] : memref<9x64x64xf32, #tpu.memory_space<vmem>>, vector<1x64x64xf32>
    %288 = vector.shape_cast %287 : vector<1x64x64xf32> to vector<64x64xf32>
    %cst_183 = arith.constant dense<0.000000e+00> : vector<64x64xf32>
    %289 = tpu.matmul %286, %288, %cst_183 {dimension_numbers = #tpu.dot_dimension_numbers<[1], [0], [0], [1], [0, 0, 1, 1], [], []>} : vector<64x64xf32>, vector<64x64xf32>, vector<64x64xf32> -> vector<64x64xf32>
    %290 = arith.addf %284, %289 : vector<64x64xf32>
    %c0_184 = arith.constant 0 : index
    %c0_185 = arith.constant 0 : index
    %291 = vector.load %arg12[%c0_184, %c0_185] : memref<1x64xf32, #tpu.memory_space<vmem>>, vector<1x64xf32>
    %292 = vector.broadcast %291 : vector<1x64xf32> to vector<64x64xf32>
    %293 = arith.addf %290, %292 : vector<64x64xf32>
    %294 = arith.addf %155, %293 : vector<64x64xf32>
    %295 = arith.negf %294 : vector<64x64xf32>
    %296 = math.exp %295 : vector<64x64xf32>
    %cst_186 = arith.constant 1.000000e+00 : f32
    %297 = vector.broadcast %cst_186 : f32 to vector<64x64xf32>
    %298 = arith.addf %297, %296 : vector<64x64xf32>
    %299 = arith.divf %297, %298 : vector<64x64xf32>
    %300 = arith.mulf %294, %299 : vector<64x64xf32>
    %301 = vector.shape_cast %300 : vector<64x64xf32> to vector<8x8x64xf32>
    %c1_187 = arith.constant 1 : index
    %c1_188 = arith.constant 1 : index
    %c0_189 = arith.constant 0 : index
    %302 = vector.load %arg26[%c1_187, %c1_188, %c0_189] : memref<10x10x64xf32, #tpu.memory_space<vmem>>, vector<8x8x64xf32>
    tpu.vector_store %arg26[%c1_187, %c1_188, %c0_189], %301 {strides = array<i32>} : memref<10x10x64xf32, #tpu.memory_space<vmem>>, vector<8x8x64xf32>,
    %c0_190 = arith.constant 0 : index
    %c0_191 = arith.constant 0 : index
    %c0_192 = arith.constant 0 : index
    %303 = vector.load %arg26[%c0_190, %c0_191, %c0_192] : memref<10x10x64xf32, #tpu.memory_space<vmem>>, vector<10x10x64xf32>
    %cst_193 = arith.constant 0.000000e+00 : f32
    %304 = vector.broadcast %cst_193 : f32 to vector<64x64xf32>
    %305 = vector.extract_strided_slice %303 {offsets = [0, 0, 0], sizes = [8, 8, 64], strides = [1, 1, 1]} : vector<10x10x64xf32> to vector<8x8x64xf32>
    %306 = vector.shape_cast %305 : vector<8x8x64xf32> to vector<64x64xf32>
    %c0_194 = arith.constant 0 : index
    %c0_195 = arith.constant 0 : index
    %c0_196 = arith.constant 0 : index
    %307 = vector.load %arg13[%c0_194, %c0_195, %c0_196] : memref<9x64x64xf32, #tpu.memory_space<vmem>>, vector<1x64x64xf32>
    %308 = vector.shape_cast %307 : vector<1x64x64xf32> to vector<64x64xf32>
    %cst_197 = arith.constant dense<0.000000e+00> : vector<64x64xf32>
    %309 = tpu.matmul %306, %308, %cst_197 {dimension_numbers = #tpu.dot_dimension_numbers<[1], [0], [0], [1], [0, 0, 1, 1], [], []>} : vector<64x64xf32>, vector<64x64xf32>, vector<64x64xf32> -> vector<64x64xf32>
    %310 = arith.addf %304, %309 : vector<64x64xf32>
    %311 = vector.extract_strided_slice %303 {offsets = [0, 1, 0], sizes = [8, 8, 64], strides = [1, 1, 1]} : vector<10x10x64xf32> to vector<8x8x64xf32>
    %312 = vector.shape_cast %311 : vector<8x8x64xf32> to vector<64x64xf32>
    %c1_198 = arith.constant 1 : index
    %c0_199 = arith.constant 0 : index
    %c0_200 = arith.constant 0 : index
    %313 = vector.load %arg13[%c1_198, %c0_199, %c0_200] : memref<9x64x64xf32, #tpu.memory_space<vmem>>, vector<1x64x64xf32>
    %314 = vector.shape_cast %313 : vector<1x64x64xf32> to vector<64x64xf32>
    %cst_201 = arith.constant dense<0.000000e+00> : vector<64x64xf32>
    %315 = tpu.matmul %312, %314, %cst_201 {dimension_numbers = #tpu.dot_dimension_numbers<[1], [0], [0], [1], [0, 0, 1, 1], [], []>} : vector<64x64xf32>, vector<64x64xf32>, vector<64x64xf32> -> vector<64x64xf32>
    %316 = arith.addf %310, %315 : vector<64x64xf32>
    %317 = vector.extract_strided_slice %303 {offsets = [0, 2, 0], sizes = [8, 8, 64], strides = [1, 1, 1]} : vector<10x10x64xf32> to vector<8x8x64xf32>
    %318 = vector.shape_cast %317 : vector<8x8x64xf32> to vector<64x64xf32>
    %c2_202 = arith.constant 2 : index
    %c0_203 = arith.constant 0 : index
    %c0_204 = arith.constant 0 : index
    %319 = vector.load %arg13[%c2_202, %c0_203, %c0_204] : memref<9x64x64xf32, #tpu.memory_space<vmem>>, vector<1x64x64xf32>
    %320 = vector.shape_cast %319 : vector<1x64x64xf32> to vector<64x64xf32>
    %cst_205 = arith.constant dense<0.000000e+00> : vector<64x64xf32>
    %321 = tpu.matmul %318, %320, %cst_205 {dimension_numbers = #tpu.dot_dimension_numbers<[1], [0], [0], [1], [0, 0, 1, 1], [], []>} : vector<64x64xf32>, vector<64x64xf32>, vector<64x64xf32> -> vector<64x64xf32>
    %322 = arith.addf %316, %321 : vector<64x64xf32>
    %323 = vector.extract_strided_slice %303 {offsets = [1, 0, 0], sizes = [8, 8, 64], strides = [1, 1, 1]} : vector<10x10x64xf32> to vector<8x8x64xf32>
    %324 = vector.shape_cast %323 : vector<8x8x64xf32> to vector<64x64xf32>
    %c3_206 = arith.constant 3 : index
    %c0_207 = arith.constant 0 : index
    %c0_208 = arith.constant 0 : index
    %325 = vector.load %arg13[%c3_206, %c0_207, %c0_208] : memref<9x64x64xf32, #tpu.memory_space<vmem>>, vector<1x64x64xf32>
    %326 = vector.shape_cast %325 : vector<1x64x64xf32> to vector<64x64xf32>
    %cst_209 = arith.constant dense<0.000000e+00> : vector<64x64xf32>
    %327 = tpu.matmul %324, %326, %cst_209 {dimension_numbers = #tpu.dot_dimension_numbers<[1], [0], [0], [1], [0, 0, 1, 1], [], []>} : vector<64x64xf32>, vector<64x64xf32>, vector<64x64xf32> -> vector<64x64xf32>
    %328 = arith.addf %322, %327 : vector<64x64xf32>
    %329 = vector.extract_strided_slice %303 {offsets = [1, 1, 0], sizes = [8, 8, 64], strides = [1, 1, 1]} : vector<10x10x64xf32> to vector<8x8x64xf32>
    %330 = vector.shape_cast %329 : vector<8x8x64xf32> to vector<64x64xf32>
    %c4_210 = arith.constant 4 : index
    %c0_211 = arith.constant 0 : index
    %c0_212 = arith.constant 0 : index
    %331 = vector.load %arg13[%c4_210, %c0_211, %c0_212] : memref<9x64x64xf32, #tpu.memory_space<vmem>>, vector<1x64x64xf32>
    %332 = vector.shape_cast %331 : vector<1x64x64xf32> to vector<64x64xf32>
    %cst_213 = arith.constant dense<0.000000e+00> : vector<64x64xf32>
    %333 = tpu.matmul %330, %332, %cst_213 {dimension_numbers = #tpu.dot_dimension_numbers<[1], [0], [0], [1], [0, 0, 1, 1], [], []>} : vector<64x64xf32>, vector<64x64xf32>, vector<64x64xf32> -> vector<64x64xf32>
    %334 = arith.addf %328, %333 : vector<64x64xf32>
    %335 = vector.extract_strided_slice %303 {offsets = [1, 2, 0], sizes = [8, 8, 64], strides = [1, 1, 1]} : vector<10x10x64xf32> to vector<8x8x64xf32>
    %336 = vector.shape_cast %335 : vector<8x8x64xf32> to vector<64x64xf32>
    %c5_214 = arith.constant 5 : index
    %c0_215 = arith.constant 0 : index
    %c0_216 = arith.constant 0 : index
    %337 = vector.load %arg13[%c5_214, %c0_215, %c0_216] : memref<9x64x64xf32, #tpu.memory_space<vmem>>, vector<1x64x64xf32>
    %338 = vector.shape_cast %337 : vector<1x64x64xf32> to vector<64x64xf32>
    %cst_217 = arith.constant dense<0.000000e+00> : vector<64x64xf32>
    %339 = tpu.matmul %336, %338, %cst_217 {dimension_numbers = #tpu.dot_dimension_numbers<[1], [0], [0], [1], [0, 0, 1, 1], [], []>} : vector<64x64xf32>, vector<64x64xf32>, vector<64x64xf32> -> vector<64x64xf32>
    %340 = arith.addf %334, %339 : vector<64x64xf32>
    %341 = vector.extract_strided_slice %303 {offsets = [2, 0, 0], sizes = [8, 8, 64], strides = [1, 1, 1]} : vector<10x10x64xf32> to vector<8x8x64xf32>
    %342 = vector.shape_cast %341 : vector<8x8x64xf32> to vector<64x64xf32>
    %c6_218 = arith.constant 6 : index
    %c0_219 = arith.constant 0 : index
    %c0_220 = arith.constant 0 : index
    %343 = vector.load %arg13[%c6_218, %c0_219, %c0_220] : memref<9x64x64xf32, #tpu.memory_space<vmem>>, vector<1x64x64xf32>
    %344 = vector.shape_cast %343 : vector<1x64x64xf32> to vector<64x64xf32>
    %cst_221 = arith.constant dense<0.000000e+00> : vector<64x64xf32>
    %345 = tpu.matmul %342, %344, %cst_221 {dimension_numbers = #tpu.dot_dimension_numbers<[1], [0], [0], [1], [0, 0, 1, 1], [], []>} : vector<64x64xf32>, vector<64x64xf32>, vector<64x64xf32> -> vector<64x64xf32>
    %346 = arith.addf %340, %345 : vector<64x64xf32>
    %347 = vector.extract_strided_slice %303 {offsets = [2, 1, 0], sizes = [8, 8, 64], strides = [1, 1, 1]} : vector<10x10x64xf32> to vector<8x8x64xf32>
    %348 = vector.shape_cast %347 : vector<8x8x64xf32> to vector<64x64xf32>
    %c7_222 = arith.constant 7 : index
    %c0_223 = arith.constant 0 : index
    %c0_224 = arith.constant 0 : index
    %349 = vector.load %arg13[%c7_222, %c0_223, %c0_224] : memref<9x64x64xf32, #tpu.memory_space<vmem>>, vector<1x64x64xf32>
    %350 = vector.shape_cast %349 : vector<1x64x64xf32> to vector<64x64xf32>
    %cst_225 = arith.constant dense<0.000000e+00> : vector<64x64xf32>
    %351 = tpu.matmul %348, %350, %cst_225 {dimension_numbers = #tpu.dot_dimension_numbers<[1], [0], [0], [1], [0, 0, 1, 1], [], []>} : vector<64x64xf32>, vector<64x64xf32>, vector<64x64xf32> -> vector<64x64xf32>
    %352 = arith.addf %346, %351 : vector<64x64xf32>
    %353 = vector.extract_strided_slice %303 {offsets = [2, 2, 0], sizes = [8, 8, 64], strides = [1, 1, 1]} : vector<10x10x64xf32> to vector<8x8x64xf32>
    %354 = vector.shape_cast %353 : vector<8x8x64xf32> to vector<64x64xf32>
    %c8_226 = arith.constant 8 : index
    %c0_227 = arith.constant 0 : index
    %c0_228 = arith.constant 0 : index
    %355 = vector.load %arg13[%c8_226, %c0_227, %c0_228] : memref<9x64x64xf32, #tpu.memory_space<vmem>>, vector<1x64x64xf32>
    %356 = vector.shape_cast %355 : vector<1x64x64xf32> to vector<64x64xf32>
    %cst_229 = arith.constant dense<0.000000e+00> : vector<64x64xf32>
    %357 = tpu.matmul %354, %356, %cst_229 {dimension_numbers = #tpu.dot_dimension_numbers<[1], [0], [0], [1], [0, 0, 1, 1], [], []>} : vector<64x64xf32>, vector<64x64xf32>, vector<64x64xf32> -> vector<64x64xf32>
    %358 = arith.addf %352, %357 : vector<64x64xf32>
    %c0_230 = arith.constant 0 : index
    %c0_231 = arith.constant 0 : index
    %359 = vector.load %arg14[%c0_230, %c0_231] : memref<1x64xf32, #tpu.memory_space<vmem>>, vector<1x64xf32>
    %360 = vector.broadcast %359 : vector<1x64xf32> to vector<64x64xf32>
    %361 = arith.addf %358, %360 : vector<64x64xf32>
    %c0_232 = arith.constant 0 : index
    %c0_233 = arith.constant 0 : index
    %c0_234 = arith.constant 0 : index
    %362 = vector.load %arg3[%c0_232, %c0_233, %c0_234] : memref<1x1x64xf32, #tpu.memory_space<vmem>>, vector<1x1x64xf32>
    %363 = vector.shape_cast %362 : vector<1x1x64xf32> to vector<1x64xf32>
    %364 = vector.broadcast %363 : vector<1x64xf32> to vector<64x64xf32>
    %365 = arith.addf %361, %364 : vector<64x64xf32>
    %366 = arith.negf %365 : vector<64x64xf32>
    %367 = math.exp %366 : vector<64x64xf32>
    %cst_235 = arith.constant 1.000000e+00 : f32
    %368 = vector.broadcast %cst_235 : f32 to vector<64x64xf32>
    %369 = arith.addf %368, %367 : vector<64x64xf32>
    %370 = arith.divf %368, %369 : vector<64x64xf32>
    %371 = arith.mulf %365, %370 : vector<64x64xf32>
    %372 = vector.shape_cast %371 : vector<64x64xf32> to vector<8x8x64xf32>
    %c1_236 = arith.constant 1 : index
    %c1_237 = arith.constant 1 : index
    %c0_238 = arith.constant 0 : index
    %373 = vector.load %arg26[%c1_236, %c1_237, %c0_238] : memref<10x10x64xf32, #tpu.memory_space<vmem>>, vector<8x8x64xf32>
    tpu.vector_store %arg26[%c1_236, %c1_237, %c0_238], %372 {strides = array<i32>} : memref<10x10x64xf32, #tpu.memory_space<vmem>>, vector<8x8x64xf32>,
    %c0_239 = arith.constant 0 : index
    %c0_240 = arith.constant 0 : index
    %c0_241 = arith.constant 0 : index
    %374 = vector.load %arg26[%c0_239, %c0_240, %c0_241] : memref<10x10x64xf32, #tpu.memory_space<vmem>>, vector<10x10x64xf32>
    %cst_242 = arith.constant 0.000000e+00 : f32
    %375 = vector.broadcast %cst_242 : f32 to vector<64x64xf32>
    %376 = vector.extract_strided_slice %374 {offsets = [0, 0, 0], sizes = [8, 8, 64], strides = [1, 1, 1]} : vector<10x10x64xf32> to vector<8x8x64xf32>
    %377 = vector.shape_cast %376 : vector<8x8x64xf32> to vector<64x64xf32>
    %c0_243 = arith.constant 0 : index
    %c0_244 = arith.constant 0 : index
    %c0_245 = arith.constant 0 : index
    %378 = vector.load %arg15[%c0_243, %c0_244, %c0_245] : memref<9x64x64xf32, #tpu.memory_space<vmem>>, vector<1x64x64xf32>
    %379 = vector.shape_cast %378 : vector<1x64x64xf32> to vector<64x64xf32>
    %cst_246 = arith.constant dense<0.000000e+00> : vector<64x64xf32>
    %380 = tpu.matmul %377, %379, %cst_246 {dimension_numbers = #tpu.dot_dimension_numbers<[1], [0], [0], [1], [0, 0, 1, 1], [], []>} : vector<64x64xf32>, vector<64x64xf32>, vector<64x64xf32> -> vector<64x64xf32>
    %381 = arith.addf %375, %380 : vector<64x64xf32>
    %382 = vector.extract_strided_slice %374 {offsets = [0, 1, 0], sizes = [8, 8, 64], strides = [1, 1, 1]} : vector<10x10x64xf32> to vector<8x8x64xf32>
    %383 = vector.shape_cast %382 : vector<8x8x64xf32> to vector<64x64xf32>
    %c1_247 = arith.constant 1 : index
    %c0_248 = arith.constant 0 : index
    %c0_249 = arith.constant 0 : index
    %384 = vector.load %arg15[%c1_247, %c0_248, %c0_249] : memref<9x64x64xf32, #tpu.memory_space<vmem>>, vector<1x64x64xf32>
    %385 = vector.shape_cast %384 : vector<1x64x64xf32> to vector<64x64xf32>
    %cst_250 = arith.constant dense<0.000000e+00> : vector<64x64xf32>
    %386 = tpu.matmul %383, %385, %cst_250 {dimension_numbers = #tpu.dot_dimension_numbers<[1], [0], [0], [1], [0, 0, 1, 1], [], []>} : vector<64x64xf32>, vector<64x64xf32>, vector<64x64xf32> -> vector<64x64xf32>
    %387 = arith.addf %381, %386 : vector<64x64xf32>
    %388 = vector.extract_strided_slice %374 {offsets = [0, 2, 0], sizes = [8, 8, 64], strides = [1, 1, 1]} : vector<10x10x64xf32> to vector<8x8x64xf32>
    %389 = vector.shape_cast %388 : vector<8x8x64xf32> to vector<64x64xf32>
    %c2_251 = arith.constant 2 : index
    %c0_252 = arith.constant 0 : index
    %c0_253 = arith.constant 0 : index
    %390 = vector.load %arg15[%c2_251, %c0_252, %c0_253] : memref<9x64x64xf32, #tpu.memory_space<vmem>>, vector<1x64x64xf32>
    %391 = vector.shape_cast %390 : vector<1x64x64xf32> to vector<64x64xf32>
    %cst_254 = arith.constant dense<0.000000e+00> : vector<64x64xf32>
    %392 = tpu.matmul %389, %391, %cst_254 {dimension_numbers = #tpu.dot_dimension_numbers<[1], [0], [0], [1], [0, 0, 1, 1], [], []>} : vector<64x64xf32>, vector<64x64xf32>, vector<64x64xf32> -> vector<64x64xf32>
    %393 = arith.addf %387, %392 : vector<64x64xf32>
    %394 = vector.extract_strided_slice %374 {offsets = [1, 0, 0], sizes = [8, 8, 64], strides = [1, 1, 1]} : vector<10x10x64xf32> to vector<8x8x64xf32>
    %395 = vector.shape_cast %394 : vector<8x8x64xf32> to vector<64x64xf32>
    %c3_255 = arith.constant 3 : index
    %c0_256 = arith.constant 0 : index
    %c0_257 = arith.constant 0 : index
    %396 = vector.load %arg15[%c3_255, %c0_256, %c0_257] : memref<9x64x64xf32, #tpu.memory_space<vmem>>, vector<1x64x64xf32>
    %397 = vector.shape_cast %396 : vector<1x64x64xf32> to vector<64x64xf32>
    %cst_258 = arith.constant dense<0.000000e+00> : vector<64x64xf32>
    %398 = tpu.matmul %395, %397, %cst_258 {dimension_numbers = #tpu.dot_dimension_numbers<[1], [0], [0], [1], [0, 0, 1, 1], [], []>} : vector<64x64xf32>, vector<64x64xf32>, vector<64x64xf32> -> vector<64x64xf32>
    %399 = arith.addf %393, %398 : vector<64x64xf32>
    %400 = vector.extract_strided_slice %374 {offsets = [1, 1, 0], sizes = [8, 8, 64], strides = [1, 1, 1]} : vector<10x10x64xf32> to vector<8x8x64xf32>
    %401 = vector.shape_cast %400 : vector<8x8x64xf32> to vector<64x64xf32>
    %c4_259 = arith.constant 4 : index
    %c0_260 = arith.constant 0 : index
    %c0_261 = arith.constant 0 : index
    %402 = vector.load %arg15[%c4_259, %c0_260, %c0_261] : memref<9x64x64xf32, #tpu.memory_space<vmem>>, vector<1x64x64xf32>
    %403 = vector.shape_cast %402 : vector<1x64x64xf32> to vector<64x64xf32>
    %cst_262 = arith.constant dense<0.000000e+00> : vector<64x64xf32>
    %404 = tpu.matmul %401, %403, %cst_262 {dimension_numbers = #tpu.dot_dimension_numbers<[1], [0], [0], [1], [0, 0, 1, 1], [], []>} : vector<64x64xf32>, vector<64x64xf32>, vector<64x64xf32> -> vector<64x64xf32>
    %405 = arith.addf %399, %404 : vector<64x64xf32>
    %406 = vector.extract_strided_slice %374 {offsets = [1, 2, 0], sizes = [8, 8, 64], strides = [1, 1, 1]} : vector<10x10x64xf32> to vector<8x8x64xf32>
    %407 = vector.shape_cast %406 : vector<8x8x64xf32> to vector<64x64xf32>
    %c5_263 = arith.constant 5 : index
    %c0_264 = arith.constant 0 : index
    %c0_265 = arith.constant 0 : index
    %408 = vector.load %arg15[%c5_263, %c0_264, %c0_265] : memref<9x64x64xf32, #tpu.memory_space<vmem>>, vector<1x64x64xf32>
    %409 = vector.shape_cast %408 : vector<1x64x64xf32> to vector<64x64xf32>
    %cst_266 = arith.constant dense<0.000000e+00> : vector<64x64xf32>
    %410 = tpu.matmul %407, %409, %cst_266 {dimension_numbers = #tpu.dot_dimension_numbers<[1], [0], [0], [1], [0, 0, 1, 1], [], []>} : vector<64x64xf32>, vector<64x64xf32>, vector<64x64xf32> -> vector<64x64xf32>
    %411 = arith.addf %405, %410 : vector<64x64xf32>
    %412 = vector.extract_strided_slice %374 {offsets = [2, 0, 0], sizes = [8, 8, 64], strides = [1, 1, 1]} : vector<10x10x64xf32> to vector<8x8x64xf32>
    %413 = vector.shape_cast %412 : vector<8x8x64xf32> to vector<64x64xf32>
    %c6_267 = arith.constant 6 : index
    %c0_268 = arith.constant 0 : index
    %c0_269 = arith.constant 0 : index
    %414 = vector.load %arg15[%c6_267, %c0_268, %c0_269] : memref<9x64x64xf32, #tpu.memory_space<vmem>>, vector<1x64x64xf32>
    %415 = vector.shape_cast %414 : vector<1x64x64xf32> to vector<64x64xf32>
    %cst_270 = arith.constant dense<0.000000e+00> : vector<64x64xf32>
    %416 = tpu.matmul %413, %415, %cst_270 {dimension_numbers = #tpu.dot_dimension_numbers<[1], [0], [0], [1], [0, 0, 1, 1], [], []>} : vector<64x64xf32>, vector<64x64xf32>, vector<64x64xf32> -> vector<64x64xf32>
    %417 = arith.addf %411, %416 : vector<64x64xf32>
    %418 = vector.extract_strided_slice %374 {offsets = [2, 1, 0], sizes = [8, 8, 64], strides = [1, 1, 1]} : vector<10x10x64xf32> to vector<8x8x64xf32>
    %419 = vector.shape_cast %418 : vector<8x8x64xf32> to vector<64x64xf32>
    %c7_271 = arith.constant 7 : index
    %c0_272 = arith.constant 0 : index
    %c0_273 = arith.constant 0 : index
    %420 = vector.load %arg15[%c7_271, %c0_272, %c0_273] : memref<9x64x64xf32, #tpu.memory_space<vmem>>, vector<1x64x64xf32>
    %421 = vector.shape_cast %420 : vector<1x64x64xf32> to vector<64x64xf32>
    %cst_274 = arith.constant dense<0.000000e+00> : vector<64x64xf32>
    %422 = tpu.matmul %419, %421, %cst_274 {dimension_numbers = #tpu.dot_dimension_numbers<[1], [0], [0], [1], [0, 0, 1, 1], [], []>} : vector<64x64xf32>, vector<64x64xf32>, vector<64x64xf32> -> vector<64x64xf32>
    %423 = arith.addf %417, %422 : vector<64x64xf32>
    %424 = vector.extract_strided_slice %374 {offsets = [2, 2, 0], sizes = [8, 8, 64], strides = [1, 1, 1]} : vector<10x10x64xf32> to vector<8x8x64xf32>
    %425 = vector.shape_cast %424 : vector<8x8x64xf32> to vector<64x64xf32>
    %c8_275 = arith.constant 8 : index
    %c0_276 = arith.constant 0 : index
    %c0_277 = arith.constant 0 : index
    %426 = vector.load %arg15[%c8_275, %c0_276, %c0_277] : memref<9x64x64xf32, #tpu.memory_space<vmem>>, vector<1x64x64xf32>
    %427 = vector.shape_cast %426 : vector<1x64x64xf32> to vector<64x64xf32>
    %cst_278 = arith.constant dense<0.000000e+00> : vector<64x64xf32>
    %428 = tpu.matmul %425, %427, %cst_278 {dimension_numbers = #tpu.dot_dimension_numbers<[1], [0], [0], [1], [0, 0, 1, 1], [], []>} : vector<64x64xf32>, vector<64x64xf32>, vector<64x64xf32> -> vector<64x64xf32>
    %429 = arith.addf %423, %428 : vector<64x64xf32>
    %c0_279 = arith.constant 0 : index
    %c0_280 = arith.constant 0 : index
    %430 = vector.load %arg16[%c0_279, %c0_280] : memref<1x64xf32, #tpu.memory_space<vmem>>, vector<1x64xf32>
    %431 = vector.broadcast %430 : vector<1x64xf32> to vector<64x64xf32>
    %432 = arith.addf %429, %431 : vector<64x64xf32>
    %433 = arith.addf %294, %432 : vector<64x64xf32>
    %434 = vector.shape_cast %433 : vector<64x64xf32> to vector<8x8x64xf32>
    %c1_281 = arith.constant 1 : index
    %c1_282 = arith.constant 1 : index
    %c0_283 = arith.constant 0 : index
    %435 = vector.load %arg26[%c1_281, %c1_282, %c0_283] : memref<10x10x64xf32, #tpu.memory_space<vmem>>, vector<8x8x64xf32>
    tpu.vector_store %arg26[%c1_281, %c1_282, %c0_283], %434 {strides = array<i32>} : memref<10x10x64xf32, #tpu.memory_space<vmem>>, vector<8x8x64xf32>,
    %c0_284 = arith.constant 0 : index
    %c0_285 = arith.constant 0 : index
    %c0_286 = arith.constant 0 : index
    %436 = vector.load %arg26[%c0_284, %c0_285, %c0_286] : memref<10x10x64xf32, #tpu.memory_space<vmem>>, vector<10x10x64xf32>
    %cst_287 = arith.constant 0.000000e+00 : f32
    %437 = vector.broadcast %cst_287 : f32 to vector<64x64xf32>
    %438 = vector.extract_strided_slice %436 {offsets = [0, 0, 0], sizes = [8, 8, 64], strides = [1, 1, 1]} : vector<10x10x64xf32> to vector<8x8x64xf32>
    %439 = vector.shape_cast %438 : vector<8x8x64xf32> to vector<64x64xf32>
    %c0_288 = arith.constant 0 : index
    %c0_289 = arith.constant 0 : index
    %c0_290 = arith.constant 0 : index
    %440 = vector.load %arg17[%c0_288, %c0_289, %c0_290] : memref<9x64x64xf32, #tpu.memory_space<vmem>>, vector<1x64x64xf32>
    %441 = vector.shape_cast %440 : vector<1x64x64xf32> to vector<64x64xf32>
    %cst_291 = arith.constant dense<0.000000e+00> : vector<64x64xf32>
    %442 = tpu.matmul %439, %441, %cst_291 {dimension_numbers = #tpu.dot_dimension_numbers<[1], [0], [0], [1], [0, 0, 1, 1], [], []>} : vector<64x64xf32>, vector<64x64xf32>, vector<64x64xf32> -> vector<64x64xf32>
    %443 = arith.addf %437, %442 : vector<64x64xf32>
    %444 = vector.extract_strided_slice %436 {offsets = [0, 1, 0], sizes = [8, 8, 64], strides = [1, 1, 1]} : vector<10x10x64xf32> to vector<8x8x64xf32>
    %445 = vector.shape_cast %444 : vector<8x8x64xf32> to vector<64x64xf32>
    %c1_292 = arith.constant 1 : index
    %c0_293 = arith.constant 0 : index
    %c0_294 = arith.constant 0 : index
    %446 = vector.load %arg17[%c1_292, %c0_293, %c0_294] : memref<9x64x64xf32, #tpu.memory_space<vmem>>, vector<1x64x64xf32>
    %447 = vector.shape_cast %446 : vector<1x64x64xf32> to vector<64x64xf32>
    %cst_295 = arith.constant dense<0.000000e+00> : vector<64x64xf32>
    %448 = tpu.matmul %445, %447, %cst_295 {dimension_numbers = #tpu.dot_dimension_numbers<[1], [0], [0], [1], [0, 0, 1, 1], [], []>} : vector<64x64xf32>, vector<64x64xf32>, vector<64x64xf32> -> vector<64x64xf32>
    %449 = arith.addf %443, %448 : vector<64x64xf32>
    %450 = vector.extract_strided_slice %436 {offsets = [0, 2, 0], sizes = [8, 8, 64], strides = [1, 1, 1]} : vector<10x10x64xf32> to vector<8x8x64xf32>
    %451 = vector.shape_cast %450 : vector<8x8x64xf32> to vector<64x64xf32>
    %c2_296 = arith.constant 2 : index
    %c0_297 = arith.constant 0 : index
    %c0_298 = arith.constant 0 : index
    %452 = vector.load %arg17[%c2_296, %c0_297, %c0_298] : memref<9x64x64xf32, #tpu.memory_space<vmem>>, vector<1x64x64xf32>
    %453 = vector.shape_cast %452 : vector<1x64x64xf32> to vector<64x64xf32>
    %cst_299 = arith.constant dense<0.000000e+00> : vector<64x64xf32>
    %454 = tpu.matmul %451, %453, %cst_299 {dimension_numbers = #tpu.dot_dimension_numbers<[1], [0], [0], [1], [0, 0, 1, 1], [], []>} : vector<64x64xf32>, vector<64x64xf32>, vector<64x64xf32> -> vector<64x64xf32>
    %455 = arith.addf %449, %454 : vector<64x64xf32>
    %456 = vector.extract_strided_slice %436 {offsets = [1, 0, 0], sizes = [8, 8, 64], strides = [1, 1, 1]} : vector<10x10x64xf32> to vector<8x8x64xf32>
    %457 = vector.shape_cast %456 : vector<8x8x64xf32> to vector<64x64xf32>
    %c3_300 = arith.constant 3 : index
    %c0_301 = arith.constant 0 : index
    %c0_302 = arith.constant 0 : index
    %458 = vector.load %arg17[%c3_300, %c0_301, %c0_302] : memref<9x64x64xf32, #tpu.memory_space<vmem>>, vector<1x64x64xf32>
    %459 = vector.shape_cast %458 : vector<1x64x64xf32> to vector<64x64xf32>
    %cst_303 = arith.constant dense<0.000000e+00> : vector<64x64xf32>
    %460 = tpu.matmul %457, %459, %cst_303 {dimension_numbers = #tpu.dot_dimension_numbers<[1], [0], [0], [1], [0, 0, 1, 1], [], []>} : vector<64x64xf32>, vector<64x64xf32>, vector<64x64xf32> -> vector<64x64xf32>
    %461 = arith.addf %455, %460 : vector<64x64xf32>
    %462 = vector.extract_strided_slice %436 {offsets = [1, 1, 0], sizes = [8, 8, 64], strides = [1, 1, 1]} : vector<10x10x64xf32> to vector<8x8x64xf32>
    %463 = vector.shape_cast %462 : vector<8x8x64xf32> to vector<64x64xf32>
    %c4_304 = arith.constant 4 : index
    %c0_305 = arith.constant 0 : index
    %c0_306 = arith.constant 0 : index
    %464 = vector.load %arg17[%c4_304, %c0_305, %c0_306] : memref<9x64x64xf32, #tpu.memory_space<vmem>>, vector<1x64x64xf32>
    %465 = vector.shape_cast %464 : vector<1x64x64xf32> to vector<64x64xf32>
    %cst_307 = arith.constant dense<0.000000e+00> : vector<64x64xf32>
    %466 = tpu.matmul %463, %465, %cst_307 {dimension_numbers = #tpu.dot_dimension_numbers<[1], [0], [0], [1], [0, 0, 1, 1], [], []>} : vector<64x64xf32>, vector<64x64xf32>, vector<64x64xf32> -> vector<64x64xf32>
    %467 = arith.addf %461, %466 : vector<64x64xf32>
    %468 = vector.extract_strided_slice %436 {offsets = [1, 2, 0], sizes = [8, 8, 64], strides = [1, 1, 1]} : vector<10x10x64xf32> to vector<8x8x64xf32>
    %469 = vector.shape_cast %468 : vector<8x8x64xf32> to vector<64x64xf32>
    %c5_308 = arith.constant 5 : index
    %c0_309 = arith.constant 0 : index
    %c0_310 = arith.constant 0 : index
    %470 = vector.load %arg17[%c5_308, %c0_309, %c0_310] : memref<9x64x64xf32, #tpu.memory_space<vmem>>, vector<1x64x64xf32>
    %471 = vector.shape_cast %470 : vector<1x64x64xf32> to vector<64x64xf32>
    %cst_311 = arith.constant dense<0.000000e+00> : vector<64x64xf32>
    %472 = tpu.matmul %469, %471, %cst_311 {dimension_numbers = #tpu.dot_dimension_numbers<[1], [0], [0], [1], [0, 0, 1, 1], [], []>} : vector<64x64xf32>, vector<64x64xf32>, vector<64x64xf32> -> vector<64x64xf32>
    %473 = arith.addf %467, %472 : vector<64x64xf32>
    %474 = vector.extract_strided_slice %436 {offsets = [2, 0, 0], sizes = [8, 8, 64], strides = [1, 1, 1]} : vector<10x10x64xf32> to vector<8x8x64xf32>
    %475 = vector.shape_cast %474 : vector<8x8x64xf32> to vector<64x64xf32>
    %c6_312 = arith.constant 6 : index
    %c0_313 = arith.constant 0 : index
    %c0_314 = arith.constant 0 : index
    %476 = vector.load %arg17[%c6_312, %c0_313, %c0_314] : memref<9x64x64xf32, #tpu.memory_space<vmem>>, vector<1x64x64xf32>
    %477 = vector.shape_cast %476 : vector<1x64x64xf32> to vector<64x64xf32>
    %cst_315 = arith.constant dense<0.000000e+00> : vector<64x64xf32>
    %478 = tpu.matmul %475, %477, %cst_315 {dimension_numbers = #tpu.dot_dimension_numbers<[1], [0], [0], [1], [0, 0, 1, 1], [], []>} : vector<64x64xf32>, vector<64x64xf32>, vector<64x64xf32> -> vector<64x64xf32>
    %479 = arith.addf %473, %478 : vector<64x64xf32>
    %480 = vector.extract_strided_slice %436 {offsets = [2, 1, 0], sizes = [8, 8, 64], strides = [1, 1, 1]} : vector<10x10x64xf32> to vector<8x8x64xf32>
    %481 = vector.shape_cast %480 : vector<8x8x64xf32> to vector<64x64xf32>
    %c7_316 = arith.constant 7 : index
    %c0_317 = arith.constant 0 : index
    %c0_318 = arith.constant 0 : index
    %482 = vector.load %arg17[%c7_316, %c0_317, %c0_318] : memref<9x64x64xf32, #tpu.memory_space<vmem>>, vector<1x64x64xf32>
    %483 = vector.shape_cast %482 : vector<1x64x64xf32> to vector<64x64xf32>
    %cst_319 = arith.constant dense<0.000000e+00> : vector<64x64xf32>
    %484 = tpu.matmul %481, %483, %cst_319 {dimension_numbers = #tpu.dot_dimension_numbers<[1], [0], [0], [1], [0, 0, 1, 1], [], []>} : vector<64x64xf32>, vector<64x64xf32>, vector<64x64xf32> -> vector<64x64xf32>
    %485 = arith.addf %479, %484 : vector<64x64xf32>
    %486 = vector.extract_strided_slice %436 {offsets = [2, 2, 0], sizes = [8, 8, 64], strides = [1, 1, 1]} : vector<10x10x64xf32> to vector<8x8x64xf32>
    %487 = vector.shape_cast %486 : vector<8x8x64xf32> to vector<64x64xf32>
    %c8_320 = arith.constant 8 : index
    %c0_321 = arith.constant 0 : index
    %c0_322 = arith.constant 0 : index
    %488 = vector.load %arg17[%c8_320, %c0_321, %c0_322] : memref<9x64x64xf32, #tpu.memory_space<vmem>>, vector<1x64x64xf32>
    %489 = vector.shape_cast %488 : vector<1x64x64xf32> to vector<64x64xf32>
    %cst_323 = arith.constant dense<0.000000e+00> : vector<64x64xf32>
    %490 = tpu.matmul %487, %489, %cst_323 {dimension_numbers = #tpu.dot_dimension_numbers<[1], [0], [0], [1], [0, 0, 1, 1], [], []>} : vector<64x64xf32>, vector<64x64xf32>, vector<64x64xf32> -> vector<64x64xf32>
    %491 = arith.addf %485, %490 : vector<64x64xf32>
    %c0_324 = arith.constant 0 : index
    %c0_325 = arith.constant 0 : index
    %492 = vector.load %arg18[%c0_324, %c0_325] : memref<1x64xf32, #tpu.memory_space<vmem>>, vector<1x64xf32>
    %493 = vector.broadcast %492 : vector<1x64xf32> to vector<64x64xf32>
    %494 = arith.addf %491, %493 : vector<64x64xf32>
    %cst_326 = arith.constant dense<0.000000e+00> : vector<64xf32>
    %495 = vector.multi_reduction <add>, %494, %cst_326 [0] : vector<64x64xf32> to vector<64xf32>
    %496 = vector.shape_cast %495 : vector<64xf32> to vector<1x64xf32>
    %cst_327 = arith.constant 6.400000e+01 : f32
    %497 = vector.broadcast %cst_327 : f32 to vector<1x64xf32>
    %498 = arith.divf %496, %497 : vector<1x64xf32>
    %499 = arith.mulf %498, %498 : vector<1x64xf32>
    %cst_328 = arith.constant dense<0.000000e+00> : vector<1xf32>
    %500 = vector.multi_reduction <add>, %499, %cst_328 [1] : vector<1x64xf32> to vector<1xf32>
    %501 = vector.shape_cast %500 : vector<1xf32> to vector<1x1xf32>
    %502 = math.sqrt %501 : vector<1x1xf32>
    %cst_329 = arith.constant 9.99999997E-7 : f32
    %503 = vector.broadcast %cst_329 : f32 to vector<1x1xf32>
    %504 = arith.addf %502, %503 : vector<1x1xf32>
    %505 = vector.broadcast %504 : vector<1x1xf32> to vector<1x64xf32>
    %506 = arith.divf %498, %505 : vector<1x64xf32>
    %c0_330 = arith.constant 0 : index
    %c0_331 = arith.constant 0 : index
    %507 = vector.load %arg19[%c0_330, %c0_331] : memref<64x64xf32, #tpu.memory_space<vmem>>, vector<64x64xf32>
    %cst_332 = arith.constant dense<0.000000e+00> : vector<1x64xf32>
    %508 = tpu.matmul %506, %507, %cst_332 {dimension_numbers = #tpu.dot_dimension_numbers<[1], [0], [0], [1], [0, 0, 1, 1], [], []>} : vector<1x64xf32>, vector<64x64xf32>, vector<1x64xf32> -> vector<1x64xf32>
    %c0_333 = arith.constant 0 : index
    %c0_334 = arith.constant 0 : index
    %509 = vector.load %arg20[%c0_333, %c0_334] : memref<1x64xf32, #tpu.memory_space<vmem>>, vector<1x64xf32>
    %510 = arith.addf %508, %509 : vector<1x64xf32>
    %cst_335 = arith.constant 0.000000e+00 : f32
    %511 = vector.broadcast %cst_335 : f32 to vector<1x64xf32>
    %512 = arith.maximumf %510, %511 : vector<1x64xf32>
    %c0_336 = arith.constant 0 : index
    %c0_337 = arith.constant 0 : index
    %513 = vector.load %arg21[%c0_336, %c0_337] : memref<64x1xf32, #tpu.memory_space<vmem>>, vector<64x1xf32>
    %cst_338 = arith.constant dense<0.000000e+00> : vector<1x1xf32>
    %514 = tpu.matmul %512, %513, %cst_338 {dimension_numbers = #tpu.dot_dimension_numbers<[1], [0], [0], [1], [0, 0, 1, 1], [], []>} : vector<1x64xf32>, vector<64x1xf32>, vector<1x1xf32> -> vector<1x1xf32>
    %c0_339 = arith.constant 0 : index
    %c0_340 = arith.constant 0 : index
    %515 = vector.load %arg22[%c0_339, %c0_340] : memref<1x1xf32, #tpu.memory_space<vmem>>, vector<1x1xf32>
    %516 = arith.addf %514, %515 : vector<1x1xf32>
    %517 = vector.shape_cast %516 : vector<1x1xf32> to vector<1x1x1xf32>
    %c0_341 = arith.constant 0 : index
    %c0_342 = arith.constant 0 : index
    %c0_343 = arith.constant 0 : index
    %518 = vector.load %arg23[%c0_341, %c0_342, %c0_343] : memref<1x1x1xf32, #tpu.memory_space<vmem>>, vector<1x1x1xf32>
    tpu.vector_store %arg23[%c0_341, %c0_342, %c0_343], %517 {strides = array<i32>} : memref<1x1x1xf32, #tpu.memory_space<vmem>>, vector<1x1x1xf32>,
    return
  }
  func.func @transform_0(%arg0: i32) -> (i32, i32, i32, i32) {
    %c0_i32 = arith.constant 0 : i32
    %c0_i32_0 = arith.constant 0 : i32
    %c0_i32_1 = arith.constant 0 : i32
    %c0_i32_2 = arith.constant 0 : i32
    return %arg0, %c0_i32, %c0_i32_0, %c0_i32_1 : i32, i32, i32, i32
  }
  func.func @transform_1(%arg0: i32) -> (i32, i32, i32) {
    %c0_i32 = arith.constant 0 : i32
    %c0_i32_0 = arith.constant 0 : i32
    %c0_i32_1 = arith.constant 0 : i32
    return %arg0, %c0_i32, %c0_i32_0 : i32, i32, i32
  }
  func.func @transform_2(%arg0: i32) -> (i32, i32, i32) {
    %c0_i32 = arith.constant 0 : i32
    %c0_i32_0 = arith.constant 0 : i32
    %c0_i32_1 = arith.constant 0 : i32
    return %arg0, %c0_i32, %c0_i32_0 : i32, i32, i32
  }
  func.func @transform_3(%arg0: i32) -> (i32, i32) {
    %c0_i32 = arith.constant 0 : i32
    %c0_i32_0 = arith.constant 0 : i32
    %c0_i32_1 = arith.constant 0 : i32
    return %c0_i32, %c0_i32_0 : i32, i32
  }
  func.func @transform_4(%arg0: i32) -> (i32, i32, i32) {
    %c0_i32 = arith.constant 0 : i32
    %c0_i32_0 = arith.constant 0 : i32
    %c0_i32_1 = arith.constant 0 : i32
    %c0_i32_2 = arith.constant 0 : i32
    return %c0_i32, %c0_i32_0, %c0_i32_1 : i32, i32, i32
  }
  func.func @transform_5(%arg0: i32) -> (i32, i32) {
    %c0_i32 = arith.constant 0 : i32
    %c0_i32_0 = arith.constant 0 : i32
    %c0_i32_1 = arith.constant 0 : i32
    return %c0_i32, %c0_i32_0 : i32, i32
  }
  func.func @transform_6(%arg0: i32) -> (i32, i32, i32) {
    %c0_i32 = arith.constant 0 : i32
    %c0_i32_0 = arith.constant 0 : i32
    %c0_i32_1 = arith.constant 0 : i32
    %c0_i32_2 = arith.constant 0 : i32
    return %c0_i32, %c0_i32_0, %c0_i32_1 : i32, i32, i32
  }
  func.func @transform_7(%arg0: i32) -> (i32, i32) {
    %c0_i32 = arith.constant 0 : i32
    %c0_i32_0 = arith.constant 0 : i32
    %c0_i32_1 = arith.constant 0 : i32
    return %c0_i32, %c0_i32_0 : i32, i32
  }
  func.func @transform_8(%arg0: i32) -> (i32, i32, i32) {
    %c0_i32 = arith.constant 0 : i32
    %c0_i32_0 = arith.constant 0 : i32
    %c0_i32_1 = arith.constant 0 : i32
    %c0_i32_2 = arith.constant 0 : i32
    return %c0_i32, %c0_i32_0, %c0_i32_1 : i32, i32, i32
  }
  func.func @transform_9(%arg0: i32) -> (i32, i32) {
    %c0_i32 = arith.constant 0 : i32
    %c0_i32_0 = arith.constant 0 : i32
    %c0_i32_1 = arith.constant 0 : i32
    return %c0_i32, %c0_i32_0 : i32, i32
  }
  func.func @transform_10(%arg0: i32) -> (i32, i32, i32) {
    %c0_i32 = arith.constant 0 : i32
    %c0_i32_0 = arith.constant 0 : i32
    %c0_i32_1 = arith.constant 0 : i32
    %c0_i32_2 = arith.constant 0 : i32
    return %c0_i32, %c0_i32_0, %c0_i32_1 : i32, i32, i32
  }
  func.func @transform_11(%arg0: i32) -> (i32, i32) {
    %c0_i32 = arith.constant 0 : i32
    %c0_i32_0 = arith.constant 0 : i32
    %c0_i32_1 = arith.constant 0 : i32
    return %c0_i32, %c0_i32_0 : i32, i32
  }
  func.func @transform_12(%arg0: i32) -> (i32, i32, i32) {
    %c0_i32 = arith.constant 0 : i32
    %c0_i32_0 = arith.constant 0 : i32
    %c0_i32_1 = arith.constant 0 : i32
    %c0_i32_2 = arith.constant 0 : i32
    return %c0_i32, %c0_i32_0, %c0_i32_1 : i32, i32, i32
  }
  func.func @transform_13(%arg0: i32) -> (i32, i32) {
    %c0_i32 = arith.constant 0 : i32
    %c0_i32_0 = arith.constant 0 : i32
    %c0_i32_1 = arith.constant 0 : i32
    return %c0_i32, %c0_i32_0 : i32, i32
  }
  func.func @transform_14(%arg0: i32) -> (i32, i32, i32) {
    %c0_i32 = arith.constant 0 : i32
    %c0_i32_0 = arith.constant 0 : i32
    %c0_i32_1 = arith.constant 0 : i32
    %c0_i32_2 = arith.constant 0 : i32
    return %c0_i32, %c0_i32_0, %c0_i32_1 : i32, i32, i32
  }
  func.func @transform_15(%arg0: i32) -> (i32, i32) {
    %c0_i32 = arith.constant 0 : i32
    %c0_i32_0 = arith.constant 0 : i32
    %c0_i32_1 = arith.constant 0 : i32
    return %c0_i32, %c0_i32_0 : i32, i32
  }
  func.func @transform_16(%arg0: i32) -> (i32, i32, i32) {
    %c0_i32 = arith.constant 0 : i32
    %c0_i32_0 = arith.constant 0 : i32
    %c0_i32_1 = arith.constant 0 : i32
    %c0_i32_2 = arith.constant 0 : i32
    return %c0_i32, %c0_i32_0, %c0_i32_1 : i32, i32, i32
  }
  func.func @transform_17(%arg0: i32) -> (i32, i32) {
    %c0_i32 = arith.constant 0 : i32
    %c0_i32_0 = arith.constant 0 : i32
    %c0_i32_1 = arith.constant 0 : i32
    return %c0_i32, %c0_i32_0 : i32, i32
  }
  func.func @transform_18(%arg0: i32) -> (i32, i32) {
    %c0_i32 = arith.constant 0 : i32
    %c0_i32_0 = arith.constant 0 : i32
    %c0_i32_1 = arith.constant 0 : i32
    return %c0_i32, %c0_i32_0 : i32, i32
  }
  func.func @transform_19(%arg0: i32) -> (i32, i32) {
    %c0_i32 = arith.constant 0 : i32
    %c0_i32_0 = arith.constant 0 : i32
    %c0_i32_1 = arith.constant 0 : i32
    return %c0_i32, %c0_i32_0 : i32, i32
  }
  func.func @transform_20(%arg0: i32) -> (i32, i32) {
    %c0_i32 = arith.constant 0 : i32
    %c0_i32_0 = arith.constant 0 : i32
    %c0_i32_1 = arith.constant 0 : i32
    return %c0_i32, %c0_i32_0 : i32, i32
  }
  func.func @transform_21(%arg0: i32) -> (i32, i32) {
    %c0_i32 = arith.constant 0 : i32
    %c0_i32_0 = arith.constant 0 : i32
    %c0_i32_1 = arith.constant 0 : i32
    return %c0_i32, %c0_i32_0 : i32, i32
  }
  func.func @transform_22(%arg0: i32) -> (i32, i32, i32) {
    %c0_i32 = arith.constant 0 : i32
    %c0_i32_0 = arith.constant 0 : i32
    %c0_i32_1 = arith.constant 0 : i32
    return %arg0, %c0_i32, %c0_i32_0 : i32, i32, i32
  }
}

</mosaic_0001>

<bundles_post_ra>
// kernel: forward_pallas.1
= control target key start
LH: loop header
LB: loop body
LE: loop exit
PB: predicated region body
PF: predicated region fallthrough
CT: control target
= control target key end

     0   :  { %s24269_s0 = inlined_call_operand.vmem [shape: f32[2,16,16,1], index: 0, kind: input, shape index: {}]   ;;  %s24270_s1 = inlined_call_operand.vmem [shape: f32[2,1,64], index: 1, kind: input, shape index: {}]   ;;  %s24271_s2 = inlined_call_operand.vmem [shape: f32[2,1,64], index: 2, kind: input, shape index: {}]   ;;  %s24272_s3 = inlined_call_operand.vmem [shape: f32[64,256], index: 3, kind: input, shape index: {}]   ;;  %s24273_s4 = inlined_call_operand.hbm [shape: f32[9,1,32], index: 4, kind: input, shape index: {}]   ;;  %s24274_s5 = inlined_call_operand.hbm [shape: f32[1,32], index: 5, kind: input, shape index: {}]   ;;  %s24275_s6 = inlined_call_operand.vmem [shape: f32[9,32,64], index: 6, kind: input, shape index: {}]   ;;  %s24276_s7 = inlined_call_operand.hbm [shape: f32[1,64], index: 7, kind: input, shape index: {}]   ;;  %s24277_s8 = inlined_call_operand.vmem [shape: f32[9,64,64], index: 8, kind: input, shape index: {}]   ;;  %s24278_s9 = inlined_call_operand.hbm [shape: f32[1,64], index: 9, kind: input, shape index: {}]   ;;  %s24279_s10 = inlined_call_operand.hbm [shape: f32[9,64,64], index: 10, kind: input, shape index: {}]   ;;  %s24280_s11 = inlined_call_operand.hbm [shape: f32[1,64], index: 11, kind: input, shape index: {}]   ;;  %s24281_s12 = inlined_call_operand.hbm [shape: f32[9,64,64], index: 12, kind: input, shape index: {}]   ;;  %s24282_s13 = inlined_call_operand.vmem [shape: f32[1,64], index: 13, kind: input, shape index: {}]   ;;  %s24283_s14 = inlined_call_operand.hbm [shape: f32[9,64,64], index: 14, kind: input, shape index: {}]   ;;  %s24284_s15 = inlined_call_operand.vmem [shape: f32[1,64], index: 15, kind: input, shape index: {}]   ;;  %s24285_s16 = inlined_call_operand.hbm [shape: f32[9,64,64], index: 16, kind: input, shape index: {}]   ;;  %s24286_s17 = inlined_call_operand.hbm [shape: f32[1,64], index: 17, kind: input, shape index: {}]   ;;  %s24287_s18 = inlined_call_operand.hbm [shape: f32[64,64], index: 18, kind: input, shape index: {}]   ;;  %s24288_s19 = inlined_call_operand.hbm [shape: f32[1,64], index: 19, kind: input, shape index: {}]   ;;  %s24289_s20 = inlined_call_operand.vmem [shape: f32[64,1], index: 20, kind: input, shape index: {}]   ;;  %s24290_s21 = inlined_call_operand.<no memory space> [shape: f32[1,1], index: 21, kind: input, shape index: {}]   ;;  %s24291_s22 = inlined_call_operand.vmem [shape: f32[2,1,1], index: 22, kind: output, shape index: {}]  }
   0x1   :  { %24389 = sst [smem:[#allocation88_spill]] %s24269_s0  ;;  %v27_v0 = vstv %s24290_s21 }
   0x2   :  { %24390 = sst [smem:[#allocation89_spill]] %s24270_s1  ;;  %28 = vst [vmem:[#allocation5] sm:$0x1] %v27_v0 }
   0x3   :  { %24391 = sst [smem:[#allocation90_spill]] %s24271_s2 }
   0x4   :  { %24392 = sst [smem:[#allocation91_spill]] %s24272_s3 }
   0x5   :  { %24393 = sst [smem:[#allocation92_spill]] %s24273_s4 }
   0x6   :  { %24394 = sst [smem:[#allocation93_spill]] %s24274_s5 }
   0x7   :  { %24395 = sst [smem:[#allocation94_spill]] %s24275_s6 }
   0x8   :  { %24396 = sst [smem:[#allocation95_spill]] %s24278_s9 }
   0x9   :  { %24397 = sst [smem:[#allocation96_spill]] %s24280_s11 }
   0xa   :  { %24398 = sst [smem:[#allocation97_spill]] %s24283_s14 }
   0xb   :  { %24399 = sst [smem:[#allocation98_spill]] %s24289_s20 }
   0xc   :  { %24400 = sst [smem:[#allocation99_spill]] %s24291_s22 }
   0xd   :  { %29 = vsyncpa [#allocation7], 0 }
   0xe   :  { %30 = vsyncpa [#allocation9], 0 }
   0xf   :  { %31 = vsyncpa [#allocation12], 0 }
  0x10   :  { %32 = vsyncpa [#allocation15], 0 }
  0x11   :  { %33 = vsyncpa [#allocation18], 0 }
  0x12   :  { %34 = vsyncpa [#allocation21], 0 }
  0x13   :  { %35 = vsyncpa [#allocation24], 0  ;;  %s19507_s29 = smov 0  }
  0x14 LB: > { %24401 = sst [smem:[#allocation32_spill]] %s19367_s29  ;;  %s19369_s30 = smov [#allocation8]   ;;  %s19367_s29 = sphi %s19507_s29, %s41_s29  }
  0x15   : > { %s578_s21 = sshll.u32 %s19369_s30, 4  ;;  %s19513_s4 = sadd.s32 4294967295, %s19367_s29   ;;  %s19518_s21 = int_to_ptr.vmem [resolvable:$true] %s578_s21 }
  0x16   : > { %p13333_p0 = scmp.ge.s32.totalorder %s19367_s29, 1  ;;  %p549_p1 = scmp.lt.s32.totalorder %s19367_s29, 3 }
  0x17   : > { %p24298_p2 = scmp.eq.s32.totalorder %s19513_s4, 0  ;;  %s19370_s23 = smov [#allocation11]  }
  0x18   : > { %p19520_p3 = pnand %p13333_p0, %p549_p1  ;;  %s606_s1 = sshll.u32 %s19370_s23, 4  ;;  %s19526_s1 = int_to_ptr.vmem [resolvable:$true] %s606_s1 }
  0x19   : > { %s19371_s5 = smov [#allocation14]   ;;  %s19372_s25 = smov [#allocation17]  }
  0x1a   : > { %s24402_s0 = scalar_select %p19520_p3, 1, 0 }
  0x1b   : > { %p18589_p4 = pneg %p19520_p3  ;;  %s630_s24 = sshll.u32 %s19371_s5, 4  ;;  %s19534_s24 = int_to_ptr.vmem [resolvable:$true] %s630_s24 }
  0x1c   : > { %s19536_s26 = sshll.u32 %s19372_s25, 4  ;;  %s24404_s3 = sld [smem:[#allocation93_spill]]  ;;  %s657_s26 = int_to_ptr.vmem [resolvable:$true] %s19536_s26 }
  0x1d   : > { %p19530_p5 = pnand %p24298_p2, %p18589_p4 }
  0x1f   : > { %p19546_p7 = pneg %p19530_p5 }
  0x22   : > { %s18997_s28 = scalar_lea.hbm %s24404_s3, 16 }
  0x23   : > { %p18998_p6 = scmp.ne.s32.totalorder %s24404_s3, %s18997_s28  ;;  %p19004_p10 = scmp.lt.u32.totalorder %s18997_s28, %s24404_s3 }
  0x25   : > { %p19000_p8 = pnand %p19546_p7, %p18998_p6 }
  0x27   : > { %p19001_p9 = pneg %p19000_p8 }
  0x29   : > { %p19006_p11 = pnand %p19004_p10, %p19001_p9 }
  0x2b   : > { %19009 = shalt.err (!%p19006_p11)
}
  0x2c   : > { %s19010_s2 = scalar_lea.vmem %s19518_s21, 16  ;;  %s19017_s27 = scalar_lea.vmem %s19518_s21, 32 }
  0x2d   : > { %p19011_p12 = scmp.ne.s32.totalorder %s19518_s21, %s19010_s2  ;;  %p19018_p1 = scmp.lt.s32.totalorder %s19518_s21, %s19518_s21 }
  0x2e   : > { %p19019_p4 = scmp.lt.s32.totalorder %s19017_s27, %s19010_s2 }
  0x2f   : > { %p19013_p13 = pnand %p19011_p12, %p19546_p7 }
  0x30   : > { %p19020_p6 = por %p19019_p4, %p19018_p1 }
  0x31   : > { %p19014_p0 = pneg %p19013_p13 }
  0x33   : > { %p19021_p8 = pnand %p19020_p6, %p19014_p0 }
  0x35   : > { %19024 = shalt.err (!%p19021_p8)
}
  0x36   : > { %18595 = dma.hbm_to_vmem [thread:$0]  (!%p19530_p5), %s24404_s3, 16, %s19518_s21, [#allocation9]  }
  0x37   : > { %s24406_s9 = sld [smem:[#allocation95_spill]] }
  0x3d   : > { %s19025_s25 = scalar_lea.hbm %s24406_s9, 16 }
  0x3e   : > { %p19026_p9 = scmp.ne.s32.totalorder %s24406_s9, %s19025_s25  ;;  %p19032_p12 = scmp.lt.u32.totalorder %s19025_s25, %s24406_s9 }
  0x40   : > { %p19028_p10 = pnand %p19026_p9, %p19546_p7 }
  0x42   : > { %p19029_p11 = pneg %p19028_p10 }
  0x44   : > { %p19034_p13 = pnand %p19032_p12, %p19029_p11 }
  0x46   : > { %19037 = shalt.err (!%p19034_p13)
}
  0x47   : > { %s19038_s21 = scalar_lea.vmem %s19526_s1, 16  ;;  %s19045_s20 = scalar_lea.vmem %s19526_s1, 32 }
  0x48   : > { %p19039_p0 = scmp.ne.s32.totalorder %s19526_s1, %s19038_s21  ;;  %p19046_p6 = scmp.lt.s32.totalorder %s19526_s1, %s19526_s1 }
  0x49   : > { %p19047_p8 = scmp.lt.s32.totalorder %s19045_s20, %s19038_s21 }
  0x4a   : > { %p19041_p1 = pnand %p19039_p0, %p19546_p7 }
  0x4b   : > { %p19048_p9 = por %p19047_p8, %p19046_p6 }
  0x4c   : > { %p19042_p4 = pneg %p19041_p1 }
  0x4e   : > { %p19049_p10 = pnand %p19048_p9, %p19042_p4 }
  0x50   : > { %19052 = shalt.err (!%p19049_p10)
}
  0x51   : > { %18601 = dma.hbm_to_vmem [thread:$0]  (!%p19530_p5), %s24406_s9, 16, %s19526_s1, [#allocation12]  }
  0x52   : > { %s24407_s11 = sld [smem:[#allocation96_spill]] }
  0x58   : > { %s19053_s23 = scalar_lea.hbm %s24407_s11, 16 }
  0x59   : > { %p19054_p11 = scmp.ne.s32.totalorder %s24407_s11, %s19053_s23  ;;  %p19060_p0 = scmp.lt.u32.totalorder %s19053_s23, %s24407_s11 }
  0x5b   : > { %p19056_p12 = pnand %p19054_p11, %p19546_p7 }
  0x5d   : > { %p19057_p13 = pneg %p19056_p12 }
  0x5f   : > { %p19062_p1 = pnand %p19060_p0, %p19057_p13 }
  0x61   : > { %19065 = shalt.err (!%p19062_p1)
}
  0x62   : > { %s19066_s1 = scalar_lea.vmem %s19534_s24, 16  ;;  %s19073_s20 = scalar_lea.vmem %s19534_s24, 32 }
  0x63   : > { %p19067_p4 = scmp.ne.s32.totalorder %s19534_s24, %s19066_s1  ;;  %p19074_p9 = scmp.lt.s32.totalorder %s19534_s24, %s19534_s24 }
  0x64   : > { %p19075_p10 = scmp.lt.s32.totalorder %s19073_s20, %s19066_s1 }
  0x65   : > { %p19069_p6 = pnand %p19067_p4, %p19546_p7 }
  0x66   : > { %p19076_p11 = por %p19075_p10, %p19074_p9 }
  0x67   : > { %p19070_p8 = pneg %p19069_p6 }
  0x69   : > { %p19077_p12 = pnand %p19076_p11, %p19070_p8 }
  0x6b   : > { %19080 = shalt.err (!%p19077_p12)
}
  0x6c   : > { %18607 = dma.hbm_to_vmem [thread:$0]  (!%p19530_p5), %s24407_s11, 16, %s19534_s24, [#allocation15]  }
  0x6d   : > { %s24408_s14 = sld [smem:[#allocation97_spill]] }
  0x73   : > { %s19081_s23 = scalar_lea.hbm %s24408_s14, 9216 }
  0x74   : > { %p19082_p13 = scmp.ne.s32.totalorder %s24408_s14, %s19081_s23  ;;  %p19088_p4 = scmp.lt.u32.totalorder %s19081_s23, %s24408_s14 }
  0x76   : > { %p19084_p0 = pnand %p19082_p13, %p19546_p7 }
  0x78   : > { %p19085_p1 = pneg %p19084_p0 }
  0x7a   : > { %p19090_p6 = pnand %p19088_p4, %p19085_p1 }
  0x7c   : > { %19093 = shalt.err (!%p19090_p6)
}
  0x7d   : > { %s19094_s1 = scalar_lea.vmem %s657_s26, 9216  ;;  %p19102_p11 = scmp.lt.s32.totalorder %s657_s26, %s657_s26 }
  0x7e   : > { %p19095_p8 = scmp.ne.s32.totalorder %s657_s26, %s19094_s1  ;;  %p19103_p12 = scmp.lt.s32.totalorder %s19094_s1, %s19094_s1 }
  0x80   : > { %p19097_p9 = pnand %p19095_p8, %p19546_p7  ;;  %p19104_p2 = por %p19103_p12, %p19102_p11 }
  0x82   : > { %p19098_p10 = pneg %p19097_p9 }
  0x84   : > { %p19105_p3 = pnand %p19104_p2, %p19098_p10 }
  0x86   : > { %19108 = shalt.err (!%p19105_p3)
}
  0x87   : > { %s24301_s24 = smov 128   ;;  %s24303_s20 = smov 8  }
  0x88   : > { %18613 = dma.hbm_to_vmem [thread:$0]  (!%p19530_p5), %s24408_s14, 9216, %s657_s26, [#allocation18], %s24301_s24, %s24301_s24, %s24303_s20  }
  0x89   : > { %s19375_s28 = smov [#allocation20]   ;;  %s19376_s23 = smov [#allocation6]  }
  0x8a   : > { %s686_s30 = sshll.u32 %s19375_s28, 4  ;;  %s564_s25 = sshll.u32 %s19376_s23, 4  ;;  %s687_s30 = int_to_ptr.vmem [resolvable:$true] %s686_s30  ;;  %s565_s25 = int_to_ptr.vmem [resolvable:$true] %s564_s25 }
  0x8b   : > { %s19109_s21 = scalar_lea.hbm %s24286_s17, 16 }
  0x8c   : > { %p19110_p2 = scmp.ne.s32.totalorder %s24286_s17, %s19109_s21  ;;  %p19116_p0 = scmp.lt.u32.totalorder %s19109_s21, %s24286_s17 }
  0x8e   : > { %p19112_p3 = pnand %p19110_p2, %p19546_p7 }
  0x90   : > { %p19113_p13 = pneg %p19112_p3 }
  0x92   : > { %p19118_p1 = pnand %p19116_p0, %p19113_p13 }
  0x94   : > { %19121 = shalt.err (!%p19118_p1)
}
  0x95   : > { %s19122_s26 = scalar_lea.vmem %s687_s30, 16  ;;  %s19129_s22 = scalar_lea.vmem %s687_s30, 32 }
  0x96   : > { %p19123_p4 = scmp.ne.s32.totalorder %s687_s30, %s19122_s26  ;;  %p19130_p9 = scmp.lt.s32.totalorder %s687_s30, %s687_s30 }
  0x97   : > { %p19131_p10 = scmp.lt.s32.totalorder %s19129_s22, %s19122_s26 }
  0x98   : > { %p19125_p6 = pnand %p19123_p4, %p19546_p7 }
  0x99   : > { %p19132_p11 = por %p19131_p10, %p19130_p9 }
  0x9a   : > { %p19126_p8 = pneg %p19125_p6 }
  0x9c   : > { %p19133_p12 = pnand %p19132_p11, %p19126_p8 }
  0x9e   : > { %19136 = shalt.err (!%p19133_p12)
}
  0x9f   : > { %18619 = dma.hbm_to_vmem [thread:$0]  (!%p19530_p5), %s24286_s17, 16, %s687_s30, [#allocation21]  }
  0xa0   : > { %s24409_s28 = sld [smem:[#allocation92_spill]] }
  0xa6   : > { %s19137_s23 = scalar_lea.hbm %s24409_s28, 144 }
  0xa7   : > { %p19138_p2 = scmp.ne.s32.totalorder %s24409_s28, %s19137_s23  ;;  %p19144_p0 = scmp.lt.u32.totalorder %s19137_s23, %s24409_s28 }
  0xa9   : > { %p19140_p3 = pnand %p19138_p2, %p19546_p7 }
  0xab   : > { %p19141_p13 = pneg %p19140_p3 }
  0xad   : > { %p19146_p1 = pnand %p19144_p0, %p19141_p13 }
  0xaf   : > { %19149 = shalt.err (!%p19146_p1)
}
  0xb0   : > { %s19150_s26 = scalar_lea.vmem %s565_s25, 144  ;;  %s19157_s30 = scalar_lea.vmem %s565_s25, 160 }
  0xb1   : > { %p19151_p4 = scmp.ne.s32.totalorder %s565_s25, %s19150_s26  ;;  %p19158_p9 = scmp.lt.s32.totalorder %s565_s25, %s565_s25 }
  0xb2   : > { %p19159_p10 = scmp.lt.s32.totalorder %s19157_s30, %s19150_s26 }
  0xb3   : > { %p19153_p6 = pnand %p19151_p4, %p19546_p7 }
  0xb4   : > { %p19160_p11 = por %p19159_p10, %p19158_p9 }
  0xb5   : > { %p19154_p8 = pneg %p19153_p6 }
  0xb7   : > { %p19161_p12 = pnand %p19160_p11, %p19154_p8 }
  0xb9   : > { %19164 = shalt.err (!%p19161_p12)
}
  0xba   : > { %s19377_s22 = smov 16   ;;  %s19378_s3 = smov 1  }
  0xbb   : > { %18592 = dma.hbm_to_vmem [thread:$0]  (!%p19530_p5), %s24409_s28, 144, %s565_s25, [#allocation7], %s19377_s22, %s19377_s22, %s19378_s3  }
  0xbc   : > { %s19379_s11 = smov [#allocation10]   ;;  %s19380_s2 = smov [#allocation13]  }
  0xbd   : > { %s592_s23 = sshll.u32 %s19379_s11, 4  ;;  %s616_s27 = sshll.u32 %s19380_s2, 4  ;;  %s593_s23 = int_to_ptr.vmem [resolvable:$true] %s592_s23  ;;  %s617_s27 = int_to_ptr.vmem [resolvable:$true] %s616_s27 }
  0xbe   : > { %s19165_s26 = scalar_lea.hbm %s24276_s7, 16 }
  0xbf   : > { %p19166_p2 = scmp.ne.s32.totalorder %s24276_s7, %s19165_s26  ;;  %p19172_p0 = scmp.lt.u32.totalorder %s19165_s26, %s24276_s7 }
  0xc1   : > { %p19168_p3 = pnand %p19166_p2, %p19546_p7 }
  0xc3   : > { %p19169_p13 = pneg %p19168_p3 }
  0xc5   : > { %p19174_p1 = pnand %p19172_p0, %p19169_p13 }
  0xc7   : > { %19177 = shalt.err (!%p19174_p1)
}
  0xc8   : > { %s19178_s25 = scalar_lea.vmem %s593_s23, 16  ;;  %s19185_s22 = scalar_lea.vmem %s593_s23, 32 }
  0xc9   : > { %p19179_p4 = scmp.ne.s32.totalorder %s593_s23, %s19178_s25  ;;  %p19186_p9 = scmp.lt.s32.totalorder %s593_s23, %s593_s23 }
  0xca   : > { %p19187_p10 = scmp.lt.s32.totalorder %s19185_s22, %s19178_s25 }
  0xcb   : > { %p19181_p6 = pnand %p19179_p4, %p19546_p7 }
  0xcc   : > { %p19188_p11 = por %p19187_p10, %p19186_p9 }
  0xcd   : > { %p19182_p8 = pneg %p19181_p6 }
  0xcf   : > { %p19189_p12 = pnand %p19188_p11, %p19182_p8 }
  0xd1   : > { %19192 = shalt.err (!%p19189_p12)
}
  0xd2   : > { %18598 = dma.hbm_to_vmem [thread:$0]  (!%p19530_p5), %s24276_s7, 16, %s593_s23, [#allocation9]  }
  0xd3   : > { %s19193_s29 = scalar_lea.hbm %s24279_s10, 9216 }
  0xd4   : > { %p19194_p2 = scmp.ne.s32.totalorder %s24279_s10, %s19193_s29  ;;  %p19200_p0 = scmp.lt.u32.totalorder %s19193_s29, %s24279_s10 }
  0xd6   : > { %p19196_p3 = pnand %p19194_p2, %p19546_p7 }
  0xd8   : > { %p19197_p13 = pneg %p19196_p3 }
  0xda   : > { %p19202_p1 = pnand %p19200_p0, %p19197_p13 }
  0xdc   : > { %19205 = shalt.err (!%p19202_p1)
}
  0xdd   : > { %s19206_s1 = scalar_lea.vmem %s617_s27, 9216  ;;  %p19214_p9 = scmp.lt.s32.totalorder %s617_s27, %s617_s27 }
  0xde   : > { %p19207_p4 = scmp.ne.s32.totalorder %s617_s27, %s19206_s1  ;;  %p19215_p10 = scmp.lt.s32.totalorder %s19206_s1, %s19206_s1 }
  0xe0   : > { %p19209_p6 = pnand %p19207_p4, %p19546_p7  ;;  %p19216_p11 = por %p19215_p10, %p19214_p9 }
  0xe2   : > { %p19210_p8 = pneg %p19209_p6 }
  0xe4   : > { %p19217_p12 = pnand %p19216_p11, %p19210_p8 }
  0xe6   : > { %19220 = shalt.err (!%p19217_p12)
}
  0xe7   : > { %s24410_s23 = smov 8   ;;  %s24411_s26 = smov 128  }
  0xe8   : > { %18604 = dma.hbm_to_vmem [thread:$0]  (!%p19530_p5), %s24279_s10, 9216, %s617_s27, [#allocation12], %s24411_s26, %s24411_s26, %s24410_s23  }
  0xe9   : > { %s19381_s22 = smov [#allocation16]   ;;  %s19382_s3 = smov [#allocation19]  }
  0xea   : > { %s640_s24 = sshll.u32 %s19381_s22, 4  ;;  %s672_s14 = sshll.u32 %s19382_s3, 4  ;;  %s641_s24 = int_to_ptr.vmem [resolvable:$true] %s640_s24  ;;  %s673_s14 = int_to_ptr.vmem [resolvable:$true] %s672_s14 }
  0xeb   : > { %s19221_s9 = scalar_lea.hbm %s24281_s12, 9216 }
  0xec   : > { %p19222_p2 = scmp.ne.s32.totalorder %s24281_s12, %s19221_s9  ;;  %p19228_p0 = scmp.lt.u32.totalorder %s19221_s9, %s24281_s12 }
  0xee   : > { %p19224_p3 = pnand %p19222_p2, %p19546_p7 }
  0xf0   : > { %p19225_p13 = pneg %p19224_p3 }
  0xf2   : > { %p19230_p1 = pnand %p19228_p0, %p19225_p13 }
  0xf4   : > { %19233 = shalt.err (!%p19230_p1)
}
  0xf5   : > { %s19234_s27 = scalar_lea.vmem %s641_s24, 9216  ;;  %p19242_p9 = scmp.lt.s32.totalorder %s641_s24, %s641_s24 }
  0xf6   : > { %p19235_p4 = scmp.ne.s32.totalorder %s641_s24, %s19234_s27  ;;  %p19243_p10 = scmp.lt.s32.totalorder %s19234_s27, %s19234_s27 }
  0xf8   : > { %p19237_p6 = pnand %p19235_p4, %p19546_p7  ;;  %p19244_p11 = por %p19243_p10, %p19242_p9 }
  0xfa   : > { %p19238_p8 = pneg %p19237_p6 }
  0xfc   : > { %p19245_p12 = pnand %p19244_p11, %p19238_p8 }
  0xfe   : > { %19248 = shalt.err (!%p19245_p12)
}
  0xff   : > { %18610 = dma.hbm_to_vmem [thread:$0]  (!%p19530_p5), %s24281_s12, 9216, %s641_s24, [#allocation15], %s24411_s26, %s24411_s26, %s24410_s23  }
 0x100   : > { %s19249_s20 = scalar_lea.hbm %s24285_s16, 9216 }
 0x101   : > { %p19250_p2 = scmp.ne.s32.totalorder %s24285_s16, %s19249_s20  ;;  %p19256_p0 = scmp.lt.u32.totalorder %s19249_s20, %s24285_s16 }
 0x103   : > { %p19252_p3 = pnand %p19250_p2, %p19546_p7 }
 0x105   : > { %p19253_p13 = pneg %p19252_p3 }
 0x107   : > { %p19258_p1 = pnand %p19256_p0, %p19253_p13 }
 0x109   : > { %19261 = shalt.err (!%p19258_p1)
}
 0x10a   : > { %s19262_s21 = scalar_lea.vmem %s673_s14, 9216  ;;  %p19270_p9 = scmp.lt.s32.totalorder %s673_s14, %s673_s14 }
 0x10b   : > { %p19263_p4 = scmp.ne.s32.totalorder %s673_s14, %s19262_s21  ;;  %p19271_p10 = scmp.lt.s32.totalorder %s19262_s21, %s19262_s21 }
 0x10d   : > { %p19265_p6 = pnand %p19263_p4, %p19546_p7  ;;  %p19272_p11 = por %p19271_p10, %p19270_p9 }
 0x10f   : > { %p19266_p8 = pneg %p19265_p6 }
 0x111   : > { %p19273_p12 = pnand %p19272_p11, %p19266_p8 }
 0x113   : > { %19276 = shalt.err (!%p19273_p12)
}
 0x114   : > { %18616 = dma.hbm_to_vmem [thread:$0]  (!%p19530_p5), %s24285_s16, 9216, %s673_s14, [#allocation18], %s24411_s26, %s24411_s26, %s24410_s23  }
 0x115   : > { %s19383_s27 = smov [#allocation22]   ;;  %s19384_s25 = smov [#allocation23]  }
 0x116   : > { %s696_s30 = sshll.u32 %s19383_s27, 4  ;;  %s710_s22 = sshll.u32 %s19384_s25, 4  ;;  %s697_s30 = int_to_ptr.vmem [resolvable:$true] %s696_s30  ;;  %s711_s22 = int_to_ptr.vmem [resolvable:$true] %s710_s22 }
 0x117   : > { %s19277_s29 = scalar_lea.hbm %s24287_s18, 1024 }
 0x118   : > { %p19278_p2 = scmp.ne.s32.totalorder %s24287_s18, %s19277_s29  ;;  %p19284_p0 = scmp.lt.u32.totalorder %s19277_s29, %s24287_s18 }
 0x11a   : > { %p19280_p3 = pnand %p19278_p2, %p19546_p7 }
 0x11c   : > { %p19281_p13 = pneg %p19280_p3 }
 0x11e   : > { %p19286_p1 = pnand %p19284_p0, %p19281_p13 }
 0x120   : > { %19289 = shalt.err (!%p19286_p1)
}
 0x121   : > { %s19290_s14 = scalar_lea.vmem %s697_s30, 1024  ;;  %p19298_p9 = scmp.lt.s32.totalorder %s697_s30, %s697_s30 }
 0x122   : > { %p19291_p4 = scmp.ne.s32.totalorder %s697_s30, %s19290_s14  ;;  %p19299_p10 = scmp.lt.s32.totalorder %s19290_s14, %s19290_s14 }
 0x124   : > { %p19293_p6 = pnand %p19291_p4, %p19546_p7  ;;  %p19300_p11 = por %p19299_p10, %p19298_p9 }
 0x126   : > { %p19294_p8 = pneg %p19293_p6 }
 0x128   : > { %p19301_p12 = pnand %p19300_p11, %p19294_p8 }
 0x12a   : > { %19304 = shalt.err (!%p19301_p12)
}
 0x12b   : > { %18622 = dma.hbm_to_vmem [thread:$0]  (!%p19530_p5), %s24287_s18, 1024, %s697_s30, [#allocation21], %s24411_s26, %s24411_s26, %s24410_s23  }
 0x12c   : > { %s19305_s3 = scalar_lea.hbm %s24288_s19, 16 }
 0x12d   : > { %p19306_p2 = scmp.ne.s32.totalorder %s24288_s19, %s19305_s3  ;;  %p19312_p0 = scmp.lt.u32.totalorder %s19305_s3, %s24288_s19 }
 0x12f   : > { %p19308_p3 = pnand %p19306_p2, %p19546_p7 }
 0x131   : > { %p19309_p13 = pneg %p19308_p3 }
 0x133   : > { %p19314_p1 = pnand %p19312_p0, %p19309_p13 }
 0x135   : > { %19317 = shalt.err (!%p19314_p1)
}
 0x136   : > { %s19318_s2 = scalar_lea.vmem %s711_s22, 16  ;;  %s19325_s23 = scalar_lea.vmem %s711_s22, 32 }
 0x137   : > { %p19319_p4 = scmp.ne.s32.totalorder %s711_s22, %s19318_s2  ;;  %p19326_p9 = scmp.lt.s32.totalorder %s711_s22, %s711_s22 }
 0x138   : > { %p19327_p10 = scmp.lt.s32.totalorder %s19325_s23, %s19318_s2 }
 0x139   : > { %p19321_p6 = pnand %p19319_p4, %p19546_p7 }
 0x13a   : > { %p19328_p11 = por %p19327_p10, %p19326_p9 }
 0x13b   : > { %p19322_p8 = pneg %p19321_p6 }
 0x13d   : > { %p19329_p12 = pnand %p19328_p11, %p19322_p8 }
 0x13f   : > { %19332 = shalt.err (!%p19329_p12)
}
 0x140   : > { %18625 = dma.hbm_to_vmem [thread:$0]  (!%p19530_p5), %s24288_s19, 16, %s711_s22, [#allocation24]  }
 0x141   : > { %p24412_p2 = scmp.ne.s32.totalorder %s24402_s0, 0 }
 0x143   : > { %749 = sbr.rel (%p24412_p2) target bundleno = 4281 (0x10b9), region = 108 }
 0x14a   : > { %p24413_p3 = scmp.eq.s32.totalorder %s19513_s4, 0 }
 0x14c   : > { %19338 = dma.done.wait (%p24413_p3), [#allocation7], 144   ;;  %p24414_p7 = pmov %p24413_p3 }
 0x14d   : > { %p24415_p13 = pmov %p24413_p3 }
 0x14e   : > { %19340 = vsyncadd (%p24414_p7), [#allocation7], 4294967152 }
 0x14f   : > { %19342 = dma.done.wait (%p24415_p13), [#allocation9], 32   ;;  %p24416_p0 = pmov %p24413_p3 }
 0x151   : > { %19344 = vsyncadd (%p24416_p0), [#allocation9], 4294967264  ;;  %p24417_p1 = pmov %p24416_p0 }
 0x152   : > { %p24418_p5 = pmov %p24416_p0 }
 0x153   : > { %19346 = dma.done.wait (%p24417_p1), [#allocation12], 9232  }
 0x154   : > { %19348 = vsyncadd (%p24418_p5), [#allocation12], 4294958064  ;;  %p24419_p4 = pmov %p24416_p0 }
 0x155   : > { %p24420_p6 = pmov %p24416_p0 }
 0x156   : > { %19350 = dma.done.wait (%p24419_p4), [#allocation15], 9232  }
 0x157   : > { %19352 = vsyncadd (%p24420_p6), [#allocation15], 4294958064  ;;  %p24421_p8 = pmov %p24416_p0 }
 0x158   : > { %p24422_p9 = pmov %p24416_p0 }
 0x159   : > { %19354 = dma.done.wait (%p24421_p8), [#allocation18], 18432  }
 0x15a   : > { %19356 = vsyncadd (%p24422_p9), [#allocation18], 4294948864  ;;  %p24423_p10 = pmov %p24416_p0 }
 0x15b   : > { %p24424_p11 = pmov %p24416_p0 }
 0x15c   : > { %19358 = dma.done.wait (%p24423_p10), [#allocation21], 1040  }
 0x15d   : > { %19360 = vsyncadd (%p24424_p11), [#allocation21], 4294966256  ;;  %p24425_p12 = pmov %p24416_p0 }
 0x15e   : > { %p24426_p2 = pmov %p24416_p0 }
 0x15f   : > { %19362 = dma.done.wait (%p24425_p12), [#allocation24], 16  }
 0x160   : > { %19364 = vsyncadd (%p24426_p2), [#allocation24], 4294967280  ;;  %vm873_vm0 = vcmask 7168   ;;  %vm876_vm1 = vcmask 1024   ;;  %v19385_v1 = vmov 0   ;;  %v24305_v2 = vmov 0.0  }
 0x161   : > { %18678 = vset.pattern.permute.xlu0 %v19385_v1  ;;  %874 = vst.msk [vmem:[#allocation2] sm:$0xff] %vm873_vm0, %v24305_v2  ;;  %875 = vst.msk [vmem:[#allocation2 + $0x8] sm:$0xff] %vm873_vm0, %v24305_v2  ;;  %18679 = vset.pattern.permute.xlu1 %v19385_v1  ;;  %p859_p3 = scmp.lt.s32.totalorder %s19513_s4, 1  ;;  %s24427_s22 = sld [smem:[#allocation88_spill]]  ;;  %vm929_vm2 = vcmask 261120   ;;  %vm932_vm3 = vcmask 254976  }
 0x162   : > { %878 = vst.msk [vmem:[#allocation2 + $0x18] sm:$0xff] %vm873_vm0, %v24305_v2  ;;  %879 = vst.msk [vmem:[#allocation2 + $0x20] sm:$0xff] %vm873_vm0, %v24305_v2  ;;  %s24428_s1 = sld [smem:[#allocation94_spill]]  ;;  %vm1541_vm4 = vcmask 1046528   ;;  %vm1790_vm5 = vcmask 1045504   ;;  %s24580_s27 = sld [smem:[#allocation91_spill]] }
 0x163   : > { %881 = vst.msk [vmem:[#allocation2 + $0x30] sm:$0xff] %vm873_vm0, %v24305_v2  ;;  %882 = vst.msk [vmem:[#allocation2 + $0x38] sm:$0xff] %vm873_vm0, %v24305_v2  ;;  %s24610_s4 = smov (!%p859_p3, %s19513_s4), 1  ;;  %vm985_vm6 = vcmask 523264   ;;  %vm987_vm7 = vcmask 517120   ;;  %s24604_s2 = sld [smem:[#allocation89_spill]] }
 0x164   : > { %884 = vst.msk [vmem:[#allocation2 + $0x48] sm:$0xff] %vm873_vm0, %v24305_v2  ;;  %885 = vst.msk [vmem:[#allocation2 + $0x50] sm:$0xff] %vm873_vm0, %v24305_v2  ;;  %s14192_s0 = sshll.u32 %s24610_s4, 8  ;;  %vm19388_vm8 = vmmov 0   ;;  %s24606_s3 = sld [smem:[#allocation98_spill]]  ;;  %vm13147_vm11 = vcmask 0  }
 0x165   : > { %887 = vst.msk [vmem:[#allocation2 + $0x60] sm:$0xff] %vm873_vm0, %v24305_v2  ;;  %888 = vst.msk [vmem:[#allocation2 + $0x68] sm:$0xff] %vm873_vm0, %v24305_v2  ;;  %s24607_s20 = sld [smem:[#allocation99_spill]] }
 0x166   : > { %890 = vst.msk [vmem:[#allocation2 + $0x78] sm:$0xff] %vm873_vm0, %v24305_v2  ;;  %891 = vst.msk [vmem:[#allocation2 + $0x80] sm:$0xff] %vm873_vm0, %v24305_v2 }
 0x167   : > { %893 = vst.msk [vmem:[#allocation2 + $0x90] sm:$0xff] %vm873_vm0, %v24305_v2  ;;  %894 = vst.msk [vmem:[#allocation2 + $0x98] sm:$0xff] %vm873_vm0, %v24305_v2  ;;  %s19940_s21 = scalar_lea.vmem %s24427_s22, %s14192_s0  ;;  %s24605_s0 = sld [smem:[#allocation90_spill]] }
 0x168   : > { %896 = vst.msk [vmem:[#allocation2 + $0xa8] sm:$0xff] %vm873_vm0, %v24305_v2  ;;  %897 = vst.msk [vmem:[#allocation2 + $0xb0] sm:$0xff] %vm873_vm0, %v24305_v2  ;;  %v1007_v3 = vld [vmem:[%s19940_s21] sm:$0xff]  ;;  %v1008_v4 = vld [vmem:[%s19940_s21 + $0x8] sm:$0xff] }
 0x169   : > { %899 = vst.msk [vmem:[#allocation2 + $0xc0] sm:$0xff] %vm873_vm0, %v24305_v2  ;;  %900 = vst.msk [vmem:[#allocation2 + $0xc8] sm:$0xff] %vm873_vm0, %v24305_v2  ;;  %v1009_v5 = vld [vmem:[%s19940_s21 + $0x10] sm:$0xff]  ;;  %v1072_v6 = vld [vmem:[#allocation2] sm:$0xff]  ;;  %s866_s23 = scalar_lea.vmem %s24604_s2, %s24610_s4 }
 0x16a   : > { %902 = vst.msk [vmem:[#allocation2 + $0xd8] sm:$0xff] %vm873_vm0, %v24305_v2  ;;  %903 = vst.msk [vmem:[#allocation2 + $0xe0] sm:$0xff] %vm873_vm0, %v24305_v2  ;;  %v1073_v8 = vld [vmem:[#allocation2 + $0x8] sm:$0xff]  ;;  %1129 = vperm.xlu0 %18678, %v1072_v6   ;;  %v1010_v9 = vld [vmem:[%s19940_s21 + $0x18] sm:$0xff] }
 0x16b   : > { %905 = vst.msk [vmem:[#allocation2 + $0xf0] sm:$0xff] %vm873_vm0, %v24305_v2  ;;  %906 = vst.msk [vmem:[#allocation2 + $0xf8] sm:$0xff] %vm873_vm0, %v24305_v2  ;;  %v1011_v10 = vld [vmem:[%s19940_s21 + $0x20] sm:$0xff]  ;;  %v1012_v11 = vld [vmem:[%s19940_s21 + $0x28] sm:$0xff]  ;;  %s872_s29 = scalar_lea.vmem %s24607_s20, %s24610_s4 }
 0x16c   : > { %908 = vst.msk [vmem:[#allocation2 + $0x108] sm:$0xff] %vm873_vm0, %v24305_v2  ;;  %909 = vst.msk [vmem:[#allocation2 + $0x110] sm:$0xff] %vm873_vm0, %v24305_v2  ;;  %v1013_v12 = vld [vmem:[%s19940_s21 + $0x30] sm:$0xff]  ;;  %v1014_v13 = vld [vmem:[%s19940_s21 + $0x38] sm:$0xff] }
 0x16d   : > { %911 = vst.msk [vmem:[#allocation2 + $0x120] sm:$0xff] %vm873_vm0, %v24305_v2  ;;  %912 = vst.msk [vmem:[#allocation2 + $0x128] sm:$0xff] %vm873_vm0, %v24305_v2  ;;  %v1015_v14 = vld [vmem:[%s19940_s21 + $0x40] sm:$0xff]  ;;  %v1016_v15 = vld [vmem:[%s19940_s21 + $0x48] sm:$0xff]  ;;  %s869_s6 = scalar_lea.vmem %s24605_s0, %s24610_s4 }
 0x16e   : > { %914 = vst.msk [vmem:[#allocation2 + $0x138] sm:$0xff] %vm873_vm0, %v24305_v2  ;;  %915 = vst.msk [vmem:[#allocation2 + $0x140] sm:$0xff] %vm873_vm0, %v24305_v2  ;;  %v1017_v16 = vld [vmem:[%s19940_s21 + $0x50] sm:$0xff]  ;;  %v1018_v17 = vld [vmem:[%s19940_s21 + $0x58] sm:$0xff]  ;;  %1134 = vperm.xlu0 %18678, %v1073_v8  }
 0x16f   : > { %917 = vst.msk [vmem:[#allocation2 + $0x150] sm:$0xff] %vm873_vm0, %v24305_v2  ;;  %918 = vst.msk [vmem:[#allocation2 + $0x158] sm:$0xff] %vm873_vm0, %v24305_v2  ;;  %v1019_v18 = vld [vmem:[%s19940_s21 + $0x60] sm:$0xff]  ;;  %v1020_v19 = vld [vmem:[%s19940_s21 + $0x68] sm:$0xff] }
 0x170   : > { %920 = vst.msk [vmem:[#allocation2 + $0x168] sm:$0xff] %vm873_vm0, %v24305_v2  ;;  %921 = vst.msk [vmem:[#allocation2 + $0x170] sm:$0xff] %vm873_vm0, %v24305_v2  ;;  %v1021_v20 = vld [vmem:[%s19940_s21 + $0x70] sm:$0xff]  ;;  %v1022_v21 = vld [vmem:[%s19940_s21 + $0x78] sm:$0xff] }
 0x171   : > { %923 = vst.msk [vmem:[#allocation2 + $0x180] sm:$0xff] %vm873_vm0, %v24305_v2  ;;  %924 = vst.msk [vmem:[#allocation2 + $0x188] sm:$0xff] %vm873_vm0, %v24305_v2  ;;  %v1023_v22 = vld [vmem:[%s19940_s21 + $0x80] sm:$0xff]  ;;  %v1024_v23 = vld [vmem:[%s19940_s21 + $0x88] sm:$0xff] }
 0x172   : > { %926 = vst.msk [vmem:[#allocation2 + $0x198] sm:$0xff] %vm873_vm0, %v24305_v2  ;;  %927 = vst.msk [vmem:[#allocation2 + $0x1a0] sm:$0xff] %vm873_vm0, %v24305_v2  ;;  %v1025_v24 = vld [vmem:[%s19940_s21 + $0x90] sm:$0xff]  ;;  %v1026_v25 = vld [vmem:[%s19940_s21 + $0x98] sm:$0xff] }
 0x173   : > { %877 = vst.msk [vmem:[#allocation2 + $0x10] sm:$0x3] %vm876_vm1, %v24305_v2  ;;  %880 = vst.msk [vmem:[#allocation2 + $0x28] sm:$0x3] %vm876_vm1, %v24305_v2  ;;  %v1027_v26 = vld [vmem:[%s19940_s21 + $0xa0] sm:$0xff]  ;;  %v1028_v29 = vld [vmem:[%s19940_s21 + $0xa8] sm:$0xff] }
 0x174   : > { %883 = vst.msk [vmem:[#allocation2 + $0x40] sm:$0x3] %vm876_vm1, %v24305_v2  ;;  %886 = vst.msk [vmem:[#allocation2 + $0x58] sm:$0x3] %vm876_vm1, %v24305_v2  ;;  %v1029_v30 = vld [vmem:[%s19940_s21 + $0xb0] sm:$0xff]  ;;  %v1030_v38 = vld [vmem:[%s19940_s21 + $0xb8] sm:$0xff] }
 0x175   : > { %889 = vst.msk [vmem:[#allocation2 + $0x70] sm:$0x3] %vm876_vm1, %v24305_v2  ;;  %892 = vst.msk [vmem:[#allocation2 + $0x88] sm:$0x3] %vm876_vm1, %v24305_v2  ;;  %v1031_v39 = vld [vmem:[%s19940_s21 + $0xc0] sm:$0xff]  ;;  %v1032_v40 = vld [vmem:[%s19940_s21 + $0xc8] sm:$0xff] }
 0x176   : > { %895 = vst.msk [vmem:[#allocation2 + $0xa0] sm:$0x3] %vm876_vm1, %v24305_v2  ;;  %898 = vst.msk [vmem:[#allocation2 + $0xb8] sm:$0x3] %vm876_vm1, %v24305_v2  ;;  %v1033_v41 = vld [vmem:[%s19940_s21 + $0xd0] sm:$0xff]  ;;  %v1034_v42 = vld [vmem:[%s19940_s21 + $0xd8] sm:$0xff] }
 0x177   : > { %901 = vst.msk [vmem:[#allocation2 + $0xd0] sm:$0x3] %vm876_vm1, %v24305_v2  ;;  %904 = vst.msk [vmem:[#allocation2 + $0xe8] sm:$0x3] %vm876_vm1, %v24305_v2  ;;  %v1035_v43 = vld [vmem:[%s19940_s21 + $0xe0] sm:$0xff]  ;;  %v1036_v44 = vld [vmem:[%s19940_s21 + $0xe8] sm:$0xff] }
 0x178   : > { %907 = vst.msk [vmem:[#allocation2 + $0x100] sm:$0x3] %vm876_vm1, %v24305_v2  ;;  %910 = vst.msk [vmem:[#allocation2 + $0x118] sm:$0x3] %vm876_vm1, %v24305_v2  ;;  %v1037_v45 = vld [vmem:[%s19940_s21 + $0xf0] sm:$0xff]  ;;  %v1038_v46 = vld [vmem:[%s19940_s21 + $0xf8] sm:$0xff] }
 0x179   : > { %913 = vst.msk [vmem:[#allocation2 + $0x130] sm:$0x3] %vm876_vm1, %v24305_v2  ;;  %916 = vst.msk [vmem:[#allocation2 + $0x148] sm:$0x3] %vm876_vm1, %v24305_v2  ;;  %v13373_v8 = vld [vmem:[%s24428_s1 + $0x28] sm:$0xff] }
 0x17a   : > { %919 = vst.msk [vmem:[#allocation2 + $0x160] sm:$0x3] %vm876_vm1, %v24305_v2  ;;  %922 = vst.msk [vmem:[#allocation2 + $0x178] sm:$0x3] %vm876_vm1, %v24305_v2  ;;  %v1074_v7 = vld [vmem:[#allocation2 + $0x10] sm:$0x3] }
 0x17b   : > { %925 = vst.msk [vmem:[#allocation2 + $0x190] sm:$0x3] %vm876_vm1, %v24305_v2  ;;  %928 = vst.msk [vmem:[#allocation2 + $0x1a8] sm:$0x3] %vm876_vm1, %v24305_v2  ;;  %1361 = vperm.xlu1 %18679, %v1074_v7   ;;  %v13372_v7 = vld [vmem:[%s24428_s1 + $0x20] sm:$0xff] }
 0x17c   : > { %1040 = vst.msk [vmem:[#allocation2 + $0x19] sm:$0xff] %vm873_vm0, %v1007_v3  ;;  %1041 = vst.msk [vmem:[#allocation2 + $0x21] sm:$0xff] %vm873_vm0, %v1008_v4 }
 0x17d   : > { %1042 = vst.msk [vmem:[#allocation2 + $0x31] sm:$0xff] %vm873_vm0, %v1009_v5  ;;  %1043 = vst.msk [vmem:[#allocation2 + $0x39] sm:$0xff] %vm873_vm0, %v1010_v9 }
 0x17e   : > { %1044 = vst.msk [vmem:[#allocation2 + $0x49] sm:$0xff] %vm873_vm0, %v1011_v10  ;;  %1045 = vst.msk [vmem:[#allocation2 + $0x51] sm:$0xff] %vm873_vm0, %v1012_v11  ;;  %v17113_v10 = vpack.c.bf16 %v13373_v8, %v13372_v7 }
 0x17f   : > { %1046 = vst.msk [vmem:[#allocation2 + $0x61] sm:$0xff] %vm873_vm0, %v1013_v12  ;;  %1047 = vst.msk [vmem:[#allocation2 + $0x69] sm:$0xff] %vm873_vm0, %v1014_v13 }
 0x180   : > { %1048 = vst.msk [vmem:[#allocation2 + $0x79] sm:$0xff] %vm873_vm0, %v1015_v14  ;;  %1049 = vst.msk [vmem:[#allocation2 + $0x81] sm:$0xff] %vm873_vm0, %v1016_v15  ;;  %17114 = vmatprep.subr.bf16.mxu0 %v17113_v10  ;;  %17961 = vmatprep.subr.bf16.mxu1 %v17113_v10  ;;  %v13374_v14 = vld [vmem:[%s24428_s1 + $0x30] sm:$0xff]  ;;  %v13375_v15 = vld [vmem:[%s24428_s1 + $0x38] sm:$0xff] }
 0x181   : > { %1050 = vst.msk [vmem:[#allocation2 + $0x91] sm:$0xff] %vm873_vm0, %v1017_v16  ;;  %1051 = vst.msk [vmem:[#allocation2 + $0x99] sm:$0xff] %vm873_vm0, %v1018_v17  ;;  %17116 = vmatpush3.bf16.msra.mxu0 %v17113_v10  ;;  %17963 = vmatpush3.bf16.msra.mxu1 %v17113_v10  ;;  %v17117_v17 = vpack.c.bf16 %v13375_v15, %v13374_v14 }
 0x182   : > { %1052 = vst.msk [vmem:[#allocation2 + $0xa9] sm:$0xff] %vm873_vm0, %v1019_v18  ;;  %1053 = vst.msk [vmem:[#allocation2 + $0xb1] sm:$0xff] %vm873_vm0, %v1020_v19 }
 0x183   : > { %1054 = vst.msk [vmem:[#allocation2 + $0xc1] sm:$0xff] %vm873_vm0, %v1021_v20  ;;  %1055 = vst.msk [vmem:[#allocation2 + $0xc9] sm:$0xff] %vm873_vm0, %v1022_v21  ;;  %v1075_v27 = vld [vmem:[#allocation2 + $0x18] sm:$0xff]  ;;  %v1076_v28 = vld [vmem:[#allocation2 + $0x20] sm:$0xff]  ;;  %17118 = vmatprep.subr.bf16.mxu0 %v17117_v17  ;;  %17962 = vmatprep.subr.bf16.mxu1 %v17117_v17 }
 0x184   : > { %1056 = vst.msk [vmem:[#allocation2 + $0xd9] sm:$0xff] %vm873_vm0, %v1023_v22  ;;  %1057 = vst.msk [vmem:[#allocation2 + $0xe1] sm:$0xff] %vm873_vm0, %v1024_v23  ;;  %1139 = vperm.xlu1 %18679, %v1075_v27   ;;  %1144 = vperm.xlu0 %18678, %v1076_v28   ;;  %v1077_v31 = vld [vmem:[#allocation2 + $0x28] sm:$0x3]  ;;  %v1078_v32 = vld [vmem:[#allocation2 + $0x30] sm:$0xff] }
 0x185   : > { %1058 = vst.msk [vmem:[#allocation2 + $0xf1] sm:$0xff] %vm873_vm0, %v1025_v24  ;;  %1059 = vst.msk [vmem:[#allocation2 + $0xf9] sm:$0xff] %vm873_vm0, %v1026_v25  ;;  %v1079_v33 = vld [vmem:[#allocation2 + $0x38] sm:$0xff]  ;;  %v1080_v34 = vld [vmem:[#allocation2 + $0x40] sm:$0x3]  ;;  %17120 = vmatpush3.bf16.msra.mxu0 %v17117_v17  ;;  %17964 = vmatpush3.bf16.msra.mxu1 %v17117_v17 }
 0x186   : > { %1060 = vst.msk [vmem:[#allocation2 + $0x109] sm:$0xff] %vm873_vm0, %v1027_v26  ;;  %1061 = vst.msk [vmem:[#allocation2 + $0x111] sm:$0xff] %vm873_vm0, %v1028_v29  ;;  %v1081_v35 = vld [vmem:[#allocation2 + $0x48] sm:$0xff]  ;;  %v1082_v36 = vld [vmem:[#allocation2 + $0x50] sm:$0xff] }
 0x187   : > { %1062 = vst.msk [vmem:[#allocation2 + $0x121] sm:$0xff] %vm873_vm0, %v1029_v30  ;;  %v1083_v37 = vld [vmem:[#allocation2 + $0x58] sm:$0x3]  ;;  %1063 = vst.msk [vmem:[#allocation2 + $0x129] sm:$0xff] %vm873_vm0, %v1030_v38  ;;  %v1084_v47 = vld [vmem:[#allocation2 + $0x60] sm:$0xff] }
 0x188   : > { %1366 = vperm.xlu1 %18679, %v1077_v31   ;;  %1149 = vperm.xlu0 %18678, %v1078_v32   ;;  %1064 = vst.msk [vmem:[#allocation2 + $0x139] sm:$0xff] %vm873_vm0, %v1031_v39  ;;  %1065 = vst.msk [vmem:[#allocation2 + $0x141] sm:$0xff] %vm873_vm0, %v1032_v40  ;;  %v1085_v48 = vld [vmem:[#allocation2 + $0x68] sm:$0xff]  ;;  %v1086_v49 = vld [vmem:[#allocation2 + $0x70] sm:$0x3] }
 0x189   : > { %1066 = vst.msk [vmem:[#allocation2 + $0x151] sm:$0xff] %vm873_vm0, %v1033_v41  ;;  %1067 = vst.msk [vmem:[#allocation2 + $0x159] sm:$0xff] %vm873_vm0, %v1034_v42  ;;  %v1087_v50 = vld [vmem:[#allocation2 + $0x78] sm:$0xff]  ;;  %v1088_v51 = vld [vmem:[#allocation2 + $0x80] sm:$0xff] }
 0x18a   : > { %1068 = vst.msk [vmem:[#allocation2 + $0x169] sm:$0xff] %vm873_vm0, %v1035_v43  ;;  %1069 = vst.msk [vmem:[#allocation2 + $0x171] sm:$0xff] %vm873_vm0, %v1036_v44  ;;  %v1089_v52 = vld [vmem:[#allocation2 + $0x88] sm:$0x3]  ;;  %v1090_v53 = vld [vmem:[#allocation2 + $0x90] sm:$0xff] }
 0x18b   : > { %1070 = vst.msk [vmem:[#allocation2 + $0x181] sm:$0xff] %vm873_vm0, %v1037_v45  ;;  %1071 = vst.msk [vmem:[#allocation2 + $0x189] sm:$0xff] %vm873_vm0, %v1038_v46  ;;  %v1091_v54 = vld [vmem:[#allocation2 + $0x98] sm:$0xff]  ;;  %v1092_v55 = vld [vmem:[#allocation2 + $0xa0] sm:$0x3] }
 0x18c   : > { %1154 = vperm.xlu1 %18679, %v1079_v33   ;;  %1371 = vperm.xlu0 %18678, %v1080_v34   ;;  %934 = vst.msk [vmem:[#allocation3 + $0x18] sm:$0xff] %vm929_vm2, %v24305_v2  ;;  %935 = vst.msk [vmem:[#allocation3 + $0x20] sm:$0xff] %vm929_vm2, %v24305_v2  ;;  %v1093_v56 = vld [vmem:[#allocation2 + $0xa8] sm:$0xff]  ;;  %v1094_v57 = vld [vmem:[#allocation2 + $0xb0] sm:$0xff] }
 0x18d   : > { %936 = vst.msk [vmem:[#allocation3 + $0x28] sm:$0x3] %vm932_vm3, %v24305_v2  ;;  %933 = vst.msk [vmem:[#allocation3 + $0x10] sm:$0x3] %vm932_vm3, %v24305_v2  ;;  %v1095_v58 = vld [vmem:[#allocation2 + $0xb8] sm:$0x3] }
 0x18e   : > { %930 = vst.msk [vmem:[#allocation3] sm:$0xff] %vm929_vm2, %v24305_v2  ;;  %931 = vst.msk [vmem:[#allocation3 + $0x8] sm:$0xff] %vm929_vm2, %v24305_v2  ;;  %v1096_v59 = vld [vmem:[#allocation2 + $0xc0] sm:$0xff]  ;;  %v1097_v60 = vld [vmem:[#allocation2 + $0xc8] sm:$0xff] }
 0x18f   : > { %937 = vst.msk [vmem:[#allocation3 + $0x30] sm:$0xff] %vm929_vm2, %v24305_v2  ;;  %938 = vst.msk [vmem:[#allocation3 + $0x38] sm:$0xff] %vm929_vm2, %v24305_v2  ;;  %v1098_v61 = vld [vmem:[#allocation2 + $0xd0] sm:$0x3]  ;;  %v1099_v62 = vld [vmem:[#allocation2 + $0xd8] sm:$0xff] }
 0x190   : > { %1159 = vperm.xlu1 %18679, %v1081_v35   ;;  %1164 = vperm.xlu0 %18678, %v1082_v36   ;;  %939 = vst.msk [vmem:[#allocation3 + $0x40] sm:$0x3] %vm932_vm3, %v24305_v2  ;;  %942 = vst.msk [vmem:[#allocation3 + $0x58] sm:$0x3] %vm932_vm3, %v24305_v2  ;;  %v1100_v63 = vld [vmem:[#allocation2 + $0xe0] sm:$0xff]  ;;  %v1102_v1 = vld [vmem:[#allocation2 + $0xf0] sm:$0xff] }
 0x191   : > { %940 = vst.msk [vmem:[#allocation3 + $0x48] sm:$0xff] %vm929_vm2, %v24305_v2  ;;  %941 = vst.msk [vmem:[#allocation3 + $0x50] sm:$0xff] %vm929_vm2, %v24305_v2  ;;  %v1101_v0 = vld [vmem:[#allocation2 + $0xe8] sm:$0x3]  ;;  %v1103_v3 = vld [vmem:[#allocation2 + $0xf8] sm:$0xff] }
 0x192   : > { %943 = vst.msk [vmem:[#allocation3 + $0x60] sm:$0xff] %vm929_vm2, %v24305_v2  ;;  %944 = vst.msk [vmem:[#allocation3 + $0x68] sm:$0xff] %vm929_vm2, %v24305_v2  ;;  %v1104_v4 = vld [vmem:[#allocation2 + $0x100] sm:$0x3]  ;;  %v1105_v5 = vld [vmem:[#allocation2 + $0x108] sm:$0xff] }
 0x193   : > { %945 = vst.msk [vmem:[#allocation3 + $0x70] sm:$0x3] %vm932_vm3, %v24305_v2  ;;  %948 = vst.msk [vmem:[#allocation3 + $0x88] sm:$0x3] %vm932_vm3, %v24305_v2  ;;  %v1106_v6 = vld [vmem:[#allocation2 + $0x110] sm:$0xff]  ;;  %v1108_v11 = vld [vmem:[#allocation2 + $0x120] sm:$0xff] }
 0x194   : > { %1376 = vperm.xlu1 %18679, %v1083_v37   ;;  %1169 = vperm.xlu0 %18678, %v1084_v47   ;;  %946 = vst.msk [vmem:[#allocation3 + $0x78] sm:$0xff] %vm929_vm2, %v24305_v2  ;;  %947 = vst.msk [vmem:[#allocation3 + $0x80] sm:$0xff] %vm929_vm2, %v24305_v2  ;;  %v1107_v9 = vld [vmem:[#allocation2 + $0x118] sm:$0x3]  ;;  %v1109_v12 = vld [vmem:[#allocation2 + $0x128] sm:$0xff] }
 0x195   : > { %949 = vst.msk [vmem:[#allocation3 + $0x90] sm:$0xff] %vm929_vm2, %v24305_v2  ;;  %950 = vst.msk [vmem:[#allocation3 + $0x98] sm:$0xff] %vm929_vm2, %v24305_v2  ;;  %v1110_v13 = vld [vmem:[#allocation2 + $0x130] sm:$0x3]  ;;  %v1111_v16 = vld [vmem:[#allocation2 + $0x138] sm:$0xff] }
 0x196   : > { %951 = vst.msk [vmem:[#allocation3 + $0xa0] sm:$0x3] %vm932_vm3, %v24305_v2  ;;  %954 = vst.msk [vmem:[#allocation3 + $0xb8] sm:$0x3] %vm932_vm3, %v24305_v2  ;;  %v1112_v18 = vld [vmem:[#allocation2 + $0x140] sm:$0xff]  ;;  %v1114_v20 = vld [vmem:[#allocation2 + $0x150] sm:$0xff] }
 0x197   : > { %952 = vst.msk [vmem:[#allocation3 + $0xa8] sm:$0xff] %vm929_vm2, %v24305_v2  ;;  %953 = vst.msk [vmem:[#allocation3 + $0xb0] sm:$0xff] %vm929_vm2, %v24305_v2  ;;  %v1113_v19 = vld [vmem:[#allocation2 + $0x148] sm:$0x3]  ;;  %v1115_v21 = vld [vmem:[#allocation2 + $0x158] sm:$0xff] }
 0x198   : > { %955 = vst.msk [vmem:[#allocation3 + $0xc0] sm:$0xff] %vm929_vm2, %v24305_v2  ;;  %956 = vst.msk [vmem:[#allocation3 + $0xc8] sm:$0xff] %vm929_vm2, %v24305_v2  ;;  %1174 = vperm.xlu1 %18679, %v1085_v48   ;;  %1381 = vperm.xlu0 %18678, %v1086_v49   ;;  %v1116_v22 = vld [vmem:[#allocation2 + $0x160] sm:$0x3]  ;;  %v3173_v23 = vld [vmem:[#allocation3] sm:$0xff] }
 0x199   : > { %957 = vst.msk [vmem:[#allocation3 + $0xd0] sm:$0x3] %vm932_vm3, %v24305_v2  ;;  %960 = vst.msk [vmem:[#allocation3 + $0xe8] sm:$0x3] %vm932_vm3, %v24305_v2  ;;  %v3174_v24 = vld [vmem:[#allocation3 + $0x8] sm:$0xff]  ;;  %v1117_v25 = vld [vmem:[#allocation2 + $0x168] sm:$0xff] }
 0x19a   : > { %958 = vst.msk [vmem:[#allocation3 + $0xd8] sm:$0xff] %vm929_vm2, %v24305_v2  ;;  %959 = vst.msk [vmem:[#allocation3 + $0xe0] sm:$0xff] %vm929_vm2, %v24305_v2  ;;  %v3279_v26 = vrot.slane %v3173_v23, 1  ;;  %v3280_v27 = vrot.slane %v3174_v24, 1  ;;  %v1118_v28 = vld [vmem:[#allocation2 + $0x170] sm:$0xff]  ;;  %v1120_v33 = vld [vmem:[#allocation2 + $0x180] sm:$0xff] }
 0x19b   : > { %961 = vst.msk [vmem:[#allocation3 + $0xf0] sm:$0xff] %vm929_vm2, %v24305_v2  ;;  %962 = vst.msk [vmem:[#allocation3 + $0xf8] sm:$0xff] %vm929_vm2, %v24305_v2  ;;  %v20127_v30 = vld [vmem:[#allocation3 + $0x10] sm:$0x3]  ;;  %v1119_v32 = vld [vmem:[#allocation2 + $0x178] sm:$0x3] }
 0x19c   : > { %963 = vst.msk [vmem:[#allocation3 + $0x100] sm:$0x3] %vm932_vm3, %v24305_v2  ;;  %966 = vst.msk [vmem:[#allocation3 + $0x118] sm:$0x3] %vm932_vm3, %v24305_v2  ;;  %1179 = vperm.xlu1 %18679, %v1087_v50   ;;  %1184 = vperm.xlu0 %18678, %v1088_v51   ;;  %v3281_v29 = vsel %vm1541_vm4, %v3279_v26, %v3280_v27  ;;  %v3282_v31 = vrot.slane %v20127_v30, 1  ;;  %v1121_v35 = vld [vmem:[#allocation2 + $0x188] sm:$0xff] }
 0x19d   : > { %964 = vst.msk [vmem:[#allocation3 + $0x108] sm:$0xff] %vm929_vm2, %v24305_v2  ;;  %965 = vst.msk [vmem:[#allocation3 + $0x110] sm:$0xff] %vm929_vm2, %v24305_v2  ;;  %15319 = vmatprep.mubr.msk.f32.mxu0 %vm929_vm2, %v3281_v29  ;;  %v1122_v36 = vld [vmem:[#allocation2 + $0x190] sm:$0x3]  ;;  %v1123_v37 = vld [vmem:[#allocation2 + $0x198] sm:$0xff] }
 0x19e   : > { %967 = vst.msk [vmem:[#allocation3 + $0x120] sm:$0xff] %vm929_vm2, %v24305_v2  ;;  %968 = vst.msk [vmem:[#allocation3 + $0x128] sm:$0xff] %vm929_vm2, %v24305_v2  ;;  %v3283_v34 = vsel %vm1541_vm4, %v3280_v27, %v3282_v31  ;;  %v1124_v38 = vld [vmem:[#allocation2 + $0x1a0] sm:$0xff]  ;;  %v1125_v39 = vld [vmem:[#allocation2 + $0x1a8] sm:$0x3] }
 0x19f   : > { %969 = vst.msk [vmem:[#allocation3 + $0x130] sm:$0x3] %vm932_vm3, %v24305_v2  ;;  %972 = vst.msk [vmem:[#allocation3 + $0x148] sm:$0x3] %vm932_vm3, %v24305_v2  ;;  %15320 = vmatmul.mubr.msk.f32.vlgmr.msra.gmra.mrb[0].mxu0 %vm929_vm2, %v3283_v34  ;;  %v20133_v40 = vld [vmem:[#allocation6 + $0x1] ss:$0 sm:$0xff] }
 0x1a0   : > { %970 = vst.msk [vmem:[#allocation3 + $0x138] sm:$0xff] %vm929_vm2, %v24305_v2  ;;  %971 = vst.msk [vmem:[#allocation3 + $0x140] sm:$0xff] %vm929_vm2, %v24305_v2  ;;  %1386 = vperm.xlu1 %18679, %v1089_v52   ;;  %1189 = vperm.xlu0 %18678, %v1090_v53   ;;  %v20135_v41 = vld [vmem:[#allocation6 + $0x2] ss:$0 sm:$0xff]  ;;  %v20140_v47 = vld [vmem:[#allocation6] ss:$0 sm:$0xff] }
 0x1a1   : > { %973 = vst.msk [vmem:[#allocation3 + $0x150] sm:$0xff] %vm929_vm2, %v24305_v2  ;;  %974 = vst.msk [vmem:[#allocation3 + $0x158] sm:$0xff] %vm929_vm2, %v24305_v2 }
 0x1a2   : > { %975 = vst.msk [vmem:[#allocation3 + $0x160] sm:$0x3] %vm932_vm3, %v24305_v2  ;;  %978 = vst.msk [vmem:[#allocation3 + $0x178] sm:$0x3] %vm932_vm3, %v24305_v2 }
 0x1a3   : > { %976 = vst.msk [vmem:[#allocation3 + $0x168] sm:$0xff] %vm929_vm2, %v24305_v2  ;;  %977 = vst.msk [vmem:[#allocation3 + $0x170] sm:$0xff] %vm929_vm2, %v24305_v2 }
 0x1a4   : > { %979 = vst.msk [vmem:[#allocation3 + $0x180] sm:$0xff] %vm929_vm2, %v24305_v2  ;;  %980 = vst.msk [vmem:[#allocation3 + $0x188] sm:$0xff] %vm929_vm2, %v24305_v2  ;;  %1194 = vperm.xlu1 %18679, %v1091_v54   ;;  %1391 = vperm.xlu0 %18678, %v1092_v55   ;;  %v20145_v54 = vld [vmem:[#allocation6 + $0x3] ss:$0 sm:$0xff] }
 0x1a5   : > { %981 = vst.msk [vmem:[#allocation3 + $0x190] sm:$0x3] %vm932_vm3, %v24305_v2  ;;  %984 = vst.msk [vmem:[#allocation3 + $0x1a8] sm:$0x3] %vm932_vm3, %v24305_v2 }
 0x1a6   : > { %982 = vst.msk [vmem:[#allocation3 + $0x198] sm:$0xff] %vm929_vm2, %v24305_v2  ;;  %983 = vst.msk [vmem:[#allocation3 + $0x1a0] sm:$0xff] %vm929_vm2, %v24305_v2 }
 0x1a8   : > { %1199 = vperm.xlu1 %18679, %v1093_v56   ;;  %1204 = vperm.xlu0 %18678, %v1094_v57  }
 0x1ac   : > { %1396 = vperm.xlu1 %18679, %v1095_v58   ;;  %1209 = vperm.xlu0 %18678, %v1096_v59  }
 0x1b0   : > { %1214 = vperm.xlu1 %18679, %v1097_v60   ;;  %1401 = vperm.xlu0 %18678, %v1098_v61  }
 0x1b4   : > { %1219 = vperm.xlu1 %18679, %v1099_v62   ;;  %1224 = vperm.xlu0 %18678, %v1100_v63   ;;  %v20150_v63 = vld [vmem:[#allocation6 + $0x4] ss:$0 sm:$0xff] }
 0x1b8   : > { %1406 = vperm.xlu1 %18679, %v1101_v0   ;;  %1229 = vperm.xlu0 %18678, %v1102_v1   ;;  %v20152_v0 = vld [vmem:[#allocation6 + $0x5] ss:$0 sm:$0xff] }
 0x1bc   : > { %1234 = vperm.xlu1 %18679, %v1103_v3   ;;  %1411 = vperm.xlu0 %18678, %v1104_v4  }
 0x1c0   : > { %1239 = vperm.xlu1 %18679, %v1105_v5   ;;  %1244 = vperm.xlu0 %18678, %v1106_v6  }
 0x1c4   : > { %1416 = vperm.xlu1 %18679, %v1107_v9   ;;  %1249 = vperm.xlu0 %18678, %v1108_v11  }
 0x1c8   : > { %1254 = vperm.xlu1 %18679, %v1109_v12   ;;  %1421 = vperm.xlu0 %18678, %v1110_v13  }
 0x1cc   : > { %1259 = vperm.xlu1 %18679, %v1111_v16   ;;  %1264 = vperm.xlu0 %18678, %v1112_v18  }
 0x1d0   : > { %1426 = vperm.xlu1 %18679, %v1113_v19   ;;  %1269 = vperm.xlu0 %18678, %v1114_v20  }
 0x1d4   : > { %1274 = vperm.xlu1 %18679, %v1115_v21   ;;  %1431 = vperm.xlu0 %18678, %v1116_v22  }
 0x1d8   : > { %1279 = vperm.xlu1 %18679, %v1117_v25   ;;  %1284 = vperm.xlu0 %18678, %v1118_v28  }
 0x1dc   : > { %1436 = vperm.xlu1 %18679, %v1119_v32   ;;  %1939 = vperm.xlu0 %18678, %v1120_v33  }
 0x1e0   : > { %1944 = vperm.xlu1 %18679, %v1121_v35   ;;  %2021 = vperm.xlu0 %18678, %v1122_v36  }
 0x1e4   : > { %2522 = vperm.xlu1 %18679, %v1123_v37   ;;  %2527 = vperm.xlu0 %18678, %v1124_v38  }
 0x1e8   : > { %2604 = vperm.xlu1 %18679, %v1125_v39  }
 0x1e9   : > { %v1130_v42 = vpop.permute.xlu0 %1129 }
 0x1ea   : > { %v1445_v45 = vmul.f32 %v20133_v40, %v1130_v42  ;;  %v1694_v48 = vmul.f32 %v20135_v41, %v1130_v42  ;;  %v1293_v55 = vmul.f32 %v20140_v47, %v1130_v42 }
 0x1ec   : > { %v1542_v56 = vrot.slane %v1445_v45, 1  ;;  %v1791_v58 = vrot.slane %v1694_v48, 2 }
 0x1ed   : > { %v1135_v49 = vpop.permute.xlu0 %1134 }
 0x1ee   : > { %v1446_v52 = vmul.f32 %v20133_v40, %v1135_v49  ;;  %v1695_v53 = vmul.f32 %v20135_v41, %v1135_v49  ;;  %v1294_v59 = vmul.f32 %v20140_v47, %v1135_v49 }
 0x1f0   : > { %v1543_v60 = vrot.slane %v1446_v52, 1  ;;  %v1792_v61 = vrot.slane %v1695_v53, 2 }
 0x1f2   : > { %v1544_v7 = vsel %vm1541_vm4, %v1542_v56, %v1543_v60  ;;  %v1793_v9 = vsel %vm1790_vm5, %v1791_v58, %v1792_v61 }
 0x1f3   : > { %v1654_v11 = vadd.f32 %v1544_v7, %v1293_v55  ;;  %v20189_v7 = vld [vmem:[#allocation6 + $0x8] ss:$0 sm:$0xff] }
 0x1f5   : > { %v1903_v20 = vadd.f32 %v1793_v9, %v1654_v11 }
 0x1fa   : > { %v1362_v43 = vpop.permute.xlu1 %1361 }
 0x1fb   : > { %v1447_v44 = vmul.f32 %v20133_v40, %v1362_v43  ;;  %v1696_v46 = vmul.f32 %v20135_v41, %v1362_v43 }
 0x1fd   : > { %v1545_v50 = vrot.slane %v1447_v44, 1  ;;  %v1794_v51 = vrot.slane %v1696_v46, 2 }
 0x1ff   : > { %v1546_v8 = vsel %vm1541_vm4, %v1543_v60, %v1545_v50  ;;  %v1795_v10 = vsel %vm1790_vm5, %v1792_v61, %v1794_v51  ;;  %v20180_v60 = vld [vmem:[#allocation6 + $0x6] ss:$0 sm:$0xff]  ;;  %v20182_v61 = vld [vmem:[#allocation6 + $0x7] ss:$0 sm:$0xff] }
 0x200   : > { %v1655_v12 = vadd.f32 %v1546_v8, %v1294_v59 }
 0x202   : > { %v1904_v21 = vadd.f32 %v1795_v10, %v1655_v12 }
 0x203   : > { %v1140_v62 = vpop.permute.xlu1 %1139  ;;  %v1145_v6 = vpop.permute.xlu0 %1144 }
 0x204   : > { %v1295_v1 = vmul.f32 %v20140_v47, %v1140_v62  ;;  %v1448_v3 = vmul.f32 %v20133_v40, %v1140_v62  ;;  %v1697_v4 = vmul.f32 %v20135_v41, %v1140_v62  ;;  %v1953_v5 = vmul.f32 %v20145_v54, %v1140_v62 }
 0x205   : > { %v2030_v15 = vmul.f32 %v20150_v63, %v1140_v62  ;;  %v2278_v16 = vmul.f32 %v20152_v0, %v1140_v62  ;;  %v1296_v17 = vmul.f32 %v20140_v47, %v1145_v6  ;;  %v1449_v18 = vmul.f32 %v20133_v40, %v1145_v6 }
 0x206   : > { %v1547_v13 = vrot.slane %v1448_v3, 1  ;;  %v1796_v14 = vrot.slane %v1697_v4, 2  ;;  %v1698_v22 = vmul.f32 %v20135_v41, %v1145_v6  ;;  %v1954_v23 = vmul.f32 %v20145_v54, %v1145_v6 }
 0x207   : > { %v1367_v19 = vpop.permute.xlu1 %1366  ;;  %v2126_v24 = vrot.slane %v2030_v15, 1  ;;  %v2374_v25 = vrot.slane %v2278_v16, 2  ;;  %v1548_v26 = vrot.slane %v1449_v18, 1  ;;  %v2031_v27 = vmul.f32 %v20150_v63, %v1145_v6  ;;  %v1150_v48 = vpop.permute.xlu0 %1149 }
 0x208   : > { %v1985_v28 = vadd.f32 %v1953_v5, %v1903_v20  ;;  %v1797_v29 = vrot.slane %v1698_v22, 2  ;;  %v2279_v31 = vmul.f32 %v20152_v0, %v1145_v6  ;;  %v1450_v32 = vmul.f32 %v20133_v40, %v1367_v19 }
 0x209   : > { %v1549_v33 = vsel %vm1541_vm4, %v1547_v13, %v1548_v26  ;;  %v2127_v34 = vrot.slane %v2031_v27, 1  ;;  %v1699_v35 = vmul.f32 %v20135_v41, %v1367_v19  ;;  %v1986_v36 = vadd.f32 %v1954_v23, %v1904_v21 }
 0x20a   : > { %v1656_v37 = vadd.f32 %v1549_v33, %v1295_v1  ;;  %v1798_v38 = vsel %vm1790_vm5, %v1796_v14, %v1797_v29  ;;  %v2375_v39 = vrot.slane %v2279_v31, 2  ;;  %v1550_v42 = vrot.slane %v1450_v32, 1 }
 0x20b   : > { %v2128_v43 = vsel %vm1541_vm4, %v2126_v24, %v2127_v34  ;;  %v1799_v44 = vrot.slane %v1699_v35, 2  ;;  %v2032_v45 = vmul.f32 %v20150_v63, %v1367_v19  ;;  %v2280_v46 = vmul.f32 %v20152_v0, %v1367_v19  ;;  %v1155_v9 = vpop.permute.xlu1 %1154 }
 0x20c   : > { %v1905_v49 = vadd.f32 %v1798_v38, %v1656_v37  ;;  %v2238_v50 = vadd.f32 %v2128_v43, %v1985_v28  ;;  %v2376_v51 = vsel %vm1790_vm5, %v2374_v25, %v2375_v39  ;;  %v1551_v52 = vsel %vm1541_vm4, %v1548_v26, %v1550_v42 }
 0x20d   : > { %v1657_v53 = vadd.f32 %v1551_v52, %v1296_v17  ;;  %v1800_v55 = vsel %vm1790_vm5, %v1797_v29, %v1799_v44  ;;  %v2129_v56 = vrot.slane %v2032_v45, 1  ;;  %v2377_v58 = vrot.slane %v2280_v46, 2 }
 0x20e   : > { %v2486_v59 = vadd.f32 %v2376_v51, %v2238_v50  ;;  %v1297_v62 = vmul.f32 %v20140_v47, %v1150_v48  ;;  %v1451_v1 = vmul.f32 %v20133_v40, %v1150_v48  ;;  %v1700_v3 = vmul.f32 %v20135_v41, %v1150_v48 }
 0x20f   : > { %v1906_v4 = vadd.f32 %v1800_v55, %v1657_v53  ;;  %v2130_v5 = vsel %vm1541_vm4, %v2127_v34, %v2129_v56  ;;  %v2378_v6 = vsel %vm1790_vm5, %v2375_v39, %v2377_v58  ;;  %v1955_v8 = vmul.f32 %v20145_v54, %v1150_v48  ;;  %v1372_v39 = vpop.permute.xlu0 %1371 }
 0x210   : > { %v2239_v10 = vadd.f32 %v2130_v5, %v1986_v36  ;;  %v1552_v11 = vrot.slane %v1451_v1, 1  ;;  %v1801_v12 = vrot.slane %v1700_v3, 2  ;;  %v2033_v13 = vmul.f32 %v20150_v63, %v1150_v48  ;;  %v1160_v3 = vpop.permute.xlu1 %1159 }
 0x211   : > { %v1987_v14 = vadd.f32 %v1955_v8, %v1905_v49  ;;  %v2281_v15 = vmul.f32 %v20152_v0, %v1150_v48  ;;  %v2536_v16 = vmul.f32 %v20180_v60, %v1150_v48  ;;  %v2613_v17 = vmul.f32 %v20182_v61, %v1150_v48 }
 0x212   : > { %v2487_v18 = vadd.f32 %v2378_v6, %v2239_v10  ;;  %v2131_v19 = vrot.slane %v2033_v13, 1  ;;  %v2861_v20 = vmul.f32 %v20189_v7, %v1150_v48  ;;  %v1298_v21 = vmul.f32 %v20140_v47, %v1155_v9 }
 0x213   : > { %v2379_v22 = vrot.slane %v2281_v15, 2  ;;  %v2568_v23 = vadd.f32 %v2536_v16, %v2486_v59  ;;  %v2709_v24 = vrot.slane %v2613_v17, 1  ;;  %v1452_v25 = vmul.f32 %v20133_v40, %v1155_v9 }
 0x214   : > { %v2957_v26 = vrot.slane %v2861_v20, 2  ;;  %v1701_v27 = vmul.f32 %v20135_v41, %v1155_v9  ;;  %v1956_v28 = vmul.f32 %v20145_v54, %v1155_v9  ;;  %v2034_v29 = vmul.f32 %v20150_v63, %v1155_v9 }
 0x215   : > { %v1553_v31 = vrot.slane %v1452_v25, 1  ;;  %v2282_v32 = vmul.f32 %v20152_v0, %v1155_v9  ;;  %v2537_v33 = vmul.f32 %v20180_v60, %v1155_v9  ;;  %v2614_v34 = vmul.f32 %v20182_v61, %v1155_v9 }
 0x216   : > { %v1802_v35 = vrot.slane %v1701_v27, 2  ;;  %v1988_v36 = vadd.f32 %v1956_v28, %v1906_v4  ;;  %v2132_v37 = vrot.slane %v2034_v29, 1  ;;  %v2862_v38 = vmul.f32 %v20189_v7, %v1155_v9  ;;  %v20214_v4 = vld [vmem:[#allocation8] ss:$0 sm:$0xff] }
 0x217   : > { %v1554_v42 = vsel %vm1541_vm4, %v1552_v11, %v1553_v31  ;;  %v2380_v43 = vrot.slane %v2282_v32, 2  ;;  %v2569_v44 = vadd.f32 %v2537_v33, %v2487_v18  ;;  %v2710_v45 = vrot.slane %v2614_v34, 1  ;;  %v1165_v34 = vpop.permute.xlu0 %1164 }
 0x218   : > { %v1658_v46 = vadd.f32 %v1554_v42, %v1297_v62  ;;  %v1803_v48 = vsel %vm1790_vm5, %v1801_v12, %v1802_v35  ;;  %v2133_v49 = vsel %vm1541_vm4, %v2131_v19, %v2132_v37  ;;  %v2958_v50 = vrot.slane %v2862_v38, 2 }
 0x219   : > { %v2240_v51 = vadd.f32 %v2133_v49, %v1987_v14  ;;  %v2381_v52 = vsel %vm1790_vm5, %v2379_v22, %v2380_v43  ;;  %v2711_v53 = vsel %vm1541_vm4, %v2709_v24, %v2710_v45  ;;  %v1453_v55 = vmul.f32 %v20133_v40, %v1372_v39 }
 0x21a   : > { %v1907_v56 = vadd.f32 %v1803_v48, %v1658_v46  ;;  %v2821_v58 = vadd.f32 %v2711_v53, %v2568_v23  ;;  %v2959_v59 = vsel %vm1790_vm5, %v2957_v26, %v2958_v50  ;;  %v1702_v1 = vmul.f32 %v20135_v41, %v1372_v39  ;;  %v1377_v46 = vpop.permute.xlu1 %1376 }
 0x21b   : > { %v2488_v62 = vadd.f32 %v2381_v52, %v2240_v51  ;;  %v1555_v5 = vrot.slane %v1453_v55, 1  ;;  %v2035_v6 = vmul.f32 %v20150_v63, %v1372_v39  ;;  %v2283_v8 = vmul.f32 %v20152_v0, %v1372_v39 }
 0x21c   : > { %v3069_v9 = vadd.f32 %v2959_v59, %v2821_v58  ;;  %v1804_v10 = vrot.slane %v1702_v1, 2  ;;  %v2615_v11 = vmul.f32 %v20182_v61, %v1372_v39  ;;  %v2863_v12 = vmul.f32 %v20189_v7, %v1372_v39 }
 0x21d   : > { %v1556_v13 = vsel %vm1541_vm4, %v1553_v31, %v1555_v5  ;;  %v2134_v14 = vrot.slane %v2035_v6, 1  ;;  %v2382_v15 = vrot.slane %v2283_v8, 2  ;;  %v1299_v16 = vmul.f32 %v20140_v47, %v1160_v3 }
 0x21e   : > { %v3108_v17 = vadd.f32 %v20214_v4, %v3069_v9  ;;  %v1659_v18 = vadd.f32 %v1556_v13, %v1298_v21  ;;  %v1805_v19 = vsel %vm1790_vm5, %v1802_v35, %v1804_v10  ;;  %v2712_v20 = vrot.slane %v2615_v11, 1 }
 0x21f   : > { %v2135_v22 = vsel %vm1541_vm4, %v2132_v37, %v2134_v14  ;;  %v2383_v23 = vsel %vm1790_vm5, %v2380_v43, %v2382_v15  ;;  %v2960_v24 = vrot.slane %v2863_v12, 2  ;;  %v1454_v25 = vmul.f32 %v20133_v40, %v1160_v3 }
 0x220   : > { %3141 = vst.msk [vmem:[#allocation3 + $0x19] sm:$0xff] %vm929_vm2, %v3108_v17  ;;  %v1908_v26 = vadd.f32 %v1805_v19, %v1659_v18  ;;  %v2241_v27 = vadd.f32 %v2135_v22, %v1988_v36  ;;  %v2713_v28 = vsel %vm1541_vm4, %v2710_v45, %v2712_v20  ;;  %v1703_v29 = vmul.f32 %v20135_v41, %v1160_v3 }
 0x221   : > { %v2822_v31 = vadd.f32 %v2713_v28, %v2569_v44  ;;  %v2961_v21 = vsel %vm1790_vm5, %v2958_v50, %v2960_v24  ;;  %v1557_v32 = vrot.slane %v1454_v25, 1  ;;  %v1957_v33 = vmul.f32 %v20145_v54, %v1160_v3 }
 0x222   : > { %v2489_v35 = vadd.f32 %v2383_v23, %v2241_v27  ;;  %v1806_v37 = vrot.slane %v1703_v29, 2  ;;  %v2036_v38 = vmul.f32 %v20150_v63, %v1160_v3  ;;  %v2284_v39 = vmul.f32 %v20152_v0, %v1160_v3 }
 0x223   : > { %v3070_v42 = vadd.f32 %v2961_v21, %v2822_v31  ;;  %v1989_v43 = vadd.f32 %v1957_v33, %v1907_v56  ;;  %v2538_v36 = vmul.f32 %v20180_v60, %v1160_v3  ;;  %v2616_v45 = vmul.f32 %v20182_v61, %v1160_v3 }
 0x224   : > { %v2136_v44 = vrot.slane %v2036_v38, 1  ;;  %v2384_v48 = vrot.slane %v2284_v39, 2  ;;  %v2864_v49 = vmul.f32 %v20189_v7, %v1160_v3  ;;  %v1300_v50 = vmul.f32 %v20140_v47, %v1165_v34 }
 0x225   : > { %v3109_v51 = vadd.f32 %v20214_v4, %v3070_v42  ;;  %v2570_v52 = vadd.f32 %v2538_v36, %v2488_v62  ;;  %v2714_v53 = vrot.slane %v2616_v45, 1  ;;  %v1455_v55 = vmul.f32 %v20133_v40, %v1165_v34  ;;  %v1170_v42 = vpop.permute.xlu0 %1169 }
 0x226   : > { %v2962_v58 = vrot.slane %v2864_v49, 2  ;;  %v1456_v56 = vmul.f32 %v20133_v40, %v1377_v46  ;;  %v1704_v59 = vmul.f32 %v20135_v41, %v1165_v34  ;;  %v1705_v1 = vmul.f32 %v20135_v41, %v1377_v46 }
 0x227   : > { %3142 = vst.msk [vmem:[#allocation3 + $0x21] sm:$0xff] %vm929_vm2, %v3109_v51  ;;  %v1558_v5 = vrot.slane %v1455_v55, 1  ;;  %v1958_v3 = vmul.f32 %v20145_v54, %v1165_v34  ;;  %v2037_v6 = vmul.f32 %v20150_v63, %v1165_v34  ;;  %v2038_v8 = vmul.f32 %v20150_v63, %v1377_v46 }
 0x228   : > { %v1560_v62 = vrot.slane %v1456_v56, 1  ;;  %v1807_v9 = vrot.slane %v1704_v59, 2  ;;  %v1809_v10 = vrot.slane %v1705_v1, 2  ;;  %v2285_v11 = vmul.f32 %v20152_v0, %v1165_v34 }
 0x229   : > { %v1559_v12 = vsel %vm1541_vm4, %v1557_v32, %v1558_v5  ;;  %v1990_v13 = vadd.f32 %v1958_v3, %v1908_v26  ;;  %v2137_v14 = vrot.slane %v2037_v6, 1  ;;  %v2139_v15 = vrot.slane %v2038_v8, 1 }
 0x22a   : > { %v1561_v17 = vsel %vm1541_vm4, %v1558_v5, %v1560_v62  ;;  %v1660_v18 = vadd.f32 %v1559_v12, %v1299_v16  ;;  %v1808_v19 = vsel %vm1790_vm5, %v1806_v37, %v1807_v9  ;;  %v1810_v20 = vsel %vm1790_vm5, %v1807_v9, %v1809_v10  ;;  %v1175_v12 = vpop.permute.xlu1 %1174 }
 0x22b   : > { %v1661_v22 = vadd.f32 %v1561_v17, %v1300_v50  ;;  %v2138_v23 = vsel %vm1541_vm4, %v2136_v44, %v2137_v14  ;;  %v2140_v24 = vsel %vm1541_vm4, %v2137_v14, %v2139_v15  ;;  %v2286_v25 = vmul.f32 %v20152_v0, %v1377_v46 }
 0x22c   : > { %v1909_v27 = vadd.f32 %v1808_v19, %v1660_v18  ;;  %v2242_v28 = vadd.f32 %v2138_v23, %v1989_v43  ;;  %v2243_v29 = vadd.f32 %v2140_v24, %v1990_v13  ;;  %v2385_v26 = vrot.slane %v2285_v11, 2 }
 0x22d   : > { %v1910_v31 = vadd.f32 %v1810_v20, %v1661_v22  ;;  %v2387_v21 = vrot.slane %v2286_v25, 2  ;;  %v2539_v32 = vmul.f32 %v20180_v60, %v1165_v34  ;;  %v2617_v16 = vmul.f32 %v20182_v61, %v1165_v34 }
 0x22e   : > { %v2386_v33 = vsel %vm1790_vm5, %v2384_v48, %v2385_v26  ;;  %v2618_v37 = vmul.f32 %v20182_v61, %v1377_v46  ;;  %v2865_v38 = vmul.f32 %v20189_v7, %v1165_v34  ;;  %v2866_v39 = vmul.f32 %v20189_v7, %v1377_v46 }
 0x22f   : > { %v2388_v36 = vsel %vm1790_vm5, %v2385_v26, %v2387_v21  ;;  %v2490_v43 = vadd.f32 %v2386_v33, %v2242_v28  ;;  %v2571_v45 = vadd.f32 %v2539_v32, %v2489_v35  ;;  %v2715_v44 = vrot.slane %v2617_v16, 1  ;;  %v1382_v33 = vpop.permute.xlu0 %1381 }
 0x230   : > { %v2491_v49 = vadd.f32 %v2388_v36, %v2243_v29  ;;  %v2717_v50 = vrot.slane %v2618_v37, 1  ;;  %v2963_v51 = vrot.slane %v2865_v38, 2  ;;  %v2965_v55 = vrot.slane %v2866_v39, 2 }
 0x231   : > { %v2716_v56 = vsel %vm1541_vm4, %v2714_v53, %v2715_v44  ;;  %v1301_v48 = vmul.f32 %v20140_v47, %v1170_v42  ;;  %v1457_v59 = vmul.f32 %v20133_v40, %v1170_v42  ;;  %v1706_v34 = vmul.f32 %v20135_v41, %v1170_v42 }
 0x232   : > { %v2718_v46 = vsel %vm1541_vm4, %v2715_v44, %v2717_v50  ;;  %v2823_v1 = vadd.f32 %v2716_v56, %v2570_v52  ;;  %v2964_v5 = vsel %vm1790_vm5, %v2962_v58, %v2963_v51  ;;  %v2966_v35 = vsel %vm1790_vm5, %v2963_v51, %v2965_v55 }
 0x233   : > { %v2824_v3 = vadd.f32 %v2718_v46, %v2571_v45  ;;  %v1562_v6 = vrot.slane %v1457_v59, 1  ;;  %v1811_v8 = vrot.slane %v1706_v34, 2  ;;  %v1959_v62 = vmul.f32 %v20145_v54, %v1170_v42 }
 0x234   : > { %v3071_v9 = vadd.f32 %v2964_v5, %v2823_v1  ;;  %v2039_v53 = vmul.f32 %v20150_v63, %v1170_v42  ;;  %v2287_v10 = vmul.f32 %v20152_v0, %v1170_v42  ;;  %v2540_v11 = vmul.f32 %v20180_v60, %v1170_v42 }
 0x235   : > { %v3072_v13 = vadd.f32 %v2966_v35, %v2824_v3  ;;  %v1991_v14 = vadd.f32 %v1959_v62, %v1909_v27  ;;  %v2619_v52 = vmul.f32 %v20182_v61, %v1170_v42  ;;  %v2867_v58 = vmul.f32 %v20189_v7, %v1170_v42 }
 0x236   : > { %v3110_v15 = vadd.f32 %v20214_v4, %v3071_v9  ;;  %v2141_v17 = vrot.slane %v2039_v53, 1  ;;  %v2389_v18 = vrot.slane %v2287_v10, 2  ;;  %v2572_v19 = vadd.f32 %v2540_v11, %v2490_v43  ;;  %v1180_v9 = vpop.permute.xlu1 %1179 }
 0x237   : > { %v3111_v20 = vadd.f32 %v20214_v4, %v3072_v13  ;;  %v2719_v22 = vrot.slane %v2619_v52, 1  ;;  %v2967_v23 = vrot.slane %v2867_v58, 2  ;;  %v1302_v24 = vmul.f32 %v20140_v47, %v1175_v12 }
 0x238   : > { %3143 = vst.msk [vmem:[#allocation3 + $0x31] sm:$0xff] %vm929_vm2, %v3110_v15  ;;  %v1458_v25 = vmul.f32 %v20133_v40, %v1175_v12  ;;  %v1707_v27 = vmul.f32 %v20135_v41, %v1175_v12  ;;  %v1960_v28 = vmul.f32 %v20145_v54, %v1175_v12  ;;  %v2040_v29 = vmul.f32 %v20150_v63, %v1175_v12 }
 0x239   : > { %3144 = vst.msk [vmem:[#allocation3 + $0x39] sm:$0xff] %vm929_vm2, %v3111_v20  ;;  %v2288_v26 = vmul.f32 %v20152_v0, %v1175_v12  ;;  %v2541_v21 = vmul.f32 %v20180_v60, %v1175_v12  ;;  %v2620_v32 = vmul.f32 %v20182_v61, %v1175_v12  ;;  %v2868_v16 = vmul.f32 %v20189_v7, %v1175_v12 }
 0x23a   : > { %v1563_v37 = vrot.slane %v1458_v25, 1  ;;  %v1812_v38 = vrot.slane %v1707_v27, 2  ;;  %v1992_v39 = vadd.f32 %v1960_v28, %v1910_v31  ;;  %v2142_v42 = vrot.slane %v2040_v29, 1 }
 0x23b   : > { %v2390_v36 = vrot.slane %v2288_v26, 2  ;;  %v2573_v43 = vadd.f32 %v2541_v21, %v2491_v49  ;;  %v2720_v45 = vrot.slane %v2620_v32, 1  ;;  %v2968_v44 = vrot.slane %v2868_v16, 2  ;;  %v1185_v16 = vpop.permute.xlu0 %1184 }
 0x23c   : > { %v1564_v50 = vsel %vm1541_vm4, %v1562_v6, %v1563_v37  ;;  %v1813_v51 = vsel %vm1790_vm5, %v1811_v8, %v1812_v38  ;;  %v2143_v55 = vsel %vm1541_vm4, %v2141_v17, %v2142_v42  ;;  %v1459_v56 = vmul.f32 %v20133_v40, %v1382_v33 }
 0x23d   : > { %v1662_v59 = vadd.f32 %v1564_v50, %v1301_v48  ;;  %v2244_v34 = vadd.f32 %v2143_v55, %v1991_v14  ;;  %v2391_v46 = vsel %vm1790_vm5, %v2389_v18, %v2390_v36  ;;  %v2721_v1 = vsel %vm1541_vm4, %v2719_v22, %v2720_v45 }
 0x23e   : > { %v2825_v31 = vadd.f32 %v2721_v1, %v2572_v19  ;;  %v2969_v5 = vsel %vm1790_vm5, %v2967_v23, %v2968_v44  ;;  %v1565_v49 = vrot.slane %v1459_v56, 1  ;;  %v1708_v35 = vmul.f32 %v20135_v41, %v1382_v33 }
 0x23f   : > { %v1911_v3 = vadd.f32 %v1813_v51, %v1662_v59  ;;  %v2492_v6 = vadd.f32 %v2391_v46, %v2244_v34  ;;  %v2041_v8 = vmul.f32 %v20150_v63, %v1382_v33  ;;  %v2289_v62 = vmul.f32 %v20152_v0, %v1382_v33 }
 0x240   : > { %v3073_v53 = vadd.f32 %v2969_v5, %v2825_v31  ;;  %v1566_v48 = vsel %vm1541_vm4, %v1563_v37, %v1565_v49  ;;  %v1814_v10 = vrot.slane %v1708_v35, 2  ;;  %v2621_v11 = vmul.f32 %v20182_v61, %v1382_v33 }
 0x241   : > { %v1663_v12 = vadd.f32 %v1566_v48, %v1302_v24  ;;  %v2144_v13 = vrot.slane %v2041_v8, 1  ;;  %v2392_v14 = vrot.slane %v2289_v62, 2  ;;  %v2869_v52 = vmul.f32 %v20189_v7, %v1382_v33 }
 0x242   : > { %v3112_v58 = vadd.f32 %v20214_v4, %v3073_v53  ;;  %v1815_v15 = vsel %vm1790_vm5, %v1812_v38, %v1814_v10  ;;  %v2722_v17 = vrot.slane %v2621_v11, 1  ;;  %v1303_v18 = vmul.f32 %v20140_v47, %v1180_v9 }
 0x243   : > { %v1912_v19 = vadd.f32 %v1815_v15, %v1663_v12  ;;  %v2145_v20 = vsel %vm1541_vm4, %v2142_v42, %v2144_v13  ;;  %v2393_v22 = vsel %vm1790_vm5, %v2390_v36, %v2392_v14  ;;  %v2970_v23 = vrot.slane %v2869_v52, 2 }
 0x244   : > { %3145 = vst.msk [vmem:[#allocation3 + $0x49] sm:$0xff] %vm929_vm2, %v3112_v58  ;;  %v2245_v24 = vadd.f32 %v2145_v20, %v1992_v39  ;;  %v2723_v25 = vsel %vm1541_vm4, %v2720_v45, %v2722_v17  ;;  %v1460_v27 = vmul.f32 %v20133_v40, %v1180_v9  ;;  %v1709_v28 = vmul.f32 %v20135_v41, %v1180_v9  ;;  %v1387_v39 = vpop.permute.xlu1 %1386 }
 0x245   : > { %v2826_v29 = vadd.f32 %v2723_v25, %v2573_v43  ;;  %v2971_v26 = vsel %vm1790_vm5, %v2968_v44, %v2970_v23  ;;  %v1961_v21 = vmul.f32 %v20145_v54, %v1180_v9  ;;  %v2042_v32 = vmul.f32 %v20150_v63, %v1180_v9 }
 0x246   : > { %v2493_v33 = vadd.f32 %v2393_v22, %v2245_v24  ;;  %v1567_v37 = vrot.slane %v1460_v27, 1  ;;  %v1816_v38 = vrot.slane %v1709_v28, 2  ;;  %v2290_v42 = vmul.f32 %v20152_v0, %v1180_v9 }
 0x247   : > { %v3074_v36 = vadd.f32 %v2971_v26, %v2826_v29  ;;  %v1993_v45 = vadd.f32 %v1961_v21, %v1911_v3  ;;  %v2146_v50 = vrot.slane %v2042_v32, 1  ;;  %v2542_v51 = vmul.f32 %v20180_v60, %v1180_v9  ;;  %v1190_v32 = vpop.permute.xlu0 %1189 }
 0x248   : > { %v2394_v55 = vrot.slane %v2290_v42, 2  ;;  %v2622_v43 = vmul.f32 %v20182_v61, %v1180_v9  ;;  %v20317_v44 = vmul.f32 %v20189_v7, %v1180_v9  ;;  %v1304_v56 = vmul.f32 %v20140_v47, %v1185_v16 }
 0x249   : > { %v3113_v59 = vadd.f32 %v20214_v4, %v3074_v36  ;;  %v2574_v34 = vadd.f32 %v2542_v51, %v2492_v6  ;;  %v1461_v46 = vmul.f32 %v20133_v40, %v1185_v16  ;;  %v1462_v1 = vmul.f32 %v20133_v40, %v1387_v39 }
 0x24a   : > { %v2724_v31 = vrot.slane %v2622_v43, 1  ;;  %v2972_v5 = vrot.slane %v20317_v44, 2  ;;  %v1710_v49 = vmul.f32 %v20135_v41, %v1185_v16  ;;  %v1711_v35 = vmul.f32 %v20135_v41, %v1387_v39 }
 0x24b   : > { %3146 = vst.msk [vmem:[#allocation3 + $0x51] sm:$0xff] %vm929_vm2, %v3113_v59  ;;  %v1568_v3 = vrot.slane %v1461_v46, 1  ;;  %v1570_v8 = vrot.slane %v1462_v1, 1  ;;  %v1962_v62 = vmul.f32 %v20145_v54, %v1185_v16  ;;  %v2043_v9 = vmul.f32 %v20150_v63, %v1185_v16 }
 0x24c   : > { %v1817_v6 = vrot.slane %v1710_v49, 2  ;;  %v1819_v53 = vrot.slane %v1711_v35, 2  ;;  %v2044_v48 = vmul.f32 %v20150_v63, %v1387_v39  ;;  %v2291_v10 = vmul.f32 %v20152_v0, %v1185_v16 }
 0x24d   : > { %v1569_v11 = vsel %vm1541_vm4, %v1567_v37, %v1568_v3  ;;  %v1571_v12 = vsel %vm1541_vm4, %v1568_v3, %v1570_v8  ;;  %v1994_v13 = vadd.f32 %v1962_v62, %v1912_v19  ;;  %v2147_v14 = vrot.slane %v2043_v9, 1 }
 0x24e   : > { %v1664_v52 = vadd.f32 %v1569_v11, %v1303_v18  ;;  %v1665_v58 = vadd.f32 %v1571_v12, %v1304_v56  ;;  %v1818_v15 = vsel %vm1790_vm5, %v1816_v38, %v1817_v6  ;;  %v1820_v17 = vsel %vm1790_vm5, %v1817_v6, %v1819_v53  ;;  %v20355_v53 = vld [vmem:[#allocation3 + $0x18] sm:$0xff] }
 0x24f   : > { %v2148_v20 = vsel %vm1541_vm4, %v2146_v50, %v2147_v14  ;;  %v2149_v22 = vrot.slane %v2044_v48, 1  ;;  %v2292_v23 = vmul.f32 %v20152_v0, %v1387_v39  ;;  %v2395_v24 = vrot.slane %v2291_v10, 2 }
 0x250   : > { %v1913_v25 = vadd.f32 %v1818_v15, %v1664_v52  ;;  %v20337_v27 = vadd.f32 %v1820_v17, %v1665_v58  ;;  %v2246_v28 = vadd.f32 %v2148_v20, %v1993_v45  ;;  %v2543_v29 = vmul.f32 %v20180_v60, %v1185_v16  ;;  %v1195_v52 = vpop.permute.xlu1 %1194 }
 0x251   : > { %v2150_v19 = vsel %vm1541_vm4, %v2147_v14, %v2149_v22  ;;  %v2396_v18 = vsel %vm1790_vm5, %v2394_v55, %v2395_v24  ;;  %v2397_v26 = vrot.slane %v2292_v23, 2  ;;  %v2623_v21 = vmul.f32 %v20182_v61, %v1185_v16 }
 0x252   : > { %v2247_v37 = vadd.f32 %v2150_v19, %v1994_v13  ;;  %v2494_v38 = vadd.f32 %v2396_v18, %v2246_v28  ;;  %v2575_v42 = vadd.f32 %v2543_v29, %v2493_v33  ;;  %v2624_v36 = vmul.f32 %v20182_v61, %v1387_v39 }
 0x253   : > { %v2398_v50 = vsel %vm1790_vm5, %v2395_v24, %v2397_v26  ;;  %v2725_v51 = vrot.slane %v2623_v21, 1  ;;  %v2871_v45 = vmul.f32 %v20189_v7, %v1185_v16  ;;  %v2872_v43 = vmul.f32 %v20189_v7, %v1387_v39 }
 0x254   : > { %v2495_v44 = vadd.f32 %v2398_v50, %v2247_v37  ;;  %v2727_v56 = vrot.slane %v2624_v36, 1  ;;  %v1305_v55 = vmul.f32 %v20140_v47, %v1190_v32  ;;  %v1463_v59 = vmul.f32 %v20133_v40, %v1190_v32 }
 0x255   : > { %v2726_v46 = vsel %vm1541_vm4, %v2724_v31, %v2725_v51  ;;  %v2973_v1 = vrot.slane %v2871_v45, 2  ;;  %v2975_v49 = vrot.slane %v2872_v43, 2  ;;  %v1712_v33 = vmul.f32 %v20135_v41, %v1190_v32 }
 0x256   : > { %v2728_v35 = vsel %vm1541_vm4, %v2725_v51, %v2727_v56  ;;  %v2827_v3 = vadd.f32 %v2726_v46, %v2574_v34  ;;  %v1572_v8 = vrot.slane %v1463_v59, 1  ;;  %v1963_v16 = vmul.f32 %v20145_v54, %v1190_v32  ;;  %v1392_v51 = vpop.permute.xlu0 %1391 }
 0x257   : > { %v2828_v62 = vadd.f32 %v2728_v35, %v2575_v42  ;;  %v2974_v39 = vsel %vm1790_vm5, %v2972_v5, %v2973_v1  ;;  %v2976_v9 = vsel %vm1790_vm5, %v2973_v1, %v2975_v49  ;;  %v1821_v6 = vrot.slane %v1712_v33, 2  ;;  %v20362_v5 = vld [vmem:[#allocation3 + $0x20] sm:$0xff] }
 0x258   : > { %v3075_v48 = vadd.f32 %v2974_v39, %v2827_v3  ;;  %v1995_v31 = vadd.f32 %v1963_v16, %v1913_v25  ;;  %v2045_v10 = vmul.f32 %v20150_v63, %v1190_v32  ;;  %v2293_v11 = vmul.f32 %v20152_v0, %v1190_v32 }
 0x259   : > { %v3076_v12 = vadd.f32 %v2976_v9, %v2828_v62  ;;  %v2544_v34 = vmul.f32 %v20180_v60, %v1190_v32  ;;  %v2625_v13 = vmul.f32 %v20182_v61, %v1190_v32  ;;  %v2873_v14 = vmul.f32 %v20189_v7, %v1190_v32 }
 0x25a   : > { %v3114_v58 = vadd.f32 %v20214_v4, %v3075_v48  ;;  %v2151_v15 = vrot.slane %v2045_v10, 1  ;;  %v2399_v17 = vrot.slane %v2293_v11, 2  ;;  %v3284_v20 = vrot.slane %v20355_v53, 1 }
 0x25b   : > { %v3115_v22 = vadd.f32 %v20214_v4, %v3076_v12  ;;  %v2576_v23 = vadd.f32 %v2544_v34, %v2494_v38  ;;  %v2729_v24 = vrot.slane %v2625_v13, 1  ;;  %v2977_v25 = vrot.slane %v2873_v14, 2  ;;  %v3178_v13 = vld [vmem:[#allocation3 + $0x28] sm:$0x3] }
 0x25c   : > { %3147 = vst.msk [vmem:[#allocation3 + $0x61] sm:$0xff] %vm929_vm2, %v3114_v58  ;;  %v3285_v28 = vrot.slane %v20362_v5, 1  ;;  %v1306_v29 = vmul.f32 %v20140_v47, %v1195_v52  ;;  %v1464_v19 = vmul.f32 %v20133_v40, %v1195_v52  ;;  %v1713_v18 = vmul.f32 %v20135_v41, %v1195_v52 }
 0x25d   : > { %3148 = vst.msk [vmem:[#allocation3 + $0x69] sm:$0xff] %vm929_vm2, %v3115_v22  ;;  %v1964_v26 = vmul.f32 %v20145_v54, %v1195_v52  ;;  %v2046_v21 = vmul.f32 %v20150_v63, %v1195_v52  ;;  %v2294_v32 = vmul.f32 %v20152_v0, %v1195_v52  ;;  %v2545_v37 = vmul.f32 %v20180_v60, %v1195_v52 }
 0x25e   : > { %v20378_v38 = vsel %vm1541_vm4, %v3284_v20, %v3285_v28  ;;  %v1573_v42 = vrot.slane %v1464_v19, 1  ;;  %v1822_v36 = vrot.slane %v1713_v18, 2  ;;  %v2626_v50 = vmul.f32 %v20182_v61, %v1195_v52 }
 0x25f   : > { %15322 = vmatprep.mubr.msk.f32.mxu0 %vm929_vm2, %v20378_v38  ;;  %v1996_v45 = vadd.f32 %v1964_v26, %v20337_v27  ;;  %v2152_v43 = vrot.slane %v2046_v21, 1  ;;  %v2400_v56 = vrot.slane %v2294_v32, 2  ;;  %v2577_v59 = vadd.f32 %v2545_v37, %v2495_v44 }
 0x260   : > { %v1574_v46 = vsel %vm1541_vm4, %v1572_v8, %v1573_v42  ;;  %v1823_v1 = vsel %vm1790_vm5, %v1821_v6, %v1822_v36  ;;  %v2730_v49 = vrot.slane %v2626_v50, 1  ;;  %v2874_v33 = vmul.f32 %v20189_v7, %v1195_v52 }
 0x261   : > { %v1666_v35 = vadd.f32 %v1574_v46, %v1305_v55  ;;  %v2153_v3 = vsel %vm1541_vm4, %v2151_v15, %v2152_v43  ;;  %v2401_v16 = vsel %vm1790_vm5, %v2399_v17, %v2400_v56  ;;  %v1465_v62 = vmul.f32 %v20133_v40, %v1392_v51 }
 0x262   : > { %v2248_v39 = vadd.f32 %v2153_v3, %v1995_v31  ;;  %v2731_v27 = vsel %vm1541_vm4, %v2729_v24, %v2730_v49  ;;  %v2978_v9 = vrot.slane %v2874_v33, 2  ;;  %v1714_v44 = vmul.f32 %v20135_v41, %v1392_v51  ;;  %v20418_v33 = vld [vmem:[#allocation3 + $0x30] sm:$0xff] }
 0x263   : > { %v1915_v48 = vadd.f32 %v1823_v1, %v1666_v35  ;;  %v2829_v8 = vadd.f32 %v2731_v27, %v2576_v23  ;;  %v1575_v10 = vrot.slane %v1465_v62, 1  ;;  %v2047_v6 = vmul.f32 %v20150_v63, %v1392_v51  ;;  %v1200_v23 = vpop.permute.xlu1 %1199  ;;  %v1205_v62 = vpop.permute.xlu0 %1204 }
 0x264   : > { %v2496_v11 = vadd.f32 %v2401_v16, %v2248_v39  ;;  %v2979_v55 = vsel %vm1790_vm5, %v2977_v25, %v2978_v9  ;;  %v1824_v12 = vrot.slane %v1714_v44, 2  ;;  %v2295_v34 = vmul.f32 %v20152_v0, %v1392_v51  ;;  %v20424_v39 = vld [vmem:[#allocation3 + $0x38] sm:$0xff] }
 0x265   : > { %v3077_v14 = vadd.f32 %v2979_v55, %v2829_v8  ;;  %v1576_v31 = vsel %vm1541_vm4, %v1573_v42, %v1575_v10  ;;  %v2154_v52 = vrot.slane %v2047_v6, 1  ;;  %v2627_v58 = vmul.f32 %v20182_v61, %v1392_v51 }
 0x266   : > { %v1667_v15 = vadd.f32 %v1576_v31, %v1306_v29  ;;  %v1825_v17 = vsel %vm1790_vm5, %v1822_v36, %v1824_v12  ;;  %v2402_v20 = vrot.slane %v2295_v34, 2  ;;  %v2875_v22 = vmul.f32 %v20189_v7, %v1392_v51 }
 0x267   : > { %v3116_v24 = vadd.f32 %v20214_v4, %v3077_v14  ;;  %v2155_v25 = vsel %vm1541_vm4, %v2152_v43, %v2154_v52  ;;  %v2732_v19 = vrot.slane %v2627_v58, 1  ;;  %v3287_v18 = vrot.slane %v3178_v13, 1  ;;  %v1397_v10 = vpop.permute.xlu1 %1396 }
 0x268   : > { %v1916_v26 = vadd.f32 %v1825_v17, %v1667_v15  ;;  %v2249_v21 = vadd.f32 %v2155_v25, %v1996_v45  ;;  %v2403_v32 = vsel %vm1790_vm5, %v2400_v56, %v2402_v20  ;;  %v2980_v37 = vrot.slane %v2875_v22, 2 }
 0x269   : > { %3149 = vst.msk [vmem:[#allocation3 + $0x79] sm:$0xff] %vm929_vm2, %v3116_v24  ;;  %v2733_v29 = vsel %vm1541_vm4, %v2730_v49, %v2732_v19  ;;  %v20405_v42 = vsel %vm1541_vm4, %v3285_v28, %v3287_v18  ;;  %v1307_v36 = vmul.f32 %v20140_v47, %v1200_v23  ;;  %v1466_v50 = vmul.f32 %v20133_v40, %v1200_v23 }
 0x26a   : > { %v20409_v51 = vadd.f32 %v2403_v32, %v2249_v21  ;;  %v2830_v43 = vadd.f32 %v2733_v29, %v2577_v59  ;;  %v2981_v46 = vsel %vm1790_vm5, %v2978_v9, %v2980_v37  ;;  %15323 = vmatmul.mubr.msk.f32.gmra.mrb[2].mxu0 %vm929_vm2, %v20405_v42  ;;  %v1715_v45 = vmul.f32 %v20135_v41, %v1200_v23 }
 0x26b   : > { %v1577_v56 = vrot.slane %v1466_v50, 1  ;;  %v1965_v1 = vmul.f32 %v20145_v54, %v1200_v23  ;;  %v2048_v28 = vmul.f32 %v20150_v63, %v1200_v23  ;;  %v2296_v49 = vmul.f32 %v20152_v0, %v1200_v23 }
 0x26c   : > { %v3078_v35 = vadd.f32 %v2981_v46, %v2830_v43  ;;  %v1826_v3 = vrot.slane %v1715_v45, 2  ;;  %v2546_v59 = vmul.f32 %v20180_v60, %v1200_v23  ;;  %v20422_v16 = vmul.f32 %v20182_v61, %v1200_v23 }
 0x26d   : > { %v1997_v27 = vadd.f32 %v1965_v1, %v1915_v48  ;;  %v2156_v9 = vrot.slane %v2048_v28, 1  ;;  %v2404_v44 = vrot.slane %v2296_v49, 2  ;;  %v20427_v8 = vmul.f32 %v20189_v7, %v1200_v23 }
 0x26e   : > { %v3117_v6 = vadd.f32 %v20214_v4, %v3078_v35  ;;  %v20430_v55 = vadd.f32 %v2546_v59, %v2496_v11  ;;  %v2734_v12 = vrot.slane %v20422_v16, 1  ;;  %v3289_v34 = vrot.slane %v20418_v33, 1 }
 0x26f   : > { %v2982_v13 = vrot.slane %v20427_v8, 2  ;;  %v3290_v14 = vrot.slane %v20424_v39, 1  ;;  %v1308_v48 = vmul.f32 %v20140_v47, %v1205_v62  ;;  %v1467_v31 = vmul.f32 %v20133_v40, %v1205_v62  ;;  %v1210_v8 = vpop.permute.xlu0 %1209 }
 0x270   : > { %3150 = vst.msk [vmem:[#allocation3 + $0x81] sm:$0xff] %vm929_vm2, %v3117_v6  ;;  %v1468_v52 = vmul.f32 %v20133_v40, %v1397_v10  ;;  %v1716_v58 = vmul.f32 %v20135_v41, %v1205_v62  ;;  %v1717_v11 = vmul.f32 %v20135_v41, %v1397_v10  ;;  %v1966_v15 = vmul.f32 %v20145_v54, %v1205_v62 }
 0x271   : > { %v20446_v17 = vsel %vm1541_vm4, %v3289_v34, %v3290_v14  ;;  %v1578_v20 = vrot.slane %v1467_v31, 1  ;;  %v2049_v47 = vmul.f32 %v20150_v63, %v1205_v62  ;;  %v2050_v22 = vmul.f32 %v20150_v63, %v1397_v10 }
 0x272   : > { %15325 = vmatprep.mubr.msk.f32.mxu0 %vm929_vm2, %v20446_v17  ;;  %v1580_v40 = vrot.slane %v1468_v52, 1  ;;  %v1827_v23 = vrot.slane %v1716_v58, 2  ;;  %v1829_v24 = vrot.slane %v1717_v11, 2  ;;  %v1998_v25 = vadd.f32 %v1966_v15, %v1916_v26 }
 0x273   : > { %v1579_v41 = vsel %vm1541_vm4, %v1577_v56, %v1578_v20  ;;  %v2157_v54 = vrot.slane %v2049_v47, 1  ;;  %v2159_v19 = vrot.slane %v2050_v22, 1  ;;  %v2297_v18 = vmul.f32 %v20152_v0, %v1205_v62 }
 0x274   : > { %v1581_v21 = vsel %vm1541_vm4, %v1578_v20, %v1580_v40  ;;  %v1668_v32 = vadd.f32 %v1579_v41, %v1307_v36  ;;  %v1828_v37 = vsel %vm1790_vm5, %v1826_v3, %v1827_v23  ;;  %v1830_v63 = vsel %vm1790_vm5, %v1827_v23, %v1829_v24  ;;  %v20473_v20 = vld [vmem:[#allocation6] ss:$0 sm:$0xff]  ;;  %v20488_v41 = vld [vmem:[#allocation6 + $0x2] ss:$0 sm:$0xff] }
 0x275   : > { %v1669_v29 = vadd.f32 %v1581_v21, %v1308_v48  ;;  %v2158_v50 = vsel %vm1541_vm4, %v2156_v9, %v2157_v54  ;;  %v2160_v43 = vsel %vm1541_vm4, %v2157_v54, %v2159_v19  ;;  %v2298_v26 = vmul.f32 %v20152_v0, %v1397_v10  ;;  %v3181_v0 = vld [vmem:[#allocation3 + $0x40] sm:$0x3] }
 0x276   : > { %v1917_v46 = vadd.f32 %v1828_v37, %v1668_v32  ;;  %v2250_v45 = vadd.f32 %v2158_v50, %v1997_v27  ;;  %v2251_v56 = vadd.f32 %v2160_v43, %v1998_v25  ;;  %v2405_v1 = vrot.slane %v2297_v18, 2  ;;  %v20496_v18 = vld [vmem:[#allocation6 + $0x4] ss:$0 sm:$0xff]  ;;  %v20499_v32 = vld [vmem:[#allocation6 + $0x5] ss:$0 sm:$0xff]  ;;  %v1215_v43 = vpop.permute.xlu1 %1214 }
 0x277   : > { %v20460_v28 = vadd.f32 %v1830_v63, %v1669_v29  ;;  %v2407_v49 = vrot.slane %v2298_v26, 2  ;;  %v2547_v36 = vmul.f32 %v20180_v60, %v1205_v62  ;;  %v2629_v35 = vmul.f32 %v20182_v61, %v1205_v62  ;;  %v20504_v26 = vld [vmem:[#allocation3 + $0x48] sm:$0xff] }
 0x278   : > { %v2406_v3 = vsel %vm1790_vm5, %v2404_v44, %v2405_v1  ;;  %v2630_v59 = vmul.f32 %v20182_v61, %v1397_v10  ;;  %v2877_v16 = vmul.f32 %v20189_v7, %v1205_v62  ;;  %v2878_v9 = vmul.f32 %v20189_v7, %v1397_v10  ;;  %v20476_v10 = vld [vmem:[#allocation6 + $0x1] ss:$0 sm:$0xff] }
 0x279   : > { %v2408_v27 = vsel %vm1790_vm5, %v2405_v1, %v2407_v49  ;;  %v2498_v6 = vadd.f32 %v2406_v3, %v2250_v45  ;;  %v2579_v34 = vadd.f32 %v2547_v36, %v20409_v51  ;;  %v2735_v48 = vrot.slane %v2629_v35, 1  ;;  %v20506_v45 = vld [vmem:[#allocation3 + $0x50] sm:$0xff] }
 0x27a   : > { %v20470_v31 = vadd.f32 %v2408_v27, %v2251_v56  ;;  %v2737_v52 = vrot.slane %v2630_v59, 1  ;;  %v2983_v58 = vrot.slane %v2877_v16, 2  ;;  %v2985_v11 = vrot.slane %v2878_v9, 2 }
 0x27b   : > { %v2736_v44 = vsel %vm1541_vm4, %v2734_v12, %v2735_v48  ;;  %v3292_v15 = vrot.slane %v3181_v0, 1  ;;  %v1309_v62 = vmul.f32 %v20473_v20, %v1210_v8  ;;  %v1469_v47 = vmul.f32 %v20476_v10, %v1210_v8 }
 0x27c   : > { %v2738_v22 = vsel %vm1541_vm4, %v2735_v48, %v2737_v52  ;;  %v2831_v51 = vadd.f32 %v2736_v44, %v20430_v55  ;;  %v2984_v40 = vsel %vm1790_vm5, %v2982_v13, %v2983_v58  ;;  %v2986_v23 = vsel %vm1790_vm5, %v2983_v58, %v2985_v11  ;;  %v20493_v55 = vld [vmem:[#allocation6 + $0x3] ss:$0 sm:$0xff]  ;;  %v20526_v52 = vld [vmem:[#allocation6 + $0x6] ss:$0 sm:$0xff] }
 0x27d   : > { %v2832_v24 = vadd.f32 %v2738_v22, %v2579_v34  ;;  %v20486_v12 = vsel %vm1541_vm4, %v3290_v14, %v3292_v15  ;;  %v1582_v25 = vrot.slane %v1469_v47, 1  ;;  %v1718_v54 = vmul.f32 %v20488_v41, %v1210_v8  ;;  %v20532_v47 = vld [vmem:[#allocation6 + $0x7] ss:$0 sm:$0xff] }
 0x27e   : > { %v3079_v19 = vadd.f32 %v2984_v40, %v2831_v51  ;;  %15326 = vmatmul.mubr.msk.f32.gmra.mrb[4].mxu0 %vm929_vm2, %v20486_v12  ;;  %v1967_v13 = vmul.f32 %v20493_v55, %v1210_v8  ;;  %v2051_v21 = vmul.f32 %v20496_v18, %v1210_v8  ;;  %v2299_v14 = vmul.f32 %v20499_v32, %v1210_v8  ;;  %v1402_v51 = vpop.permute.xlu0 %1401 }
 0x27f   : > { %v3080_v37 = vadd.f32 %v2986_v23, %v2832_v24  ;;  %v1831_v63 = vrot.slane %v1718_v54, 2  ;;  %v2548_v29 = vmul.f32 %v20180_v60, %v1210_v8  ;;  %v2631_v50 = vmul.f32 %v20182_v61, %v1210_v8  ;;  %v20537_v54 = vld [vmem:[#allocation6 + $0x8] ss:$0 sm:$0xff] }
 0x280   : > { %v3118_v56 = vadd.f32 %v20214_v4, %v3079_v19  ;;  %v1999_v1 = vadd.f32 %v1967_v13, %v1917_v46  ;;  %v2161_v49 = vrot.slane %v2051_v21, 1  ;;  %v2409_v36 = vrot.slane %v2299_v14, 2 }
 0x281   : > { %v3119_v35 = vadd.f32 %v20214_v4, %v3080_v37  ;;  %v2580_v3 = vadd.f32 %v2548_v29, %v2498_v6  ;;  %v2739_v59 = vrot.slane %v2631_v50, 1  ;;  %v2879_v16 = vmul.f32 %v20189_v7, %v1210_v8 }
 0x282   : > { %3151 = vst.msk [vmem:[#allocation3 + $0x91] sm:$0xff] %vm929_vm2, %v3118_v56  ;;  %v3294_v60 = vrot.slane %v20504_v26, 1  ;;  %v3295_v61 = vrot.slane %v20506_v45, 1  ;;  %v1310_v9 = vmul.f32 %v20473_v20, %v1215_v43  ;;  %v1470_v0 = vmul.f32 %v20476_v10, %v1215_v43 }
 0x283   : > { %3152 = vst.msk [vmem:[#allocation3 + $0x99] sm:$0xff] %vm929_vm2, %v3119_v35  ;;  %v2987_v46 = vrot.slane %v2879_v16, 2  ;;  %v1719_v27 = vmul.f32 %v20488_v41, %v1215_v43  ;;  %v1968_v6 = vmul.f32 %v20493_v55, %v1215_v43  ;;  %v2052_v34 = vmul.f32 %v20496_v18, %v1215_v43 }
 0x284   : > { %v20523_v7 = vsel %vm1541_vm4, %v3294_v60, %v3295_v61  ;;  %v1583_v8 = vrot.slane %v1470_v0, 1  ;;  %v2300_v48 = vmul.f32 %v20499_v32, %v1215_v43  ;;  %v2549_v58 = vmul.f32 %v20526_v52, %v1215_v43 }
 0x285   : > { %15328 = vmatprep.mubr.msk.f32.mxu0 %vm929_vm2, %v20523_v7  ;;  %v1832_v11 = vrot.slane %v1719_v27, 2  ;;  %v2000_v44 = vadd.f32 %v1968_v6, %v20460_v28  ;;  %v2162_v15 = vrot.slane %v2052_v34, 1  ;;  %v2632_v22 = vmul.f32 %v20532_v47, %v1215_v43 }
 0x286   : > { %v1584_v40 = vsel %vm1541_vm4, %v1582_v25, %v1583_v8  ;;  %v2410_v23 = vrot.slane %v2300_v48, 2  ;;  %v2581_v24 = vadd.f32 %v2549_v58, %v20470_v31  ;;  %v2880_v19 = vmul.f32 %v20537_v54, %v1215_v43  ;;  %v3184_v43 = vld [vmem:[#allocation3 + $0x58] sm:$0x3]  ;;  %v3227_v58 = vld [vmem:[%s24428_s1] sm:$0xff] }
 0x287   : > { %v1670_v13 = vadd.f32 %v1584_v40, %v1309_v62  ;;  %v1833_v21 = vsel %vm1790_vm5, %v1831_v63, %v1832_v11  ;;  %v2163_v28 = vsel %vm1541_vm4, %v2161_v49, %v2162_v15  ;;  %v2740_v14 = vrot.slane %v2632_v22, 1 }
 0x288   : > { %v2252_v37 = vadd.f32 %v2163_v28, %v1999_v1  ;;  %v2411_v29 = vsel %vm1790_vm5, %v2409_v36, %v2410_v23  ;;  %v2988_v50 = vrot.slane %v2880_v19, 2  ;;  %v1471_v56 = vmul.f32 %v20476_v10, %v1402_v51 }
 0x289   : > { %v1919_v25 = vadd.f32 %v1833_v21, %v1670_v13  ;;  %v2741_v35 = vsel %vm1541_vm4, %v2739_v59, %v2740_v14  ;;  %v1720_v31 = vmul.f32 %v20488_v41, %v1402_v51  ;;  %v2053_v16 = vmul.f32 %v20496_v18, %v1402_v51  ;;  %v1220_v13 = vpop.permute.xlu1 %1219 }
 0x28a   : > { %v2500_v62 = vadd.f32 %v2411_v29, %v2252_v37  ;;  %v2833_v60 = vadd.f32 %v2741_v35, %v2580_v3  ;;  %v2989_v63 = vsel %vm1790_vm5, %v2987_v46, %v2988_v50  ;;  %v1585_v49 = vrot.slane %v1471_v56, 1  ;;  %v3228_v3 = vld [vmem:[%s24428_s1 + $0x8] sm:$0xff] }
 0x28b   : > { %v1834_v0 = vrot.slane %v1720_v31, 2  ;;  %v2164_v1 = vrot.slane %v2053_v16, 1  ;;  %v2301_v36 = vmul.f32 %v20499_v32, %v1402_v51  ;;  %v2633_v27 = vmul.f32 %v20532_v47, %v1402_v51 }
 0x28c   : > { %v3081_v6 = vadd.f32 %v2989_v63, %v2833_v60  ;;  %v1586_v34 = vsel %vm1541_vm4, %v1583_v8, %v1585_v49  ;;  %v2881_v59 = vmul.f32 %v20537_v54, %v1402_v51  ;;  %v3297_v48 = vrot.slane %v3184_v43, 1  ;;  %v20584_v60 = vld [vmem:[#allocation3 + $0x60] sm:$0xff] }
 0x28d   : > { %v1671_v46 = vadd.f32 %v1586_v34, %v1310_v9  ;;  %v1835_v22 = vsel %vm1790_vm5, %v1832_v11, %v1834_v0  ;;  %v2165_v40 = vsel %vm1541_vm4, %v2162_v15, %v2164_v1  ;;  %v2412_v19 = vrot.slane %v2301_v36, 2  ;;  %v1225_v36 = vpop.permute.xlu0 %1224  ;;  %v1407_v34 = vpop.permute.xlu1 %1406 }
 0x28e   : > { %v3120_v8 = vadd.f32 %v20214_v4, %v3081_v6  ;;  %v2253_v21 = vadd.f32 %v2165_v40, %v2000_v44  ;;  %v2742_v51 = vrot.slane %v2633_v27, 1  ;;  %v2990_v28 = vrot.slane %v2881_v59, 2  ;;  %v3229_v27 = vld [vmem:[%s24428_s1 + $0x10] sm:$0xff]  ;;  %v3230_v6 = vld [vmem:[%s24428_s1 + $0x18] sm:$0xff] }
 0x28f   : > { %v1920_v37 = vadd.f32 %v1835_v22, %v1671_v46  ;;  %v2413_v29 = vsel %vm1790_vm5, %v2410_v23, %v2412_v19  ;;  %v20565_v56 = vsel %vm1541_vm4, %v3295_v61, %v3297_v48  ;;  %v17121_v9 = vpack.c.bf16 %v3228_v3, %v3227_v58  ;;  %v20597_v46 = vld [vmem:[#allocation8] ss:$0 sm:$0xff] }
 0x290   : > { %3153 = vst.msk [vmem:[#allocation3 + $0xa9] sm:$0xff] %vm929_vm2, %v3120_v8  ;;  %v20568_v11 = vadd.f32 %v2413_v29, %v2253_v21  ;;  %v2743_v15 = vsel %vm1541_vm4, %v2740_v14, %v2742_v51  ;;  %v2991_v4 = vsel %vm1790_vm5, %v2988_v50, %v2990_v28  ;;  %15329 = vmatmul.mubr.msk.f32.gmra.mrb[6].mxu0 %vm929_vm2, %v20565_v56  ;;  %v3299_v40 = vrot.slane %v20584_v60, 1 }
 0x291   : > { %v1311_v44 = vmul.f32 %v20473_v20, %v1220_v13  ;;  %v2834_v23 = vadd.f32 %v2743_v15, %v2581_v24  ;;  %17122 = vmatprep.subr.bf16.mxu0 %v17121_v9  ;;  %v1472_v35 = vmul.f32 %v20476_v10, %v1220_v13  ;;  %v1721_v61 = vmul.f32 %v20488_v41, %v1220_v13  ;;  %v20586_v24 = vld [vmem:[#allocation3 + $0x68] sm:$0xff] }
 0x292   : > { %v1969_v31 = vmul.f32 %v20493_v55, %v1220_v13  ;;  %v2054_v16 = vmul.f32 %v20496_v18, %v1220_v13  ;;  %v2302_v43 = vmul.f32 %v20499_v32, %v1220_v13  ;;  %v2550_v14 = vmul.f32 %v20526_v52, %v1220_v13  ;;  %17124 = vmatpush3.bf16.msra.mxu0 %v17121_v9 }
 0x293   : > { %v20582_v50 = vmul.f32 %v20532_v47, %v1220_v13  ;;  %v3082_v63 = vadd.f32 %v2991_v4, %v2834_v23  ;;  %v1587_v49 = vrot.slane %v1472_v35, 1  ;;  %v1836_v0 = vrot.slane %v1721_v61, 2 }
 0x294   : > { %v2001_v1 = vadd.f32 %v1969_v31, %v1919_v25  ;;  %v2166_v59 = vrot.slane %v2054_v16, 1  ;;  %v2414_v48 = vrot.slane %v2302_v43, 2  ;;  %v20594_v58 = vadd.f32 %v2550_v14, %v2500_v62 }
 0x295   : > { %v2744_v3 = vrot.slane %v20582_v50, 1  ;;  %v3121_v25 = vadd.f32 %v20597_v46, %v3082_v63  ;;  %v20601_v22 = vmul.f32 %v20537_v54, %v1220_v13  ;;  %v3300_v19 = vrot.slane %v20586_v24, 1 }
 0x296   : > { %v17125_v8 = vpack.c.bf16 %v3230_v6, %v3229_v27  ;;  %v1312_v21 = vmul.f32 %v20473_v20, %v1225_v36  ;;  %v1473_v51 = vmul.f32 %v20476_v10, %v1225_v36  ;;  %v1474_v62 = vmul.f32 %v20476_v10, %v1407_v34 }
 0x297   : > { %3154 = vst.msk [vmem:[#allocation3 + $0xb1] sm:$0xff] %vm929_vm2, %v3121_v25  ;;  %v2992_v28 = vrot.slane %v20601_v22, 2  ;;  %v20611_v29 = vsel %vm1541_vm4, %v3299_v40, %v3300_v19  ;;  %v1722_v13 = vmul.f32 %v20488_v41, %v1225_v36  ;;  %v1723_v9 = vmul.f32 %v20488_v41, %v1407_v34 }
 0x298   : > { %15331 = vmatprep.mubr.msk.f32.mxu0 %vm929_vm2, %v20611_v29  ;;  %17126 = vmatprep.subr.bf16.mxu0 %v17125_v8  ;;  %v1588_v15 = vrot.slane %v1473_v51, 1  ;;  %v1590_v4 = vrot.slane %v1474_v62, 1  ;;  %v1970_v23 = vmul.f32 %v20493_v55, %v1225_v36  ;;  %v2055_v35 = vmul.f32 %v20496_v18, %v1225_v36 }
 0x299   : > { %v1837_v61 = vrot.slane %v1722_v13, 2  ;;  %v1839_v31 = vrot.slane %v1723_v9, 2  ;;  %v2056_v16 = vmul.f32 %v20496_v18, %v1407_v34  ;;  %v2303_v43 = vmul.f32 %v20499_v32, %v1225_v36  ;;  %17128 = vmatpush3.bf16.msra.mxu0 %v17125_v8 }
 0x29a   : > { %v1589_v14 = vsel %vm1541_vm4, %v1587_v49, %v1588_v15  ;;  %v1591_v50 = vsel %vm1541_vm4, %v1588_v15, %v1590_v4  ;;  %v2002_v63 = vadd.f32 %v1970_v23, %v1920_v37  ;;  %v2167_v27 = vrot.slane %v2055_v35, 1  ;;  %v3187_v4 = vld [vmem:[#allocation3 + $0x70] sm:$0x3]  ;;  %v1230_v23 = vpop.permute.xlu0 %1229 }
 0x29b   : > { %v1672_v6 = vadd.f32 %v1589_v14, %v1311_v44  ;;  %v1673_v25 = vadd.f32 %v1591_v50, %v1312_v21  ;;  %v1838_v22 = vsel %vm1790_vm5, %v1836_v0, %v1837_v61  ;;  %v1840_v40 = vsel %vm1790_vm5, %v1837_v61, %v1839_v31 }
 0x29c   : > { %v2168_v51 = vsel %vm1541_vm4, %v2166_v59, %v2167_v27  ;;  %v2169_v62 = vrot.slane %v2056_v16, 1  ;;  %v2304_v13 = vmul.f32 %v20499_v32, %v1407_v34  ;;  %v2415_v9 = vrot.slane %v2303_v43, 2 }
 0x29d   : > { %v1921_v2 = vadd.f32 %v1838_v22, %v1672_v6  ;;  %v20627_v8 = vadd.f32 %v1840_v40, %v1673_v25  ;;  %v2254_v49 = vadd.f32 %v2168_v51, %v2001_v1  ;;  %v2551_v15 = vmul.f32 %v20526_v52, %v1225_v36 }
 0x29e   : > { %v2170_v37 = vsel %vm1541_vm4, %v2167_v27, %v2169_v62  ;;  %v2416_v44 = vsel %vm1790_vm5, %v2414_v48, %v2415_v9  ;;  %v2417_v21 = vrot.slane %v2304_v13, 2  ;;  %v2635_v0 = vmul.f32 %v20532_v47, %v1225_v36 }
 0x29f   : > { %v2255_v59 = vadd.f32 %v2170_v37, %v2002_v63  ;;  %v2502_v35 = vadd.f32 %v2416_v44, %v2254_v49  ;;  %v2583_v61 = vadd.f32 %v2551_v15, %v20568_v11  ;;  %v2636_v31 = vmul.f32 %v20532_v47, %v1407_v34  ;;  %v18950_v44 = vld [vmem:[#allocation3] sm:$0xff] }
 0x2a0   : > { %v2418_v16 = vsel %vm1790_vm5, %v2415_v9, %v2417_v21  ;;  %v2745_v1 = vrot.slane %v2635_v0, 1  ;;  %v2883_v43 = vmul.f32 %v20537_v54, %v1225_v36  ;;  %v2884_v14 = vmul.f32 %v20537_v54, %v1407_v34 }
 0x2a1   : > { %v20638_v50 = vadd.f32 %v2418_v16, %v2255_v59  ;;  %v2747_v48 = vrot.slane %v2636_v31, 1  ;;  %v3302_v27 = vrot.slane %v3187_v4, 1  ;;  %v20641_v6 = vmul.f32 %v20473_v20, %v1230_v23  ;;  %v1235_v4 = vpop.permute.xlu1 %1234  ;;  %v20661_v59 = vld [vmem:[#allocation3 + $0x78] sm:$0xff] }
 0x2a2   : > { %v2746_v63 = vsel %vm1541_vm4, %v2744_v3, %v2745_v1  ;;  %v2993_v25 = vrot.slane %v2883_v43, 2  ;;  %v2995_v11 = vrot.slane %v2884_v14, 2  ;;  %v1475_v22 = vmul.f32 %v20476_v10, %v1230_v23 }
 0x2a3   : > { %v2748_v40 = vsel %vm1541_vm4, %v2745_v1, %v2747_v48  ;;  %v2835_v51 = vadd.f32 %v2746_v63, %v20594_v58  ;;  %v20648_v36 = vsel %vm1541_vm4, %v3300_v19, %v3302_v27  ;;  %v1724_v34 = vmul.f32 %v20488_v41, %v1230_v23 }
 0x2a4   : > { %v2836_v62 = vadd.f32 %v2748_v40, %v2583_v61  ;;  %v2994_v13 = vsel %vm1790_vm5, %v2992_v28, %v2993_v25  ;;  %v2996_v9 = vsel %vm1790_vm5, %v2993_v25, %v2995_v11  ;;  %15332 = vmatmul.mubr.msk.f32.gmra.mrb[8].mxu0 %vm929_vm2, %v20648_v36  ;;  %v1592_v3 = vrot.slane %v1475_v22, 1  ;;  %v20663_v61 = vld [vmem:[#allocation3 + $0x80] sm:$0xff]  ;;  %v18951_v25 = vld [vmem:[#allocation3 + $0x8] sm:$0xff] }
 0x2a5   : > { %v3083_v49 = vadd.f32 %v2994_v13, %v2835_v51  ;;  %v1841_v15 = vrot.slane %v1724_v34, 2  ;;  %v1971_v37 = vmul.f32 %v20493_v55, %v1230_v23  ;;  %v2057_v58 = vmul.f32 %v20496_v18, %v1230_v23  ;;  %15375 = vmatprep.mubr.msk.f32.mxu0 %vm929_vm2, %v18950_v44 }
 0x2a6   : > { %v3084_v19 = vadd.f32 %v2996_v9, %v2836_v62  ;;  %v2305_v21 = vmul.f32 %v20499_v32, %v1230_v23  ;;  %v2552_v28 = vmul.f32 %v20526_v52, %v1230_v23  ;;  %v2637_v0 = vmul.f32 %v20532_v47, %v1230_v23 }
 0x2a7   : > { %v3122_v31 = vadd.f32 %v20597_v46, %v3083_v49  ;;  %v2003_v16 = vadd.f32 %v1971_v37, %v1921_v2  ;;  %v2171_v1 = vrot.slane %v2057_v58, 1  ;;  %v2885_v43 = vmul.f32 %v20537_v54, %v1230_v23  ;;  %v1412_v49 = vpop.permute.xlu0 %1411 }
 0x2a8   : > { %v3123_v14 = vadd.f32 %v20597_v46, %v3084_v19  ;;  %v2419_v48 = vrot.slane %v2305_v21, 2  ;;  %v2584_v27 = vadd.f32 %v2552_v28, %v2502_v35  ;;  %v2749_v63 = vrot.slane %v2637_v0, 1  ;;  %15376 = vmatmul.mubr.msk.f32.vlgmr.msra.gmra.mrb[0].mxu0 %vm929_vm2, %v18951_v25 }
 0x2a9   : > { %3155 = vst.msk [vmem:[#allocation3 + $0xc1] sm:$0xff] %vm929_vm2, %v3122_v31  ;;  %v2997_v11 = vrot.slane %v2885_v43, 2  ;;  %v3304_v22 = vrot.slane %v20661_v59, 1  ;;  %v3305_v40 = vrot.slane %v20663_v61, 1  ;;  %15378 = vmatprep.mubr.msk.f32.mxu0 %vm929_vm2, %v20355_v53  ;;  %v1314_v2 = vmul.f32 %v20473_v20, %v1235_v4 }
 0x2aa   : > { %3156 = vst.msk [vmem:[#allocation3 + $0xc9] sm:$0xff] %vm929_vm2, %v3123_v14  ;;  %v1476_v23 = vmul.f32 %v20476_v10, %v1235_v4  ;;  %v1725_v35 = vmul.f32 %v20488_v41, %v1235_v4  ;;  %v1972_v51 = vmul.f32 %v20493_v55, %v1235_v4  ;;  %v2058_v34 = vmul.f32 %v20496_v18, %v1235_v4 }
 0x2ab   : > { %v20683_v62 = vsel %vm1541_vm4, %v3304_v22, %v3305_v40  ;;  %v2306_v13 = vmul.f32 %v20499_v32, %v1235_v4  ;;  %v2553_v53 = vmul.f32 %v20526_v52, %v1235_v4  ;;  %v2638_v9 = vmul.f32 %v20532_v47, %v1235_v4 }
 0x2ac   : > { %15334 = vmatprep.mubr.msk.f32.mxu1 %vm929_vm2, %v20683_v62  ;;  %v1593_v37 = vrot.slane %v1476_v23, 1  ;;  %v1842_v58 = vrot.slane %v1725_v35, 2  ;;  %v2004_v44 = vadd.f32 %v1972_v51, %v20627_v8  ;;  %v2172_v19 = vrot.slane %v2058_v34, 1  ;;  %15379 = vmatmul.mubr.msk.f32.gmra.mrb[2].mxu0 %vm929_vm2, %v20362_v5 }
 0x2ad   : > { %v2420_v21 = vrot.slane %v2306_v13, 2  ;;  %v2585_v28 = vadd.f32 %v2553_v53, %v20638_v50  ;;  %v2750_v0 = vrot.slane %v2638_v9, 1  ;;  %v2886_v31 = vmul.f32 %v20537_v54, %v1235_v4  ;;  %15381 = vmatprep.mubr.msk.f32.mxu0 %vm929_vm2, %v20418_v33 }
 0x2ae   : > { %v1594_v43 = vsel %vm1541_vm4, %v1592_v3, %v1593_v37  ;;  %v1843_v14 = vsel %vm1790_vm5, %v1841_v15, %v1842_v58  ;;  %v2173_v25 = vsel %vm1541_vm4, %v2171_v1, %v2172_v19  ;;  %v1477_v8 = vmul.f32 %v20476_v10, %v1412_v49 }
 0x2af   : > { %v1674_v22 = vadd.f32 %v1594_v43, %v20641_v6  ;;  %v2256_v5 = vadd.f32 %v2173_v25, %v2003_v16  ;;  %v2421_v23 = vsel %vm1790_vm5, %v2419_v48, %v2420_v21  ;;  %v2751_v50 = vsel %vm1541_vm4, %v2749_v63, %v2750_v0  ;;  %v3190_v6 = vld [vmem:[#allocation3 + $0x88] sm:$0x3] }
 0x2b0   : > { %v2837_v35 = vadd.f32 %v2751_v50, %v2584_v27  ;;  %v2998_v4 = vrot.slane %v2886_v31, 2  ;;  %v1595_v51 = vrot.slane %v1477_v8, 1  ;;  %v1726_v33 = vmul.f32 %v20488_v41, %v1412_v49  ;;  %15382 = vmatmul.mubr.msk.f32.gmra.mrb[4].mxu0 %vm929_vm2, %v20424_v39  ;;  %v1240_v8 = vpop.permute.xlu1 %1239  ;;  %v3191_v50 = vld [vmem:[#allocation3 + $0x90] sm:$0xff] }
 0x2b1   : > { %v1923_v3 = vadd.f32 %v1843_v14, %v1674_v22  ;;  %v2504_v15 = vadd.f32 %v2421_v23, %v2256_v5  ;;  %v2059_v1 = vmul.f32 %v20496_v18, %v1412_v49  ;;  %v2307_v34 = vmul.f32 %v20499_v32, %v1412_v49  ;;  %15384 = vmatprep.mubr.msk.f32.mxu0 %vm929_vm2, %v20504_v26 }
 0x2b2   : > { %v2999_v16 = vsel %vm1790_vm5, %v2997_v11, %v2998_v4  ;;  %v1596_v48 = vsel %vm1541_vm4, %v1593_v37, %v1595_v51  ;;  %v1844_v27 = vrot.slane %v1726_v33, 2  ;;  %v2639_v63 = vmul.f32 %v20532_v47, %v1412_v49 }
 0x2b3   : > { %v3085_v13 = vadd.f32 %v2999_v16, %v2837_v35  ;;  %v1675_v53 = vadd.f32 %v1596_v48, %v1314_v2  ;;  %v2174_v39 = vrot.slane %v2059_v1, 1  ;;  %v2422_v9 = vrot.slane %v2307_v34, 2  ;;  %v20743_v1 = vpop.permute.xlu0 %1244  ;;  %v20745_v34 = vld [vmem:[#allocation3 + $0x98] sm:$0xff] }
 0x2b4   : > { %v1845_v31 = vsel %vm1790_vm5, %v1842_v58, %v1844_v27  ;;  %v2752_v43 = vrot.slane %v2639_v63, 1  ;;  %v2887_v14 = vmul.f32 %v20537_v54, %v1412_v49  ;;  %v3307_v25 = vrot.slane %v3190_v6, 1  ;;  %15385 = vmatmul.mubr.msk.f32.gmra.mrb[6].mxu0 %vm929_vm2, %v20506_v45 }
 0x2b5   : > { %v3124_v26 = vadd.f32 %v20597_v46, %v3085_v13  ;;  %v1924_v11 = vadd.f32 %v1845_v31, %v1675_v53  ;;  %v2175_v37 = vsel %vm1541_vm4, %v2172_v19, %v2174_v39  ;;  %v2423_v22 = vsel %vm1790_vm5, %v2420_v21, %v2422_v9  ;;  %15387 = vmatprep.mubr.msk.f32.mxu0 %vm929_vm2, %v20584_v60 }
 0x2b6   : > { %v2257_v2 = vadd.f32 %v2175_v37, %v2004_v44  ;;  %v2753_v58 = vsel %vm1541_vm4, %v2750_v0, %v2752_v43  ;;  %v3000_v5 = vrot.slane %v2887_v14, 2  ;;  %v20727_v49 = vsel %vm1541_vm4, %v3305_v40, %v3307_v25 }
 0x2b7   : > { %24429 = vst [vmem:[#allocation33_spill] sm:$0xff] %v20727_v49  ;;  %3157 = vst.msk [vmem:[#allocation3 + $0xd9] sm:$0xff] %vm929_vm2, %v3124_v26  ;;  %v2838_v45 = vadd.f32 %v2753_v58, %v2585_v28  ;;  %15335 = vmatmul.mubr.msk.f32.vlgmr.msra.gmra.mrb[0].mxu1 %vm929_vm2, %v20727_v49  ;;  %v1315_v19 = vmul.f32 %v20473_v20, %v1240_v8  ;;  %v1478_v21 = vmul.f32 %v20476_v10, %v1240_v8 }
 0x2b8   : > { %v1727_v60 = vmul.f32 %v20488_v41, %v1240_v8  ;;  %v20735_v44 = vadd.f32 %v2423_v22, %v2257_v2  ;;  %v3001_v0 = vsel %vm1790_vm5, %v2998_v4, %v3000_v5  ;;  %v1973_v23 = vmul.f32 %v20493_v55, %v1240_v8  ;;  %15388 = vmatmul.mubr.msk.f32.gmra.mrb[8].mxu0 %vm929_vm2, %v20586_v24  ;;  %v1417_v24 = vpop.permute.xlu1 %1416 }
 0x2b9   : > { %v2060_v40 = vmul.f32 %v20496_v18, %v1240_v8  ;;  %v3086_v28 = vadd.f32 %v3001_v0, %v2838_v45  ;;  %v1597_v35 = vrot.slane %v1478_v21, 1  ;;  %v2308_v33 = vmul.f32 %v20499_v32, %v1240_v8  ;;  %15390 = vmatprep.mubr.msk.f32.mxu0 %vm929_vm2, %v20661_v59  ;;  %v20788_v0 = vld [vmem:[#allocation3 + $0xa8] sm:$0xff] }
 0x2ba   : > { %v1846_v51 = vrot.slane %v1727_v60, 2  ;;  %v2005_v4 = vadd.f32 %v1973_v23, %v1923_v3  ;;  %v2554_v16 = vmul.f32 %v20526_v52, %v1240_v8  ;;  %v20751_v48 = vmul.f32 %v20532_v47, %v1240_v8 }
 0x2bb   : > { %v2176_v6 = vrot.slane %v2060_v40, 1  ;;  %v3125_v27 = vadd.f32 %v20597_v46, %v3086_v28  ;;  %v2424_v63 = vrot.slane %v2308_v33, 2  ;;  %v20755_v13 = vmul.f32 %v20537_v54, %v1240_v8 }
 0x2bc   : > { %v3309_v53 = vrot.slane %v3191_v50, 1  ;;  %v20757_v39 = vadd.f32 %v2554_v16, %v2504_v15  ;;  %v2754_v9 = vrot.slane %v20751_v48, 1  ;;  %v3310_v59 = vrot.slane %v20745_v34, 1  ;;  %15391 = vmatmul.mubr.msk.f32.gmra.mrb[10].mxu0 %vm929_vm2, %v20663_v61 }
 0x2bd   : > { %v1316_v3 = vmul.f32 %v20473_v20, %v20743_v1  ;;  %3158 = vst.msk [vmem:[#allocation3 + $0xe1] sm:$0xff] %vm929_vm2, %v3125_v27  ;;  %v3002_v31 = vrot.slane %v20755_v13, 2  ;;  %v1479_v43 = vmul.f32 %v20476_v10, %v20743_v1  ;;  %v1480_v15 = vmul.f32 %v20476_v10, %v1417_v24  ;;  %15393 = vmatprep.mubr.msk.f32.mxu0 %vm929_vm2, %v3191_v50 }
 0x2be   : > { %v1728_v14 = vmul.f32 %v20488_v41, %v20743_v1  ;;  %v20776_v25 = vsel %vm1541_vm4, %v3309_v53, %v3310_v59  ;;  %v1729_v61 = vmul.f32 %v20488_v41, %v1417_v24  ;;  %v1974_v8 = vmul.f32 %v20493_v55, %v20743_v1 }
 0x2bf   : > { %24430 = vst [vmem:[#allocation34_spill] sm:$0xff] %v20776_v25  ;;  %v2061_v26 = vmul.f32 %v20496_v18, %v20743_v1  ;;  %15337 = vmatprep.mubr.msk.f32.mxu1 %vm929_vm2, %v20776_v25  ;;  %v1598_v37 = vrot.slane %v1479_v43, 1  ;;  %v1600_v22 = vrot.slane %v1480_v15, 1  ;;  %v2062_v58 = vmul.f32 %v20496_v18, %v1417_v24 }
 0x2c0   : > { %v1847_v2 = vrot.slane %v1728_v14, 2  ;;  %v1849_v5 = vrot.slane %v1729_v61, 2  ;;  %v2006_v45 = vadd.f32 %v1974_v8, %v1924_v11  ;;  %v2309_v60 = vmul.f32 %v20499_v32, %v20743_v1  ;;  %15394 = vmatmul.mubr.msk.f32.gmra.mrb[12].mxu0 %vm929_vm2, %v20745_v34  ;;  %v20801_v14 = vld [vmem:[#allocation3 + $0xb0] sm:$0xff] }
 0x2c1   : > { %v2177_v21 = vrot.slane %v2061_v26, 1  ;;  %v1599_v23 = vsel %vm1541_vm4, %v1597_v35, %v1598_v37  ;;  %v1601_v40 = vsel %vm1541_vm4, %v1598_v37, %v1600_v22  ;;  %v2179_v28 = vrot.slane %v2062_v58, 1  ;;  %15396 = vmatprep.mubr.msk.f32.mxu0 %vm929_vm2, %v20788_v0  ;;  %v20807_v26 = vld [vmem:[#allocation3 + $0xc0] sm:$0xff] }
 0x2c2   : > { %v1848_v50 = vsel %vm1790_vm5, %v1846_v51, %v1847_v2  ;;  %v1676_v11 = vadd.f32 %v1599_v23, %v1315_v19  ;;  %v1677_v33 = vadd.f32 %v1601_v40, %v1316_v3  ;;  %v1850_v16 = vsel %vm1790_vm5, %v1847_v2, %v1849_v5  ;;  %v3193_v3 = vld [vmem:[#allocation3 + $0xa0] sm:$0x3]  ;;  %v1250_v2 = vpop.permute.xlu0 %1249 }
 0x2c3   : > { %v2178_v27 = vsel %vm1541_vm4, %v2176_v6, %v2177_v21  ;;  %v2180_v53 = vsel %vm1541_vm4, %v2177_v21, %v2179_v28  ;;  %v2310_v15 = vmul.f32 %v20499_v32, %v1417_v24  ;;  %v2425_v35 = vrot.slane %v2309_v60, 2 }
 0x2c4   : > { %v2258_v43 = vadd.f32 %v2178_v27, %v2005_v4  ;;  %v1925_v61 = vadd.f32 %v1848_v50, %v1676_v11  ;;  %v20803_v51 = vadd.f32 %v1850_v16, %v1677_v33  ;;  %v2259_v8 = vadd.f32 %v2180_v53, %v2006_v45  ;;  %15397 = vmatmul.mubr.msk.f32.gmra.mrb[14].mxu0 %vm929_vm2, %v20801_v14  ;;  %v20822_v50 = vld [vmem:[#allocation3 + $0xc8] sm:$0xff] }
 0x2c5   : > { %v2555_v19 = vmul.f32 %v20526_v52, %v20743_v1  ;;  %v2426_v4 = vsel %vm1790_vm5, %v2424_v63, %v2425_v35  ;;  %v2427_v6 = vrot.slane %v2310_v15, 2  ;;  %v2641_v37 = vmul.f32 %v20532_v47, %v20743_v1  ;;  %15399 = vmatprep.mubr.msk.f32.mxu0 %vm929_vm2, %v20807_v26 }
 0x2c6   : > { %v2642_v22 = vmul.f32 %v20532_v47, %v1417_v24  ;;  %v2506_v58 = vadd.f32 %v2426_v4, %v2258_v43  ;;  %v2889_v45 = vmul.f32 %v20537_v54, %v20743_v1  ;;  %v2890_v21 = vmul.f32 %v20537_v54, %v1417_v24  ;;  %v13440_v4 = vld [vmem:[%s24428_s1 + $0x40] sm:$0xff] }
 0x2c7   : > { %v2587_v5 = vadd.f32 %v2555_v19, %v20735_v44  ;;  %v2428_v63 = vsel %vm1790_vm5, %v2425_v35, %v2427_v6  ;;  %v2755_v60 = vrot.slane %v2641_v37, 1  ;;  %v3312_v40 = vrot.slane %v3193_v3, 1  ;;  %v20829_v44 = vld [vmem:[#allocation3 + $0xd8] sm:$0xff]  ;;  %v20855_v19 = vld [vmem:[#allocation3 + $0xe0] sm:$0xff] }
 0x2c8   : > { %v2757_v23 = vrot.slane %v2642_v22, 1  ;;  %v20824_v28 = vadd.f32 %v2428_v63, %v2259_v8  ;;  %v3003_v11 = vrot.slane %v2889_v45, 2  ;;  %v3005_v33 = vrot.slane %v2890_v21, 2  ;;  %15400 = vmatmul.mubr.msk.f32.gmra.mrb[16].mxu0 %vm929_vm2, %v20822_v50  ;;  %v13441_v6 = vld [vmem:[%s24428_s1 + $0x48] sm:$0xff]  ;;  %v1255_v21 = vpop.permute.xlu1 %1254 }
 0x2c9   : > { %v20827_v16 = vmul.f32 %v20473_v20, %v1250_v2  ;;  %v2756_v1 = vsel %vm1541_vm4, %v2754_v9, %v2755_v60  ;;  %v20840_v27 = vsel %vm1541_vm4, %v3310_v59, %v3312_v40  ;;  %v1481_v53 = vmul.f32 %v20476_v10, %v1250_v2  ;;  %15402 = vmatprep.mubr.msk.f32.mxu0 %vm929_vm2, %v20829_v44 }
 0x2ca   : > { %v2758_v24 = vsel %vm1541_vm4, %v2755_v60, %v2757_v23  ;;  %24431 = vst [vmem:[#allocation35_spill] sm:$0xff] %v20840_v27  ;;  %v2839_v43 = vadd.f32 %v2756_v1, %v20757_v39  ;;  %v3004_v48 = vsel %vm1790_vm5, %v3002_v31, %v3003_v11  ;;  %v3006_v9 = vsel %vm1790_vm5, %v3003_v11, %v3005_v33 }
 0x2cb   : > { %v2840_v15 = vadd.f32 %v2758_v24, %v2587_v5  ;;  %15338 = vmatmul.mubr.msk.f32.gmra.mrb[2].mxu1 %vm929_vm2, %v20840_v27  ;;  %v1602_v34 = vrot.slane %v1481_v53, 1  ;;  %v1730_v59 = vmul.f32 %v20488_v41, %v1250_v2  ;;  %v1975_v35 = vmul.f32 %v20493_v55, %v1250_v2 }
 0x2cc   : > { %v2063_v8 = vmul.f32 %v20496_v18, %v1250_v2  ;;  %v3087_v39 = vadd.f32 %v3004_v48, %v2839_v43  ;;  %v2311_v13 = vmul.f32 %v20499_v32, %v1250_v2  ;;  %v2556_v31 = vmul.f32 %v20526_v52, %v1250_v2  ;;  %15403 = vmatmul.mubr.msk.f32.gmra.mrb[18].mxu0 %vm929_vm2, %v20855_v19 }
 0x2cd   : > { %v3088_v3 = vadd.f32 %v3006_v9, %v2840_v15  ;;  %v1851_v37 = vrot.slane %v1730_v59, 2  ;;  %v2007_v22 = vadd.f32 %v1975_v35, %v1925_v61  ;;  %v2643_v45 = vmul.f32 %v20532_v47, %v1250_v2 }
 0x2ce   : > { %v2181_v5 = vrot.slane %v2063_v8, 1  ;;  %v3126_v63 = vadd.f32 %v20597_v46, %v3087_v39  ;;  %v2429_v23 = vrot.slane %v2311_v13, 2  ;;  %v2588_v40 = vadd.f32 %v2556_v31, %v2506_v58 }
 0x2cf   : > { %v3127_v60 = vadd.f32 %v20597_v46, %v3088_v3  ;;  %v2759_v11 = vrot.slane %v2643_v45, 1  ;;  %v2891_v33 = vmul.f32 %v20537_v54, %v1250_v2  ;;  %v17129_v1 = vpack.c.bf16 %v13441_v6, %v13440_v4  ;;  %v1422_v4 = vpop.permute.xlu0 %1421 }
 0x2d0   : > { %v3314_v24 = vrot.slane %v20788_v0, 1  ;;  %3159 = vst.msk [vmem:[#allocation3 + $0xf1] sm:$0xff] %vm929_vm2, %v3126_v63  ;;  %v24307_v61 = vrot.slane %v20801_v14, 1  ;;  %v1318_v53 = vmul.f32 %v20473_v20, %v1255_v21  ;;  %v1482_v43 = vmul.f32 %v20476_v10, %v1255_v21 }
 0x2d1   : > { %3160 = vst.msk [vmem:[#allocation3 + $0xf9] sm:$0xff] %vm929_vm2, %v3127_v60  ;;  %v1731_v15 = vmul.f32 %v20488_v41, %v1255_v21  ;;  %v3007_v48 = vrot.slane %v2891_v33, 2  ;;  %17130 = vmatprep.subr.bf16.mxu0 %v17129_v1  ;;  %v1976_v58 = vmul.f32 %v20493_v55, %v1255_v21  ;;  %v2064_v2 = vmul.f32 %v20496_v18, %v1255_v21 }
 0x2d2   : > { %v2312_v0 = vmul.f32 %v20499_v32, %v1255_v21  ;;  %v20884_v9 = vsel %vm1541_vm4, %v3314_v24, %v24307_v61  ;;  %17132 = vmatpush3.bf16.msra.mxu0 %v17129_v1  ;;  %v1603_v59 = vrot.slane %v1482_v43, 1  ;;  %v2557_v8 = vmul.f32 %v20526_v52, %v1255_v21 }
 0x2d3   : > { %24432 = vst [vmem:[#allocation36_spill] sm:$0xff] %v20884_v9  ;;  %v1852_v35 = vrot.slane %v1731_v15, 2  ;;  %15340 = vmatprep.mubr.msk.f32.mxu1 %vm929_vm2, %v20884_v9  ;;  %v2008_v39 = vadd.f32 %v1976_v58, %v20803_v51  ;;  %v2182_v3 = vrot.slane %v2064_v2, 1  ;;  %v2644_v31 = vmul.f32 %v20532_v47, %v1255_v21 }
 0x2d4   : > { %v2430_v13 = vrot.slane %v2312_v0, 2  ;;  %v1604_v6 = vsel %vm1541_vm4, %v1602_v34, %v1603_v59  ;;  %v2589_v63 = vadd.f32 %v2557_v8, %v20824_v28  ;;  %v2892_v60 = vmul.f32 %v20537_v54, %v1255_v21  ;;  %v20903_v0 = vld [vmem:[#allocation3 + $0xb8] sm:$0x3] }
 0x2d5   : > { %v1853_v45 = vsel %vm1790_vm5, %v1851_v37, %v1852_v35  ;;  %v1678_v33 = vadd.f32 %v1604_v6, %v20827_v16  ;;  %v2183_v1 = vsel %vm1541_vm4, %v2181_v5, %v2182_v3  ;;  %v2760_v51 = vrot.slane %v2644_v31, 1 }
 0x2d6   : > { %v2431_v24 = vsel %vm1790_vm5, %v2429_v23, %v2430_v13  ;;  %v2260_v43 = vadd.f32 %v2183_v1, %v2007_v22  ;;  %v3008_v15 = vrot.slane %v2892_v60, 2  ;;  %v1483_v58 = vmul.f32 %v20476_v10, %v1422_v4 }
 0x2d7   : > { %v1732_v2 = vmul.f32 %v20488_v41, %v1422_v4  ;;  %v1927_v34 = vadd.f32 %v1853_v45, %v1678_v33  ;;  %v2761_v37 = vsel %vm1541_vm4, %v2759_v11, %v2760_v51  ;;  %v2065_v28 = vmul.f32 %v20496_v18, %v1422_v4  ;;  %v20905_v16 = vld [vmem:[#allocation3 + $0xf0] sm:$0xff] }
 0x2d8   : > { %v2313_v21 = vmul.f32 %v20499_v32, %v1422_v4  ;;  %v2508_v5 = vadd.f32 %v2431_v24, %v2260_v43  ;;  %v2841_v23 = vadd.f32 %v2761_v37, %v2588_v40  ;;  %v3009_v22 = vsel %vm1790_vm5, %v3007_v48, %v3008_v15  ;;  %v20908_v31 = vld [vmem:[#allocation3 + $0xf8] sm:$0xff]  ;;  %15405 = vmatprep.mubr.msk.f32.mxu0 %vm929_vm2, %v20905_v16  ;;  %v1260_v24 = vpop.permute.xlu1 %1259 }
 0x2d9   : > { %v1605_v8 = vrot.slane %v1483_v58, 1  ;;  %v1854_v6 = vrot.slane %v1732_v2, 2  ;;  %v2184_v11 = vrot.slane %v2065_v28, 1  ;;  %v2645_v60 = vmul.f32 %v20532_v47, %v1422_v4  ;;  %15406 = vmatmul.mubr.msk.f32.gmra.mrb[20].mxu0 %vm929_vm2, %v20908_v31 }
 0x2da   : > { %v2432_v45 = vrot.slane %v2313_v21, 2  ;;  %v3089_v33 = vadd.f32 %v3009_v22, %v2841_v23  ;;  %v2893_v40 = vmul.f32 %v20537_v54, %v1422_v4  ;;  %v3317_v48 = vrot.slane %v20903_v0, 1 }
 0x2db   : > { %v1606_v1 = vsel %vm1541_vm4, %v1603_v59, %v1605_v8  ;;  %v1855_v58 = vsel %vm1790_vm5, %v1852_v35, %v1854_v6  ;;  %v2185_v2 = vsel %vm1541_vm4, %v2182_v3, %v2184_v11  ;;  %v2762_v57 = vrot.slane %v2645_v60, 1 }
 0x2dc   : > { %v1679_v43 = vadd.f32 %v1606_v1, %v1318_v53  ;;  %v2433_v37 = vsel %vm1790_vm5, %v2430_v13, %v2432_v45  ;;  %v3128_v28 = vadd.f32 %v20597_v46, %v3089_v33  ;;  %v2261_v21 = vadd.f32 %v2185_v2, %v2008_v39 }
 0x2dd   : > { %v3010_v61 = vrot.slane %v2893_v40, 2  ;;  %v24433_v59 = vrot.slane %v20801_v14, 1  ;;  %v1319_v22 = vmul.f32 %v20473_v20, %v1260_v24  ;;  %v1484_v53 = vmul.f32 %v20476_v10, %v1260_v24 }
 0x2de   : > { %v1928_v23 = vadd.f32 %v1855_v58, %v1679_v43  ;;  %3161 = vst.msk [vmem:[#allocation3 + $0x109] sm:$0xff] %vm929_vm2, %v3128_v28  ;;  %v20930_v35 = vadd.f32 %v2433_v37, %v2261_v21  ;;  %v2763_v3 = vsel %vm1541_vm4, %v2760_v51, %v2762_v57  ;;  %v1733_v14 = vmul.f32 %v20488_v41, %v1260_v24 }
 0x2df   : > { %v20925_v4 = vsel %vm1541_vm4, %v24433_v59, %v3317_v48  ;;  %v3011_v39 = vsel %vm1790_vm5, %v3008_v15, %v3010_v61  ;;  %v2842_v13 = vadd.f32 %v2763_v3, %v2589_v63  ;;  %v1607_v8 = vrot.slane %v1484_v53, 1  ;;  %v1265_v61 = vpop.permute.xlu0 %1264  ;;  %v1427_v63 = vpop.permute.xlu1 %1426 }
 0x2e0   : > { %24434 = vst [vmem:[#allocation37_spill] sm:$0xff] %v20925_v4  ;;  %15341 = vmatmul.mubr.msk.f32.gmra.mrb[4].mxu1 %vm929_vm2, %v20925_v4  ;;  %v1977_v6 = vmul.f32 %v20493_v55, %v1260_v24  ;;  %v2066_v11 = vmul.f32 %v20496_v18, %v1260_v24  ;;  %v1856_v45 = vrot.slane %v1733_v14, 2  ;;  %v2314_v60 = vmul.f32 %v20499_v32, %v1260_v24 }
 0x2e1   : > { %v2558_v33 = vmul.f32 %v20526_v52, %v1260_v24  ;;  %v20942_v57 = vmul.f32 %v20532_v47, %v1260_v24  ;;  %v3090_v51 = vadd.f32 %v3011_v39, %v2842_v13  ;;  %v20945_v40 = vmul.f32 %v20537_v54, %v1260_v24  ;;  %v20956_v24 = vld [vmem:[#allocation6 + $0x1] ss:$0 sm:$0xff] }
 0x2e2   : > { %v2009_v15 = vadd.f32 %v1977_v6, %v1927_v34  ;;  %v2186_v1 = vrot.slane %v2066_v11, 1  ;;  %v2434_v48 = vrot.slane %v2314_v60, 2  ;;  %v3319_v32 = vrot.slane %v20807_v26, 1 }
 0x2e3   : > { %v20947_v43 = vadd.f32 %v2558_v33, %v2508_v5  ;;  %v2764_v58 = vrot.slane %v20942_v57, 1  ;;  %v3129_v2 = vadd.f32 %v20597_v46, %v3090_v51  ;;  %v24308_v28 = vrot.slane %v20822_v50, 1 }
 0x2e4   : > { %v1320_v34 = vmul.f32 %v20473_v20, %v1265_v61  ;;  %v1485_v21 = vmul.f32 %v20476_v10, %v1265_v61  ;;  %v1486_v59 = vmul.f32 %v20956_v24, %v1427_v63  ;;  %v1734_v5 = vmul.f32 %v20488_v41, %v1265_v61 }
 0x2e5   : > { %v1735_v53 = vmul.f32 %v20488_v41, %v1427_v63  ;;  %3162 = vst.msk [vmem:[#allocation3 + $0x111] sm:$0xff] %vm929_vm2, %v3129_v2  ;;  %v20965_v26 = vsel %vm1541_vm4, %v3319_v32, %v24308_v28  ;;  %v1978_v3 = vmul.f32 %v20493_v55, %v1265_v61  ;;  %v2067_v20 = vmul.f32 %v20496_v18, %v1265_v61  ;;  %v20970_v39 = vld [vmem:[#allocation3 + $0x108] sm:$0xff]  ;;  %v20976_v55 = vld [vmem:[#allocation6 + $0x5] ss:$0 sm:$0xff] }
 0x2e6   : > { %24435 = vst [vmem:[#allocation38_spill] sm:$0xff] %v20965_v26  ;;  %v2068_v10 = vmul.f32 %v20496_v18, %v1427_v63  ;;  %15343 = vmatprep.mubr.msk.f32.mxu1 %vm929_vm2, %v20965_v26  ;;  %v1608_v14 = vrot.slane %v1485_v21, 1  ;;  %v1610_v41 = vrot.slane %v1486_v59, 1  ;;  %v1857_v13 = vrot.slane %v1734_v5, 2  ;;  %15408 = vmatprep.mubr.msk.f32.mxu0 %vm929_vm2, %v20970_v39 }
 0x2e7   : > { %v1859_v6 = vrot.slane %v1735_v53, 2  ;;  %v2010_v11 = vadd.f32 %v1978_v3, %v1928_v23  ;;  %v2187_v60 = vrot.slane %v2067_v20, 1  ;;  %v2315_v57 = vmul.f32 %v20976_v55, %v1265_v61 }
 0x2e8   : > { %v2189_v33 = vrot.slane %v2068_v10, 1  ;;  %v1609_v18 = vsel %vm1541_vm4, %v1607_v8, %v1608_v14  ;;  %v1611_v51 = vsel %vm1541_vm4, %v1608_v14, %v1610_v41  ;;  %v1858_v32 = vsel %vm1790_vm5, %v1856_v45, %v1857_v13  ;;  %v20990_v14 = vld [vmem:[#allocation3 + $0xd0] sm:$0x3]  ;;  %v1270_v41 = vpop.permute.xlu0 %1269 }
 0x2e9   : > { %v1860_v2 = vsel %vm1790_vm5, %v1857_v13, %v1859_v6  ;;  %v1680_v21 = vadd.f32 %v1609_v18, %v1319_v22  ;;  %v1681_v59 = vadd.f32 %v1611_v51, %v1320_v34  ;;  %v2188_v5 = vsel %vm1541_vm4, %v2186_v1, %v2187_v60 }
 0x2ea   : > { %v2190_v23 = vsel %vm1541_vm4, %v2187_v60, %v2189_v33  ;;  %v2262_v53 = vadd.f32 %v2188_v5, %v2009_v15  ;;  %v2316_v20 = vmul.f32 %v20976_v55, %v1427_v63  ;;  %v2435_v10 = vrot.slane %v2315_v57, 2 }
 0x2eb   : > { %v2263_v3 = vadd.f32 %v2190_v23, %v2010_v11  ;;  %v1929_v28 = vadd.f32 %v1858_v32, %v1680_v21  ;;  %v20986_v37 = vadd.f32 %v1860_v2, %v1681_v59  ;;  %v2559_v8 = vmul.f32 %v20526_v52, %v1265_v61  ;;  %v21004_v32 = vld [vmem:[#allocation6] ss:$0 sm:$0xff] }
 0x2ec   : > { %v2647_v45 = vmul.f32 %v20532_v47, %v1265_v61  ;;  %v2436_v22 = vsel %vm1790_vm5, %v2434_v48, %v2435_v10  ;;  %v2437_v34 = vrot.slane %v2316_v20, 2  ;;  %v2648_v1 = vmul.f32 %v20532_v47, %v1427_v63  ;;  %v20995_v13 = vld [vmem:[#allocation3 + $0x110] sm:$0xff]  ;;  %v21251_v49 = vld [vmem:[#allocation3 + $0x118] sm:$0x3] }
 0x2ed   : > { %v2895_v15 = vmul.f32 %v20537_v54, %v1265_v61  ;;  %v2510_v6 = vadd.f32 %v2436_v22, %v2262_v53  ;;  %v2591_v11 = vadd.f32 %v2559_v8, %v20930_v35  ;;  %v2896_v52 = vmul.f32 %v20537_v54, %v1427_v63  ;;  %15409 = vmatmul.mubr.msk.f32.gmra.mrb[22].mxu0 %vm929_vm2, %v20995_v13  ;;  %v21030_v20 = vld [vmem:[#allocation6 + $0x3] ss:$0 sm:$0xff] }
 0x2ee   : > { %v2765_v60 = vrot.slane %v2647_v45, 1  ;;  %v2438_v33 = vsel %vm1790_vm5, %v2435_v10, %v2437_v34  ;;  %v2767_v48 = vrot.slane %v2648_v1, 1  ;;  %v3322_v47 = vrot.slane %v20990_v14, 1  ;;  %v21033_v10 = vld [vmem:[#allocation6 + $0x4] ss:$0 sm:$0xff] }
 0x2ef   : > { %v3013_v57 = vrot.slane %v2895_v15, 2  ;;  %v2511_v18 = vadd.f32 %v2438_v33, %v2263_v3  ;;  %v3015_v51 = vrot.slane %v2896_v52, 2  ;;  %v21007_v35 = vmul.f32 %v21004_v32, %v1270_v41  ;;  %v21025_v3 = vld [vmem:[#allocation6 + $0x2] ss:$0 sm:$0xff]  ;;  %v21039_v15 = vld [vmem:[#allocation6 + $0x6] ss:$0 sm:$0xff] }
 0x2f0   : > { %v2766_v61 = vsel %vm1541_vm4, %v2764_v58, %v2765_v60  ;;  %v2768_v54 = vsel %vm1541_vm4, %v2765_v60, %v2767_v48  ;;  %v24436_v2 = vrot.slane %v20945_v40, 2  ;;  %v24437_v59 = vrot.slane %v20822_v50, 1  ;;  %v1275_v60 = vpop.permute.xlu1 %1274 }
 0x2f1   : > { %v2843_v63 = vadd.f32 %v2766_v61, %v20947_v43  ;;  %v2844_v58 = vadd.f32 %v2768_v54, %v2591_v11  ;;  %v3016_v23 = vsel %vm1790_vm5, %v3013_v57, %v3015_v51  ;;  %v21023_v53 = vmul.f32 %v20956_v24, %v1270_v41  ;;  %v21044_v51 = vld [vmem:[#allocation6 + $0x7] ss:$0 sm:$0xff] }
 0x2f2   : > { %v3014_v21 = vsel %vm1790_vm5, %v24436_v2, %v3013_v57  ;;  %v21017_v5 = vsel %vm1541_vm4, %v24437_v59, %v3322_v47  ;;  %v21028_v40 = vmul.f32 %v21025_v3, %v1270_v41  ;;  %v1979_v50 = vmul.f32 %v21030_v20, %v1270_v41 }
 0x2f3   : > { %24438 = vst [vmem:[#allocation39_spill] sm:$0xff] %v21017_v5  ;;  %15344 = vmatmul.mubr.msk.f32.gmra.mrb[6].mxu1 %vm929_vm2, %v21017_v5  ;;  %v3091_v43 = vadd.f32 %v3014_v21, %v2843_v63  ;;  %v2069_v8 = vmul.f32 %v21033_v10, %v1270_v41  ;;  %v2317_v45 = vmul.f32 %v20976_v55, %v1270_v41  ;;  %v21047_v63 = vld [vmem:[#allocation6 + $0x8] ss:$0 sm:$0xff]  ;;  %v3324_v21 = vrot.slane %v20829_v44, 1 }
 0x2f4   : > { %v3092_v22 = vadd.f32 %v3016_v23, %v2844_v58  ;;  %v2560_v11 = vmul.f32 %v21039_v15, %v1270_v41  ;;  %v2011_v33 = vadd.f32 %v1979_v50, %v1929_v28  ;;  %v2649_v54 = vmul.f32 %v21044_v51, %v1270_v41  ;;  %v21082_v26 = vpop.permute.xlu1 %1279 }
 0x2f5   : > { %v3130_v52 = vadd.f32 %v20597_v46, %v3091_v43  ;;  %v2191_v48 = vrot.slane %v2069_v8, 1  ;;  %v2439_v57 = vrot.slane %v2317_v45, 2  ;;  %v2897_v2 = vmul.f32 %v21047_v63, %v1270_v41  ;;  %v1432_v43 = vpop.permute.xlu0 %1431 }
 0x2f6   : > { %v3131_v47 = vadd.f32 %v20597_v46, %v3092_v22  ;;  %v2592_v61 = vadd.f32 %v2560_v11, %v2510_v6  ;;  %v24309_v59 = vrot.slane %v20855_v19, 1  ;;  %v1322_v28 = vmul.f32 %v21004_v32, %v1275_v60 }
 0x2f7   : > { %3163 = vst.msk [vmem:[#allocation3 + $0x121] sm:$0xff] %vm929_vm2, %v3130_v52  ;;  %v21055_v58 = vmul.f32 %v20956_v24, %v1275_v60  ;;  %v2769_v46 = vrot.slane %v2649_v54, 1  ;;  %v3017_v6 = vrot.slane %v2897_v2, 2  ;;  %v21059_v23 = vmul.f32 %v21025_v3, %v1275_v60 }
 0x2f8   : > { %3164 = vst.msk [vmem:[#allocation3 + $0x129] sm:$0xff] %vm929_vm2, %v3131_v47  ;;  %v1980_v41 = vmul.f32 %v21030_v20, %v1275_v60  ;;  %v21065_v44 = vsel %vm1541_vm4, %v3324_v21, %v24309_v59  ;;  %v2070_v8 = vmul.f32 %v21033_v10, %v1275_v60  ;;  %v2318_v45 = vmul.f32 %v20976_v55, %v1275_v60 }
 0x2f9   : > { %24439 = vst [vmem:[#allocation40_spill] sm:$0xff] %v21065_v44  ;;  %15346 = vmatprep.mubr.msk.f32.mxu1 %vm929_vm2, %v21065_v44  ;;  %v2561_v52 = vmul.f32 %v21039_v15, %v1275_v60  ;;  %v2650_v47 = vmul.f32 %v21044_v51, %v1275_v60  ;;  %v2898_v21 = vmul.f32 %v21047_v63, %v1275_v60 }
 0x2fa   : > { %v2012_v11 = vadd.f32 %v1980_v41, %v20986_v37  ;;  %v2192_v54 = vrot.slane %v2070_v8, 1  ;;  %v2440_v2 = vrot.slane %v2318_v45, 2  ;;  %v1489_v1 = vmul.f32 %v20956_v24, %v1432_v43 }
 0x2fb   : > { %v2593_v34 = vadd.f32 %v2561_v52, %v2511_v18  ;;  %v2770_v59 = vrot.slane %v2650_v47, 1  ;;  %v1738_v50 = vmul.f32 %v21025_v3, %v1432_v43  ;;  %v2071_v44 = vmul.f32 %v21033_v10, %v1432_v43 }
 0x2fc   : > { %v2193_v22 = vsel %vm1541_vm4, %v2191_v48, %v2192_v54  ;;  %v2441_v37 = vsel %vm1790_vm5, %v2439_v57, %v2440_v2  ;;  %v3018_v41 = vrot.slane %v2898_v21, 2  ;;  %v1615_v5 = vrot.slane %v1489_v1, 1  ;;  %v21092_v21 = vld [vmem:[#allocation3 + $0xe8] sm:$0x3] }
 0x2fd   : > { %v2264_v8 = vadd.f32 %v2193_v22, %v2011_v33  ;;  %v2771_v45 = vsel %vm1541_vm4, %v2769_v46, %v2770_v59  ;;  %v1864_v60 = vrot.slane %v1738_v50, 2  ;;  %v2194_v4 = vrot.slane %v2071_v44, 1 }
 0x2fe   : > { %v21085_v9 = vld [vmem:[#allocation3 + $0x120] sm:$0xff]  ;;  %v2845_v18 = vadd.f32 %v2771_v45, %v2592_v61  ;;  %v3019_v52 = vsel %vm1790_vm5, %v3017_v6, %v3018_v41  ;;  %v24440_v47 = vrot.slane %v21055_v58, 1  ;;  %v2319_v57 = vmul.f32 %v20976_v55, %v1432_v43 }
 0x2ff   : > { %v21094_v1 = vld [vmem:[#allocation3 + $0x128] sm:$0xff]  ;;  %15411 = vmatprep.mubr.msk.f32.mxu0 %vm929_vm2, %v21085_v9  ;;  %v2512_v33 = vadd.f32 %v2441_v37, %v2264_v8  ;;  %v24441_v44 = vrot.slane %v21059_v23, 2  ;;  %v2195_v6 = vsel %vm1541_vm4, %v2192_v54, %v2194_v4  ;;  %v2651_v45 = vmul.f32 %v21044_v51, %v1432_v43  ;;  %v21111_v8 = vld [vmem:[#allocation8] ss:$0 sm:$0xff] }
 0x300   : > { %v1616_v48 = vsel %vm1541_vm4, %v24440_v47, %v1615_v5  ;;  %15412 = vmatmul.mubr.msk.f32.gmra.mrb[24].mxu0 %vm929_vm2, %v21094_v1  ;;  %v3093_v5 = vadd.f32 %v3019_v52, %v2845_v18  ;;  %v2265_v50 = vadd.f32 %v2195_v6, %v2012_v11  ;;  %v2442_v22 = vrot.slane %v2319_v57, 2  ;;  %v1437_v18 = vpop.permute.xlu1 %1436 }
 0x301   : > { %v1683_v46 = vadd.f32 %v1616_v48, %v1322_v28  ;;  %v1865_v61 = vsel %vm1790_vm5, %v24441_v44, %v1864_v60  ;;  %v2899_v27 = vmul.f32 %v21047_v63, %v1432_v43  ;;  %v3327_v28 = vrot.slane %v21092_v21, 1  ;;  %v21122_v44 = vpop.permute.xlu0 %1284 }
 0x302   : > { %v2562_v37 = vmul.f32 %v21039_v15, %v21082_v26  ;;  %v3132_v4 = vadd.f32 %v21111_v8, %v3093_v5  ;;  %v2443_v54 = vsel %vm1790_vm5, %v2440_v2, %v2442_v22  ;;  %v2772_v60 = vrot.slane %v2651_v45, 1 }
 0x303   : > { %v21105_v47 = vadd.f32 %v1865_v61, %v1683_v46  ;;  %v2652_v11 = vmul.f32 %v21044_v51, %v21082_v26  ;;  %v2513_v52 = vadd.f32 %v2443_v54, %v2265_v50  ;;  %v3020_v48 = vrot.slane %v2899_v27, 2 }
 0x304   : > { %v24442_v43 = vrot.slane %v20855_v19, 1  ;;  %v2594_v46 = vadd.f32 %v2562_v37, %v2512_v33  ;;  %3165 = vst.msk [vmem:[#allocation3 + $0x139] sm:$0xff] %vm929_vm2, %v3132_v4  ;;  %v2773_v61 = vsel %vm1541_vm4, %v2770_v59, %v2772_v60  ;;  %v2900_v6 = vmul.f32 %v21047_v63, %v21082_v26 }
 0x305   : > { %v2774_v2 = vrot.slane %v2652_v11, 1  ;;  %v3329_v27 = vrot.slane %v20905_v16, 1  ;;  %v2846_v19 = vadd.f32 %v2773_v61, %v2593_v34  ;;  %v3021_v5 = vsel %vm1790_vm5, %v3018_v41, %v3020_v48  ;;  %v21154_v11 = vld [vmem:[#allocation3 + $0x100] sm:$0x3] }
 0x306   : > { %v21120_v57 = vsel %vm1541_vm4, %v24442_v43, %v3327_v28  ;;  %v3330_v33 = vrot.slane %v20908_v31, 1  ;;  %v21134_v50 = vmul.f32 %v20956_v24, %v1437_v18  ;;  %v3022_v22 = vrot.slane %v2900_v6, 2 }
 0x307   : > { %24443 = vst [vmem:[#allocation41_spill] sm:$0xff] %v21120_v57  ;;  %15347 = vmatmul.mubr.msk.f32.gmra.mrb[8].mxu1 %vm929_vm2, %v21120_v57  ;;  %v21137_v59 = vmul.f32 %v21025_v3, %v1437_v18  ;;  %v2073_v45 = vmul.f32 %v21033_v10, %v21122_v44  ;;  %v2074_v28 = vmul.f32 %v21033_v10, %v1437_v18  ;;  %v3332_v41 = vrot.slane %v21154_v11, 1 }
 0x308   : > { %v3094_v37 = vadd.f32 %v3021_v5, %v2846_v19  ;;  %v21143_v16 = vsel %vm1541_vm4, %v3329_v27, %v3330_v33  ;;  %v21147_v31 = vmul.f32 %v20976_v55, %v1437_v18  ;;  %v2563_v60 = vmul.f32 %v21039_v15, %v21122_v44 }
 0x309   : > { %24444 = vst [vmem:[#allocation42_spill] sm:$0xff] %v21143_v16  ;;  %15349 = vmatprep.mubr.msk.f32.mxu1 %vm929_vm2, %v21143_v16  ;;  %v2197_v4 = vrot.slane %v2073_v45, 1  ;;  %v2199_v54 = vrot.slane %v2074_v28, 1  ;;  %v2653_v61 = vmul.f32 %v21044_v51, %v21122_v44  ;;  %v2654_v6 = vmul.f32 %v21044_v51, %v1437_v18 }
 0x30a   : > { %v3133_v48 = vadd.f32 %v21111_v8, %v3094_v37  ;;  %v2595_v19 = vadd.f32 %v2563_v60, %v2513_v52  ;;  %v2901_v5 = vmul.f32 %v21047_v63, %v21122_v44  ;;  %v2902_v45 = vmul.f32 %v21047_v63, %v1437_v18 }
 0x30b   : > { %v21162_v27 = vsel %vm1541_vm4, %v2197_v4, %v2199_v54  ;;  %v2775_v28 = vrot.slane %v2653_v61, 1  ;;  %v2777_v37 = vrot.slane %v2654_v6, 1  ;;  %v24445_v34 = vrot.slane %v21055_v58, 1  ;;  %v21174_v54 = vld [vmem:[#allocation3 + $0x138] sm:$0xff] }
 0x30c   : > { %3166 = vst.msk [vmem:[#allocation3 + $0x141] sm:$0xff] %vm929_vm2, %v3133_v48  ;;  %v24446_v43 = vrot.slane %v21023_v53, 1  ;;  %v3023_v52 = vrot.slane %v2901_v5, 2  ;;  %v3025_v60 = vrot.slane %v2902_v45, 2  ;;  %v24447_v18 = vrot.slane %v21059_v23, 2  ;;  %15414 = vmatprep.mubr.msk.f32.mxu0 %vm929_vm2, %v21174_v54 }
 0x30d   : > { %v24448_v48 = vrot.slane %v21028_v40, 2  ;;  %v2776_v58 = vsel %vm1541_vm4, %v2774_v2, %v2775_v28  ;;  %v2778_v53 = vsel %vm1541_vm4, %v2775_v28, %v2777_v37  ;;  %v2072_v2 = vmul.f32 %v21033_v10, %v21082_v26 }
 0x30e   : > { %v1614_v16 = vsel %vm1541_vm4, %v24446_v43, %v24445_v34  ;;  %v21187_v34 = vsel %vm1541_vm4, %v3330_v33, %v3332_v41  ;;  %v1981_v43 = vmul.f32 %v21030_v20, %v21082_v26  ;;  %v2848_v23 = vadd.f32 %v2778_v53, %v2595_v19 }
 0x30f   : > { %v1682_v57 = vadd.f32 %v1614_v16, %v21007_v35  ;;  %v1863_v61 = vsel %vm1790_vm5, %v24448_v48, %v24447_v18  ;;  %24449 = vst [vmem:[#allocation43_spill] sm:$0xff] %v21187_v34  ;;  %v1940_v35 = vpop.permute.xlu0 %1939  ;;  %v2847_v16 = vadd.f32 %v2776_v58, %v2594_v46  ;;  %v3024_v40 = vsel %vm1790_vm5, %v3022_v22, %v3023_v52 }
 0x310   : > { %v3026_v6 = vsel %vm1790_vm5, %v3023_v52, %v3025_v60  ;;  %15350 = vmatmul.mubr.msk.f32.gmra.mrb[10].mxu1 %vm929_vm2, %v21187_v34  ;;  %v2320_v33 = vmul.f32 %v20976_v55, %v21082_v26  ;;  %v2321_v41 = vmul.f32 %v20976_v55, %v21122_v44  ;;  %v21202_v19 = vmul.f32 %v21030_v20, %v1940_v35  ;;  %v1945_v60 = vpop.permute.xlu1 %1944 }
 0x311   : > { %v1931_v5 = vadd.f32 %v1863_v61, %v1682_v57  ;;  %v3095_v45 = vadd.f32 %v3024_v40, %v2847_v16  ;;  %v3096_v46 = vadd.f32 %v3026_v6, %v2848_v23  ;;  %v21205_v22 = vmul.f32 %v21033_v10, %v1940_v35 }
 0x312   : > { %v2196_v37 = vrot.slane %v2072_v2, 1  ;;  %v2444_v57 = vrot.slane %v2320_v33, 2  ;;  %v2445_v52 = vrot.slane %v2321_v41, 2  ;;  %v21211_v58 = vmul.f32 %v20976_v55, %v1940_v35 }
 0x313   : > { %v2013_v28 = vadd.f32 %v1981_v43, %v1931_v5  ;;  %v3134_v18 = vadd.f32 %v21111_v8, %v3095_v45  ;;  %v3135_v48 = vadd.f32 %v21111_v8, %v3096_v46  ;;  %v21213_v53 = vld [vmem:[#allocation3 + $0x140] sm:$0xff]  ;;  %v2564_v43 = vmul.f32 %v21039_v15, %v1940_v35 }
 0x314   : > { %v2198_v16 = vsel %vm1541_vm4, %v2196_v37, %v2197_v4  ;;  %v2446_v23 = vsel %vm1790_vm5, %v2444_v57, %v2445_v52  ;;  %v2655_v40 = vmul.f32 %v21044_v51, %v1940_v35  ;;  %15415 = vmatmul.mubr.msk.f32.gmra.mrb[26].mxu0 %vm929_vm2, %v21213_v53  ;;  %v2449_v5 = vrot.slane %v21211_v58, 2 }
 0x315   : > { %3168 = vst.msk [vmem:[#allocation3 + $0x159] sm:$0xff] %vm929_vm2, %v3135_v48  ;;  %3167 = vst.msk [vmem:[#allocation3 + $0x151] sm:$0xff] %vm929_vm2, %v3134_v18  ;;  %v2266_v6 = vadd.f32 %v2198_v16, %v2013_v28  ;;  %v2903_v2 = vmul.f32 %v21047_v63, %v1940_v35  ;;  %v21226_v4 = vmul.f32 %v21030_v20, %v1945_v60  ;;  %v2022_v48 = vpop.permute.xlu0 %2021  ;;  %v3334_v16 = vrot.slane %v20970_v39, 1 }
 0x316   : > { %v2779_v33 = vrot.slane %v2655_v40, 1  ;;  %v21229_v41 = vmul.f32 %v21033_v10, %v1945_v60  ;;  %v21232_v45 = vmul.f32 %v20976_v55, %v1945_v60  ;;  %v2565_v46 = vmul.f32 %v21039_v15, %v1945_v60 }
 0x317   : > { %v2514_v37 = vadd.f32 %v2446_v23, %v2266_v6  ;;  %v3027_v57 = vrot.slane %v2903_v2, 2  ;;  %v2656_v28 = vmul.f32 %v21044_v51, %v1945_v60  ;;  %v2904_v18 = vmul.f32 %v21047_v63, %v1945_v60 }
 0x318   : > { %v3335_v40 = vrot.slane %v20995_v13, 1  ;;  %v1982_v23 = vmul.f32 %v21030_v20, %v21122_v44  ;;  %v24451_v60 = vrot.slane %v21147_v31, 2  ;;  %v2077_v35 = vmul.f32 %v21033_v10, %v2022_v48 }
 0x319   : > { %v2596_v61 = vadd.f32 %v2564_v43, %v2514_v37  ;;  %v2780_v34 = vrot.slane %v2656_v28, 1  ;;  %v3028_v25 = vrot.slane %v2904_v18, 2  ;;  %v2325_v58 = vmul.f32 %v20976_v55, %v2022_v48 }
 0x31a   : > { %v21244_v6 = vsel %vm1541_vm4, %v3334_v16, %v3335_v40  ;;  %v2448_v2 = vsel %vm1790_vm5, %v2445_v52, %v24451_v60  ;;  %v2014_v20 = vadd.f32 %v1982_v23, %v21105_v47  ;;  %v2657_v28 = vmul.f32 %v21044_v51, %v2022_v48 }
 0x31b   : > { %24450 = vst [vmem:[#allocation44_spill] sm:$0xff] %v21244_v6  ;;  %v2781_v43 = vsel %vm1541_vm4, %v2779_v33, %v2780_v34  ;;  %v3029_v37 = vsel %vm1790_vm5, %v3027_v57, %v3028_v25  ;;  %15352 = vmatprep.mubr.msk.f32.mxu1 %vm929_vm2, %v21244_v6  ;;  %v2204_v18 = vrot.slane %v2077_v35, 1  ;;  %v2452_v52 = vrot.slane %v2325_v58, 2 }
 0x31c   : > { %v2849_v31 = vadd.f32 %v2781_v43, %v2596_v61  ;;  %v2905_v10 = vmul.f32 %v21047_v63, %v2022_v48  ;;  %v21260_v16 = vld [vmem:[#allocation3 + $0x150] sm:$0xff]  ;;  %v2267_v55 = vadd.f32 %v21162_v27, %v2014_v20  ;;  %v2782_v60 = vrot.slane %v2657_v28, 1  ;;  %v21268_v47 = vld [vmem:[#allocation3 + $0x158] sm:$0xff]  ;;  %v2523_v20 = vpop.permute.xlu1 %2522 }
 0x31d   : > { %v3337_v33 = vrot.slane %v21251_v49, 1  ;;  %v1323_v57 = vmul.f32 %v21004_v32, %v21082_v26  ;;  %15417 = vmatprep.mubr.msk.f32.mxu0 %vm929_vm2, %v21260_v16  ;;  %v1490_v48 = vmul.f32 %v20956_v24, %v21082_v26  ;;  %v1739_v58 = vmul.f32 %v21025_v3, %v21082_v26 }
 0x31e   : > { %v3097_v61 = vadd.f32 %v3029_v37, %v2849_v31  ;;  %v3030_v35 = vrot.slane %v2905_v10, 2  ;;  %15418 = vmatmul.mubr.msk.f32.gmra.mrb[28].mxu0 %vm929_vm2, %v21268_v47  ;;  %v2515_v27 = vadd.f32 %v2448_v2, %v2267_v55  ;;  %v2783_v23 = vsel %vm1541_vm4, %v2780_v34, %v2782_v60 }
 0x31f   : > { %v21278_v43 = vsel %vm1541_vm4, %v3335_v40, %v3337_v33  ;;  %v1491_v37 = vmul.f32 %v20956_v24, %v21122_v44  ;;  %v1617_v26 = vrot.slane %v1490_v48, 1  ;;  %v1866_v10 = vrot.slane %v1739_v58, 2  ;;  %v2528_v58 = vpop.permute.xlu0 %2527 }
 0x320   : > { %24452 = vst [vmem:[#allocation45_spill] sm:$0xff] %v21278_v43  ;;  %v3136_v28 = vadd.f32 %v21111_v8, %v3097_v61  ;;  %v3031_v31 = vsel %vm1790_vm5, %v3028_v25, %v3030_v35  ;;  %15353 = vmatmul.mubr.msk.f32.gmra.mrb[12].mxu1 %vm929_vm2, %v21278_v43  ;;  %v2597_v6 = vadd.f32 %v2565_v46, %v2515_v27  ;;  %v24453_v40 = vrot.slane %v21229_v41, 1 }
 0x321   : > { %v1618_v2 = vrot.slane %v1491_v37, 1  ;;  %v1740_v34 = vmul.f32 %v21025_v3, %v21122_v44  ;;  %v24454_v55 = vrot.slane %v21205_v22, 1  ;;  %v24455_v25 = vrot.slane %v21232_v45, 2 }
 0x322   : > { %3169 = vst.msk [vmem:[#allocation3 + $0x169] sm:$0xff] %vm929_vm2, %v3136_v28  ;;  %v2566_v33 = vmul.f32 %v21039_v15, %v2523_v20  ;;  %v2658_v46 = vmul.f32 %v21044_v51, %v2523_v20  ;;  %v2906_v61 = vmul.f32 %v21047_v63, %v2523_v20  ;;  %v2850_v35 = vadd.f32 %v2783_v23, %v2597_v6  ;;  %v2605_v20 = vpop.permute.xlu1 %2604 }
 0x323   : > { %v2203_v24 = vsel %vm1541_vm4, %v24454_v55, %v24453_v40  ;;  %v2451_v60 = vsel %vm1790_vm5, %v2449_v5, %v24455_v25  ;;  %v1619_v3 = vsel %vm1541_vm4, %v1617_v26, %v1618_v2  ;;  %v1867_v48 = vrot.slane %v1740_v34, 2 }
 0x324   : > { %v1324_v22 = vmul.f32 %v21004_v32, %v21122_v44  ;;  %v1684_v27 = vadd.f32 %v1619_v3, %v1323_v57  ;;  %v2784_v37 = vrot.slane %v2658_v46, 1  ;;  %v3032_v28 = vrot.slane %v2906_v61, 2  ;;  %v21320_v46 = vld [vmem:[#allocation3 + $0x130] sm:$0x3]  ;;  %v13442_v3 = vld [vmem:[%s24428_s1 + $0x50] sm:$0xff] }
 0x325   : > { %v24456_v40 = vrot.slane %v21134_v50, 1  ;;  %v3098_v55 = vadd.f32 %v3031_v31, %v2850_v35  ;;  %v1868_v25 = vsel %vm1790_vm5, %v1866_v10, %v1867_v48  ;;  %v24457_v6 = vrot.slane %v21137_v59, 2 }
 0x326   : > { %v1933_v26 = vadd.f32 %v1868_v25, %v1684_v27  ;;  %v24458_v32 = vrot.slane %v21229_v41, 1  ;;  %v24459_v57 = vrot.slane %v21232_v45, 2  ;;  %v2659_v34 = vmul.f32 %v21044_v51, %v2528_v58 }
 0x327   : > { %v1621_v5 = vsel %vm1541_vm4, %v1618_v2, %v24456_v40  ;;  %v1870_v23 = vsel %vm1790_vm5, %v1867_v48, %v24457_v6  ;;  %v2567_v2 = vmul.f32 %v21039_v15, %v2528_v58  ;;  %v3137_v31 = vadd.f32 %v21111_v8, %v3098_v55  ;;  %v21347_v55 = vld [vmem:[#allocation3 + $0x148] sm:$0x3] }
 0x328   : > { %v1685_v43 = vadd.f32 %v1621_v5, %v1324_v22  ;;  %v2205_v44 = vsel %vm1541_vm4, %v24458_v32, %v2204_v18  ;;  %v2453_v50 = vsel %vm1790_vm5, %v24459_v57, %v2452_v52  ;;  %v2907_v59 = vmul.f32 %v21047_v63, %v2528_v58 }
 0x329   : > { %v2015_v61 = vadd.f32 %v21202_v19, %v1933_v26  ;;  %v3339_v41 = vrot.slane %v21085_v9, 1  ;;  %v3340_v18 = vrot.slane %v21094_v1, 1  ;;  %v2660_v45 = vmul.f32 %v21044_v51, %v2605_v20  ;;  %3170 = vst.msk [vmem:[#allocation3 + $0x171] sm:$0xff] %vm929_vm2, %v3137_v31  ;;  %v13443_v19 = vld [vmem:[%s24428_s1 + $0x58] sm:$0xff] }
 0x32a   : > { %v1934_v10 = vadd.f32 %v1870_v23, %v1685_v43  ;;  %v2785_v52 = vrot.slane %v2659_v34, 1  ;;  %v3033_v43 = vrot.slane %v2907_v59, 2  ;;  %v2908_v35 = vmul.f32 %v21047_v63, %v2605_v20  ;;  %v21335_v48 = vld [vmem:[#allocation3 + $0x168] sm:$0xff]  ;;  %v21353_v20 = vld [vmem:[#allocation3 + $0x160] sm:$0x3] }
 0x32b   : > { %v2268_v22 = vadd.f32 %v2203_v24, %v2015_v61  ;;  %v21338_v51 = vsel %vm1541_vm4, %v3339_v41, %v3340_v18  ;;  %v2787_v58 = vrot.slane %v2660_v45, 1  ;;  %15420 = vmatprep.mubr.msk.f32.mxu0 %vm929_vm2, %v21335_v48  ;;  %v17133_v23 = vpack.c.bf16 %v13443_v19, %v13442_v3  ;;  %v18962_v45 = vld [vmem:[#allocation3] sm:$0xff] }
 0x32c   : > { %v2016_v15 = vadd.f32 %v21226_v4, %v1934_v10  ;;  %24460 = vst [vmem:[#allocation46_spill] sm:$0xff] %v21338_v51  ;;  %v3342_v4 = vrot.slane %v21320_v46, 1  ;;  %v2786_v27 = vsel %vm1541_vm4, %v2784_v37, %v2785_v52  ;;  %v3034_v40 = vsel %vm1790_vm5, %v3032_v28, %v3033_v43  ;;  %15355 = vmatprep.mubr.msk.f32.mxu1 %vm929_vm2, %v21338_v51 }
 0x32d   : > { %v3035_v5 = vrot.slane %v2908_v35, 2  ;;  %v2516_v24 = vadd.f32 %v2451_v60, %v2268_v22  ;;  %v2788_v25 = vsel %vm1541_vm4, %v2785_v52, %v2787_v58  ;;  %v3344_v28 = vrot.slane %v21174_v54, 1  ;;  %17134 = vmatprep.subr.bf16.mxu0 %v17133_v23  ;;  %v18963_v22 = vld [vmem:[#allocation3 + $0x8] sm:$0xff] }
 0x32e   : > { %v2269_v63 = vadd.f32 %v2205_v44, %v2016_v15  ;;  %v21351_v6 = vsel %vm1541_vm4, %v3340_v18, %v3342_v4  ;;  %v3345_v32 = vrot.slane %v21213_v53, 1  ;;  %v3347_v60 = vrot.slane %v21347_v55, 1  ;;  %17136 = vmatpush3.bf16.msra.mxu0 %v17133_v23  ;;  %v21391_v4 = vld [vmem:[#allocation3 + $0x18] sm:$0xff] }
 0x32f   : > { %24461 = vst [vmem:[#allocation47_spill] sm:$0xff] %v21351_v6  ;;  %v3036_v37 = vsel %vm1790_vm5, %v3033_v43, %v3035_v5  ;;  %15356 = vmatmul.mubr.msk.f32.gmra.mrb[14].mxu1 %vm929_vm2, %v21351_v6  ;;  %v2598_v44 = vadd.f32 %v2566_v33, %v2516_v24  ;;  %v3349_v57 = vrot.slane %v21260_v16, 1  ;;  %v3350_v31 = vrot.slane %v21268_v47, 1 }
 0x330   : > { %v2517_v26 = vadd.f32 %v2453_v50, %v2269_v63  ;;  %v21364_v50 = vsel %vm1541_vm4, %v3344_v28, %v3345_v32  ;;  %v3352_v34 = vrot.slane %v21353_v20, 1  ;;  %v3354_v59 = vrot.slane %v21335_v48, 1  ;;  %v21376_v18 = vld [vmem:[#allocation3 + $0x170] sm:$0xff] }
 0x331   : > { %24462 = vst [vmem:[#allocation48_spill] sm:$0xff] %v21364_v50  ;;  %v2851_v61 = vadd.f32 %v2786_v27, %v2598_v44  ;;  %15358 = vmatprep.mubr.msk.f32.mxu1 %vm929_vm2, %v21364_v50  ;;  %v21371_v33 = vsel %vm1541_vm4, %v3345_v32, %v3347_v60  ;;  %v21374_v41 = vsel %vm1541_vm4, %v3349_v57, %v3350_v31  ;;  %v3942_v15 = vrot.slane %v18962_v45, 2  ;;  %v21394_v27 = vld [vmem:[#allocation3 + $0x20] sm:$0xff]  ;;  %v13476_v32 = vld [vmem:[%s24428_s1 + $0x60] sm:$0xff]  ;;  %v13477_v44 = vld [vmem:[%s24428_s1 + $0x68] sm:$0xff] }
 0x332   : > { %v2599_v10 = vadd.f32 %v2567_v2, %v2517_v26  ;;  %24463 = vst [vmem:[#allocation49_spill] sm:$0xff] %v21371_v33  ;;  %24464 = vst [vmem:[#allocation50_spill] sm:$0xff] %v21374_v41  ;;  %v21378_v2 = vld [vmem:[#allocation3 + $0x178] sm:$0x3]  ;;  %v21383_v43 = vsel %vm1541_vm4, %v3350_v31, %v3352_v34  ;;  %15421 = vmatmul.mubr.msk.f32.gmra.mrb[30].mxu0 %vm929_vm2, %v21376_v18  ;;  %v3355_v35 = vrot.slane %v21376_v18, 1  ;;  %v3943_v58 = vrot.slane %v18963_v22, 2 }
 0x333   : > { %15359 = vmatmul.mubr.msk.f32.gmra.mrb[16].mxu1 %vm929_vm2, %v21371_v33  ;;  %24465 = vst [vmem:[#allocation51_spill] sm:$0xff] %v21383_v43  ;;  %v3357_v3 = vrot.slane %v21378_v2, 1  ;;  %v3099_v19 = vadd.f32 %v3034_v40, %v2851_v61  ;;  %v3947_v63 = vrot.slane %v21391_v4, 2  ;;  %v3948_v5 = vrot.slane %v21394_v27, 2  ;;  %v18966_v60 = vld [vmem:[#allocation3 + $0x28] sm:$0x3] }
 0x334   : > { %v2852_v52 = vadd.f32 %v2788_v25, %v2599_v10  ;;  %15361 = vmatprep.mubr.msk.f32.mxu1 %vm929_vm2, %v21374_v41  ;;  %v21398_v25 = vsel %vm1541_vm4, %v3354_v59, %v3355_v35  ;;  %v3944_v40 = vsel %vm1790_vm5, %v3942_v15, %v3943_v58  ;;  %v24467_v26 = vrot.slane %v20127_v30, 2  ;;  %v21431_v59 = vld [vmem:[#allocation3 + $0x30] sm:$0xff]  ;;  %v18969_v15 = vld [vmem:[#allocation3 + $0x40] sm:$0x3]  ;;  %v21449_v22 = vld [vmem:[#allocation3 + $0x48] sm:$0xff] }
 0x335   : > { %24466 = vst [vmem:[#allocation52_spill] sm:$0xff] %v21398_v25  ;;  %v3138_v23 = vadd.f32 %v21111_v8, %v3099_v19  ;;  %15431 = vmatprep.mubr.msk.f32.mxu0 %vm929_vm2, %v3944_v40  ;;  %v3950_v57 = vrot.slane %v18966_v60, 2  ;;  %v21419_v30 = vsel %vm1541_vm4, %v3355_v35, %v3357_v3  ;;  %v21423_v31 = vsel %vm1790_vm5, %v3947_v63, %v3948_v5  ;;  %v21444_v3 = vld [vmem:[#allocation3 + $0x50] sm:$0xff]  ;;  %v21460_v40 = vld [vmem:[#allocation3 + $0x68] sm:$0xff] }
 0x336   : > { %v3100_v24 = vadd.f32 %v3036_v37, %v2852_v52  ;;  %v3946_v28 = vsel %vm1790_vm5, %v3943_v58, %v24467_v26  ;;  %24468 = vst [vmem:[#allocation53_spill] sm:$0xff] %v21419_v30  ;;  %24469 = vst [vmem:[#allocation54_spill] sm:$0xff] %v21423_v31  ;;  %v17137_v34 = vpack.c.bf16 %v13477_v44, %v13476_v32  ;;  %v3952_v61 = vrot.slane %v21431_v59, 2  ;;  %v13479_v32 = vld [vmem:[%s24428_s1 + $0x78] sm:$0xff]  ;;  %v21471_v44 = vld [vmem:[#allocation3 + $0x60] sm:$0xff] }
 0x337   : > { %15362 = vmatmul.mubr.msk.f32.gmra.mrb[18].mxu1 %vm929_vm2, %v21383_v43  ;;  %3171 = vst.msk [vmem:[#allocation3 + $0x181] sm:$0xff] %vm929_vm2, %v3138_v23  ;;  %15432 = vmatmul.mubr.msk.f32.vlgmr.msra.gmra.mrb[0].mxu0 %vm929_vm2, %v3946_v28  ;;  %v21437_v45 = vsel %vm1790_vm5, %v3948_v5, %v3950_v57  ;;  %v3955_v52 = vrot.slane %v18969_v15, 2  ;;  %v3958_v19 = vrot.slane %v21444_v3, 2  ;;  %v3957_v58 = vrot.slane %v21449_v22, 2  ;;  %v18972_v5 = vld [vmem:[#allocation3 + $0x58] sm:$0x3] }
 0x338   : > { %v3139_v37 = vadd.f32 %v21111_v8, %v3100_v24  ;;  %15364 = vmatprep.mubr.msk.f32.mxu1 %vm929_vm2, %v21398_v25  ;;  %v21425_v8 = vld [vmem:[#allocation3 + $0x38] sm:$0xff]  ;;  %15434 = vmatprep.mubr.msk.f32.mxu0 %vm929_vm2, %v21423_v31  ;;  %24470 = vst [vmem:[#allocation55_spill] sm:$0xff] %v21437_v45  ;;  %v3960_v24 = vrot.slane %v18972_v5, 2  ;;  %v3963_v26 = vrot.slane %v21460_v40, 2  ;;  %v13478_v28 = vld [vmem:[%s24428_s1 + $0x70] sm:$0xff] }
 0x339   : > { %v3953_v10 = vrot.slane %v21425_v8, 2  ;;  %17138 = vmatprep.subr.bf16.mxu0 %v17137_v34  ;;  %v21458_v23 = vsel %vm1790_vm5, %v3957_v58, %v3958_v19  ;;  %v18975_v57 = vld [vmem:[#allocation3 + $0x70] sm:$0x3]  ;;  %v21482_v15 = vld [vmem:[#allocation3 + $0x80] sm:$0xff]  ;;  %v13513_v58 = vld [vmem:[%s24428_s1 + $0x88] sm:$0xff] }
 0x33a   : > { %3172 = vst.msk [vmem:[#allocation3 + $0x189] sm:$0xff] %vm929_vm2, %v3139_v37  ;;  %17140 = vmatpush3.bf16.msra.mxu0 %v17137_v34  ;;  %24473 = vst [vmem:[#allocation58_spill] sm:$0xff] %v21458_v23  ;;  %v3962_v37 = vrot.slane %v21471_v44, 2  ;;  %v21475_v60 = vsel %vm1790_vm5, %v3958_v19, %v3960_v24  ;;  %v17141_v34 = vpack.c.bf16 %v13479_v32, %v13478_v28  ;;  %v13512_v19 = vld [vmem:[%s24428_s1 + $0x80] sm:$0xff]  ;;  %v21493_v5 = vld [vmem:[#allocation3 + $0x78] sm:$0xff] }
 0x33b   : > { %15365 = vmatmul.mubr.msk.f32.gmra.mrb[20].mxu1 %vm929_vm2, %v21419_v30  ;;  %15435 = vmatmul.mubr.msk.f32.gmra.mrb[2].mxu0 %vm929_vm2, %v21437_v45  ;;  %v21442_v35 = vsel %vm1790_vm5, %v3952_v61, %v3953_v10  ;;  %v21453_v63 = vsel %vm1790_vm5, %v3953_v10, %v3955_v52  ;;  %24474 = vst [vmem:[#allocation59_spill] sm:$0xff] %v21475_v60  ;;  %v3965_v10 = vrot.slane %v18975_v57, 2  ;;  %v3968_v52 = vrot.slane %v21482_v15, 2  ;;  %v18978_v32 = vld [vmem:[#allocation3 + $0x88] sm:$0x3] }
 0x33c   : > { %24471 = vst [vmem:[#allocation56_spill] sm:$0xff] %v21442_v35  ;;  %15437 = vmatprep.mubr.msk.f32.mxu0 %vm929_vm2, %v21442_v35  ;;  %24472 = vst [vmem:[#allocation57_spill] sm:$0xff] %v21453_v63  ;;  %v21480_v61 = vsel %vm1790_vm5, %v3962_v37, %v3963_v26  ;;  %17142 = vmatprep.subr.bf16.mxu0 %v17141_v34  ;;  %v3967_v24 = vrot.slane %v21493_v5, 2  ;;  %v3970_v37 = vrot.slane %v18978_v32, 2 }
 0x33d   : > { %24475 = vst [vmem:[#allocation60_spill] sm:$0xff] %v21480_v61  ;;  %v21497_v28 = vsel %vm1790_vm5, %v3963_v26, %v3965_v10 }
 0x33e   : > { %17144 = vmatpush3.bf16.msra.mxu0 %v17141_v34  ;;  %24476 = vst [vmem:[#allocation61_spill] sm:$0xff] %v21497_v28  ;;  %v21502_v57 = vsel %vm1790_vm5, %v3967_v24, %v3968_v52  ;;  %v21511_v34 = vld [vmem:[#allocation3 + $0x90] sm:$0xff]  ;;  %v21516_v10 = vsel %vm1790_vm5, %v3968_v52, %v3970_v37  ;;  %v18981_v24 = vld [vmem:[#allocation3 + $0xa0] sm:$0x3] }
 0x33f   : > { %15438 = vmatmul.mubr.msk.f32.gmra.mrb[4].mxu0 %vm929_vm2, %v21453_v63  ;;  %24477 = vst [vmem:[#allocation62_spill] sm:$0xff] %v21502_v57  ;;  %v3972_v26 = vrot.slane %v21511_v34, 2  ;;  %24478 = vst [vmem:[#allocation63_spill] sm:$0xff] %v21516_v10  ;;  %v3975_v32 = vrot.slane %v18981_v24, 2  ;;  %v3980_v24 = vrot.slane %v20903_v0, 2  ;;  %v3985_v0 = vrot.slane %v20990_v14, 2 }
 0x340   : > { %15440 = vmatprep.mubr.msk.f32.mxu0 %vm929_vm2, %v21458_v23  ;;  %v21507_v23 = vpack.c.bf16 %v13513_v58, %v13512_v19  ;;  %v21523_v58 = vld [vmem:[#allocation3 + $0xb0] sm:$0xff]  ;;  %v3990_v14 = vrot.slane %v21092_v21, 2  ;;  %v3995_v21 = vrot.slane %v21154_v11, 2 }
 0x342   : > { %17146 = vmatprep.subr.bf16.mxu0 %v21507_v23 }
 0x343   : > { %15441 = vmatmul.mubr.msk.f32.gmra.mrb[6].mxu0 %vm929_vm2, %v21475_v60 }
 0x344   : > { %15443 = vmatprep.mubr.msk.f32.mxu0 %vm929_vm2, %v21480_v61  ;;  %v21504_v61 = vld [vmem:[#allocation3 + $0x98] sm:$0xff] }
 0x345   : > { %v3973_v60 = vrot.slane %v21504_v61, 2 }
 0x347   : > { %15444 = vmatmul.mubr.msk.f32.gmra.mrb[8].mxu0 %vm929_vm2, %v21497_v28  ;;  %v21521_v19 = vsel %vm1790_vm5, %v3972_v26, %v3973_v60  ;;  %v21528_v28 = vld [vmem:[#allocation3 + $0xa8] sm:$0xff]  ;;  %v21532_v37 = vsel %vm1790_vm5, %v3973_v60, %v3975_v32 }
 0x348   : > { %15446 = vmatprep.mubr.msk.f32.mxu0 %vm929_vm2, %v21502_v57  ;;  %24479 = vst [vmem:[#allocation64_spill] sm:$0xff] %v21521_v19  ;;  %v3978_v57 = vrot.slane %v21523_v58, 2  ;;  %v3977_v52 = vrot.slane %v21528_v28, 2  ;;  %24480 = vst [vmem:[#allocation65_spill] sm:$0xff] %v21532_v37 }
 0x34a   : > { %v21538_v26 = vsel %vm1790_vm5, %v3977_v52, %v3978_v57  ;;  %v21549_v32 = vsel %vm1790_vm5, %v3978_v57, %v3980_v24 }
 0x34b   : > { %15447 = vmatmul.mubr.msk.f32.gmra.mrb[10].mxu0 %vm929_vm2, %v21516_v10  ;;  %24481 = vst [vmem:[#allocation66_spill] sm:$0xff] %v21538_v26  ;;  %v21540_v10 = vld [vmem:[#allocation3 + $0xc8] sm:$0xff]  ;;  %24482 = vst [vmem:[#allocation67_spill] sm:$0xff] %v21549_v32 }
 0x34c   : > { %15449 = vmatprep.mubr.msk.f32.mxu0 %vm929_vm2, %v21521_v19  ;;  %v3983_v63 = vrot.slane %v21540_v10, 2  ;;  %v21545_v19 = vld [vmem:[#allocation3 + $0xc0] sm:$0xff] }
 0x34d   : > { %v3982_v60 = vrot.slane %v21545_v19, 2 }
 0x34e   : > { %v21566_v24 = vsel %vm1790_vm5, %v3983_v63, %v3985_v0 }
 0x34f   : > { %15450 = vmatmul.mubr.msk.f32.gmra.mrb[12].mxu0 %vm929_vm2, %v21532_v37  ;;  %v21555_v52 = vsel %vm1790_vm5, %v3982_v60, %v3983_v63  ;;  %v21557_v37 = vld [vmem:[#allocation3 + $0xe0] sm:$0xff]  ;;  %24484 = vst [vmem:[#allocation69_spill] sm:$0xff] %v21566_v24 }
 0x350   : > { %15452 = vmatprep.mubr.msk.f32.mxu0 %vm929_vm2, %v21538_v26  ;;  %24483 = vst [vmem:[#allocation68_spill] sm:$0xff] %v21555_v52  ;;  %v3988_v35 = vrot.slane %v21557_v37, 2  ;;  %v21562_v26 = vld [vmem:[#allocation3 + $0xd8] sm:$0xff] }
 0x351   : > { %v3987_v57 = vrot.slane %v21562_v26, 2 }
 0x352   : > { %v21583_v0 = vsel %vm1790_vm5, %v3988_v35, %v3990_v14  ;;  %v4003_v14 = vrot.slane %v21094_v1, 2 }
 0x353   : > { %15453 = vmatmul.mubr.msk.f32.gmra.mrb[14].mxu0 %vm929_vm2, %v21549_v32  ;;  %v21572_v60 = vsel %vm1790_vm5, %v3987_v57, %v3988_v35  ;;  %v21574_v32 = vld [vmem:[#allocation3 + $0xf8] sm:$0xff]  ;;  %v4000_v35 = vrot.slane %v21251_v49, 2 }
 0x354   : > { %15455 = vmatprep.mubr.msk.f32.mxu0 %vm929_vm2, %v21555_v52  ;;  %24485 = vst [vmem:[#allocation70_spill] sm:$0xff] %v21572_v60  ;;  %v3993_v45 = vrot.slane %v21574_v32, 2  ;;  %v21579_v52 = vld [vmem:[#allocation3 + $0xf0] sm:$0xff] }
 0x355   : > { %v3992_v63 = vrot.slane %v21579_v52, 2 }
 0x356   : > { %v21596_v31 = vsel %vm1790_vm5, %v3993_v45, %v3995_v21  ;;  %v4007_v21 = vrot.slane %v21174_v54, 2 }
 0x357   : > { %15456 = vmatmul.mubr.msk.f32.gmra.mrb[16].mxu0 %vm929_vm2, %v21566_v24  ;;  %v21589_v57 = vsel %vm1790_vm5, %v3992_v63, %v3993_v45  ;;  %v3998_v24 = vrot.slane %v20995_v13, 2  ;;  %v4002_v63 = vrot.slane %v21085_v9, 2  ;;  %v4005_v45 = vrot.slane %v21320_v46, 2 }
 0x358   : > { %15458 = vmatprep.mubr.msk.f32.mxu0 %vm929_vm2, %v21572_v60  ;;  %v3997_v60 = vrot.slane %v20970_v39, 2 }
 0x359   : > { %v21609_v39 = vsel %vm1790_vm5, %v3998_v24, %v4000_v35  ;;  %v21615_v49 = vsel %vm1790_vm5, %v4002_v63, %v4003_v14  ;;  %v4013_v35 = vrot.slane %v21268_v47, 2  ;;  %v4012_v63 = vrot.slane %v21260_v16, 2 }
 0x35a   : > { %v21602_v11 = vsel %vm1790_vm5, %v3997_v60, %v3998_v24  ;;  %24487 = vst [vmem:[#allocation72_spill] sm:$0xff] %v21615_v49  ;;  %v4008_v60 = vrot.slane %v21213_v53, 2  ;;  %v4010_v24 = vrot.slane %v21347_v55, 2 }
 0x35b   : > { %15459 = vmatmul.mubr.msk.f32.gmra.mrb[18].mxu0 %vm929_vm2, %v21583_v0  ;;  %24486 = vst [vmem:[#allocation71_spill] sm:$0xff] %v21602_v11  ;;  %v21641_v55 = vsel %vm1790_vm5, %v4012_v63, %v4013_v35  ;;  %v13514_v63 = vld [vmem:[%s24428_s1 + $0x90] sm:$0xff] }
 0x35c   : > { %15461 = vmatprep.mubr.msk.f32.mxu0 %vm929_vm2, %v21589_v57  ;;  %v21628_v46 = vsel %vm1790_vm5, %v4007_v21, %v4008_v60  ;;  %24491 = vst [vmem:[#allocation76_spill] sm:$0xff] %v21641_v55  ;;  %v4017_v21 = vrot.slane %v21335_v48, 2 }
 0x35d   : > { %24489 = vst [vmem:[#allocation74_spill] sm:$0xff] %v21628_v46 }
 0x35f   : > { %15462 = vmatmul.mubr.msk.f32.gmra.mrb[20].mxu0 %vm929_vm2, %v21596_v31 }
 0x360   : > { %15464 = vmatprep.mubr.msk.f32.mxu0 %vm929_vm2, %v21602_v11  ;;  %v21622_v11 = vsel %vm1790_vm5, %v4003_v14, %v4005_v45  ;;  %v4015_v14 = vrot.slane %v21353_v20, 2  ;;  %v4018_v45 = vrot.slane %v21376_v18, 2 }
 0x361   : > { %24488 = vst [vmem:[#allocation73_spill] sm:$0xff] %v21622_v11 }
 0x362   : > { %v21654_v20 = vsel %vm1790_vm5, %v4017_v21, %v4018_v45 }
 0x363   : > { %15465 = vmatmul.mubr.msk.f32.gmra.mrb[22].mxu0 %vm929_vm2, %v21609_v39  ;;  %24492 = vst [vmem:[#allocation77_spill] sm:$0xff] %v21654_v20 }
 0x364   : > { %15467 = vmatprep.mubr.msk.f32.mxu0 %vm929_vm2, %v21615_v49  ;;  %v21635_v49 = vsel %vm1790_vm5, %v4008_v60, %v4010_v24  ;;  %v4020_v60 = vrot.slane %v21378_v2, 2  ;;  %v13515_v2 = vld [vmem:[%s24428_s1 + $0x98] sm:$0xff] }
 0x365   : > { %24490 = vst [vmem:[#allocation75_spill] sm:$0xff] %v21635_v49 }
 0x366   : > { %v21659_v24 = vsel %vm1790_vm5, %v4018_v45, %v4020_v60  ;;  %v13549_v45 = vld [vmem:[%s24428_s1 + $0xa8] sm:$0xff] }
 0x367   : > { %15468 = vmatmul.mubr.msk.f32.gmra.mrb[24].mxu0 %vm929_vm2, %v21622_v11 }
 0x368   : > { %15470 = vmatprep.mubr.msk.f32.mxu0 %vm929_vm2, %v21628_v46  ;;  %v21648_v46 = vsel %vm1790_vm5, %v4013_v35, %v4015_v14  ;;  %v17149_v35 = vpack.c.bf16 %v13515_v2, %v13514_v63  ;;  %v13548_v14 = vld [vmem:[%s24428_s1 + $0xa0] sm:$0xff] }
 0x369   : > { %v17153_v21 = vpack.c.bf16 %v13549_v45, %v13548_v14  ;;  %v13584_v45 = vld [vmem:[%s24428_s1 + $0xc0] sm:$0xff] }
 0x36b   : > { %15471 = vmatmul.mubr.msk.f32.gmra.mrb[26].mxu0 %vm929_vm2, %v21635_v49 }
 0x36c   : > { %15473 = vmatprep.mubr.msk.f32.mxu0 %vm929_vm2, %v21641_v55 }
 0x36f   : > { %15474 = vmatmul.mubr.msk.f32.gmra.mrb[28].mxu0 %vm929_vm2, %v21648_v46 }
 0x370   : > { %15476 = vmatprep.mubr.msk.f32.mxu0 %vm929_vm2, %v21654_v20 }
 0x373   : > { %15477 = vmatmul.mubr.msk.f32.gmra.mrb[30].mxu0 %vm929_vm2, %v21659_v24 }
 0x374   : > { %15487 = vmatprep.mubr.msk.f32.mxu0 %vm929_vm2, %v21391_v4 }
 0x377   : > { %15488 = vmatmul.mubr.msk.f32.vlgmr.msra.gmra.mrb[0].mxu0 %vm929_vm2, %v21394_v27 }
 0x378   : > { %15490 = vmatprep.mubr.msk.f32.mxu0 %vm929_vm2, %v21431_v59  ;;  %17148 = vmatpush3.bf16.msra.mxu0 %v21507_v23  ;;  %v21720_v23 = vld [vmem:[#allocation3 + $0x108] sm:$0xff] }
 0x379   : > { %17150 = vmatprep.subr.bf16.mxu0 %v17149_v35 }
 0x37b   : > { %15491 = vmatmul.mubr.msk.f32.gmra.mrb[2].mxu0 %vm929_vm2, %v21425_v8 }
 0x37c   : > { %15493 = vmatprep.mubr.msk.f32.mxu0 %vm929_vm2, %v21449_v22  ;;  %17152 = vmatpush3.bf16.msra.mxu0 %v17149_v35 }
 0x37d   : > { %17154 = vmatprep.subr.bf16.mxu0 %v17153_v21 }
 0x37f   : > { %15494 = vmatmul.mubr.msk.f32.gmra.mrb[4].mxu0 %vm929_vm2, %v21444_v3 }
 0x380   : > { %15496 = vmatprep.mubr.msk.f32.mxu0 %vm929_vm2, %v21471_v44 }
 0x383   : > { %15497 = vmatmul.mubr.msk.f32.gmra.mrb[6].mxu0 %vm929_vm2, %v21460_v40 }
 0x384   : > { %15499 = vmatprep.mubr.msk.f32.mxu0 %vm929_vm2, %v21493_v5 }
 0x387   : > { %15500 = vmatmul.mubr.msk.f32.gmra.mrb[8].mxu0 %vm929_vm2, %v21482_v15 }
 0x388   : > { %15502 = vmatprep.mubr.msk.f32.mxu0 %vm929_vm2, %v21511_v34 }
 0x38a   : > { %v21702_v4 = vpop.f32.mrb[0].mxu1 }
 0x38b   : > { %15503 = vmatmul.mubr.msk.f32.gmra.mrb[10].mxu0 %vm929_vm2, %v21504_v61  ;;  %24493 = vst [vmem:[#allocation78_spill] sm:$0xff] %v21702_v4  ;;  %v21704_v27 = vpop.f32.mrb[1].mxu1 }
 0x38c   : > { %15505 = vmatprep.mubr.msk.f32.mxu0 %vm929_vm2, %v21528_v28  ;;  %24494 = vst [vmem:[#allocation79_spill] sm:$0xff] %v21704_v27 }
 0x38f   : > { %15506 = vmatmul.mubr.msk.f32.gmra.mrb[12].mxu0 %vm929_vm2, %v21523_v58 }
 0x390   : > { %15508 = vmatprep.mubr.msk.f32.mxu0 %vm929_vm2, %v21545_v19 }
 0x393   : > { %15509 = vmatmul.mubr.msk.f32.gmra.mrb[14].mxu0 %vm929_vm2, %v21540_v10 }
 0x394   : > { %15511 = vmatprep.mubr.msk.f32.mxu0 %vm929_vm2, %v21562_v26 }
 0x397   : > { %15512 = vmatmul.mubr.msk.f32.gmra.mrb[16].mxu0 %vm929_vm2, %v21557_v37 }
 0x398   : > { %15514 = vmatprep.mubr.msk.f32.mxu0 %vm929_vm2, %v21579_v52 }
 0x39b   : > { %15515 = vmatmul.mubr.msk.f32.gmra.mrb[18].mxu0 %vm929_vm2, %v21574_v32 }
 0x39c   : > { %15517 = vmatprep.mubr.msk.f32.mxu0 %vm929_vm2, %v21720_v23 }
 0x39e   : > { %v21726_v60 = vpop.f32.mrb[2].mxu1 }
 0x39f   : > { %15518 = vmatmul.mubr.msk.f32.gmra.mrb[20].mxu0 %vm929_vm2, %v20995_v13  ;;  %24495 = vst [vmem:[#allocation80_spill] sm:$0xff] %v21726_v60  ;;  %v21730_v63 = vpop.f32.mrb[3].mxu1  ;;  %v21750_v13 = vld [vmem:[#allocation3 + $0x188] sm:$0xff] }
 0x3a0   : > { %15520 = vmatprep.mubr.msk.f32.mxu0 %vm929_vm2, %v21085_v9  ;;  %24496 = vst [vmem:[#allocation81_spill] sm:$0xff] %v21730_v63  ;;  %v21746_v9 = vld [vmem:[#allocation3 + $0x180] sm:$0xff]  ;;  %v13585_v63 = vld [vmem:[%s24428_s1 + $0xc8] sm:$0xff]  ;;  %v24510_v60 = vld [vmem:[#allocation42_spill] sm:$0xff] }
 0x3a3   : > { %15521 = vmatmul.mubr.msk.f32.gmra.mrb[22].mxu0 %vm929_vm2, %v21094_v1  ;;  %v13550_v1 = vld [vmem:[%s24428_s1 + $0xb0] sm:$0xff] }
 0x3a4   : > { %15523 = vmatprep.mubr.msk.f32.mxu0 %vm929_vm2, %v21174_v54  ;;  %v13551_v54 = vld [vmem:[%s24428_s1 + $0xb8] sm:$0xff] }
 0x3a5   : > { %v17157_v14 = vpack.c.bf16 %v13551_v54, %v13550_v1  ;;  %v24502_v1 = vld [vmem:[#allocation34_spill] sm:$0xff]  ;;  %v24503_v54 = vld [vmem:[#allocation35_spill] sm:$0xff] }
 0x3a7   : > { %15524 = vmatmul.mubr.msk.f32.gmra.mrb[24].mxu0 %vm929_vm2, %v21213_v53 }
 0x3a8   : > { %15526 = vmatprep.mubr.msk.f32.mxu0 %vm929_vm2, %v21260_v16 }
 0x3ab   : > { %15527 = vmatmul.mubr.msk.f32.gmra.mrb[26].mxu0 %vm929_vm2, %v21268_v47 }
 0x3ac   : > { %15529 = vmatprep.mubr.msk.f32.mxu0 %vm929_vm2, %v21335_v48 }
 0x3af   : > { %15530 = vmatmul.mubr.msk.f32.gmra.mrb[28].mxu0 %vm929_vm2, %v21376_v18 }
 0x3b0   : > { %15532 = vmatprep.mubr.msk.f32.mxu0 %vm929_vm2, %v21746_v9 }
 0x3b3   : > { %15533 = vmatmul.mubr.msk.f32.gmra.mrb[30].mxu0 %vm929_vm2, %v21750_v13  ;;  %v21760_v2 = vpop.f32.mrb[4].mxu1 }
 0x3b4   : > { %24497 = vst [vmem:[#allocation82_spill] sm:$0xff] %v21760_v2  ;;  %15543 = vmatprep.mubr.msk.f32.mxu0 %vm929_vm2, %v20378_v38  ;;  %v21764_v35 = vpop.f32.mrb[5].mxu1  ;;  %v17161_v38 = vpack.c.bf16 %v13585_v63, %v13584_v45  ;;  %v24505_v45 = vld [vmem:[#allocation37_spill] sm:$0xff]  ;;  %v24508_v2 = vld [vmem:[#allocation40_spill] sm:$0xff] }
 0x3b5   : > { %24498 = vst [vmem:[#allocation83_spill] sm:$0xff] %v21764_v35  ;;  %v24506_v35 = vld [vmem:[#allocation38_spill] sm:$0xff] }
 0x3b7   : > { %15544 = vmatmul.mubr.msk.f32.vlgmr.msra.gmra.mrb[0].mxu0 %vm929_vm2, %v20405_v42 }
 0x3b8   : > { %15546 = vmatprep.mubr.msk.f32.mxu0 %vm929_vm2, %v20446_v17  ;;  %17156 = vmatpush3.bf16.msra.mxu0 %v17153_v21  ;;  %v24500_v21 = vld [vmem:[#allocation33_spill] sm:$0xff] }
 0x3b9   : > { %17158 = vmatprep.subr.bf16.mxu0 %v17157_v14 }
 0x3bb   : > { %15547 = vmatmul.mubr.msk.f32.gmra.mrb[2].mxu0 %vm929_vm2, %v20486_v12 }
 0x3bc   : > { %15549 = vmatprep.mubr.msk.f32.mxu0 %vm929_vm2, %v20523_v7  ;;  %17160 = vmatpush3.bf16.msra.mxu0 %v17157_v14  ;;  %v24504_v14 = vld [vmem:[#allocation36_spill] sm:$0xff] }
 0x3bd   : > { %17162 = vmatprep.subr.bf16.mxu0 %v17161_v38 }
 0x3bf   : > { %15550 = vmatmul.mubr.msk.f32.gmra.mrb[4].mxu0 %vm929_vm2, %v20565_v56 }
 0x3c0   : > { %15552 = vmatprep.mubr.msk.f32.mxu0 %vm929_vm2, %v20611_v29 }
 0x3c3   : > { %15553 = vmatmul.mubr.msk.f32.gmra.mrb[6].mxu0 %vm929_vm2, %v20648_v36 }
 0x3c4   : > { %15555 = vmatprep.mubr.msk.f32.mxu0 %vm929_vm2, %v20683_v62 }
 0x3c6   : > { %v21788_v42 = vpop.f32.mrb[6].mxu1 }
 0x3c7   : > { %24499 = vst [vmem:[#allocation84_spill] sm:$0xff] %v21788_v42  ;;  %15556 = vmatmul.mubr.msk.f32.gmra.mrb[8].mxu0 %vm929_vm2, %v24500_v21  ;;  %v21792_v63 = vpop.f32.mrb[7].mxu1  ;;  %v24507_v42 = vld [vmem:[#allocation39_spill] sm:$0xff] }
 0x3c8   : > { %24501 = vst [vmem:[#allocation33_spill] sm:$0xff] %v21792_v63  ;;  %15558 = vmatprep.mubr.msk.f32.mxu0 %vm929_vm2, %v24502_v1  ;;  %v24509_v63 = vld [vmem:[#allocation41_spill] sm:$0xff] }
 0x3cb   : > { %15559 = vmatmul.mubr.msk.f32.gmra.mrb[10].mxu0 %vm929_vm2, %v24503_v54 }
 0x3cc   : > { %15561 = vmatprep.mubr.msk.f32.mxu0 %vm929_vm2, %v24504_v14 }
 0x3cf   : > { %15562 = vmatmul.mubr.msk.f32.gmra.mrb[12].mxu0 %vm929_vm2, %v24505_v45  ;;  %v24513_v45 = vld [vmem:[#allocation43_spill] sm:$0xff] }
 0x3d0   : > { %15564 = vmatprep.mubr.msk.f32.mxu0 %vm929_vm2, %v24506_v35  ;;  %v24514_v35 = vld [vmem:[#allocation44_spill] sm:$0xff] }
 0x3d3   : > { %15565 = vmatmul.mubr.msk.f32.gmra.mrb[14].mxu0 %vm929_vm2, %v24507_v42  ;;  %v24515_v42 = vld [vmem:[#allocation45_spill] sm:$0xff] }
 0x3d4   : > { %15567 = vmatprep.mubr.msk.f32.mxu0 %vm929_vm2, %v24508_v2 }
 0x3d7   : > { %15568 = vmatmul.mubr.msk.f32.gmra.mrb[16].mxu0 %vm929_vm2, %v24509_v63 }
 0x3d8   : > { %15570 = vmatprep.mubr.msk.f32.mxu0 %vm929_vm2, %v24510_v60 }
 0x3da   : > { %v21812_v27 = vpop.f32.mrb[8].mxu1 }
 0x3db   : > { %24511 = vst [vmem:[#allocation34_spill] sm:$0xff] %v21812_v27  ;;  %v21814_v4 = vpop.f32.mrb[9].mxu1  ;;  %15571 = vmatmul.mubr.msk.f32.gmra.mrb[18].mxu0 %vm929_vm2, %v24513_v45  ;;  %v4618_v27 = vrot.slane %v21750_v13, 1 }
 0x3dc   : > { %24512 = vst [vmem:[#allocation35_spill] sm:$0xff] %v21814_v4  ;;  %15573 = vmatprep.mubr.msk.f32.mxu0 %vm929_vm2, %v24514_v35 }
 0x3df   : > { %15574 = vmatmul.mubr.msk.f32.gmra.mrb[20].mxu0 %vm929_vm2, %v24515_v42 }
 0x3e0   : > { %15576 = vmatprep.mubr.msk.f32.mxu0 %vm929_vm2, %v21338_v51  ;;  %v21839_v51 = vld [vmem:[#allocation3 + $0x190] sm:$0x3] }
 0x3e3   : > { %15577 = vmatmul.mubr.msk.f32.gmra.mrb[22].mxu0 %vm929_vm2, %v21351_v6  ;;  %v21826_v60 = vpop.f32.mrb[10].mxu1  ;;  %v24523_v6 = vld [vmem:[#allocation55_spill] sm:$0xff] }
 0x3e4   : > { %24516 = vst [vmem:[#allocation36_spill] sm:$0xff] %v21826_v60  ;;  %15579 = vmatprep.mubr.msk.f32.mxu0 %vm929_vm2, %v21364_v50  ;;  %v21830_v4 = vpop.f32.mrb[11].mxu1  ;;  %v4617_v60 = vrot.slane %v21746_v9, 1  ;;  %v13621_v50 = vld [vmem:[%s24428_s1 + $0xe8] sm:$0xff] }
 0x3e5   : > { %24517 = vst [vmem:[#allocation40_spill] sm:$0xff] %v21830_v4  ;;  %v4620_v4 = vrot.slane %v21839_v51, 1 }
 0x3e7   : > { %15580 = vmatmul.mubr.msk.f32.gmra.mrb[24].mxu0 %vm929_vm2, %v21371_v33  ;;  %v21848_v33 = vsel %vm1541_vm4, %v4617_v60, %v4618_v27  ;;  %v24521_v60 = vld [vmem:[#allocation54_spill] sm:$0xff] }
 0x3e8   : > { %15582 = vmatprep.mubr.msk.f32.mxu0 %vm929_vm2, %v21374_v41  ;;  %24518 = vst [vmem:[#allocation41_spill] sm:$0xff] %v21848_v33  ;;  %v13587_v41 = vld [vmem:[%s24428_s1 + $0xd8] sm:$0xff] }
 0x3eb   : > { %15583 = vmatmul.mubr.msk.f32.gmra.mrb[26].mxu0 %vm929_vm2, %v21383_v43  ;;  %v21853_v43 = vsel %vm1541_vm4, %v4618_v27, %v4620_v4  ;;  %v13620_v27 = vld [vmem:[%s24428_s1 + $0xe0] sm:$0xff] }
 0x3ec   : > { %15585 = vmatprep.mubr.msk.f32.mxu0 %vm929_vm2, %v21398_v25  ;;  %24519 = vst [vmem:[#allocation43_spill] sm:$0xff] %v21853_v43  ;;  %v13586_v25 = vld [vmem:[%s24428_s1 + $0xd0] sm:$0xff] }
 0x3ed   : > { %v17165_v4 = vpack.c.bf16 %v13587_v41, %v13586_v25  ;;  %v24526_v41 = vld [vmem:[#allocation58_spill] sm:$0xff]  ;;  %v24527_v25 = vld [vmem:[#allocation59_spill] sm:$0xff] }
 0x3ef   : > { %15586 = vmatmul.mubr.msk.f32.gmra.mrb[28].mxu0 %vm929_vm2, %v21419_v30 }
 0x3f0   : > { %15588 = vmatprep.mubr.msk.f32.mxu0 %vm929_vm2, %v21848_v33 }
 0x3f3   : > { %15589 = vmatmul.mubr.msk.f32.gmra.mrb[30].mxu0 %vm929_vm2, %v21853_v43  ;;  %v21863_v30 = vpop.f32.mrb[12].mxu1  ;;  %v24524_v43 = vld [vmem:[#allocation56_spill] sm:$0xff] }
 0x3f4   : > { %24520 = vst [vmem:[#allocation44_spill] sm:$0xff] %v21863_v30  ;;  %15599 = vmatprep.mubr.msk.f32.mxu0 %vm929_vm2, %v24521_v60  ;;  %v21867_v33 = vpop.f32.mrb[13].mxu1  ;;  %v17169_v60 = vpack.c.bf16 %v13621_v50, %v13620_v27  ;;  %v24525_v30 = vld [vmem:[#allocation57_spill] sm:$0xff]  ;;  %v24532_v50 = vld [vmem:[#allocation62_spill] sm:$0xff] }
 0x3f5   : > { %24522 = vst [vmem:[#allocation45_spill] sm:$0xff] %v21867_v33  ;;  %v24528_v33 = vld [vmem:[#allocation60_spill] sm:$0xff] }
 0x3f7   : > { %15600 = vmatmul.mubr.msk.f32.vlgmr.msra.gmra.mrb[0].mxu0 %vm929_vm2, %v24523_v6 }
 0x3f8   : > { %15602 = vmatprep.mubr.msk.f32.mxu0 %vm929_vm2, %v24524_v43  ;;  %17164 = vmatpush3.bf16.msra.mxu0 %v17161_v38  ;;  %v24531_v38 = vld [vmem:[#allocation61_spill] sm:$0xff] }
 0x3f9   : > { %17166 = vmatprep.subr.bf16.mxu0 %v17165_v4 }
 0x3fb   : > { %15603 = vmatmul.mubr.msk.f32.gmra.mrb[2].mxu0 %vm929_vm2, %v24525_v30 }
 0x3fc   : > { %15605 = vmatprep.mubr.msk.f32.mxu0 %vm929_vm2, %v24526_v41  ;;  %17168 = vmatpush3.bf16.msra.mxu0 %v17165_v4  ;;  %v24535_v41 = vld [vmem:[#allocation63_spill] sm:$0xff] }
 0x3fd   : > { %17170 = vmatprep.subr.bf16.mxu0 %v17169_v60 }
 0x3ff   : > { %15606 = vmatmul.mubr.msk.f32.gmra.mrb[4].mxu0 %vm929_vm2, %v24527_v25  ;;  %v24536_v25 = vld [vmem:[#allocation64_spill] sm:$0xff] }
 0x400   : > { %15608 = vmatprep.mubr.msk.f32.mxu0 %vm929_vm2, %v24528_v33 }
 0x402   : > { %v21887_v6 = vpop.f32.mrb[14].mxu1 }
 0x403   : > { %24529 = vst [vmem:[#allocation54_spill] sm:$0xff] %v21887_v6  ;;  %v21889_v43 = vpop.f32.mrb[15].mxu1  ;;  %15609 = vmatmul.mubr.msk.f32.gmra.mrb[6].mxu0 %vm929_vm2, %v24531_v38  ;;  %v24540_v38 = vld [vmem:[#allocation66_spill] sm:$0xff] }
 0x404   : > { %24530 = vst [vmem:[#allocation55_spill] sm:$0xff] %v21889_v43  ;;  %15611 = vmatprep.mubr.msk.f32.mxu0 %vm929_vm2, %v24532_v50  ;;  %v24539_v43 = vld [vmem:[#allocation65_spill] sm:$0xff] }
 0x406   : > { %v21895_v27 = vpop.f32.mrb[16].mxu1 }
 0x407   : > { %24533 = vst [vmem:[#allocation57_spill] sm:$0xff] %v21895_v27  ;;  %v21897_v4 = vpop.f32.mrb[17].mxu1  ;;  %15612 = vmatmul.mubr.msk.f32.gmra.mrb[8].mxu0 %vm929_vm2, %v24535_v41  ;;  %v24544_v41 = vld [vmem:[#allocation68_spill] sm:$0xff] }
 0x408   : > { %24534 = vst [vmem:[#allocation85_spill] sm:$0xff] %v21897_v4  ;;  %15614 = vmatprep.mubr.msk.f32.mxu0 %vm929_vm2, %v24536_v25  ;;  %v24543_v4 = vld [vmem:[#allocation67_spill] sm:$0xff]  ;;  %v24545_v25 = vld [vmem:[#allocation69_spill] sm:$0xff] }
 0x40a   : > { %v21903_v33 = vpop.f32.mrb[18].mxu1 }
 0x40b   : > { %24537 = vst [vmem:[#allocation86_spill] sm:$0xff] %v21903_v33  ;;  %v21905_v6 = vpop.f32.mrb[19].mxu1  ;;  %15615 = vmatmul.mubr.msk.f32.gmra.mrb[10].mxu0 %vm929_vm2, %v24539_v43  ;;  %v24549_v33 = vld [vmem:[#allocation74_spill] sm:$0xff] }
 0x40c   : > { %24538 = vst [vmem:[#allocation87_spill] sm:$0xff] %v21905_v6  ;;  %15617 = vmatprep.mubr.msk.f32.mxu0 %vm929_vm2, %v24540_v38  ;;  %v24546_v6 = vld [vmem:[#allocation70_spill] sm:$0xff] }
 0x40e   : > { %v21911_v50 = vpop.f32.mrb[20].mxu1 }
 0x40f   : > { %24541 = vst [vmem:[#allocation65_spill] sm:$0xff] %v21911_v50  ;;  %v21913_v27 = vpop.f32.mrb[21].mxu1  ;;  %15618 = vmatmul.mubr.msk.f32.gmra.mrb[12].mxu0 %vm929_vm2, %v24543_v4  ;;  %v24548_v50 = vld [vmem:[#allocation72_spill] sm:$0xff] }
 0x410   : > { %24542 = vst [vmem:[#allocation66_spill] sm:$0xff] %v21913_v27  ;;  %15620 = vmatprep.mubr.msk.f32.mxu0 %vm929_vm2, %v24544_v41  ;;  %v24547_v27 = vld [vmem:[#allocation71_spill] sm:$0xff] }
 0x413   : > { %15621 = vmatmul.mubr.msk.f32.gmra.mrb[14].mxu0 %vm929_vm2, %v24545_v25 }
 0x414   : > { %15623 = vmatprep.mubr.msk.f32.mxu0 %vm929_vm2, %v24546_v6 }
 0x417   : > { %15624 = vmatmul.mubr.msk.f32.gmra.mrb[16].mxu0 %vm929_vm2, %v21583_v0 }
 0x418   : > { %15626 = vmatprep.mubr.msk.f32.mxu0 %vm929_vm2, %v21589_v57 }
 0x41b   : > { %15627 = vmatmul.mubr.msk.f32.gmra.mrb[18].mxu0 %vm929_vm2, %v21596_v31 }
 0x41c   : > { %15629 = vmatprep.mubr.msk.f32.mxu0 %vm929_vm2, %v24547_v27  ;;  %v4889_v27 = vrot.slane %v21750_v13, 2 }
 0x41f   : > { %15630 = vmatmul.mubr.msk.f32.gmra.mrb[20].mxu0 %vm929_vm2, %v21609_v39 }
 0x420   : > { %15632 = vmatprep.mubr.msk.f32.mxu0 %vm929_vm2, %v24548_v50  ;;  %v4888_v50 = vrot.slane %v21746_v9, 2 }
 0x423   : > { %15633 = vmatmul.mubr.msk.f32.gmra.mrb[22].mxu0 %vm929_vm2, %v21622_v11  ;;  %v4891_v11 = vrot.slane %v21839_v51, 2  ;;  %v13623_v51 = vld [vmem:[%s24428_s1 + $0xf8] sm:$0xff] }
 0x424   : > { %15635 = vmatprep.mubr.msk.f32.mxu0 %vm929_vm2, %v24549_v33 }
 0x427   : > { %15636 = vmatmul.mubr.msk.f32.gmra.mrb[24].mxu0 %vm929_vm2, %v21635_v49  ;;  %v21953_v49 = vsel %vm1790_vm5, %v4888_v50, %v4889_v27 }
 0x428   : > { %15638 = vmatprep.mubr.msk.f32.mxu0 %vm929_vm2, %v21641_v55  ;;  %v21958_v55 = vsel %vm1790_vm5, %v4889_v27, %v4891_v11  ;;  %v13656_v11 = vld [vmem:[%s24428_s1 + $0x100] sm:$0xff]  ;;  %v13657_v27 = vld [vmem:[%s24428_s1 + $0x108] sm:$0xff] }
 0x429   : > { %24550 = vst [vmem:[#allocation67_spill] sm:$0xff] %v21958_v55 }
 0x42b   : > { %15639 = vmatmul.mubr.msk.f32.gmra.mrb[26].mxu0 %vm929_vm2, %v21648_v46 }
 0x42c   : > { %15641 = vmatprep.mubr.msk.f32.mxu0 %vm929_vm2, %v21654_v20  ;;  %v13622_v20 = vld [vmem:[%s24428_s1 + $0xf0] sm:$0xff] }
 0x42d   : > { %v17173_v50 = vpack.c.bf16 %v13623_v51, %v13622_v20  ;;  %v24567_v20 = vld [vmem:[#allocation59_spill] sm:$0xff] }
 0x42f   : > { %15642 = vmatmul.mubr.msk.f32.gmra.mrb[28].mxu0 %vm929_vm2, %v21659_v24 }
 0x430   : > { %15644 = vmatprep.mubr.msk.f32.mxu0 %vm929_vm2, %v21953_v49 }
 0x433   : > { %15645 = vmatmul.mubr.msk.f32.gmra.mrb[30].mxu0 %vm929_vm2, %v21958_v55  ;;  %v17177_v55 = vpack.c.bf16 %v13657_v27, %v13656_v11 }
 0x434   : > { %15655 = vmatprep.mubr.msk.f32.mxu0 %vm929_vm2, %v21431_v59  ;;  %v18992_v59 = vld [vmem:[#allocation3 + $0x120] sm:$0xff] }
 0x437   : > { %15656 = vmatmul.mubr.msk.f32.vlgmr.msra.gmra.mrb[0].mxu0 %vm929_vm2, %v21425_v8  ;;  %v18991_v8 = vld [vmem:[#allocation3 + $0x110] sm:$0xff] }
 0x438   : > { %15658 = vmatprep.mubr.msk.f32.mxu0 %vm929_vm2, %v21449_v22  ;;  %17172 = vmatpush3.bf16.msra.mxu0 %v17169_v60  ;;  %v18994_v22 = vld [vmem:[#allocation3 + $0x138] sm:$0xff] }
 0x439   : > { %17174 = vmatprep.subr.bf16.mxu0 %v17173_v50 }
 0x43b   : > { %15659 = vmatmul.mubr.msk.f32.gmra.mrb[2].mxu0 %vm929_vm2, %v21444_v3  ;;  %v18993_v3 = vld [vmem:[#allocation3 + $0x128] sm:$0xff] }
 0x43c   : > { %15661 = vmatprep.mubr.msk.f32.mxu0 %vm929_vm2, %v21471_v44  ;;  %17176 = vmatpush3.bf16.msra.mxu0 %v17173_v50  ;;  %v24559_v44 = vld [vmem:[#allocation50_spill] sm:$0xff] }
 0x43d   : > { %17178 = vmatprep.subr.bf16.mxu0 %v17177_v55 }
 0x43f   : > { %15662 = vmatmul.mubr.msk.f32.gmra.mrb[4].mxu0 %vm929_vm2, %v21460_v40  ;;  %v22028_v40 = vld [vmem:[#allocation3 + $0x198] sm:$0xff] }
 0x440   : > { %15664 = vmatprep.mubr.msk.f32.mxu0 %vm929_vm2, %v21493_v5  ;;  %v5428_v5 = vrot.slane %v22028_v40, 1 }
 0x443   : > { %15665 = vmatmul.mubr.msk.f32.gmra.mrb[6].mxu0 %vm929_vm2, %v21482_v15  ;;  %v24561_v15 = vld [vmem:[#allocation52_spill] sm:$0xff] }
 0x444   : > { %15667 = vmatprep.mubr.msk.f32.mxu0 %vm929_vm2, %v21511_v34  ;;  %v3226_v34 = vld [vmem:[#allocation3 + $0x1a8] sm:$0x3] }
 0x447   : > { %15668 = vmatmul.mubr.msk.f32.gmra.mrb[8].mxu0 %vm929_vm2, %v21504_v61  ;;  %v24560_v61 = vld [vmem:[#allocation51_spill] sm:$0xff] }
 0x448   : > { %15670 = vmatprep.mubr.msk.f32.mxu0 %vm929_vm2, %v21528_v28 }
 0x44b   : > { %15671 = vmatmul.mubr.msk.f32.gmra.mrb[10].mxu0 %vm929_vm2, %v21523_v58  ;;  %v5431_v58 = vrot.slane %v3226_v34, 1 }
 0x44c   : > { %15673 = vmatprep.mubr.msk.f32.mxu0 %vm929_vm2, %v21545_v19  ;;  %v24563_v19 = vld [vmem:[#allocation41_spill] sm:$0xff] }
 0x44f   : > { %15674 = vmatmul.mubr.msk.f32.gmra.mrb[12].mxu0 %vm929_vm2, %v21540_v10  ;;  %v24562_v10 = vld [vmem:[#allocation53_spill] sm:$0xff] }
 0x450   : > { %15676 = vmatprep.mubr.msk.f32.mxu0 %vm929_vm2, %v21562_v26  ;;  %v24564_v26 = vld [vmem:[#allocation43_spill] sm:$0xff] }
 0x453   : > { %15677 = vmatmul.mubr.msk.f32.gmra.mrb[14].mxu0 %vm929_vm2, %v21557_v37 }
 0x454   : > { %15679 = vmatprep.mubr.msk.f32.mxu0 %vm929_vm2, %v21579_v52  ;;  %v24565_v52 = vld [vmem:[#allocation56_spill] sm:$0xff] }
 0x457   : > { %15680 = vmatmul.mubr.msk.f32.gmra.mrb[16].mxu0 %vm929_vm2, %v21574_v32 }
 0x458   : > { %15682 = vmatprep.mubr.msk.f32.mxu0 %vm929_vm2, %v21720_v23  ;;  %v24568_v23 = vld [vmem:[#allocation60_spill] sm:$0xff] }
 0x45b   : > { %15683 = vmatmul.mubr.msk.f32.gmra.mrb[18].mxu0 %vm929_vm2, %v18991_v8 }
 0x45c   : > { %15685 = vmatprep.mubr.msk.f32.mxu0 %vm929_vm2, %v18992_v59 }
 0x45f   : > { %15686 = vmatmul.mubr.msk.f32.gmra.mrb[20].mxu0 %vm929_vm2, %v18993_v3 }
 0x460   : > { %15688 = vmatprep.mubr.msk.f32.mxu0 %vm929_vm2, %v18994_v22 }
 0x463   : > { %15689 = vmatmul.mubr.msk.f32.gmra.mrb[22].mxu0 %vm929_vm2, %v21213_v53  ;;  %v22034_v53 = vld [vmem:[#allocation3 + $0x1a0] sm:$0xff] }
 0x464   : > { %15691 = vmatprep.mubr.msk.f32.mxu0 %vm929_vm2, %v21260_v16  ;;  %v13658_v16 = vld [vmem:[%s24428_s1 + $0x110] sm:$0xff]  ;;  %v5429_v28 = vrot.slane %v22034_v53, 1 }
 0x466   : > { %v5430_v37 = vsel %vm1541_vm4, %v5428_v5, %v5429_v28  ;;  %v5432_v32 = vsel %vm1541_vm4, %v5429_v28, %v5431_v58 }
 0x467   : > { %15692 = vmatmul.mubr.msk.f32.gmra.mrb[24].mxu0 %vm929_vm2, %v21268_v47  ;;  %v13659_v47 = vld [vmem:[%s24428_s1 + $0x118] sm:$0xff] }
 0x468   : > { %15694 = vmatprep.mubr.msk.f32.mxu0 %vm929_vm2, %v21335_v48  ;;  %v17181_v48 = vpack.c.bf16 %v13659_v47, %v13658_v16 }
 0x46b   : > { %15695 = vmatmul.mubr.msk.f32.gmra.mrb[26].mxu0 %vm929_vm2, %v21376_v18  ;;  %v24558_v18 = vld [vmem:[#allocation49_spill] sm:$0xff] }
 0x46c   : > { %15697 = vmatprep.mubr.msk.f32.mxu0 %vm929_vm2, %v21746_v9  ;;  %v24569_v9 = vld [vmem:[#allocation61_spill] sm:$0xff] }
 0x46f   : > { %15698 = vmatmul.mubr.msk.f32.gmra.mrb[28].mxu0 %vm929_vm2, %v21750_v13  ;;  %v24570_v13 = vld [vmem:[#allocation62_spill] sm:$0xff] }
 0x470   : > { %15700 = vmatprep.mubr.msk.f32.mxu0 %vm929_vm2, %v22028_v40 }
 0x473   : > { %15701 = vmatmul.mubr.msk.f32.gmra.mrb[30].mxu0 %vm929_vm2, %v22034_v53 }
 0x474   : > { %15711 = vmatprep.mubr.msk.f32.mxu0 %vm929_vm2, %v20446_v17  ;;  %v24551_v17 = vld [vmem:[#allocation37_spill] sm:$0xff] }
 0x477   : > { %15712 = vmatmul.mubr.msk.f32.vlgmr.msra.gmra.mrb[0].mxu0 %vm929_vm2, %v20486_v12  ;;  %v24552_v12 = vld [vmem:[#allocation38_spill] sm:$0xff] }
 0x478   : > { %15714 = vmatprep.mubr.msk.f32.mxu0 %vm929_vm2, %v20523_v7  ;;  %17180 = vmatpush3.bf16.msra.mxu0 %v17177_v55  ;;  %v24553_v7 = vld [vmem:[#allocation39_spill] sm:$0xff]  ;;  %v24566_v55 = vld [vmem:[#allocation58_spill] sm:$0xff] }
 0x479   : > { %17182 = vmatprep.subr.bf16.mxu0 %v17181_v48 }
 0x47b   : > { %15715 = vmatmul.mubr.msk.f32.gmra.mrb[2].mxu0 %vm929_vm2, %v20565_v56  ;;  %v24554_v56 = vld [vmem:[#allocation42_spill] sm:$0xff] }
 0x47c   : > { %15717 = vmatprep.mubr.msk.f32.mxu0 %vm929_vm2, %v20611_v29  ;;  %17184 = vmatpush3.bf16.msra.mxu0 %v17181_v48  ;;  %v24555_v29 = vld [vmem:[#allocation46_spill] sm:$0xff] }
 0x47f   : > { %15718 = vmatmul.mubr.msk.f32.gmra.mrb[4].mxu0 %vm929_vm2, %v20648_v36  ;;  %v24556_v36 = vld [vmem:[#allocation47_spill] sm:$0xff] }
 0x480   : > { %15720 = vmatprep.mubr.msk.f32.mxu0 %vm929_vm2, %v20683_v62  ;;  %v24557_v62 = vld [vmem:[#allocation48_spill] sm:$0xff] }
 0x483   : > { %15721 = vmatmul.mubr.msk.f32.gmra.mrb[6].mxu0 %vm929_vm2, %v24500_v21  ;;  %v5700_v21 = vrot.slane %v22034_v53, 2 }
 0x484   : > { %15723 = vmatprep.mubr.msk.f32.mxu0 %vm929_vm2, %v24502_v1  ;;  %v24579_v1 = vld [vmem:[#allocation67_spill] sm:$0xff] }
 0x487   : > { %15724 = vmatmul.mubr.msk.f32.gmra.mrb[8].mxu0 %vm929_vm2, %v24503_v54  ;;  %v6234_v54 = vld [vmem:[%s24580_s27 + $0x8] sm:$0xff] }
 0x488   : > { %15726 = vmatprep.mubr.msk.f32.mxu0 %vm929_vm2, %v24504_v14  ;;  %6313 = vmatprep.mubr.f32.mxu1 %v6234_v54 }
 0x48b   : > { %15727 = vmatmul.mubr.msk.f32.gmra.mrb[10].mxu0 %vm929_vm2, %v24551_v17 }
 0x48c   : > { %15729 = vmatprep.mubr.msk.f32.mxu0 %vm929_vm2, %v24552_v12 }
 0x48f   : > { %15730 = vmatmul.mubr.msk.f32.gmra.mrb[12].mxu0 %vm929_vm2, %v24553_v7 }
 0x490   : > { %15732 = vmatprep.mubr.msk.f32.mxu0 %vm929_vm2, %v24508_v2  ;;  %v24571_v2 = vld [vmem:[#allocation63_spill] sm:$0xff] }
 0x493   : > { %15733 = vmatmul.mubr.msk.f32.gmra.mrb[14].mxu0 %vm929_vm2, %v24509_v63 }
 0x494   : > { %15735 = vmatprep.mubr.msk.f32.mxu0 %vm929_vm2, %v24554_v56 }
 0x497   : > { %15736 = vmatmul.mubr.msk.f32.gmra.mrb[16].mxu0 %vm929_vm2, %v24513_v45 }
 0x498   : > { %15738 = vmatprep.mubr.msk.f32.mxu0 %vm929_vm2, %v24514_v35  ;;  %v24572_v35 = vld [vmem:[#allocation64_spill] sm:$0xff] }
 0x49b   : > { %15739 = vmatmul.mubr.msk.f32.gmra.mrb[18].mxu0 %vm929_vm2, %v24515_v42  ;;  %v24575_v42 = vld [vmem:[#allocation73_spill] sm:$0xff] }
 0x49c   : > { %15741 = vmatprep.mubr.msk.f32.mxu0 %vm929_vm2, %v24555_v29 }
 0x49f   : > { %15742 = vmatmul.mubr.msk.f32.gmra.mrb[20].mxu0 %vm929_vm2, %v24556_v36 }
 0x4a0   : > { %15744 = vmatprep.mubr.msk.f32.mxu0 %vm929_vm2, %v24557_v62 }
 0x4a3   : > { %15745 = vmatmul.mubr.msk.f32.gmra.mrb[22].mxu0 %vm929_vm2, %v24558_v18 }
 0x4a4   : > { %15747 = vmatprep.mubr.msk.f32.mxu0 %vm929_vm2, %v24559_v44 }
 0x4a7   : > { %15748 = vmatmul.mubr.msk.f32.gmra.mrb[24].mxu0 %vm929_vm2, %v24560_v61 }
 0x4a8   : > { %15750 = vmatprep.mubr.msk.f32.mxu0 %vm929_vm2, %v24561_v15 }
 0x4ab   : > { %15751 = vmatmul.mubr.msk.f32.gmra.mrb[26].mxu0 %vm929_vm2, %v24562_v10 }
 0x4ac   : > { %15753 = vmatprep.mubr.msk.f32.mxu0 %vm929_vm2, %v24563_v19 }
 0x4af   : > { %15754 = vmatmul.mubr.msk.f32.gmra.mrb[28].mxu0 %vm929_vm2, %v24564_v26 }
 0x4b0   : > { %15756 = vmatprep.mubr.msk.f32.mxu0 %vm929_vm2, %v5430_v37  ;;  %v24581_v37 = vld [vmem:[#allocation78_spill] sm:$0xff] }
 0x4b3   : > { %15757 = vmatmul.mubr.msk.f32.gmra.mrb[30].mxu0 %vm929_vm2, %v5432_v32 }
 0x4b4   : > { %15767 = vmatprep.mubr.msk.f32.mxu0 %vm929_vm2, %v24565_v52  ;;  %v24582_v52 = vld [vmem:[#allocation79_spill] sm:$0xff] }
 0x4b7   : > { %15768 = vmatmul.mubr.msk.f32.vlgmr.msra.gmra.mrb[0].mxu0 %vm929_vm2, %v24525_v30  ;;  %v24574_v30 = vld [vmem:[#allocation72_spill] sm:$0xff] }
 0x4b8   : > { %15770 = vmatprep.mubr.msk.f32.mxu0 %vm929_vm2, %v24566_v55 }
 0x4bb   : > { %15771 = vmatmul.mubr.msk.f32.gmra.mrb[2].mxu0 %vm929_vm2, %v24567_v20 }
 0x4bc   : > { %15773 = vmatprep.mubr.msk.f32.mxu0 %vm929_vm2, %v24568_v23 }
 0x4bf   : > { %15774 = vmatmul.mubr.msk.f32.gmra.mrb[4].mxu0 %vm929_vm2, %v24569_v9 }
 0x4c0   : > { %15776 = vmatprep.mubr.msk.f32.mxu0 %vm929_vm2, %v24570_v13 }
 0x4c3   : > { %15777 = vmatmul.mubr.msk.f32.gmra.mrb[6].mxu0 %vm929_vm2, %v24571_v2 }
 0x4c4   : > { %15779 = vmatprep.mubr.msk.f32.mxu0 %vm929_vm2, %v24572_v35 }
 0x4c7   : > { %15780 = vmatmul.mubr.msk.f32.gmra.mrb[8].mxu0 %vm929_vm2, %v24539_v43  ;;  %v24573_v43 = vld [vmem:[#allocation71_spill] sm:$0xff] }
 0x4c8   : > { %15782 = vmatprep.mubr.msk.f32.mxu0 %vm929_vm2, %v24540_v38 }
 0x4cb   : > { %15783 = vmatmul.mubr.msk.f32.gmra.mrb[10].mxu0 %vm929_vm2, %v24543_v4 }
 0x4cc   : > { %15785 = vmatprep.mubr.msk.f32.mxu0 %vm929_vm2, %v24544_v41 }
 0x4cf   : > { %15786 = vmatmul.mubr.msk.f32.gmra.mrb[12].mxu0 %vm929_vm2, %v24545_v25 }
 0x4d0   : > { %15788 = vmatprep.mubr.msk.f32.mxu0 %vm929_vm2, %v24546_v6 }
 0x4d3   : > { %15789 = vmatmul.mubr.msk.f32.gmra.mrb[14].mxu0 %vm929_vm2, %v21583_v0  ;;  %v24576_v0 = vld [vmem:[#allocation75_spill] sm:$0xff] }
 0x4d4   : > { %15791 = vmatprep.mubr.msk.f32.mxu0 %vm929_vm2, %v21589_v57  ;;  %v24577_v57 = vld [vmem:[#allocation76_spill] sm:$0xff] }
 0x4d7   : > { %15792 = vmatmul.mubr.msk.f32.gmra.mrb[16].mxu0 %vm929_vm2, %v21596_v31  ;;  %v24578_v31 = vld [vmem:[#allocation77_spill] sm:$0xff] }
 0x4d8   : > { %15794 = vmatprep.mubr.msk.f32.mxu0 %vm929_vm2, %v24573_v43 }
 0x4db   : > { %15795 = vmatmul.mubr.msk.f32.gmra.mrb[18].mxu0 %vm929_vm2, %v21609_v39  ;;  %v5699_v39 = vrot.slane %v22028_v40, 2 }
 0x4dc   : > { %15797 = vmatprep.mubr.msk.f32.mxu0 %vm929_vm2, %v24574_v30 }
 0x4dd   : > { %v5701_v63 = vsel %vm1790_vm5, %v5699_v39, %v5700_v21  ;;  %v24584_v39 = vld [vmem:[#allocation81_spill] sm:$0xff] }
 0x4df   : > { %15798 = vmatmul.mubr.msk.f32.gmra.mrb[20].mxu0 %vm929_vm2, %v24575_v42  ;;  %v24583_v42 = vld [vmem:[#allocation80_spill] sm:$0xff] }
 0x4e0   : > { %15800 = vmatprep.mubr.msk.f32.mxu0 %vm929_vm2, %v24549_v33  ;;  %v5702_v33 = vrot.slane %v3226_v34, 2 }
 0x4e3   : > { %15801 = vmatmul.mubr.msk.f32.gmra.mrb[22].mxu0 %vm929_vm2, %v24576_v0 }
 0x4e4   : > { %15803 = vmatprep.mubr.msk.f32.mxu0 %vm929_vm2, %v24577_v57 }
 0x4e7   : > { %15804 = vmatmul.mubr.msk.f32.gmra.mrb[24].mxu0 %vm929_vm2, %v21648_v46  ;;  %v5703_v46 = vsel %vm1790_vm5, %v5700_v21, %v5702_v33 }
 0x4e8   : > { %15806 = vmatprep.mubr.msk.f32.mxu0 %vm929_vm2, %v24578_v31 }
 0x4eb   : > { %15807 = vmatmul.mubr.msk.f32.gmra.mrb[26].mxu0 %vm929_vm2, %v21659_v24  ;;  %v22179_v24 = vld [vmem:[#allocation10] ss:$0 sm:$0xff] }
 0x4ec   : > { %15809 = vmatprep.mubr.msk.f32.mxu0 %vm929_vm2, %v21953_v49 }
 0x4ef   : > { %15810 = vmatmul.mubr.msk.f32.gmra.mrb[28].mxu0 %vm929_vm2, %v24579_v1 }
 0x4f0   : > { %15812 = vmatprep.mubr.msk.f32.mxu0 %vm929_vm2, %v5701_v63 }
 0x4f3   : > { %15813 = vmatmul.mubr.msk.f32.gmra.mrb[30].mxu0 %vm929_vm2, %v5703_v46 }
 0x58a   : > { %v15769_v49 = vpop.f32.mrb[0].mxu0 }
 0x58b   : > { %v22182_v14 = vadd.f32 %v15769_v49, %v22179_v24  ;;  %v5779_v45 = vpop.f32.mrb[1].mxu0 }
 0x58c   : > { %v22185_v60 = vadd.f32 %v22179_v24, %v5779_v45 }
 0x58d   : > { %v13694_v41 = vmul.f32 -1.442695, %v22182_v14 }
 0x58e   : > { %v13693_v25 = vmul.f32 -1.442695, %v22185_v60  ;;  %v15772_v6 = vpop.f32.mrb[2].mxu0 }
 0x58f   : > { %18680 = vpow2.f32 %v13694_v41  ;;  %v22190_v38 = vadd.f32 %v15772_v6, %v22179_v24  ;;  %v5789_v4 = vpop.f32.mrb[3].mxu0  ;;  %v24585_v6 = vld [vmem:[#allocation82_spill] sm:$0xff] }
 0x590   : > { %18682 = vpow2.f32 %v13693_v25  ;;  %v22193_v51 = vadd.f32 %v22179_v24, %v5789_v4 }
 0x591   : > { %v13696_v50 = vmul.f32 -1.442695, %v22190_v38 }
 0x592   : > { %v13695_v11 = vmul.f32 -1.442695, %v22193_v51  ;;  %v15775_v27 = vpop.f32.mrb[4].mxu0 }
 0x593   : > { %18684 = vpow2.f32 %v13696_v50  ;;  %v22198_v8 = vadd.f32 %v15775_v27, %v22179_v24  ;;  %v5799_v59 = vpop.f32.mrb[5].mxu0 }
 0x594   : > { %18686 = vpow2.f32 %v13695_v11  ;;  %v22201_v3 = vadd.f32 %v22179_v24, %v5799_v59 }
 0x595   : > { %v13698_v22 = vmul.f32 -1.442695, %v22198_v8 }
 0x596   : > { %v13697_v40 = vmul.f32 -1.442695, %v22201_v3  ;;  %v15778_v53 = vpop.f32.mrb[6].mxu0 }
 0x597   : > { %18688 = vpow2.f32 %v13698_v22  ;;  %v22206_v16 = vadd.f32 %v15778_v53, %v22179_v24  ;;  %v5809_v47 = vpop.f32.mrb[7].mxu0  ;;  %v24586_v22 = vld [vmem:[#allocation83_spill] sm:$0xff] }
 0x598   : > { %18690 = vpow2.f32 %v13697_v40  ;;  %v22209_v48 = vadd.f32 %v22179_v24, %v5809_v47 }
 0x599   : > { %v18681_v17 = vpop.eup %18680  ;;  %v13700_v12 = vmul.f32 -1.442695, %v22206_v16 }
 0x59a   : > { %v18683_v7 = vpop.eup %18682  ;;  %v6106_v56 = vadd.f32 1.0, %v18681_v17  ;;  %v13699_v29 = vmul.f32 -1.442695, %v22209_v48  ;;  %v15781_v36 = vpop.f32.mrb[8].mxu0 }
 0x59b   : > { %v6105_v62 = vadd.f32 1.0, %v18683_v7  ;;  %18692 = vpow2.f32 %v13700_v12  ;;  %v22214_v18 = vadd.f32 %v15781_v36, %v22179_v24  ;;  %v5819_v44 = vpop.f32.mrb[9].mxu0 }
 0x59c   : > { %18694 = vrcp.f32 %v6106_v56  ;;  %v22217_v61 = vadd.f32 %v22179_v24, %v5819_v44  ;;  %v24587_v44 = vld [vmem:[#allocation84_spill] sm:$0xff] }
 0x59d   : > { %v18685_v15 = vpop.eup %18684  ;;  %18696 = vrcp.f32 %v6105_v62  ;;  %v13702_v5 = vmul.f32 -1.442695, %v22214_v18 }
 0x59e   : > { %v18687_v28 = vpop.eup %18686  ;;  %v6108_v34 = vadd.f32 1.0, %v18685_v15  ;;  %18698 = vpow2.f32 %v13699_v29  ;;  %v13701_v10 = vmul.f32 -1.442695, %v22217_v61  ;;  %v15784_v19 = vpop.f32.mrb[10].mxu0 }
 0x59f   : > { %v6107_v58 = vadd.f32 1.0, %v18687_v28  ;;  %18700 = vpow2.f32 %v13702_v5  ;;  %v17965_v26 = vadd.f32 %v15784_v19, %v24581_v37  ;;  %v5829_v32 = vpop.f32.mrb[11].mxu0  ;;  %v24588_v19 = vld [vmem:[#allocation33_spill] sm:$0xff] }
 0x5a0   : > { %18702 = vrcp.f32 %v6108_v34  ;;  %v17966_v55 = vadd.f32 %v5829_v32, %v24582_v52 }
 0x5a1   : > { %v18689_v20 = vpop.eup %18688  ;;  %18704 = vrcp.f32 %v6107_v58  ;;  %v22224_v23 = vadd.f32 %v17965_v26, %v22179_v24 }
 0x5a2   : > { %v18691_v9 = vpop.eup %18690  ;;  %v6110_v13 = vadd.f32 1.0, %v18689_v20  ;;  %18706 = vpow2.f32 %v13701_v10  ;;  %v22227_v2 = vadd.f32 %v17966_v55, %v22179_v24  ;;  %v15787_v35 = vpop.f32.mrb[12].mxu0 }
 0x5a3   : > { %v6109_v43 = vadd.f32 1.0, %v18691_v9  ;;  %v13704_v30 = vmul.f32 -1.442695, %v22224_v23  ;;  %v17967_v0 = vadd.f32 %v15787_v35, %v24583_v42  ;;  %v5839_v57 = vpop.f32.mrb[13].mxu0 }
 0x5a4   : > { %18708 = vrcp.f32 %v6110_v13  ;;  %v13703_v31 = vmul.f32 -1.442695, %v22227_v2  ;;  %v17968_v21 = vadd.f32 %v5839_v57, %v24584_v39  ;;  %v24589_v13 = vld [vmem:[#allocation34_spill] sm:$0xff]  ;;  %v24590_v57 = vld [vmem:[#allocation35_spill] sm:$0xff] }
 0x5a5   : > { %v18693_v33 = vpop.eup %18692  ;;  %18710 = vrcp.f32 %v6109_v43  ;;  %v22234_v63 = vadd.f32 %v17967_v0, %v22179_v24 }
 0x5a6   : > { %v18695_v1 = vpop.eup %18694  ;;  %v6112_v46 = vadd.f32 1.0, %v18693_v33  ;;  %18712 = vpow2.f32 %v13704_v30  ;;  %v22237_v54 = vadd.f32 %v17968_v21, %v22179_v24  ;;  %v15790_v49 = vpop.f32.mrb[14].mxu0 }
 0x5a7   : > { %v18697_v45 = vpop.eup %18696  ;;  %v22240_v41 = vmul.f32 %v18695_v1, %v22182_v14  ;;  %18714 = vpow2.f32 %v13703_v31  ;;  %v13706_v25 = vmul.f32 -1.442695, %v22234_v63  ;;  %v17969_v4 = vadd.f32 %v15790_v49, %v24585_v6  ;;  %v5849_v50 = vpop.f32.mrb[15].mxu0 }
 0x5a8   : > { %v18699_v11 = vpop.eup %18698  ;;  %v22245_v27 = vmul.f32 %v18697_v45, %v22185_v60  ;;  %18716 = vrcp.f32 %v6112_v46  ;;  %v13705_v59 = vmul.f32 -1.442695, %v22237_v54  ;;  %v17970_v40 = vadd.f32 %v5849_v50, %v24586_v22 }
 0x5a9   : > { %v18701_v53 = vpop.eup %18700  ;;  %v6111_v47 = vadd.f32 1.0, %v18699_v11  ;;  %18718 = vpow2.f32 %v13706_v25  ;;  %v22250_v14 = vadd.f32 %v17969_v4, %v22179_v24  ;;  %v24591_v4 = vld [vmem:[#allocation36_spill] sm:$0xff] }
 0x5aa   : > { %v18703_v17 = vpop.eup %18702  ;;  %v17187_v12 = vpack.c.bf16 %v22240_v41, %v22245_v27  ;;  %v6114_v7 = vadd.f32 1.0, %v18701_v53  ;;  %18720 = vpow2.f32 %v13705_v59  ;;  %v22255_v60 = vadd.f32 %v17970_v40, %v22179_v24  ;;  %v15793_v56 = vpop.f32.mrb[16].mxu0  ;;  %v24592_v53 = vld [vmem:[#allocation40_spill] sm:$0xff] }
 0x5ab   : > { %v18705_v29 = vpop.eup %18704  ;;  %v22258_v36 = vmul.f32 %v18703_v17, %v22190_v38  ;;  %18722 = vrcp.f32 %v6111_v47  ;;  %v13708_v62 = vmul.f32 -1.442695, %v22250_v14  ;;  %v17971_v15 = vadd.f32 %v15793_v56, %v24587_v44  ;;  %v5859_v5 = vpop.f32.mrb[17].mxu0 }
 0x5ac   : > { %v18707_v28 = vpop.eup %18706  ;;  %v22263_v34 = vmul.f32 %v18705_v29, %v22193_v51  ;;  %18724 = vrcp.f32 %v6114_v7  ;;  %v13707_v10 = vmul.f32 -1.442695, %v22255_v60  ;;  %v17972_v58 = vadd.f32 %v5859_v5, %v24588_v19 }
 0x5ad   : > { %v6113_v37 = vadd.f32 1.0, %v18707_v28  ;;  %18726 = vpow2.f32 %v13708_v62  ;;  %v22268_v38 = vadd.f32 %v17971_v15, %v22179_v24 }
 0x5ae   : > { %v18709_v26 = vpop.eup %18708  ;;  %v17191_v32 = vpack.c.bf16 %v22258_v36, %v22263_v34  ;;  %18728 = vpow2.f32 %v13707_v10  ;;  %v22273_v52 = vadd.f32 %v17972_v58, %v22179_v24  ;;  %v15796_v51 = vpop.f32.mrb[18].mxu0  ;;  %v24593_v10 = vld [vmem:[#allocation44_spill] sm:$0xff] }
 0x5af   : > { %v18711_v55 = vpop.eup %18710  ;;  %v22276_v20 = vmul.f32 %v18709_v26, %v22198_v8  ;;  %18730 = vrcp.f32 %v6113_v37  ;;  %v13710_v9 = vmul.f32 -1.442695, %v22268_v38  ;;  %v17973_v35 = vadd.f32 %v15796_v51, %v24589_v13  ;;  %v5869_v43 = vpop.f32.mrb[19].mxu0  ;;  %v24594_v13 = vld [vmem:[#allocation45_spill] sm:$0xff] }
 0x5b0   : > { %v18713_v30 = vpop.eup %18712  ;;  %v22281_v42 = vmul.f32 %v18711_v55, %v22201_v3  ;;  %v13709_v0 = vmul.f32 -1.442695, %v22273_v52  ;;  %v17974_v31 = vadd.f32 %v5869_v43, %v24590_v57 }
 0x5b1   : > { %v18715_v39 = vpop.eup %18714  ;;  %v6116_v21 = vadd.f32 1.0, %v18713_v30  ;;  %18732 = vpow2.f32 %v13710_v9  ;;  %v22286_v8 = vadd.f32 %v17973_v35, %v22179_v24 }
 0x5b2   : > { %v18717_v33 = vpop.eup %18716  ;;  %v17195_v1 = vpack.c.bf16 %v22276_v20, %v22281_v42  ;;  %v6115_v46 = vadd.f32 1.0, %v18715_v39  ;;  %18734 = vpow2.f32 %v13709_v0  ;;  %v22291_v49 = vadd.f32 %v17974_v31, %v22179_v24  ;;  %v15799_v3 = vpop.f32.mrb[20].mxu0  ;;  %v24595_v39 = vld [vmem:[#allocation54_spill] sm:$0xff] }
 0x5b3   : > { %v18719_v45 = vpop.eup %18718  ;;  %v22294_v25 = vmul.f32 %v18717_v33, %v22206_v16  ;;  %18736 = vrcp.f32 %v6116_v21  ;;  %v13712_v6 = vmul.f32 -1.442695, %v22286_v8  ;;  %v17975_v50 = vadd.f32 %v15799_v3, %v24591_v4  ;;  %v5879_v11 = vpop.f32.mrb[21].mxu0 }
 0x5b4   : > { %v18721_v59 = vpop.eup %18720  ;;  %18738 = vrcp.f32 %v6115_v46  ;;  %v6118_v22 = vadd.f32 1.0, %v18719_v45  ;;  %v13711_v40 = vmul.f32 -1.442695, %v22291_v49  ;;  %v17976_v47 = vadd.f32 %v5879_v11, %v24592_v53 }
 0x5b5   : > { %v18723_v17 = vpop.eup %18722  ;;  %v6117_v7 = vadd.f32 1.0, %v18721_v59  ;;  %18740 = vpow2.f32 %v13712_v6  ;;  %v22301_v56 = vadd.f32 %v17975_v50, %v22179_v24 }
 0x5b6   : > { %v18725_v16 = vpop.eup %18724  ;;  %v22304_v29 = vmul.f32 %v18723_v17, %v22209_v48  ;;  %18742 = vrcp.f32 %v6118_v22  ;;  %v22307_v62 = vadd.f32 %v17976_v47, %v22179_v24  ;;  %v15802_v44 = vpop.f32.mrb[22].mxu0 }
 0x5b7   : > { %v18727_v15 = vpop.eup %18726  ;;  %v22310_v5 = vmul.f32 %v18725_v16, %v22214_v18  ;;  %18744 = vrcp.f32 %v6117_v7  ;;  %v13714_v28 = vmul.f32 -1.442695, %v22301_v56  ;;  %v17977_v19 = vadd.f32 %v15802_v44, %v24593_v10  ;;  %v5889_v58 = vpop.f32.mrb[23].mxu0  ;;  %v24597_v44 = vld [vmem:[#allocation57_spill] sm:$0xff] }
 0x5b8   : > { %v18729_v37 = vpop.eup %18728  ;;  %v17199_v48 = vpack.c.bf16 %v22294_v25, %v22304_v29  ;;  %v6120_v26 = vadd.f32 1.0, %v18727_v15  ;;  %18746 = vpow2.f32 %v13711_v40  ;;  %v13713_v51 = vmul.f32 -1.442695, %v22307_v62 }
 0x5b9   : > { %v18731_v55 = vpop.eup %18730  ;;  %v6119_v9 = vadd.f32 1.0, %v18729_v37  ;;  %18748 = vpow2.f32 %v13714_v28  ;;  %v22318_v18 = vadd.f32 %v17977_v19, %v22179_v24  ;;  %v17978_v35 = vadd.f32 %v5889_v58, %v24594_v13  ;;  %v24598_v58 = vld [vmem:[#allocation85_spill] sm:$0xff] }
 0x5ba   : > { %v22322_v43 = vmul.f32 %v18731_v55, %v22217_v61  ;;  %18750 = vrcp.f32 %v6120_v26  ;;  %v15805_v30 = vpop.f32.mrb[24].mxu0  ;;  %v24596_v61 = vld [vmem:[#allocation55_spill] sm:$0xff] }
 0x5bb   : > { %v18733_v0 = vpop.eup %18732  ;;  %18752 = vrcp.f32 %v6119_v9  ;;  %v13716_v57 = vmul.f32 -1.442695, %v22318_v18  ;;  %v22326_v31 = vadd.f32 %v17978_v35, %v22179_v24  ;;  %v17979_v21 = vadd.f32 %v15805_v30, %v24595_v39  ;;  %v5899_v33 = vpop.f32.mrb[25].mxu0 }
 0x5bc   : > { %v18735_v46 = vpop.eup %18734  ;;  %v17203_v3 = vpack.c.bf16 %v22310_v5, %v22322_v43  ;;  %v6122_v45 = vadd.f32 1.0, %v18733_v0  ;;  %18754 = vpow2.f32 %v13713_v51  ;;  %v17980_v6 = vadd.f32 %v5899_v33, %v24596_v61 }
 0x5bd   : > { %v18737_v4 = vpop.eup %18736  ;;  %v6121_v50 = vadd.f32 1.0, %v18735_v46  ;;  %18756 = vpow2.f32 %v13716_v57  ;;  %v13715_v11 = vmul.f32 -1.442695, %v22326_v31  ;;  %v22334_v59 = vadd.f32 %v17979_v21, %v22179_v24 }
 0x5be   : > { %v18739_v22 = vpop.eup %18738  ;;  %v22337_v40 = vmul.f32 %v18737_v4, %v22224_v23  ;;  %18758 = vrcp.f32 %v6122_v45  ;;  %v22340_v53 = vadd.f32 %v17980_v6, %v22179_v24  ;;  %v15808_v47 = vpop.f32.mrb[26].mxu0  ;;  %v24600_v6 = vld [vmem:[#allocation87_spill] sm:$0xff] }
 0x5bf   : > { %v18741_v17 = vpop.eup %18740  ;;  %v22343_v7 = vmul.f32 %v18739_v22, %v22227_v2  ;;  %18760 = vrcp.f32 %v6121_v50  ;;  %v13718_v16 = vmul.f32 -1.442695, %v22334_v59  ;;  %v17981_v15 = vadd.f32 %v15808_v47, %v24597_v44  ;;  %v5909_v28 = vpop.f32.mrb[27].mxu0 }
 0x5c0   : > { %v18743_v10 = vpop.eup %18742  ;;  %v6124_v19 = vadd.f32 1.0, %v18741_v17  ;;  %18762 = vpow2.f32 %v13715_v11  ;;  %v13717_v23 = vmul.f32 -1.442695, %v22340_v53  ;;  %v17982_v37 = vadd.f32 %v5909_v28, %v24598_v58 }
 0x5c1   : > { %v18745_v26 = vpop.eup %18744  ;;  %v17207_v51 = vpack.c.bf16 %v22337_v40, %v22343_v7  ;;  %v22352_v2 = vmul.f32 %v18743_v10, %v22234_v63  ;;  %18764 = vpow2.f32 %v13718_v16  ;;  %v22355_v55 = vadd.f32 %v17981_v15, %v22179_v24  ;;  %v24599_v63 = vld [vmem:[#allocation86_spill] sm:$0xff]  ;;  %v6235_v7 = vld [vmem:[%s24580_s27 + $0x10] sm:$0xff] }
 0x5c2   : > { %v18747_v9 = vpop.eup %18746  ;;  %v22358_v13 = vmul.f32 %v18745_v26, %v22237_v54  ;;  %18766 = vrcp.f32 %v6124_v19  ;;  %v22361_v35 = vadd.f32 %v17982_v37, %v22179_v24  ;;  %v15811_v30 = vpop.f32.mrb[28].mxu0  ;;  %v6236_v40 = vld [vmem:[%s24580_s27 + $0x18] sm:$0xff] }
 0x5c3   : > { %v18749_v0 = vpop.eup %18748  ;;  %v6123_v57 = vadd.f32 1.0, %v18747_v9  ;;  %18768 = vpow2.f32 %v13717_v23  ;;  %v13720_v39 = vmul.f32 -1.442695, %v22355_v55  ;;  %v17983_v21 = vadd.f32 %v15811_v30, %v24599_v63  ;;  %v5919_v33 = vpop.f32.mrb[29].mxu0 }
 0x5c4   : > { %v18751_v46 = vpop.eup %18750  ;;  %v17211_v45 = vpack.c.bf16 %v22352_v2, %v22358_v13  ;;  %v6126_v61 = vadd.f32 1.0, %v18749_v0  ;;  %v13719_v54 = vmul.f32 -1.442695, %v22361_v35  ;;  %v17984_v4 = vadd.f32 %v5919_v33, %v24600_v6  ;;  %v6237_v2 = vld [vmem:[%s24580_s27 + $0x20] sm:$0xff]  ;;  %v6240_v13 = vld [vmem:[%s24580_s27 + $0x38] sm:$0xff] }
 0x5c5   : > { %v18753_v50 = vpop.eup %18752  ;;  %v22370_v11 = vmul.f32 %v18751_v46, %v22250_v14  ;;  %18770 = vrcp.f32 %v6123_v57  ;;  %v22373_v22 = vadd.f32 %v17983_v21, %v22179_v24  ;;  %v24601_v14 = vld [vmem:[#allocation65_spill] sm:$0xff]  ;;  %v24602_v57 = vld [vmem:[#allocation66_spill] sm:$0xff] }
 0x5c6   : > { %v18755_v47 = vpop.eup %18754  ;;  %v22376_v17 = vmul.f32 %v18753_v50, %v22255_v60  ;;  %18772 = vrcp.f32 %v6126_v61  ;;  %v22379_v16 = vadd.f32 %v17984_v4, %v22179_v24  ;;  %v15814_v44 = vpop.f32.mrb[30].mxu0 }
 0x5c7   : > { %v18757_v15 = vpop.eup %18756  ;;  %v6125_v28 = vadd.f32 1.0, %v18755_v47  ;;  %18774 = vpow2.f32 %v13720_v39  ;;  %v13722_v10 = vmul.f32 -1.442695, %v22373_v22  ;;  %v17985_v19 = vadd.f32 %v15814_v44, %v24601_v14  ;;  %v5929_v23 = vpop.f32.mrb[31].mxu0 }
 0x5c8   : > { %v18759_v58 = vpop.eup %18758  ;;  %v17215_v37 = vpack.c.bf16 %v22370_v11, %v22376_v17  ;;  %v6128_v26 = vadd.f32 1.0, %v18757_v15  ;;  %18776 = vpow2.f32 %v13719_v54  ;;  %v13721_v60 = vmul.f32 -1.442695, %v22379_v16  ;;  %v6242_v11 = vld [vmem:[%s24580_s27 + $0x48] sm:$0xff]  ;;  %v6244_v17 = vld [vmem:[%s24580_s27 + $0x58] sm:$0xff] }
 0x5c9   : > { %v18761_v9 = vpop.eup %18760  ;;  %v6218_v30 = vmul.f32 %v18759_v58, %v22268_v38  ;;  %18778 = vrcp.f32 %v6125_v28  ;;  %v22388_v0 = vadd.f32 %v17985_v19, %v22179_v24  ;;  %v17986_v39 = vadd.f32 %v5929_v23, %v24602_v57 }
 0x5ca   : > { %v18763_v63 = vpop.eup %18762  ;;  %v6217_v21 = vmul.f32 %v18761_v9, %v22273_v52  ;;  %18780 = vrcp.f32 %v6128_v26 }
 0x5cb   : > { %v18765_v33 = vpop.eup %18764  ;;  %v6127_v46 = vadd.f32 1.0, %v18763_v63  ;;  %18782 = vpow2.f32 %v13722_v10  ;;  %v13724_v61 = vmul.f32 -1.442695, %v22388_v0  ;;  %v22394_v54 = vadd.f32 %v17986_v39, %v22179_v24 }
 0x5cc   : > { %v18767_v6 = vpop.eup %18766  ;;  %v6130_v38 = vadd.f32 1.0, %v18765_v33  ;;  %18784 = vpow2.f32 %v13721_v60  ;;  %v17185_v4 = vpack.c.bf16 %v6218_v30, %v6217_v21 }
 0x5cd   : > { %v18769_v50 = vpop.eup %18768  ;;  %18786 = vrcp.f32 %v6127_v46  ;;  %v13723_v47 = vmul.f32 -1.442695, %v22394_v54  ;;  %v6220_v44 = vmul.f32 %v18767_v6, %v22286_v8 }
 0x5ce   : > { %18788 = vrcp.f32 %v6130_v38  ;;  %v6129_v52 = vadd.f32 1.0, %v18769_v50  ;;  %17186 = vmatprep.subr.bf16.mxu1 %v17185_v4  ;;  %v6247_v4 = vld [vmem:[%s24580_s27 + $0x70] sm:$0xff]  ;;  %v24603_v50 = vmov 0.0  }
 0x5cf   : > { %v18771_v15 = vpop.eup %18770  ;;  %18790 = vpow2.f32 %v13724_v61  ;;  %17188 = vmatpush3.bf16.msra.mxu1 %v17187_v12  ;;  %989 = vst.msk [vmem:[#allocation4 + $0x10] sm:$0xff] %vm985_vm6, %v24603_v50  ;;  %986 = vst.msk [vmem:[#allocation4] sm:$0xff] %vm985_vm6, %v24603_v50 }
 0x5d0   : > { %v18773_v24 = vpop.eup %18772  ;;  %v6219_v28 = vmul.f32 %v18771_v15, %v22291_v49  ;;  %18792 = vrcp.f32 %v6129_v52  ;;  %990 = vst.msk [vmem:[#allocation4 + $0x18] sm:$0x3] %vm987_vm7, %v24603_v50  ;;  %988 = vst.msk [vmem:[#allocation4 + $0x8] sm:$0x3] %vm987_vm7, %v24603_v50  ;;  %v13735_v52 = vld [vmem:[%s24277_s8 + $0x50] sm:$0xff] }
 0x5d1   : > { %v18775_v10 = vpop.eup %18774  ;;  %18794 = vpow2.f32 %v13723_v47  ;;  %v6222_v19 = vmul.f32 %v18773_v24, %v22301_v56  ;;  %991 = vst.msk [vmem:[#allocation4 + $0x20] sm:$0xff] %vm985_vm6, %v24603_v50  ;;  %993 = vst.msk [vmem:[#allocation4 + $0x30] sm:$0xff] %vm985_vm6, %v24603_v50  ;;  %v13733_v47 = vld [vmem:[%s24277_s8 + $0x40] sm:$0xff]  ;;  %v13736_v24 = vld [vmem:[%s24277_s8 + $0x58] sm:$0xff] }
 0x5d2   : > { %v18777_v14 = vpop.eup %18776  ;;  %v6132_v23 = vadd.f32 1.0, %v18775_v10  ;;  %v17189_v8 = vpack.c.bf16 %v6220_v44, %v6219_v28  ;;  %992 = vst.msk [vmem:[#allocation4 + $0x28] sm:$0x3] %vm987_vm7, %v24603_v50  ;;  %994 = vst.msk [vmem:[#allocation4 + $0x38] sm:$0x3] %vm987_vm7, %v24603_v50  ;;  %v13734_v44 = vld [vmem:[%s24277_s8 + $0x48] sm:$0xff]  ;;  %v17221_v28 = vpack.c.bf16 %v13736_v24, %v13735_v52 }
 0x5d3   : > { %v18779_v58 = vpop.eup %18778  ;;  %v6131_v26 = vadd.f32 1.0, %v18777_v14  ;;  %995 = vst.msk [vmem:[#allocation4 + $0x40] sm:$0xff] %vm985_vm6, %v24603_v50  ;;  %997 = vst.msk [vmem:[#allocation4 + $0x50] sm:$0xff] %vm985_vm6, %v24603_v50  ;;  %v17217_v15 = vpack.c.bf16 %v13734_v44, %v13733_v47  ;;  %v13737_v10 = vld [vmem:[%s24277_s8 + $0x60] sm:$0xff]  ;;  %v13738_v14 = vld [vmem:[%s24277_s8 + $0x68] sm:$0xff] }
 0x5d4   : > { %v18781_v60 = vpop.eup %18780  ;;  %v6221_v9 = vmul.f32 %v18779_v58, %v22307_v62  ;;  %18796 = vrcp.f32 %v6132_v23  ;;  %17190 = vmatprep.subr.bf16.mxu1 %v17189_v8  ;;  %996 = vst.msk [vmem:[#allocation4 + $0x48] sm:$0x3] %vm987_vm7, %v24603_v50  ;;  %998 = vst.msk [vmem:[#allocation4 + $0x58] sm:$0x3] %vm987_vm7, %v24603_v50 }
 0x5d5   : > { %v18783_v41 = vpop.eup %18782  ;;  %18798 = vrcp.f32 %v6131_v26  ;;  %17192 = vmatpush3.bf16.msra.mxu1 %v17191_v32  ;;  %v6224_v12 = vmul.f32 %v18781_v60, %v22318_v18  ;;  %999 = vst.msk [vmem:[#allocation4 + $0x60] sm:$0xff] %vm985_vm6, %v24603_v50  ;;  %1001 = vst.msk [vmem:[#allocation4 + $0x70] sm:$0xff] %vm985_vm6, %v24603_v50  ;;  %v17225_v26 = vpack.c.bf16 %v13738_v14, %v13737_v10  ;;  %v13739_v60 = vld [vmem:[%s24277_s8 + $0x70] sm:$0xff] }
 0x5d6   : > { %v18785_v27 = vpop.eup %18784  ;;  %v6134_v49 = vadd.f32 1.0, %v18783_v41  ;;  %v17193_v56 = vpack.c.bf16 %v6222_v19, %v6221_v9  ;;  %1000 = vst.msk [vmem:[#allocation4 + $0x68] sm:$0x3] %vm987_vm7, %v24603_v50  ;;  %1002 = vst.msk [vmem:[#allocation4 + $0x78] sm:$0x3] %vm987_vm7, %v24603_v50  ;;  %v22538_v19 = vld [vmem:[#allocation4] sm:$0xff] }
 0x5d7   : > { %v18787_v30 = vpop.eup %18786  ;;  %v6133_v57 = vadd.f32 1.0, %v18785_v27  ;;  %1003 = vst.msk [vmem:[#allocation4 + $0x80] sm:$0xff] %vm985_vm6, %v24603_v50  ;;  %1005 = vst.msk [vmem:[#allocation4 + $0x90] sm:$0xff] %vm985_vm6, %v24603_v50  ;;  %v22540_v23 = vld [vmem:[#allocation4 + $0x8] sm:$0x3]  ;;  %v6463_v8 = vrot.slane %v22538_v19, 1 }
 0x5d8   : > { %v18789_v39 = vpop.eup %18788  ;;  %v6223_v63 = vmul.f32 %v18787_v30, %v22326_v31  ;;  %18800 = vrcp.f32 %v6134_v49  ;;  %17194 = vmatprep.subr.bf16.mxu1 %v17193_v56  ;;  %1004 = vst.msk [vmem:[#allocation4 + $0x88] sm:$0x3] %vm987_vm7, %v24603_v50  ;;  %1006 = vst.msk [vmem:[#allocation4 + $0x98] sm:$0x3] %vm987_vm7, %v24603_v50  ;;  %v6464_v58 = vrot.slane %v22540_v23, 1  ;;  %v13740_v9 = vld [vmem:[%s24277_s8 + $0x78] sm:$0xff] }
 0x5d9   : > { %v18791_v62 = vpop.eup %18790  ;;  %v6226_v21 = vmul.f32 %v18789_v39, %v22334_v59  ;;  %18802 = vrcp.f32 %v6133_v57  ;;  %17196 = vmatpush3.bf16.msra.mxu1 %v17195_v1  ;;  %v17229_v27 = vpack.c.bf16 %v13740_v9, %v13739_v60  ;;  %v6440_v49 = vld [vmem:[%s24277_s8 + $0x8] sm:$0xff]  ;;  %v6441_v14 = vld [vmem:[%s24277_s8 + $0x10] sm:$0xff] }
 0x5da   : > { %v18793_v36 = vpop.eup %18792  ;;  %v6136_v34 = vadd.f32 1.0, %v18791_v62  ;;  %v17197_v32 = vpack.c.bf16 %v6224_v12, %v6223_v63  ;;  %v6465_v41 = vsel %vm1541_vm4, %v6463_v8, %v6464_v58  ;;  %v6439_v12 = vld [vmem:[%s24277_s8] sm:$0xff]  ;;  %v6442_v58 = vld [vmem:[%s24277_s8 + $0x18] sm:$0xff] }
 0x5db   : > { %v18795_v18 = vpop.eup %18794  ;;  %v6225_v33 = vmul.f32 %v18793_v36, %v22340_v53  ;;  %v22560_v56 = vpack.c.bf16 %v6440_v49, %v6439_v12 }
 0x5dc   : > { %18804 = vrcp.f32 %v6136_v34  ;;  %v6135_v46 = vadd.f32 1.0, %v18795_v18  ;;  %17198 = vmatprep.subr.bf16.mxu1 %v17197_v32 }
 0x5dd   : > { %17200 = vmatpush3.bf16.msra.mxu1 %v17199_v48  ;;  %v17201_v31 = vpack.c.bf16 %v6226_v21, %v6225_v33 }
 0x5de   : > { %v18797_v59 = vpop.eup %18796  ;;  %18806 = vrcp.f32 %v6135_v46 }
 0x5df   : > { %v18799_v61 = vpop.eup %18798  ;;  %v6228_v20 = vmul.f32 %v18797_v59, %v22355_v55  ;;  %17202 = vmatprep.subr.bf16.mxu1 %v17201_v31 }
 0x5e0   : > { %v6227_v42 = vmul.f32 %v18799_v61, %v22361_v35 }
 0x5e1   : > { %17204 = vmatpush3.bf16.msra.mxu1 %v17203_v3  ;;  %v6233_v3 = vld [vmem:[%s24580_s27] sm:$0xff] }
 0x5e2   : > { %v18801_v1 = vpop.eup %18800  ;;  %v17205_v53 = vpack.c.bf16 %v6228_v20, %v6227_v42 }
 0x5e3   : > { %v18803_v6 = vpop.eup %18802  ;;  %v6230_v38 = vmul.f32 %v18801_v1, %v22373_v22  ;;  %v6241_v22 = vld [vmem:[%s24580_s27 + $0x40] sm:$0xff] }
 0x5e4   : > { %v6229_v25 = vmul.f32 %v18803_v6, %v22379_v16  ;;  %17206 = vmatprep.subr.bf16.mxu1 %v17205_v53  ;;  %v6243_v16 = vld [vmem:[%s24580_s27 + $0x50] sm:$0xff] }
 0x5e5   : > { %17208 = vmatpush3.bf16.msra.mxu1 %v17207_v51  ;;  %v6238_v51 = vld [vmem:[%s24580_s27 + $0x28] sm:$0xff] }
 0x5e6   : > { %v18805_v29 = vpop.eup %18804  ;;  %v17209_v48 = vpack.c.bf16 %v6230_v38, %v6229_v25 }
 0x5e7   : > { %v6232_v55 = vmul.f32 %v18805_v29, %v22388_v0  ;;  %v6245_v0 = vld [vmem:[%s24580_s27 + $0x60] sm:$0xff] }
 0x5e8   : > { %v18807_v35 = vpop.eup %18806  ;;  %17210 = vmatprep.subr.bf16.mxu1 %v17209_v48 }
 0x5e9   : > { %v6231_v5 = vmul.f32 %v18807_v35, %v22394_v54  ;;  %17212 = vmatpush3.bf16.msra.mxu1 %v17211_v45  ;;  %v6239_v45 = vld [vmem:[%s24580_s27 + $0x30] sm:$0xff]  ;;  %v6248_v54 = vld [vmem:[%s24580_s27 + $0x78] sm:$0xff] }
 0x5eb   : > { %v17213_v43 = vpack.c.bf16 %v6232_v55, %v6231_v5 }
 0x5ed   : > { %17214 = vmatprep.subr.bf16.mxu1 %v17213_v43 }
 0x5ee   : > { %17216 = vmatpush3.bf16.msra.mxu1 %v17215_v37  ;;  %v6246_v37 = vld [vmem:[%s24580_s27 + $0x68] sm:$0xff] }
 0x5ef   : > { %17218 = vmatprep.subr.bf16.mxu1 %v17217_v15 }
 0x5f1   : > { %6314 = vmatmul.mubr.f32.vlgmr.msra.gmra.mrb[22].mxu1 %v6233_v3 }
 0x5f2   : > { %6318 = vmatprep.mubr.f32.mxu1 %v6236_v40  ;;  %17220 = vmatpush3.bf16.msra.mxu1 %v17217_v15 }
 0x5f3   : > { %17222 = vmatprep.subr.bf16.mxu1 %v17221_v28 }
 0x5f5   : > { %6319 = vmatmul.mubr.f32.gmra.mrb[24].mxu1 %v6235_v7 }
 0x5f6   : > { %6323 = vmatprep.mubr.f32.mxu1 %v6238_v51  ;;  %17224 = vmatpush3.bf16.msra.mxu1 %v17221_v28 }
 0x5f7   : > { %17226 = vmatprep.subr.bf16.mxu1 %v17225_v26 }
 0x5f9   : > { %6324 = vmatmul.mubr.f32.gmra.mrb[26].mxu1 %v6237_v2 }
 0x5fa   : > { %6328 = vmatprep.mubr.f32.mxu1 %v6240_v13  ;;  %17228 = vmatpush3.bf16.msra.mxu1 %v17225_v26 }
 0x5fb   : > { %17230 = vmatprep.subr.bf16.mxu1 %v17229_v27 }
 0x5fd   : > { %6329 = vmatmul.mubr.f32.gmra.mrb[28].mxu1 %v6239_v45 }
 0x5fe   : > { %6333 = vmatprep.mubr.f32.mxu1 %v6242_v11  ;;  %17232 = vmatpush3.bf16.msra.mxu1 %v17229_v27 }
 0x5ff   : > { %17234 = vmatprep.subr.bf16.mxu1 %v22560_v56 }
 0x601   : > { %6334 = vmatmul.mubr.f32.gmra.mrb[30].mxu1 %v6241_v22 }
 0x602   : > { %6338 = vmatprep.mubr.f32.mxu1 %v6244_v17 }
 0x605   : > { %6339 = vmatmul.mubr.f32.gmra.mrb[32].mxu1 %v6243_v16 }
 0x606   : > { %6343 = vmatprep.mubr.f32.mxu1 %v6246_v37 }
 0x609   : > { %6344 = vmatmul.mubr.f32.gmra.mrb[34].mxu1 %v6245_v0 }
 0x60a   : > { %6348 = vmatprep.mubr.f32.mxu1 %v6248_v54 }
 0x60d   : > { %6349 = vmatmul.mubr.f32.gmra.mrb[36].mxu1 %v6247_v4 }
 0x60e   : > { %15831 = vmatprep.mubr.msk.f32.mxu1 %vm985_vm6, %v6465_v41 }
 0x6c4   : > { %v14549_v30 = vpop.f32.mrb[22].mxu1 }
 0x6c5   : > { %v14550_v57 = vpop.f32.mrb[23].mxu1 }
 0x6c6   : > { %v22563_v39 = vadd.f32 %v14550_v57, %v14549_v30  ;;  %v17237_v30 = vpack.c.bf16 %v6442_v58, %v6441_v14 }
 0x6c8   : > { %v13725_v63 = vmul.f32 -1.442695, %v22563_v39  ;;  %v14552_v62 = vpop.f32.mrb[24].mxu1 }
 0x6c9   : > { %v14553_v21 = vpop.f32.mrb[25].mxu1 }
 0x6ca   : > { %18808 = vpow2.f32 %v13725_v63  ;;  %v22566_v36 = vadd.f32 %v14553_v21, %v14552_v62  ;;  %v6443_v62 = vld [vmem:[%s24277_s8 + $0x20] sm:$0xff]  ;;  %v6444_v21 = vld [vmem:[%s24277_s8 + $0x28] sm:$0xff] }
 0x6cc   : > { %v13726_v34 = vmul.f32 -1.442695, %v22566_v36  ;;  %v14555_v32 = vpop.f32.mrb[26].mxu1 }
 0x6cd   : > { %v14556_v18 = vpop.f32.mrb[27].mxu1 }
 0x6ce   : > { %18810 = vpow2.f32 %v13726_v34  ;;  %v22569_v33 = vadd.f32 %v14556_v18, %v14555_v32 }
 0x6d0   : > { %v13727_v46 = vmul.f32 -1.442695, %v22569_v33  ;;  %v14558_v31 = vpop.f32.mrb[28].mxu1 }
 0x6d1   : > { %v14559_v59 = vpop.f32.mrb[29].mxu1 }
 0x6d2   : > { %18812 = vpow2.f32 %v13727_v46  ;;  %v22572_v61 = vadd.f32 %v14559_v59, %v14558_v31 }
 0x6d4   : > { %v18809_v20 = vpop.eup %18808  ;;  %v13728_v42 = vmul.f32 -1.442695, %v22572_v61  ;;  %v14561_v1 = vpop.f32.mrb[30].mxu1 }
 0x6d5   : > { %v6378_v53 = vadd.f32 1.0, %v18809_v20  ;;  %v14562_v6 = vpop.f32.mrb[31].mxu1 }
 0x6d6   : > { %18814 = vpow2.f32 %v13728_v42  ;;  %v22575_v38 = vadd.f32 %v14562_v6, %v14561_v1  ;;  %v17241_v42 = vpack.c.bf16 %v6444_v21, %v6443_v62  ;;  %v6445_v6 = vld [vmem:[%s24277_s8 + $0x30] sm:$0xff]  ;;  %v13760_v21 = vld [vmem:[%s24277_s8 + $0x98] sm:$0xff] }
 0x6d7   : > { %18816 = vrcp.f32 %v6378_v53  ;;  %v13759_v62 = vld [vmem:[%s24277_s8 + $0x90] sm:$0xff] }
 0x6d8   : > { %v18811_v25 = vpop.eup %18810  ;;  %v13729_v29 = vmul.f32 -1.442695, %v22575_v38  ;;  %v14564_v48 = vpop.f32.mrb[32].mxu1 }
 0x6d9   : > { %v6379_v55 = vadd.f32 1.0, %v18811_v25  ;;  %v14565_v35 = vpop.f32.mrb[33].mxu1  ;;  %v6446_v25 = vld [vmem:[%s24277_s8 + $0x38] sm:$0xff] }
 0x6da   : > { %18818 = vpow2.f32 %v13729_v29  ;;  %v22578_v5 = vadd.f32 %v14565_v35, %v14564_v48 }
 0x6db   : > { %18820 = vrcp.f32 %v6379_v55 }
 0x6dc   : > { %v18813_v43 = vpop.eup %18812  ;;  %v13730_v3 = vmul.f32 -1.442695, %v22578_v5  ;;  %v14567_v40 = vpop.f32.mrb[34].mxu1 }
 0x6dd   : > { %v6380_v7 = vadd.f32 1.0, %v18813_v43  ;;  %v14568_v51 = vpop.f32.mrb[35].mxu1  ;;  %v17245_v43 = vpack.c.bf16 %v6446_v25, %v6445_v6  ;;  %v6738_v6 = vrot.slane %v22538_v19, 2  ;;  %v6739_v25 = vrot.slane %v22540_v23, 2 }
 0x6de   : > { %18822 = vpow2.f32 %v13730_v3  ;;  %v22581_v2 = vadd.f32 %v14568_v51, %v14567_v40  ;;  %v13758_v51 = vld [vmem:[%s24277_s8 + $0x88] sm:$0xff] }
 0x6df   : > { %18824 = vrcp.f32 %v6380_v7  ;;  %v13757_v7 = vld [vmem:[%s24277_s8 + $0x80] sm:$0xff]  ;;  %v6740_v23 = vsel %vm1790_vm5, %v6738_v6, %v6739_v25  ;;  %v13791_v25 = vld [vmem:[%s24277_s8 + $0x110] sm:$0xff] }
 0x6e0   : > { %v18815_v13 = vpop.eup %18814  ;;  %v13731_v45 = vmul.f32 -1.442695, %v22581_v2  ;;  %v14570_v11 = vpop.f32.mrb[36].mxu1 }
 0x6e1   : > { %v18817_v22 = vpop.eup %18816  ;;  %v6381_v17 = vadd.f32 1.0, %v18815_v13  ;;  %v14571_v16 = vpop.f32.mrb[37].mxu1 }
 0x6e2   : > { %v6402_v37 = vmul.f32 %v18817_v22, %v22563_v39  ;;  %18826 = vpow2.f32 %v13731_v45  ;;  %v22585_v0 = vadd.f32 %v14571_v16, %v14570_v11  ;;  %v17249_v16 = vpack.c.bf16 %v13758_v51, %v13757_v7  ;;  %v13775_v7 = vld [vmem:[%s24277_s8 + $0xd0] sm:$0xff]  ;;  %v13776_v51 = vld [vmem:[%s24277_s8 + $0xd8] sm:$0xff] }
 0x6e3   : > { %18828 = vrcp.f32 %v6381_v17 }
 0x6e4   : > { %v18819_v54 = vpop.eup %18818  ;;  %6411 = vst.msk [vmem:[#allocation4 + $0x11] sm:$0xff] %vm985_vm6, %v6402_v37  ;;  %v13732_v4 = vmul.f32 -1.442695, %v22585_v0 }
 0x6e5   : > { %v18821_v47 = vpop.eup %18820  ;;  %v6382_v44 = vadd.f32 1.0, %v18819_v54 }
 0x6e6   : > { %v6403_v52 = vmul.f32 %v18821_v47, %v22566_v36  ;;  %18830 = vpow2.f32 %v13732_v4 }
 0x6e7   : > { %18832 = vrcp.f32 %v6382_v44 }
 0x6e8   : > { %v18823_v15 = vpop.eup %18822  ;;  %6412 = vst.msk [vmem:[#allocation4 + $0x21] sm:$0xff] %vm985_vm6, %v6403_v52 }
 0x6e9   : > { %v18825_v24 = vpop.eup %18824  ;;  %v6383_v28 = vadd.f32 1.0, %v18823_v15 }
 0x6ea   : > { %v6404_v10 = vmul.f32 %v18825_v24, %v22569_v33 }
 0x6eb   : > { %18834 = vrcp.f32 %v6383_v28  ;;  %v22598_v26 = vld [vmem:[#allocation4 + $0x10] sm:$0xff]  ;;  %v22600_v60 = vld [vmem:[#allocation4 + $0x18] sm:$0x3] }
 0x6ec   : > { %v18827_v9 = vpop.eup %18826  ;;  %6413 = vst.msk [vmem:[#allocation4 + $0x31] sm:$0xff] %vm985_vm6, %v6404_v10  ;;  %v6466_v41 = vrot.slane %v22598_v26, 1  ;;  %v6467_v27 = vrot.slane %v22600_v60, 1 }
 0x6ed   : > { %v18829_v12 = vpop.eup %18828  ;;  %v6384_v49 = vadd.f32 1.0, %v18827_v9 }
 0x6ee   : > { %v6405_v57 = vmul.f32 %v18829_v12, %v22572_v61  ;;  %v22607_v63 = vsel %vm1541_vm4, %v6466_v41, %v6467_v27 }
 0x6ef   : > { %18836 = vrcp.f32 %v6384_v49  ;;  %15832 = vmatmul.mubr.msk.f32.vlgmr.msra.gmra.mrb[38].mxu1 %vm985_vm6, %v22607_v63  ;;  %v22617_v34 = vld [vmem:[#allocation4 + $0x20] sm:$0xff]  ;;  %v22619_v32 = vld [vmem:[#allocation4 + $0x28] sm:$0x3] }
 0x6f0   : > { %v18831_v18 = vpop.eup %18830  ;;  %6414 = vst.msk [vmem:[#allocation4 + $0x41] sm:$0xff] %vm985_vm6, %v6405_v57  ;;  %v6469_v46 = vrot.slane %v22617_v34, 1  ;;  %v6470_v31 = vrot.slane %v22619_v32, 1  ;;  %17236 = vmatpush3.bf16.msra.mxu1 %v22560_v56 }
 0x6f1   : > { %v18833_v59 = vpop.eup %18832  ;;  %17238 = vmatprep.subr.bf16.mxu1 %v17237_v30  ;;  %v6385_v20 = vadd.f32 1.0, %v18831_v18  ;;  %v17253_v18 = vpack.c.bf16 %v13760_v21, %v13759_v62 }
 0x6f2   : > { %v6406_v1 = vmul.f32 %v18833_v59, %v22575_v38  ;;  %v22627_v53 = vsel %vm1541_vm4, %v6469_v46, %v6470_v31  ;;  %v13761_v46 = vld [vmem:[%s24277_s8 + $0xa0] sm:$0xff]  ;;  %v13762_v31 = vld [vmem:[%s24277_s8 + $0xa8] sm:$0xff] }
 0x6f3   : > { %15834 = vmatprep.mubr.msk.f32.mxu1 %vm985_vm6, %v22627_v53  ;;  %v22637_v56 = vld [vmem:[#allocation4 + $0x30] sm:$0xff]  ;;  %v22639_v29 = vld [vmem:[#allocation4 + $0x38] sm:$0x3]  ;;  %18838 = vrcp.f32 %v6385_v20  ;;  %v17257_v59 = vpack.c.bf16 %v13762_v31, %v13761_v46 }
 0x6f4   : > { %6415 = vst.msk [vmem:[#allocation4 + $0x51] sm:$0xff] %vm985_vm6, %v6406_v1  ;;  %v6472_v48 = vrot.slane %v22637_v56, 1  ;;  %v6473_v55 = vrot.slane %v22639_v29, 1  ;;  %17240 = vmatpush3.bf16.msra.mxu1 %v17237_v30  ;;  %v13763_v20 = vld [vmem:[%s24277_s8 + $0xb0] sm:$0xff] }
 0x6f5   : > { %v18835_v35 = vpop.eup %18834  ;;  %17242 = vmatprep.subr.bf16.mxu1 %v17241_v42 }
 0x6f6   : > { %v6407_v3 = vmul.f32 %v18835_v35, %v22578_v5  ;;  %v22646_v40 = vsel %vm1541_vm4, %v6472_v48, %v6473_v55  ;;  %v13773_v48 = vld [vmem:[%s24277_s8 + $0xc0] sm:$0xff]  ;;  %v13774_v55 = vld [vmem:[%s24277_s8 + $0xc8] sm:$0xff] }
 0x6f7   : > { %15835 = vmatmul.mubr.msk.f32.gmra.mrb[40].mxu1 %vm985_vm6, %v22646_v40  ;;  %v22656_v13 = vld [vmem:[#allocation4 + $0x40] sm:$0xff]  ;;  %v22658_v45 = vld [vmem:[#allocation4 + $0x48] sm:$0x3]  ;;  %v17265_v35 = vpack.c.bf16 %v13774_v55, %v13773_v48  ;;  %v13792_v48 = vld [vmem:[%s24277_s8 + $0x118] sm:$0xff] }
 0x6f8   : > { %6416 = vst.msk [vmem:[#allocation4 + $0x61] sm:$0xff] %vm985_vm6, %v6407_v3  ;;  %v6475_v11 = vrot.slane %v22656_v13, 1  ;;  %v6476_v22 = vrot.slane %v22658_v45, 1  ;;  %17244 = vmatpush3.bf16.msra.mxu1 %v17241_v42  ;;  %v13764_v42 = vld [vmem:[%s24277_s8 + $0xb8] sm:$0xff]  ;;  %v6742_v3 = vrot.slane %v22600_v60, 2  ;;  %v17269_v60 = vpack.c.bf16 %v13776_v51, %v13775_v7  ;;  %v13805_v51 = vld [vmem:[%s24277_s8 + $0x140] sm:$0xff] }
 0x6f9   : > { %v18837_v17 = vpop.eup %18836  ;;  %17246 = vmatprep.subr.bf16.mxu1 %v17245_v43  ;;  %v17261_v1 = vpack.c.bf16 %v13764_v42, %v13763_v20  ;;  %v13789_v20 = vld [vmem:[%s24277_s8 + $0x100] sm:$0xff]  ;;  %v17285_v55 = vpack.c.bf16 %v13792_v48, %v13791_v25  ;;  %v13826_v25 = vld [vmem:[%s24277_s8 + $0x1a8] sm:$0xff] }
 0x6fa   : > { %v6408_v37 = vmul.f32 %v18837_v17, %v22581_v2  ;;  %v22665_v54 = vsel %vm1541_vm4, %v6475_v11, %v6476_v22  ;;  %v6744_v11 = vrot.slane %v22617_v34, 2  ;;  %v6745_v22 = vrot.slane %v22619_v32, 2  ;;  %v13778_v32 = vld [vmem:[%s24277_s8 + $0xe8] sm:$0xff] }
 0x6fb   : > { %15837 = vmatprep.mubr.msk.f32.mxu1 %vm985_vm6, %v22665_v54  ;;  %v22669_v4 = vld [vmem:[#allocation4 + $0x50] sm:$0xff]  ;;  %v22671_v47 = vld [vmem:[#allocation4 + $0x58] sm:$0x3] }
 0x6fc   : > { %6417 = vst.msk [vmem:[#allocation4 + $0x71] sm:$0xff] %vm985_vm6, %v6408_v37  ;;  %v6478_v44 = vrot.slane %v22669_v4, 1  ;;  %v6479_v52 = vrot.slane %v22671_v47, 1  ;;  %17248 = vmatpush3.bf16.msra.mxu1 %v17245_v43  ;;  %v6741_v43 = vrot.slane %v22598_v26, 2  ;;  %v6748_v37 = vrot.slane %v22639_v29, 2 }
 0x6fd   : > { %v18839_v15 = vpop.eup %18838  ;;  %17250 = vmatprep.subr.bf16.mxu1 %v17249_v16 }
 0x6fe   : > { %v22677_v24 = vsel %vm1541_vm4, %v6478_v44, %v6479_v52  ;;  %v6409_v28 = vmul.f32 %v18839_v15, %v22585_v0  ;;  %v22762_v17 = vsel %vm1790_vm5, %v6741_v43, %v6742_v3  ;;  %v13777_v44 = vld [vmem:[%s24277_s8 + $0xe0] sm:$0xff]  ;;  %v22775_v52 = vsel %vm1790_vm5, %v6744_v11, %v6745_v22  ;;  %v13796_v3 = vld [vmem:[%s24277_s8 + $0x138] sm:$0xff]  ;;  %v13806_v11 = vld [vmem:[%s24277_s8 + $0x148] sm:$0xff] }
 0x6ff   : > { %15838 = vmatmul.mubr.msk.f32.gmra.mrb[42].mxu1 %vm985_vm6, %v22677_v24  ;;  %v22682_v10 = vld [vmem:[#allocation4 + $0x60] sm:$0xff]  ;;  %v22684_v14 = vld [vmem:[#allocation4 + $0x68] sm:$0x3]  ;;  %v6750_v15 = vrot.slane %v22656_v13, 2  ;;  %v17273_v29 = vpack.c.bf16 %v13778_v32, %v13777_v44  ;;  %v17297_v22 = vpack.c.bf16 %v13806_v11, %v13805_v51  ;;  %v13839_v11 = vld [vmem:[%s24277_s8 + $0x1d0] sm:$0xff] }
 0x700   : > { %6418 = vst.msk [vmem:[#allocation4 + $0x81] sm:$0xff] %vm985_vm6, %v6409_v28  ;;  %v6481_v58 = vrot.slane %v22682_v10, 1  ;;  %v6482_v9 = vrot.slane %v22684_v14, 1  ;;  %v6751_v28 = vrot.slane %v22658_v45, 2  ;;  %v13780_v45 = vld [vmem:[%s24277_s8 + $0xf8] sm:$0xff]  ;;  %v6756_v21 = vrot.slane %v22682_v10, 2 }
 0x701   : > { %v13809_v32 = vld [vmem:[%s24277_s8 + $0x160] sm:$0xff] }
 0x702   : > { %v22690_v41 = vsel %vm1541_vm4, %v6481_v58, %v6482_v9  ;;  %v6753_v9 = vrot.slane %v22669_v4, 2  ;;  %v22795_v62 = vsel %vm1790_vm5, %v6750_v15, %v6751_v28  ;;  %v13810_v15 = vld [vmem:[%s24277_s8 + $0x168] sm:$0xff] }
 0x703   : > { %15840 = vmatprep.mubr.msk.f32.mxu1 %vm985_vm6, %v22690_v41  ;;  %v22694_v27 = vld [vmem:[#allocation4 + $0x70] sm:$0xff]  ;;  %v22696_v12 = vld [vmem:[#allocation4 + $0x78] sm:$0x3]  ;;  %v17305_v28 = vpack.c.bf16 %v13810_v15, %v13809_v32 }
 0x704   : > { %v6484_v49 = vrot.slane %v22694_v27, 1  ;;  %v6485_v30 = vrot.slane %v22696_v12, 1  ;;  %v6759_v31 = vrot.slane %v22694_v27, 2  ;;  %v13844_v15 = vld [vmem:[%s24277_s8 + $0x1f8] sm:$0xff] }
 0x706   : > { %v22701_v57 = vsel %vm1541_vm4, %v6484_v49, %v6485_v30  ;;  %v6754_v49 = vrot.slane %v22671_v47, 2  ;;  %v13779_v30 = vld [vmem:[%s24277_s8 + $0xf0] sm:$0xff] }
 0x707   : > { %15841 = vmatmul.mubr.msk.f32.gmra.mrb[44].mxu1 %vm985_vm6, %v22701_v57  ;;  %v17277_v47 = vpack.c.bf16 %v13780_v45, %v13779_v30 }
 0x708   : > { %15859 = vmatprep.mubr.msk.f32.mxu1 %vm985_vm6, %v22538_v19  ;;  %v22802_v46 = vsel %vm1790_vm5, %v6753_v9, %v6754_v49  ;;  %v6436_v9 = vld [vmem:[#allocation4 + $0x88] sm:$0x3] }
 0x709   : > { %v7027_v45 = vrot.slane %v6436_v9, 1 }
 0x70b   : > { %15860 = vmatmul.mubr.msk.f32.vlgmr.msra.gmra.mrb[38].mxu1 %vm985_vm6, %v22598_v26 }
 0x70c   : > { %15862 = vmatprep.mubr.msk.f32.mxu1 %vm985_vm6, %v22617_v34  ;;  %17252 = vmatpush3.bf16.msra.mxu1 %v17249_v16  ;;  %v6747_v16 = vrot.slane %v22637_v56, 2 }
 0x70d   : > { %17254 = vmatprep.subr.bf16.mxu1 %v17253_v18 }
 0x70e   : > { %v22782_v58 = vsel %vm1790_vm5, %v6747_v16, %v6748_v37  ;;  %v13807_v16 = vld [vmem:[%s24277_s8 + $0x150] sm:$0xff]  ;;  %v13808_v37 = vld [vmem:[%s24277_s8 + $0x158] sm:$0xff] }
 0x70f   : > { %15863 = vmatmul.mubr.msk.f32.gmra.mrb[40].mxu1 %vm985_vm6, %v22637_v56  ;;  %v17301_v44 = vpack.c.bf16 %v13808_v37, %v13807_v16  ;;  %v13841_v37 = vld [vmem:[%s24277_s8 + $0x1e0] sm:$0xff] }
 0x710   : > { %15865 = vmatprep.mubr.msk.f32.mxu1 %vm985_vm6, %v22656_v13  ;;  %17256 = vmatpush3.bf16.msra.mxu1 %v17253_v18  ;;  %v6757_v18 = vrot.slane %v22684_v14, 2  ;;  %v13790_v14 = vld [vmem:[%s24277_s8 + $0x108] sm:$0xff] }
 0x711   : > { %17258 = vmatprep.subr.bf16.mxu1 %v17257_v59 }
 0x712   : > { %v22815_v42 = vsel %vm1790_vm5, %v6756_v21, %v6757_v18  ;;  %v13821_v21 = vld [vmem:[%s24277_s8 + $0x180] sm:$0xff]  ;;  %v13822_v18 = vld [vmem:[%s24277_s8 + $0x188] sm:$0xff] }
 0x713   : > { %15866 = vmatmul.mubr.msk.f32.gmra.mrb[42].mxu1 %vm985_vm6, %v22669_v4 }
 0x714   : > { %15868 = vmatprep.mubr.msk.f32.mxu1 %vm985_vm6, %v22682_v10  ;;  %17260 = vmatpush3.bf16.msra.mxu1 %v17257_v59  ;;  %v6760_v59 = vrot.slane %v22696_v12, 2  ;;  %v17281_v12 = vpack.c.bf16 %v13790_v14, %v13789_v20  ;;  %v13824_v20 = vld [vmem:[%s24277_s8 + $0x198] sm:$0xff] }
 0x715   : > { %17262 = vmatprep.subr.bf16.mxu1 %v17261_v1 }
 0x717   : > { %15869 = vmatmul.mubr.msk.f32.gmra.mrb[44].mxu1 %vm985_vm6, %v22694_v27 }
 0x718   : > { %17264 = vmatpush3.bf16.msra.mxu1 %v17261_v1  ;;  %15887 = vmatprep.mubr.msk.f32.mxu1 %vm985_vm6, %v6740_v23  ;;  %v22820_v1 = vsel %vm1790_vm5, %v6759_v31, %v6760_v59  ;;  %v13793_v23 = vld [vmem:[%s24277_s8 + $0x120] sm:$0xff]  ;;  %v13823_v59 = vld [vmem:[%s24277_s8 + $0x190] sm:$0xff] }
 0x719   : > { %17266 = vmatprep.subr.bf16.mxu1 %v17265_v35  ;;  %v17317_v14 = vpack.c.bf16 %v13824_v20, %v13823_v59  ;;  %v7828_v59 = vld [vmem:[#allocation13 + $0x68] sm:$0xff]  ;;  %v23052_v20 = vld [vmem:[#allocation4 + $0x8] sm:$0x3] }
 0x71b   : > { %15888 = vmatmul.mubr.msk.f32.vlgmr.msra.gmra.mrb[38].mxu1 %vm985_vm6, %v22762_v17 }
 0x71c   : > { %15890 = vmatprep.mubr.msk.f32.mxu1 %vm985_vm6, %v22775_v52  ;;  %17268 = vmatpush3.bf16.msra.mxu1 %v17265_v35  ;;  %v13794_v35 = vld [vmem:[%s24277_s8 + $0x128] sm:$0xff] }
 0x71d   : > { %17270 = vmatprep.subr.bf16.mxu1 %v17269_v60  ;;  %v17289_v43 = vpack.c.bf16 %v13794_v35, %v13793_v23 }
 0x71f   : > { %15891 = vmatmul.mubr.msk.f32.gmra.mrb[40].mxu1 %vm985_vm6, %v22782_v58 }
 0x720   : > { %15893 = vmatprep.mubr.msk.f32.mxu1 %vm985_vm6, %v22795_v62  ;;  %17272 = vmatpush3.bf16.msra.mxu1 %v17269_v60  ;;  %v22862_v60 = vld [vmem:[#allocation4 + $0x80] sm:$0xff] }
 0x721   : > { %17274 = vmatprep.subr.bf16.mxu1 %v17273_v29  ;;  %v7026_v30 = vrot.slane %v22862_v60, 1  ;;  %v7153_v35 = vrot.slane %v22862_v60, 2 }
 0x723   : > { %15894 = vmatmul.mubr.msk.f32.gmra.mrb[42].mxu1 %vm985_vm6, %v22802_v46  ;;  %v22906_v31 = vsel %vm1541_vm4, %v7026_v30, %v7027_v45  ;;  %v13859_v30 = vld [vmem:[%s24277_s8 + $0x230] sm:$0xff]  ;;  %v13860_v45 = vld [vmem:[%s24277_s8 + $0x238] sm:$0xff] }
 0x724   : > { %15896 = vmatprep.mubr.msk.f32.mxu1 %vm985_vm6, %v22815_v42  ;;  %17276 = vmatpush3.bf16.msra.mxu1 %v17273_v29  ;;  %v13812_v29 = vld [vmem:[%s24277_s8 + $0x178] sm:$0xff] }
 0x725   : > { %17278 = vmatprep.subr.bf16.mxu1 %v17277_v47 }
 0x727   : > { %15897 = vmatmul.mubr.msk.f32.gmra.mrb[44].mxu1 %vm985_vm6, %v22820_v1 }
 0x728   : > { %17280 = vmatpush3.bf16.msra.mxu1 %v17277_v47  ;;  %15915 = vmatprep.mubr.msk.f32.mxu1 %vm985_vm6, %v22598_v26  ;;  %v13795_v26 = vld [vmem:[%s24277_s8 + $0x130] sm:$0xff]  ;;  %v17313_v47 = vpack.c.bf16 %v13822_v18, %v13821_v21  ;;  %v17357_v21 = vpack.c.bf16 %v13860_v45, %v13859_v30 }
 0x729   : > { %17282 = vmatprep.subr.bf16.mxu1 %v17281_v12  ;;  %v17293_v7 = vpack.c.bf16 %v13796_v3, %v13795_v26  ;;  %v13837_v26 = vld [vmem:[%s24277_s8 + $0x1c0] sm:$0xff]  ;;  %v13838_v3 = vld [vmem:[%s24277_s8 + $0x1c8] sm:$0xff] }
 0x72b   : > { %15916 = vmatmul.mubr.msk.f32.vlgmr.msra.gmra.mrb[38].mxu1 %vm985_vm6, %v22617_v34 }
 0x72c   : > { %15918 = vmatprep.mubr.msk.f32.mxu1 %vm985_vm6, %v22637_v56  ;;  %17284 = vmatpush3.bf16.msra.mxu1 %v17281_v12  ;;  %v13825_v12 = vld [vmem:[%s24277_s8 + $0x1a0] sm:$0xff] }
 0x72d   : > { %17286 = vmatprep.subr.bf16.mxu1 %v17285_v55  ;;  %v17321_v48 = vpack.c.bf16 %v13826_v25, %v13825_v12  ;;  %v7829_v25 = vld [vmem:[#allocation13 + $0x70] sm:$0xff] }
 0x72f   : > { %15919 = vmatmul.mubr.msk.f32.gmra.mrb[40].mxu1 %vm985_vm6, %v22656_v13 }
 0x730   : > { %15921 = vmatprep.mubr.msk.f32.mxu1 %vm985_vm6, %v22669_v4  ;;  %17288 = vmatpush3.bf16.msra.mxu1 %v17285_v55  ;;  %v13828_v55 = vld [vmem:[%s24277_s8 + $0x1b8] sm:$0xff] }
 0x731   : > { %17290 = vmatprep.subr.bf16.mxu1 %v17289_v43 }
 0x733   : > { %15922 = vmatmul.mubr.msk.f32.gmra.mrb[42].mxu1 %vm985_vm6, %v22682_v10 }
 0x734   : > { %15924 = vmatprep.mubr.msk.f32.mxu1 %vm985_vm6, %v22694_v27  ;;  %17292 = vmatpush3.bf16.msra.mxu1 %v17289_v43  ;;  %v7154_v43 = vrot.slane %v6436_v9, 2  ;;  %v13858_v9 = vld [vmem:[%s24277_s8 + $0x228] sm:$0xff] }
 0x735   : > { %17294 = vmatprep.subr.bf16.mxu1 %v17293_v7 }
 0x736   : > { %v22950_v51 = vsel %vm1790_vm5, %v7153_v35, %v7154_v43 }
 0x737   : > { %15925 = vmatmul.mubr.msk.f32.gmra.mrb[44].mxu1 %vm985_vm6, %v22862_v60 }
 0x738   : > { %17296 = vmatpush3.bf16.msra.mxu1 %v17293_v7  ;;  %15943 = vmatprep.mubr.msk.f32.mxu1 %vm985_vm6, %v22607_v63  ;;  %v13811_v63 = vld [vmem:[%s24277_s8 + $0x170] sm:$0xff]  ;;  %v17329_v7 = vpack.c.bf16 %v13838_v3, %v13837_v26  ;;  %v13870_v26 = vld [vmem:[%s866_s23] ss:$0 sm:$0xff] }
 0x739   : > { %17298 = vmatprep.subr.bf16.mxu1 %v17297_v22  ;;  %v17309_v49 = vpack.c.bf16 %v13812_v29, %v13811_v63  ;;  %v13855_v63 = vld [vmem:[%s24277_s8 + $0x210] sm:$0xff]  ;;  %v13856_v29 = vld [vmem:[%s24277_s8 + $0x218] sm:$0xff] }
 0x73b   : > { %15944 = vmatmul.mubr.msk.f32.vlgmr.msra.gmra.mrb[38].mxu1 %vm985_vm6, %v22627_v53 }
 0x73c   : > { %15946 = vmatprep.mubr.msk.f32.mxu1 %vm985_vm6, %v22646_v40  ;;  %17300 = vmatpush3.bf16.msra.mxu1 %v17297_v22  ;;  %v13840_v22 = vld [vmem:[%s24277_s8 + $0x1d8] sm:$0xff] }
 0x73d   : > { %17302 = vmatprep.subr.bf16.mxu1 %v17301_v44  ;;  %v17333_v16 = vpack.c.bf16 %v13840_v22, %v13839_v11 }
 0x73f   : > { %15947 = vmatmul.mubr.msk.f32.gmra.mrb[40].mxu1 %vm985_vm6, %v22665_v54 }
 0x740   : > { %15949 = vmatprep.mubr.msk.f32.mxu1 %vm985_vm6, %v22677_v24  ;;  %17304 = vmatpush3.bf16.msra.mxu1 %v17301_v44  ;;  %v13842_v44 = vld [vmem:[%s24277_s8 + $0x1e8] sm:$0xff] }
 0x741   : > { %17306 = vmatprep.subr.bf16.mxu1 %v17305_v28  ;;  %v17337_v32 = vpack.c.bf16 %v13842_v44, %v13841_v37 }
 0x743   : > { %15950 = vmatmul.mubr.msk.f32.gmra.mrb[42].mxu1 %vm985_vm6, %v22690_v41 }
 0x744   : > { %15952 = vmatprep.mubr.msk.f32.mxu1 %vm985_vm6, %v22701_v57  ;;  %17308 = vmatpush3.bf16.msra.mxu1 %v17305_v28  ;;  %v13854_v28 = vld [vmem:[%s24277_s8 + $0x208] sm:$0xff] }
 0x745   : > { %17310 = vmatprep.subr.bf16.mxu1 %v17309_v49 }
 0x747   : > { %15953 = vmatmul.mubr.msk.f32.gmra.mrb[44].mxu1 %vm985_vm6, %v22906_v31 }
 0x748   : > { %17312 = vmatpush3.bf16.msra.mxu1 %v17309_v49  ;;  %15971 = vmatprep.mubr.msk.f32.mxu1 %vm985_vm6, %v22762_v17  ;;  %v13827_v17 = vld [vmem:[%s24277_s8 + $0x1b0] sm:$0xff] }
 0x749   : > { %17314 = vmatprep.subr.bf16.mxu1 %v17313_v47  ;;  %v17325_v23 = vpack.c.bf16 %v13828_v55, %v13827_v17  ;;  %v7774_v55 = vld [vmem:[#allocation13] sm:$0xff] }
 0x74b   : > { %15972 = vmatmul.mubr.msk.f32.vlgmr.msra.gmra.mrb[38].mxu1 %vm985_vm6, %v22775_v52 }
 0x74c   : > { %15974 = vmatprep.mubr.msk.f32.mxu1 %vm985_vm6, %v22782_v58  ;;  %17316 = vmatpush3.bf16.msra.mxu1 %v17313_v47  ;;  %v7826_v47 = vld [vmem:[#allocation13 + $0x58] sm:$0xff] }
 0x74d   : > { %17318 = vmatprep.subr.bf16.mxu1 %v17317_v14 }
 0x74f   : > { %15975 = vmatmul.mubr.msk.f32.gmra.mrb[40].mxu1 %vm985_vm6, %v22795_v62 }
 0x750   : > { %15977 = vmatprep.mubr.msk.f32.mxu1 %vm985_vm6, %v22802_v46  ;;  %17320 = vmatpush3.bf16.msra.mxu1 %v17317_v14 }
 0x751   : > { %17322 = vmatprep.subr.bf16.mxu1 %v17321_v48 }
 0x753   : > { %15978 = vmatmul.mubr.msk.f32.gmra.mrb[42].mxu1 %vm985_vm6, %v22815_v42 }
 0x754   : > { %15980 = vmatprep.mubr.msk.f32.mxu1 %vm985_vm6, %v22820_v1  ;;  %17324 = vmatpush3.bf16.msra.mxu1 %v17321_v48  ;;  %v7830_v48 = vld [vmem:[#allocation13 + $0x78] sm:$0xff] }
 0x755   : > { %17326 = vmatprep.subr.bf16.mxu1 %v17325_v23  ;;  %v17373_v17 = vpack.c.bf16 %v7830_v48, %v7829_v25 }
 0x757   : > { %15981 = vmatmul.mubr.msk.f32.gmra.mrb[44].mxu1 %vm985_vm6, %v22950_v51 }
 0x758   : > { %17328 = vmatpush3.bf16.msra.mxu1 %v17325_v23  ;;  %15999 = vmatprep.mubr.msk.f32.mxu1 %vm985_vm6, %v22617_v34  ;;  %v13843_v34 = vld [vmem:[%s24277_s8 + $0x1f0] sm:$0xff]  ;;  %v7775_v23 = vld [vmem:[#allocation13 + $0x8] sm:$0xff] }
 0x759   : > { %17330 = vmatprep.subr.bf16.mxu1 %v17329_v7  ;;  %v23059_v35 = vpack.c.bf16 %v7775_v23, %v7774_v55 }
 0x75b   : > { %16000 = vmatmul.mubr.msk.f32.vlgmr.msra.gmra.mrb[38].mxu1 %vm985_vm6, %v22637_v56  ;;  %v17341_v56 = vpack.c.bf16 %v13844_v15, %v13843_v34 }
 0x75c   : > { %16002 = vmatprep.mubr.msk.f32.mxu1 %vm985_vm6, %v22656_v13  ;;  %17332 = vmatpush3.bf16.msra.mxu1 %v17329_v7  ;;  %v13853_v13 = vld [vmem:[%s24277_s8 + $0x200] sm:$0xff] }
 0x75d   : > { %17334 = vmatprep.subr.bf16.mxu1 %v17333_v16 }
 0x75f   : > { %16003 = vmatmul.mubr.msk.f32.gmra.mrb[40].mxu1 %vm985_vm6, %v22669_v4  ;;  %v22992_v4 = vld [vmem:[#allocation4 + $0x90] sm:$0xff] }
 0x760   : > { %16005 = vmatprep.mubr.msk.f32.mxu1 %vm985_vm6, %v22682_v10  ;;  %17336 = vmatpush3.bf16.msra.mxu1 %v17333_v16  ;;  %v17345_v10 = vpack.c.bf16 %v13854_v28, %v13853_v13 }
 0x761   : > { %17338 = vmatprep.subr.bf16.mxu1 %v17337_v32 }
 0x763   : > { %16006 = vmatmul.mubr.msk.f32.gmra.mrb[42].mxu1 %vm985_vm6, %v22694_v27  ;;  %v17349_v27 = vpack.c.bf16 %v13856_v29, %v13855_v63 }
 0x764   : > { %16008 = vmatprep.mubr.msk.f32.mxu1 %vm985_vm6, %v22862_v60  ;;  %17340 = vmatpush3.bf16.msra.mxu1 %v17337_v32  ;;  %v13857_v60 = vld [vmem:[%s24277_s8 + $0x220] sm:$0xff] }
 0x765   : > { %17342 = vmatprep.subr.bf16.mxu1 %v17341_v56  ;;  %v17353_v49 = vpack.c.bf16 %v13858_v9, %v13857_v60 }
 0x767   : > { %16009 = vmatmul.mubr.msk.f32.gmra.mrb[44].mxu1 %vm985_vm6, %v22992_v4 }
 0x768   : > { %17344 = vmatpush3.bf16.msra.mxu1 %v17341_v56  ;;  %16027 = vmatprep.mubr.msk.f32.mxu1 %vm985_vm6, %v22627_v53  ;;  %v6438_v53 = vld [vmem:[#allocation4 + $0x98] sm:$0x3] }
 0x769   : > { %17346 = vmatprep.subr.bf16.mxu1 %v17345_v10 }
 0x76b   : > { %16028 = vmatmul.mubr.msk.f32.vlgmr.msra.gmra.mrb[38].mxu1 %vm985_vm6, %v22646_v40  ;;  %v7406_v40 = vrot.slane %v22992_v4, 1 }
 0x76c   : > { %16030 = vmatprep.mubr.msk.f32.mxu1 %vm985_vm6, %v22665_v54  ;;  %17348 = vmatpush3.bf16.msra.mxu1 %v17345_v10  ;;  %v7407_v54 = vrot.slane %v6438_v53, 1 }
 0x76d   : > { %17350 = vmatprep.subr.bf16.mxu1 %v17349_v27 }
 0x76f   : > { %16031 = vmatmul.mubr.msk.f32.gmra.mrb[40].mxu1 %vm985_vm6, %v22677_v24  ;;  %v7408_v24 = vsel %vm1541_vm4, %v7406_v40, %v7407_v54 }
 0x770   : > { %16033 = vmatprep.mubr.msk.f32.mxu1 %vm985_vm6, %v22690_v41  ;;  %17352 = vmatpush3.bf16.msra.mxu1 %v17349_v27  ;;  %v7533_v41 = vrot.slane %v22992_v4, 2 }
 0x771   : > { %17354 = vmatprep.subr.bf16.mxu1 %v17353_v49 }
 0x773   : > { %16034 = vmatmul.mubr.msk.f32.gmra.mrb[42].mxu1 %vm985_vm6, %v22701_v57  ;;  %v7534_v57 = vrot.slane %v6438_v53, 2 }
 0x774   : > { %16036 = vmatprep.mubr.msk.f32.mxu1 %vm985_vm6, %v22906_v31  ;;  %17356 = vmatpush3.bf16.msra.mxu1 %v17353_v49 }
 0x775   : > { %17358 = vmatprep.subr.bf16.mxu1 %v17357_v21 }
 0x777   : > { %16037 = vmatmul.mubr.msk.f32.gmra.mrb[44].mxu1 %vm985_vm6, %v7408_v24 }
 0x778   : > { %17360 = vmatpush3.bf16.msra.mxu1 %v17357_v21  ;;  %16055 = vmatprep.mubr.msk.f32.mxu1 %vm985_vm6, %v22775_v52  ;;  %v7535_v52 = vsel %vm1790_vm5, %v7533_v41, %v7534_v57 }
 0x77b   : > { %16056 = vmatmul.mubr.msk.f32.vlgmr.msra.gmra.mrb[38].mxu1 %vm985_vm6, %v22782_v58  ;;  %v7823_v58 = vld [vmem:[#allocation13 + $0x40] sm:$0xff] }
 0x77c   : > { %16058 = vmatprep.mubr.msk.f32.mxu1 %vm985_vm6, %v22795_v62  ;;  %v7824_v62 = vld [vmem:[#allocation13 + $0x48] sm:$0xff] }
 0x77d   : > { %v17361_v18 = vpack.c.bf16 %v7824_v62, %v7823_v58 }
 0x77f   : > { %16059 = vmatmul.mubr.msk.f32.gmra.mrb[40].mxu1 %vm985_vm6, %v22802_v46  ;;  %v7825_v46 = vld [vmem:[#allocation13 + $0x50] sm:$0xff]  ;;  %17362 = vmatprep.subr.bf16.mxu1 %v17361_v18 }
 0x780   : > { %16061 = vmatprep.mubr.msk.f32.mxu1 %vm985_vm6, %v22815_v42  ;;  %v17365_v31 = vpack.c.bf16 %v7826_v47, %v7825_v46  ;;  %v7827_v42 = vld [vmem:[#allocation13 + $0x60] sm:$0xff]  ;;  %17364 = vmatpush3.bf16.msra.mxu1 %v17361_v18 }
 0x781   : > { %v17369_v14 = vpack.c.bf16 %v7828_v59, %v7827_v42 }
 0x782   : > { %17366 = vmatprep.subr.bf16.mxu1 %v17365_v31 }
 0x783   : > { %16062 = vmatmul.mubr.msk.f32.gmra.mrb[42].mxu1 %vm985_vm6, %v22820_v1  ;;  %v7799_v1 = vrot.slane %v23052_v20, 1 }
 0x784   : > { %16064 = vmatprep.mubr.msk.f32.mxu1 %vm985_vm6, %v22950_v51  ;;  %17368 = vmatpush3.bf16.msra.mxu1 %v17365_v31 }
 0x785   : > { %v7800_v12 = vsel %vm1541_vm4, %v6463_v8, %v7799_v1  ;;  %17370 = vmatprep.subr.bf16.mxu1 %v17369_v14  ;;  %v13869_v8 = vld [vmem:[#allocation11] ss:$0 sm:$0xff] }
 0x787   : > { %16065 = vmatmul.mubr.msk.f32.gmra.mrb[44].mxu1 %vm985_vm6, %v7535_v52 }
 0x788   : > { %16083 = vmatprep.mubr.msk.f32.mxu1 %vm985_vm6, %v7800_v12  ;;  %17372 = vmatpush3.bf16.msra.mxu1 %v17369_v14 }
 0x789   : > { %17374 = vmatprep.subr.bf16.mxu1 %v17373_v17 }
 0x78c   : > { %17376 = vmatpush3.bf16.msra.mxu1 %v17373_v17 }
 0x78d   : > { %17378 = vmatprep.subr.bf16.mxu1 %v23059_v35 }
 0x84e   : > { %v16057_v43 = vpop.f32.mrb[38].mxu1 }
 0x84f   : > { %v7668_v3 = vadd.f32 %v16057_v43, %v13869_v8  ;;  %v7613_v7 = vpop.f32.mrb[39].mxu1 }
 0x850   : > { %v7667_v51 = vadd.f32 %v13869_v8, %v7613_v7 }
 0x851   : > { %v7683_v11 = vadd.f32 %v13870_v26, %v7668_v3 }
 0x852   : > { %v7682_v22 = vadd.f32 %v13870_v26, %v7667_v51  ;;  %v16060_v16 = vpop.f32.mrb[40].mxu1 }
 0x853   : > { %v13872_v37 = vmul.f32 -1.442695, %v7683_v11  ;;  %v7670_v44 = vadd.f32 %v16060_v16, %v13869_v8  ;;  %v7623_v32 = vpop.f32.mrb[41].mxu1 }
 0x854   : > { %v13871_v34 = vmul.f32 -1.442695, %v7682_v22  ;;  %v7669_v15 = vadd.f32 %v13869_v8, %v7623_v32 }
 0x855   : > { %18840 = vpow2.f32 %v13872_v37  ;;  %v7685_v56 = vadd.f32 %v13870_v26, %v7670_v44 }
 0x856   : > { %18842 = vpow2.f32 %v13871_v34  ;;  %v7684_v13 = vadd.f32 %v13870_v26, %v7669_v15  ;;  %v16063_v28 = vpop.f32.mrb[42].mxu1 }
 0x857   : > { %v13874_v10 = vmul.f32 -1.442695, %v7685_v56  ;;  %v7672_v63 = vadd.f32 %v16063_v28, %v13869_v8  ;;  %v7633_v29 = vpop.f32.mrb[43].mxu1  ;;  %v7776_v28 = vld [vmem:[#allocation13 + $0x10] sm:$0xff] }
 0x858   : > { %v13873_v27 = vmul.f32 -1.442695, %v7684_v13  ;;  %v7671_v60 = vadd.f32 %v13869_v8, %v7633_v29  ;;  %v7777_v29 = vld [vmem:[#allocation13 + $0x18] sm:$0xff] }
 0x859   : > { %18844 = vpow2.f32 %v13874_v10  ;;  %v7687_v9 = vadd.f32 %v13870_v26, %v7672_v63 }
 0x85a   : > { %18846 = vpow2.f32 %v13873_v27  ;;  %v7686_v49 = vadd.f32 %v13870_v26, %v7671_v60  ;;  %v16066_v53 = vpop.f32.mrb[44].mxu1 }
 0x85b   : > { %v13876_v30 = vmul.f32 -1.442695, %v7687_v9  ;;  %v7674_v45 = vadd.f32 %v16066_v53, %v13869_v8  ;;  %v7643_v54 = vpop.f32.mrb[45].mxu1 }
 0x85c   : > { %v13875_v21 = vmul.f32 -1.442695, %v7686_v49  ;;  %v7673_v24 = vadd.f32 %v13869_v8, %v7643_v54  ;;  %v7778_v54 = vld [vmem:[#allocation13 + $0x20] sm:$0xff] }
 0x85d   : > { %18848 = vpow2.f32 %v13876_v30  ;;  %v7689_v57 = vadd.f32 %v13870_v26, %v7674_v45  ;;  %v17381_v45 = vpack.c.bf16 %v7777_v29, %v7776_v28 }
 0x85e   : > { %18850 = vpow2.f32 %v13875_v21  ;;  %v23066_v52 = vadd.f32 %v13870_v26, %v7673_v24 }
 0x85f   : > { %v18841_v58 = vpop.eup %18840  ;;  %v13878_v62 = vmul.f32 -1.442695, %v7689_v57 }
 0x860   : > { %v18843_v46 = vpop.eup %18842  ;;  %v7715_v18 = vadd.f32 1.0, %v18841_v58  ;;  %v13877_v47 = vmul.f32 -1.442695, %v23066_v52 }
 0x861   : > { %v7714_v31 = vadd.f32 1.0, %v18843_v46  ;;  %18852 = vpow2.f32 %v13878_v62  ;;  %v7779_v62 = vld [vmem:[#allocation13 + $0x28] sm:$0xff] }
 0x862   : > { %18854 = vrcp.f32 %v7715_v18 }
 0x863   : > { %v18845_v42 = vpop.eup %18844  ;;  %18856 = vrcp.f32 %v7714_v31 }
 0x864   : > { %v18847_v59 = vpop.eup %18846  ;;  %v7717_v1 = vadd.f32 1.0, %v18845_v42  ;;  %18858 = vpow2.f32 %v13877_v47 }
 0x865   : > { %v7716_v14 = vadd.f32 1.0, %v18847_v59 }
 0x866   : > { %18860 = vrcp.f32 %v7717_v1 }
 0x867   : > { %v18849_v12 = vpop.eup %18848  ;;  %18862 = vrcp.f32 %v7716_v14 }
 0x868   : > { %v18851_v25 = vpop.eup %18850  ;;  %v7719_v48 = vadd.f32 1.0, %v18849_v12  ;;  %v17385_v12 = vpack.c.bf16 %v7779_v62, %v7778_v54  ;;  %v8104_v54 = vld [vmem:[#allocation13 + $0xb0] sm:$0xff]  ;;  %v8105_v62 = vld [vmem:[#allocation13 + $0xb8] sm:$0xff] }
 0x869   : > { %v7718_v17 = vadd.f32 1.0, %v18851_v25  ;;  %v7780_v25 = vld [vmem:[#allocation13 + $0x30] sm:$0xff] }
 0x86a   : > { %18864 = vrcp.f32 %v7719_v48 }
 0x86b   : > { %v18853_v55 = vpop.eup %18852  ;;  %18866 = vrcp.f32 %v7718_v17 }
 0x86c   : > { %v18855_v23 = vpop.eup %18854  ;;  %v7721_v8 = vadd.f32 1.0, %v18853_v55  ;;  %v7781_v55 = vld [vmem:[#allocation13 + $0x38] sm:$0xff] }
 0x86d   : > { %v18857_v43 = vpop.eup %18856  ;;  %v7739_v26 = vmul.f32 %v18855_v23, %v7683_v11 }
 0x86e   : > { %v18859_v3 = vpop.eup %18858  ;;  %v7738_v7 = vmul.f32 %v18857_v43, %v7682_v22  ;;  %18868 = vrcp.f32 %v7721_v8 }
 0x86f   : > { %7747 = vst.msk [vmem:[#allocation4 + $0x21] sm:$0xff] %vm985_vm6, %v7739_v26  ;;  %v7720_v51 = vadd.f32 1.0, %v18859_v3 }
 0x870   : > { %v18861_v16 = vpop.eup %18860  ;;  %7746 = vst.msk [vmem:[#allocation4 + $0x11] sm:$0xff] %vm985_vm6, %v7738_v7 }
 0x871   : > { %v18863_v37 = vpop.eup %18862  ;;  %v7741_v44 = vmul.f32 %v18861_v16, %v7685_v56  ;;  %18870 = vrcp.f32 %v7720_v51  ;;  %v17389_v51 = vpack.c.bf16 %v7781_v55, %v7780_v25  ;;  %v8239_v55 = vld [vmem:[#allocation13 + $0xd8] sm:$0xff] }
 0x872   : > { %v7740_v32 = vmul.f32 %v18863_v37, %v7684_v13  ;;  %v8098_v37 = vld [vmem:[#allocation13 + $0x80] sm:$0xff] }
 0x873   : > { %7749 = vst.msk [vmem:[#allocation4 + $0x41] sm:$0xff] %vm985_vm6, %v7741_v44  ;;  %v8099_v44 = vld [vmem:[#allocation13 + $0x88] sm:$0xff] }
 0x874   : > { %v18865_v34 = vpop.eup %18864  ;;  %7748 = vst.msk [vmem:[#allocation4 + $0x31] sm:$0xff] %vm985_vm6, %v7740_v32 }
 0x875   : > { %v18867_v15 = vpop.eup %18866  ;;  %v7743_v11 = vmul.f32 %v18865_v34, %v7687_v9 }
 0x876   : > { %v7742_v22 = vmul.f32 %v18867_v15, %v7686_v49  ;;  %v23073_v10 = vld [vmem:[#allocation4 + $0x20] sm:$0xff]  ;;  %v23075_v63 = vld [vmem:[#allocation4 + $0x28] sm:$0x3] }
 0x877   : > { %7751 = vst.msk [vmem:[#allocation4 + $0x61] sm:$0xff] %vm985_vm6, %v7743_v11  ;;  %v23078_v27 = vld [vmem:[#allocation4 + $0x10] sm:$0xff]  ;;  %v23080_v56 = vld [vmem:[#allocation4 + $0x18] sm:$0x3]  ;;  %v7804_v13 = vrot.slane %v23073_v10, 1  ;;  %v7805_v60 = vrot.slane %v23075_v63, 1  ;;  %v17393_v11 = vpack.c.bf16 %v8099_v44, %v8098_v37 }
 0x878   : > { %v18869_v53 = vpop.eup %18868  ;;  %7750 = vst.msk [vmem:[#allocation4 + $0x51] sm:$0xff] %vm985_vm6, %v7742_v22  ;;  %v7801_v9 = vrot.slane %v23078_v27, 1  ;;  %v7802_v49 = vrot.slane %v23080_v56, 1  ;;  %v8077_v25 = vrot.slane %v23080_v56, 2 }
 0x879   : > { %v7745_v30 = vmul.f32 %v18869_v53, %v7689_v57  ;;  %v23098_v18 = vsel %vm1541_vm4, %v7804_v13, %v7805_v60  ;;  %v8100_v13 = vld [vmem:[#allocation13 + $0x90] sm:$0xff]  ;;  %v8101_v60 = vld [vmem:[#allocation13 + $0x98] sm:$0xff] }
 0x87a   : > { %v23088_v21 = vsel %vm1541_vm4, %v7801_v9, %v7802_v49  ;;  %v23090_v24 = vld [vmem:[#allocation4 + $0x40] sm:$0xff]  ;;  %v23092_v58 = vld [vmem:[#allocation4 + $0x48] sm:$0x3]  ;;  %v17397_v9 = vpack.c.bf16 %v8101_v60, %v8100_v13  ;;  %v8102_v49 = vld [vmem:[#allocation13 + $0xa0] sm:$0xff] }
 0x87b   : > { %v18871_v46 = vpop.eup %18870  ;;  %7753 = vst.msk [vmem:[#allocation4 + $0x81] sm:$0xff] %vm985_vm6, %v7745_v30  ;;  %16084 = vmatmul.mubr.msk.f32.vlgmr.msra.gmra.mrb[46].mxu1 %vm985_vm6, %v23088_v21  ;;  %v23100_v57 = vld [vmem:[#allocation4 + $0x30] sm:$0xff]  ;;  %v23102_v47 = vld [vmem:[#allocation4 + $0x38] sm:$0x3]  ;;  %v7810_v31 = vrot.slane %v23090_v24, 1  ;;  %v7811_v42 = vrot.slane %v23092_v58, 1 }
 0x87c   : > { %v7744_v59 = vmul.f32 %v18871_v46, %v23066_v52  ;;  %16086 = vmatprep.mubr.msk.f32.mxu1 %vm985_vm6, %v23098_v18  ;;  %17380 = vmatpush3.bf16.msra.mxu1 %v23059_v35  ;;  %v7807_v1 = vrot.slane %v23100_v57, 1  ;;  %v7808_v14 = vrot.slane %v23102_v47, 1  ;;  %v18995_v53 = vld [vmem:[#allocation4] sm:$0xff]  ;;  %v17405_v46 = vpack.c.bf16 %v8105_v62, %v8104_v54  ;;  %v8243_v60 = vld [vmem:[#allocation13 + $0xf8] sm:$0xff]  ;;  %v8365_v54 = vld [vmem:[#allocation13 + $0x100] sm:$0xff] }
 0x87d   : > { %17382 = vmatprep.subr.bf16.mxu1 %v17381_v45  ;;  %v23123_v35 = vsel %vm1541_vm4, %v7810_v31, %v7811_v42  ;;  %v8103_v30 = vld [vmem:[#allocation13 + $0xa8] sm:$0xff]  ;;  %v8074_v31 = vrot.slane %v23052_v20, 2  ;;  %v8236_v42 = vld [vmem:[#allocation13 + $0xc0] sm:$0xff]  ;;  %v8238_v20 = vld [vmem:[#allocation13 + $0xd0] sm:$0xff]  ;;  %v8083_v56 = vrot.slane %v23102_v47, 2  ;;  %v8086_v44 = vrot.slane %v23092_v58, 2 }
 0x87e   : > { %7752 = vst.msk [vmem:[#allocation4 + $0x71] sm:$0xff] %vm985_vm6, %v7744_v59  ;;  %v23114_v48 = vsel %vm1541_vm4, %v7807_v1, %v7808_v14  ;;  %v23116_v17 = vld [vmem:[#allocation4 + $0x60] sm:$0xff]  ;;  %v23118_v52 = vld [vmem:[#allocation4 + $0x68] sm:$0x3]  ;;  %v17413_v19 = vpack.c.bf16 %v8239_v55, %v8238_v20  ;;  %v8492_v55 = vld [vmem:[#allocation13 + $0x140] sm:$0xff] }
 0x87f   : > { %16087 = vmatmul.mubr.msk.f32.gmra.mrb[48].mxu1 %vm985_vm6, %v23114_v48  ;;  %v23125_v23 = vld [vmem:[#allocation4 + $0x50] sm:$0xff]  ;;  %v23127_v8 = vld [vmem:[#allocation4 + $0x58] sm:$0x3]  ;;  %v7816_v43 = vrot.slane %v23116_v17, 1  ;;  %v7817_v26 = vrot.slane %v23118_v52, 1  ;;  %v8075_v1 = vsel %vm1790_vm5, %v6738_v6, %v8074_v31  ;;  %v8242_v13 = vld [vmem:[#allocation13 + $0xf0] sm:$0xff] }
 0x880   : > { %16089 = vmatprep.mubr.msk.f32.mxu1 %vm985_vm6, %v23123_v35  ;;  %17384 = vmatpush3.bf16.msra.mxu1 %v17381_v45  ;;  %v7813_v3 = vrot.slane %v23125_v23, 1  ;;  %v7814_v7 = vrot.slane %v23127_v8, 1  ;;  %v17401_v45 = vpack.c.bf16 %v8103_v30, %v8102_v49  ;;  %v8237_v59 = vld [vmem:[#allocation13 + $0xc8] sm:$0xff]  ;;  %v17421_v49 = vpack.c.bf16 %v8243_v60, %v8242_v13  ;;  %v8372_v20 = vld [vmem:[#allocation13 + $0x138] sm:$0xff] }
 0x881   : > { %17386 = vmatprep.subr.bf16.mxu1 %v17385_v12  ;;  %v23141_v32 = vsel %vm1541_vm4, %v7816_v43, %v7817_v26  ;;  %v17409_v14 = vpack.c.bf16 %v8237_v59, %v8236_v42  ;;  %v8079_v43 = vrot.slane %v23073_v10, 2  ;;  %v8080_v26 = vrot.slane %v23075_v63, 2  ;;  %v8366_v62 = vld [vmem:[#allocation13 + $0x108] sm:$0xff]  ;;  %v8367_v42 = vld [vmem:[#allocation13 + $0x110] sm:$0xff]  ;;  %v8368_v59 = vld [vmem:[#allocation13 + $0x118] sm:$0xff] }
 0x882   : > { %v23136_v16 = vsel %vm1541_vm4, %v7813_v3, %v7814_v7  ;;  %v8082_v3 = vrot.slane %v23100_v57, 2  ;;  %v8240_v7 = vld [vmem:[#allocation13 + $0xe0] sm:$0xff]  ;;  %v8085_v63 = vrot.slane %v23090_v24, 2 }
 0x883   : > { %16090 = vmatmul.mubr.msk.f32.gmra.mrb[50].mxu1 %vm985_vm6, %v23136_v16  ;;  %v23188_v37 = vsel %vm1790_vm5, %v8079_v43, %v8080_v26  ;;  %v8493_v43 = vld [vmem:[#allocation13 + $0x148] sm:$0xff] }
 0x884   : > { %16092 = vmatprep.mubr.msk.f32.mxu1 %vm985_vm6, %v23141_v32  ;;  %17388 = vmatpush3.bf16.msra.mxu1 %v17385_v12  ;;  %v8076_v12 = vrot.slane %v23078_v27, 2  ;;  %v23195_v47 = vsel %vm1790_vm5, %v8082_v3, %v8083_v56  ;;  %v23202_v58 = vsel %vm1790_vm5, %v8085_v63, %v8086_v44  ;;  %v17441_v26 = vpack.c.bf16 %v8493_v43, %v8492_v55  ;;  %v8494_v3 = vld [vmem:[#allocation13 + $0x150] sm:$0xff]  ;;  %v8495_v56 = vld [vmem:[#allocation13 + $0x158] sm:$0xff]  ;;  %v8497_v63 = vld [vmem:[#allocation13 + $0x168] sm:$0xff] }
 0x885   : > { %v23145_v34 = vld [vmem:[#allocation4 + $0x70] sm:$0xff]  ;;  %v23147_v15 = vld [vmem:[#allocation4 + $0x78] sm:$0x3]  ;;  %17390 = vmatprep.subr.bf16.mxu1 %v17389_v51  ;;  %v8747_v43 = vld [vmem:[#allocation13 + $0x1d0] sm:$0xff] }
 0x886   : > { %v7819_v28 = vrot.slane %v23145_v34, 1  ;;  %v7820_v22 = vrot.slane %v23147_v15, 1  ;;  %v23181_v6 = vsel %vm1790_vm5, %v8076_v12, %v8077_v25  ;;  %v8094_v30 = vrot.slane %v23145_v34, 2  ;;  %v8371_v25 = vld [vmem:[#allocation13 + $0x130] sm:$0xff] }
 0x888   : > { %v23152_v29 = vsel %vm1541_vm4, %v7819_v28, %v7820_v22  ;;  %17392 = vmatpush3.bf16.msra.mxu1 %v17389_v51  ;;  %v8241_v51 = vld [vmem:[#allocation13 + $0xe8] sm:$0xff]  ;;  %v8088_v28 = vrot.slane %v23125_v23, 2  ;;  %v8089_v22 = vrot.slane %v23127_v8, 2 }
 0x889   : > { %16093 = vmatmul.mubr.msk.f32.gmra.mrb[52].mxu1 %vm985_vm6, %v23152_v29  ;;  %17394 = vmatprep.subr.bf16.mxu1 %v17393_v11 }
 0x88a   : > { %16111 = vmatprep.mubr.msk.f32.mxu1 %vm985_vm6, %v18995_v53  ;;  %v8091_v53 = vrot.slane %v23116_v17, 2  ;;  %v23209_v8 = vsel %vm1790_vm5, %v8088_v28, %v8089_v22  ;;  %v8499_v28 = vld [vmem:[#allocation13 + $0x178] sm:$0xff] }
 0x88b   : > { %v7771_v22 = vld [vmem:[#allocation4 + $0x88] sm:$0x3] }
 0x88c   : > { %v8362_v60 = vrot.slane %v7771_v22, 1 }
 0x88d   : > { %16112 = vmatmul.mubr.msk.f32.vlgmr.msra.gmra.mrb[46].mxu1 %vm985_vm6, %v23078_v27 }
 0x88e   : > { %16114 = vmatprep.mubr.msk.f32.mxu1 %vm985_vm6, %v23073_v10  ;;  %17396 = vmatpush3.bf16.msra.mxu1 %v17393_v11  ;;  %v17417_v11 = vpack.c.bf16 %v8241_v51, %v8240_v7  ;;  %v17445_v7 = vpack.c.bf16 %v8495_v56, %v8494_v3  ;;  %v8496_v51 = vld [vmem:[#allocation13 + $0x160] sm:$0xff] }
 0x88f   : > { %17398 = vmatprep.subr.bf16.mxu1 %v17397_v9  ;;  %v17449_v44 = vpack.c.bf16 %v8497_v63, %v8496_v51  ;;  %v8749_v56 = vld [vmem:[#allocation13 + $0x1e0] sm:$0xff]  ;;  %v8751_v63 = vld [vmem:[#allocation13 + $0x1f0] sm:$0xff] }
 0x891   : > { %16115 = vmatmul.mubr.msk.f32.gmra.mrb[48].mxu1 %vm985_vm6, %v23100_v57 }
 0x892   : > { %16117 = vmatprep.mubr.msk.f32.mxu1 %vm985_vm6, %v23090_v24  ;;  %17400 = vmatpush3.bf16.msra.mxu1 %v17397_v9  ;;  %v8092_v9 = vrot.slane %v23118_v52, 2 }
 0x893   : > { %17402 = vmatprep.subr.bf16.mxu1 %v17401_v45 }
 0x894   : > { %v23216_v52 = vsel %vm1790_vm5, %v8091_v53, %v8092_v9  ;;  %v8616_v53 = vld [vmem:[#allocation13 + $0x180] sm:$0xff]  ;;  %v8617_v9 = vld [vmem:[#allocation13 + $0x188] sm:$0xff] }
 0x895   : > { %16118 = vmatmul.mubr.msk.f32.gmra.mrb[50].mxu1 %vm985_vm6, %v23125_v23 }
 0x896   : > { %16120 = vmatprep.mubr.msk.f32.mxu1 %vm985_vm6, %v23116_v17  ;;  %17404 = vmatpush3.bf16.msra.mxu1 %v17401_v45  ;;  %v8095_v45 = vrot.slane %v23147_v15, 2  ;;  %v17429_v15 = vpack.c.bf16 %v8368_v59, %v8367_v42  ;;  %v8621_v42 = vld [vmem:[#allocation13 + $0x1a8] sm:$0xff] }
 0x897   : > { %17406 = vmatprep.subr.bf16.mxu1 %v17405_v46 }
 0x898   : > { %v23221_v31 = vsel %vm1790_vm5, %v8094_v30, %v8095_v45  ;;  %v8618_v45 = vld [vmem:[#allocation13 + $0x190] sm:$0xff] }
 0x899   : > { %16121 = vmatmul.mubr.msk.f32.gmra.mrb[52].mxu1 %vm985_vm6, %v23145_v34 }
 0x89a   : > { %17408 = vmatpush3.bf16.msra.mxu1 %v17405_v46  ;;  %16139 = vmatprep.mubr.msk.f32.mxu1 %vm985_vm6, %v8075_v1  ;;  %v17425_v46 = vpack.c.bf16 %v8366_v62, %v8365_v54  ;;  %v8369_v1 = vld [vmem:[#allocation13 + $0x120] sm:$0xff]  ;;  %v8619_v54 = vld [vmem:[#allocation13 + $0x198] sm:$0xff] }
 0x89b   : > { %17410 = vmatprep.subr.bf16.mxu1 %v17409_v14  ;;  %v17461_v62 = vpack.c.bf16 %v8619_v54, %v8618_v45  ;;  %v9158_v45 = vld [vmem:[#allocation16 + $0x78] sm:$0xff] }
 0x89d   : > { %16140 = vmatmul.mubr.msk.f32.vlgmr.msra.gmra.mrb[46].mxu1 %vm985_vm6, %v23181_v6 }
 0x89e   : > { %16142 = vmatprep.mubr.msk.f32.mxu1 %vm985_vm6, %v23188_v37  ;;  %17412 = vmatpush3.bf16.msra.mxu1 %v17409_v14  ;;  %v8370_v14 = vld [vmem:[#allocation13 + $0x128] sm:$0xff] }
 0x89f   : > { %17414 = vmatprep.subr.bf16.mxu1 %v17413_v19  ;;  %v17433_v12 = vpack.c.bf16 %v8370_v14, %v8369_v1  ;;  %v8623_v1 = vld [vmem:[#allocation13 + $0x1b8] sm:$0xff] }
 0x8a1   : > { %16143 = vmatmul.mubr.msk.f32.gmra.mrb[48].mxu1 %vm985_vm6, %v23195_v47 }
 0x8a2   : > { %16145 = vmatprep.mubr.msk.f32.mxu1 %vm985_vm6, %v23202_v58  ;;  %17416 = vmatpush3.bf16.msra.mxu1 %v17413_v19  ;;  %v23239_v19 = vld [vmem:[#allocation4 + $0x80] sm:$0xff] }
 0x8a3   : > { %17418 = vmatprep.subr.bf16.mxu1 %v17417_v11  ;;  %v8361_v13 = vrot.slane %v23239_v19, 1  ;;  %v8488_v14 = vrot.slane %v23239_v19, 2 }
 0x8a5   : > { %16146 = vmatmul.mubr.msk.f32.gmra.mrb[50].mxu1 %vm985_vm6, %v23209_v8  ;;  %v23259_v30 = vsel %vm1541_vm4, %v8361_v13, %v8362_v60  ;;  %v8878_v13 = vld [vmem:[#allocation13 + $0x230] sm:$0xff]  ;;  %v8879_v60 = vld [vmem:[#allocation13 + $0x238] sm:$0xff] }
 0x8a6   : > { %16148 = vmatprep.mubr.msk.f32.mxu1 %vm985_vm6, %v23216_v52  ;;  %17420 = vmatpush3.bf16.msra.mxu1 %v17417_v11  ;;  %v8498_v11 = vld [vmem:[#allocation13 + $0x170] sm:$0xff] }
 0x8a7   : > { %17422 = vmatprep.subr.bf16.mxu1 %v17421_v49 }
 0x8a9   : > { %16149 = vmatmul.mubr.msk.f32.gmra.mrb[52].mxu1 %vm985_vm6, %v23221_v31 }
 0x8aa   : > { %17424 = vmatpush3.bf16.msra.mxu1 %v17421_v49  ;;  %16167 = vmatprep.mubr.msk.f32.mxu1 %vm985_vm6, %v23078_v27  ;;  %v17437_v27 = vpack.c.bf16 %v8372_v20, %v8371_v25  ;;  %v17457_v49 = vpack.c.bf16 %v8617_v9, %v8616_v53  ;;  %v8745_v25 = vld [vmem:[#allocation13 + $0x1c0] sm:$0xff]  ;;  %v8746_v20 = vld [vmem:[#allocation13 + $0x1c8] sm:$0xff]  ;;  %v17501_v53 = vpack.c.bf16 %v8879_v60, %v8878_v13 }
 0x8ab   : > { %17426 = vmatprep.subr.bf16.mxu1 %v17425_v46  ;;  %v23335_v9 = vld [vmem:[#allocation4] sm:$0xff] }
 0x8ad   : > { %16168 = vmatmul.mubr.msk.f32.vlgmr.msra.gmra.mrb[46].mxu1 %vm985_vm6, %v23073_v10 }
 0x8ae   : > { %16170 = vmatprep.mubr.msk.f32.mxu1 %vm985_vm6, %v23100_v57  ;;  %17428 = vmatpush3.bf16.msra.mxu1 %v17425_v46  ;;  %v8620_v46 = vld [vmem:[#allocation13 + $0x1a0] sm:$0xff] }
 0x8af   : > { %17430 = vmatprep.subr.bf16.mxu1 %v17429_v15  ;;  %v17465_v59 = vpack.c.bf16 %v8621_v42, %v8620_v46  ;;  %v9102_v46 = vld [vmem:[#allocation16] sm:$0xff]  ;;  %v9103_v42 = vld [vmem:[#allocation16 + $0x8] sm:$0xff] }
 0x8b1   : > { %16171 = vmatmul.mubr.msk.f32.gmra.mrb[48].mxu1 %vm985_vm6, %v23090_v24 }
 0x8b2   : > { %16173 = vmatprep.mubr.msk.f32.mxu1 %vm985_vm6, %v23125_v23  ;;  %17432 = vmatpush3.bf16.msra.mxu1 %v17429_v15  ;;  %v8622_v15 = vld [vmem:[#allocation13 + $0x1b0] sm:$0xff] }
 0x8b3   : > { %17434 = vmatprep.subr.bf16.mxu1 %v17433_v12 }
 0x8b5   : > { %16174 = vmatmul.mubr.msk.f32.gmra.mrb[50].mxu1 %vm985_vm6, %v23116_v17 }
 0x8b6   : > { %16176 = vmatprep.mubr.msk.f32.mxu1 %vm985_vm6, %v23145_v34  ;;  %17436 = vmatpush3.bf16.msra.mxu1 %v17433_v12  ;;  %v8489_v12 = vrot.slane %v7771_v22, 2  ;;  %v8875_v22 = vld [vmem:[#allocation13 + $0x218] sm:$0xff] }
 0x8b7   : > { %17438 = vmatprep.subr.bf16.mxu1 %v17437_v27 }
 0x8b8   : > { %v23279_v55 = vsel %vm1790_vm5, %v8488_v14, %v8489_v12 }
 0x8b9   : > { %16177 = vmatmul.mubr.msk.f32.gmra.mrb[52].mxu1 %vm985_vm6, %v23239_v19 }
 0x8ba   : > { %17440 = vmatpush3.bf16.msra.mxu1 %v17437_v27  ;;  %16195 = vmatprep.mubr.msk.f32.mxu1 %vm985_vm6, %v23088_v21  ;;  %v17453_v21 = vpack.c.bf16 %v8499_v28, %v8498_v11  ;;  %v17473_v27 = vpack.c.bf16 %v8746_v20, %v8745_v25  ;;  %v8872_v11 = vld [vmem:[#allocation13 + $0x200] sm:$0xff]  ;;  %v8873_v28 = vld [vmem:[#allocation13 + $0x208] sm:$0xff] }
 0x8bb   : > { %17442 = vmatprep.subr.bf16.mxu1 %v17441_v26 }
 0x8bd   : > { %16196 = vmatmul.mubr.msk.f32.vlgmr.msra.gmra.mrb[46].mxu1 %vm985_vm6, %v23098_v18 }
 0x8be   : > { %16198 = vmatprep.mubr.msk.f32.mxu1 %vm985_vm6, %v23114_v48  ;;  %17444 = vmatpush3.bf16.msra.mxu1 %v17441_v26  ;;  %v8748_v26 = vld [vmem:[#allocation13 + $0x1d8] sm:$0xff] }
 0x8bf   : > { %17446 = vmatprep.subr.bf16.mxu1 %v17445_v7  ;;  %v17477_v3 = vpack.c.bf16 %v8748_v26, %v8747_v43 }
 0x8c1   : > { %16199 = vmatmul.mubr.msk.f32.gmra.mrb[48].mxu1 %vm985_vm6, %v23123_v35 }
 0x8c2   : > { %16201 = vmatprep.mubr.msk.f32.mxu1 %vm985_vm6, %v23136_v16  ;;  %17448 = vmatpush3.bf16.msra.mxu1 %v17445_v7  ;;  %v8750_v7 = vld [vmem:[#allocation13 + $0x1e8] sm:$0xff] }
 0x8c3   : > { %17450 = vmatprep.subr.bf16.mxu1 %v17449_v44  ;;  %v17481_v51 = vpack.c.bf16 %v8750_v7, %v8749_v56 }
 0x8c5   : > { %16202 = vmatmul.mubr.msk.f32.gmra.mrb[50].mxu1 %vm985_vm6, %v23141_v32 }
 0x8c6   : > { %16204 = vmatprep.mubr.msk.f32.mxu1 %vm985_vm6, %v23152_v29  ;;  %17452 = vmatpush3.bf16.msra.mxu1 %v17449_v44  ;;  %v8752_v44 = vld [vmem:[#allocation13 + $0x1f8] sm:$0xff] }
 0x8c7   : > { %17454 = vmatprep.subr.bf16.mxu1 %v17453_v21 }
 0x8c9   : > { %16205 = vmatmul.mubr.msk.f32.gmra.mrb[52].mxu1 %vm985_vm6, %v23259_v30 }
 0x8ca   : > { %17456 = vmatpush3.bf16.msra.mxu1 %v17453_v21  ;;  %16223 = vmatprep.mubr.msk.f32.mxu1 %vm985_vm6, %v23181_v6  ;;  %v17469_v6 = vpack.c.bf16 %v8623_v1, %v8622_v15  ;;  %v8877_v21 = vld [vmem:[#allocation13 + $0x228] sm:$0xff]  ;;  %v13951_v15 = vld [vmem:[#allocation14] ss:$0 sm:$0xff] }
 0x8cb   : > { %17458 = vmatprep.subr.bf16.mxu1 %v17457_v49 }
 0x8cd   : > { %16224 = vmatmul.mubr.msk.f32.vlgmr.msra.gmra.mrb[46].mxu1 %vm985_vm6, %v23188_v37 }
 0x8ce   : > { %16226 = vmatprep.mubr.msk.f32.mxu1 %vm985_vm6, %v23195_v47  ;;  %17460 = vmatpush3.bf16.msra.mxu1 %v17457_v49  ;;  %v9126_v49 = vrot.slane %v23335_v9, 1 }
 0x8cf   : > { %17462 = vmatprep.subr.bf16.mxu1 %v17461_v62 }
 0x8d1   : > { %16227 = vmatmul.mubr.msk.f32.gmra.mrb[48].mxu1 %vm985_vm6, %v23202_v58 }
 0x8d2   : > { %16229 = vmatprep.mubr.msk.f32.mxu1 %vm985_vm6, %v23209_v8  ;;  %17464 = vmatpush3.bf16.msra.mxu1 %v17461_v62 }
 0x8d3   : > { %17466 = vmatprep.subr.bf16.mxu1 %v17465_v59 }
 0x8d5   : > { %16230 = vmatmul.mubr.msk.f32.gmra.mrb[50].mxu1 %vm985_vm6, %v23216_v52 }
 0x8d6   : > { %16232 = vmatprep.mubr.msk.f32.mxu1 %vm985_vm6, %v23221_v31  ;;  %17468 = vmatpush3.bf16.msra.mxu1 %v17465_v59  ;;  %v23345_v59 = vpack.c.bf16 %v9103_v42, %v9102_v46 }
 0x8d7   : > { %17470 = vmatprep.subr.bf16.mxu1 %v17469_v6 }
 0x8d9   : > { %16233 = vmatmul.mubr.msk.f32.gmra.mrb[52].mxu1 %vm985_vm6, %v23279_v55 }
 0x8da   : > { %17472 = vmatpush3.bf16.msra.mxu1 %v17469_v6  ;;  %16251 = vmatprep.mubr.msk.f32.mxu1 %vm985_vm6, %v23073_v10  ;;  %v17485_v10 = vpack.c.bf16 %v8752_v44, %v8751_v63 }
 0x8db   : > { %17474 = vmatprep.subr.bf16.mxu1 %v17473_v27 }
 0x8dd   : > { %16252 = vmatmul.mubr.msk.f32.vlgmr.msra.gmra.mrb[46].mxu1 %vm985_vm6, %v23100_v57  ;;  %v8874_v57 = vld [vmem:[#allocation13 + $0x210] sm:$0xff] }
 0x8de   : > { %16254 = vmatprep.mubr.msk.f32.mxu1 %vm985_vm6, %v23090_v24  ;;  %17476 = vmatpush3.bf16.msra.mxu1 %v17473_v27  ;;  %v17489_v24 = vpack.c.bf16 %v8873_v28, %v8872_v11 }
 0x8df   : > { %17478 = vmatprep.subr.bf16.mxu1 %v17477_v3 }
 0x8e1   : > { %16255 = vmatmul.mubr.msk.f32.gmra.mrb[48].mxu1 %vm985_vm6, %v23125_v23  ;;  %v8876_v23 = vld [vmem:[#allocation13 + $0x220] sm:$0xff] }
 0x8e2   : > { %16257 = vmatprep.mubr.msk.f32.mxu1 %vm985_vm6, %v23116_v17  ;;  %17480 = vmatpush3.bf16.msra.mxu1 %v17477_v3  ;;  %v17493_v17 = vpack.c.bf16 %v8875_v22, %v8874_v57 }
 0x8e3   : > { %17482 = vmatprep.subr.bf16.mxu1 %v17481_v51 }
 0x8e5   : > { %16258 = vmatmul.mubr.msk.f32.gmra.mrb[50].mxu1 %vm985_vm6, %v23145_v34  ;;  %v17497_v34 = vpack.c.bf16 %v8877_v21, %v8876_v23 }
 0x8e6   : > { %16260 = vmatprep.mubr.msk.f32.mxu1 %vm985_vm6, %v23239_v19  ;;  %17484 = vmatpush3.bf16.msra.mxu1 %v17481_v51  ;;  %v7773_v19 = vld [vmem:[#allocation4 + $0x98] sm:$0x3] }
 0x8e7   : > { %17486 = vmatprep.subr.bf16.mxu1 %v17485_v10 }
 0x8e9   : > { %16261 = vmatmul.mubr.msk.f32.gmra.mrb[52].mxu1 %vm985_vm6, %v22992_v4 }
 0x8ea   : > { %17488 = vmatpush3.bf16.msra.mxu1 %v17485_v10  ;;  %16279 = vmatprep.mubr.msk.f32.mxu1 %vm985_vm6, %v23098_v18  ;;  %v8742_v18 = vrot.slane %v7773_v19, 1 }
 0x8eb   : > { %17490 = vmatprep.subr.bf16.mxu1 %v17489_v24 }
 0x8ed   : > { %16280 = vmatmul.mubr.msk.f32.vlgmr.msra.gmra.mrb[46].mxu1 %vm985_vm6, %v23114_v48  ;;  %v8743_v48 = vsel %vm1541_vm4, %v7406_v40, %v8742_v18  ;;  %v8869_v40 = vrot.slane %v7773_v19, 2 }
 0x8ee   : > { %16282 = vmatprep.mubr.msk.f32.mxu1 %vm985_vm6, %v23123_v35  ;;  %17492 = vmatpush3.bf16.msra.mxu1 %v17489_v24 }
 0x8ef   : > { %17494 = vmatprep.subr.bf16.mxu1 %v17493_v17  ;;  %v8870_v35 = vsel %vm1790_vm5, %v7533_v41, %v8869_v40 }
 0x8f1   : > { %16283 = vmatmul.mubr.msk.f32.gmra.mrb[48].mxu1 %vm985_vm6, %v23136_v16  ;;  %v9151_v16 = vld [vmem:[#allocation16 + $0x40] sm:$0xff] }
 0x8f2   : > { %16285 = vmatprep.mubr.msk.f32.mxu1 %vm985_vm6, %v23141_v32  ;;  %17496 = vmatpush3.bf16.msra.mxu1 %v17493_v17  ;;  %v9152_v32 = vld [vmem:[#allocation16 + $0x48] sm:$0xff] }
 0x8f3   : > { %17498 = vmatprep.subr.bf16.mxu1 %v17497_v34 }
 0x8f5   : > { %16286 = vmatmul.mubr.msk.f32.gmra.mrb[50].mxu1 %vm985_vm6, %v23152_v29  ;;  %v9153_v29 = vld [vmem:[#allocation16 + $0x50] sm:$0xff] }
 0x8f6   : > { %16288 = vmatprep.mubr.msk.f32.mxu1 %vm985_vm6, %v23259_v30  ;;  %17500 = vmatpush3.bf16.msra.mxu1 %v17497_v34  ;;  %v9157_v30 = vld [vmem:[#allocation16 + $0x70] sm:$0xff] }
 0x8f7   : > { %17502 = vmatprep.subr.bf16.mxu1 %v17501_v53  ;;  %v17517_v62 = vpack.c.bf16 %v9158_v45, %v9157_v30 }
 0x8f9   : > { %16289 = vmatmul.mubr.msk.f32.gmra.mrb[52].mxu1 %vm985_vm6, %v8743_v48 }
 0x8fa   : > { %17504 = vmatpush3.bf16.msra.mxu1 %v17501_v53  ;;  %16307 = vmatprep.mubr.msk.f32.mxu1 %vm985_vm6, %v23188_v37  ;;  %v17505_v37 = vpack.c.bf16 %v9152_v32, %v9151_v16 }
 0x8fc   : > { %17506 = vmatprep.subr.bf16.mxu1 %v17505_v37 }
 0x8fd   : > { %16308 = vmatmul.mubr.msk.f32.vlgmr.msra.gmra.mrb[46].mxu1 %vm985_vm6, %v23195_v47  ;;  %v9154_v47 = vld [vmem:[#allocation16 + $0x58] sm:$0xff] }
 0x8fe   : > { %16310 = vmatprep.mubr.msk.f32.mxu1 %vm985_vm6, %v23202_v58  ;;  %v17509_v58 = vpack.c.bf16 %v9154_v47, %v9153_v29  ;;  %17508 = vmatpush3.bf16.msra.mxu1 %v17505_v37 }
 0x900   : > { %17510 = vmatprep.subr.bf16.mxu1 %v17509_v58 }
 0x901   : > { %16311 = vmatmul.mubr.msk.f32.gmra.mrb[48].mxu1 %vm985_vm6, %v23209_v8  ;;  %v9155_v8 = vld [vmem:[#allocation16 + $0x60] sm:$0xff] }
 0x902   : > { %16313 = vmatprep.mubr.msk.f32.mxu1 %vm985_vm6, %v23216_v52  ;;  %v9156_v52 = vld [vmem:[#allocation16 + $0x68] sm:$0xff]  ;;  %17512 = vmatpush3.bf16.msra.mxu1 %v17509_v58 }
 0x903   : > { %v17513_v41 = vpack.c.bf16 %v9156_v52, %v9155_v8 }
 0x905   : > { %16314 = vmatmul.mubr.msk.f32.gmra.mrb[50].mxu1 %vm985_vm6, %v23221_v31  ;;  %v23337_v31 = vld [vmem:[#allocation4 + $0x8] sm:$0x3]  ;;  %17514 = vmatprep.subr.bf16.mxu1 %v17513_v41 }
 0x906   : > { %16316 = vmatprep.mubr.msk.f32.mxu1 %vm985_vm6, %v23279_v55  ;;  %v9127_v4 = vrot.slane %v23337_v31, 1  ;;  %17516 = vmatpush3.bf16.msra.mxu1 %v17513_v41 }
 0x907   : > { %17518 = vmatprep.subr.bf16.mxu1 %v17517_v62 }
 0x908   : > { %v9128_v54 = vsel %vm1541_vm4, %v9126_v49, %v9127_v4 }
 0x909   : > { %16317 = vmatmul.mubr.msk.f32.gmra.mrb[52].mxu1 %vm985_vm6, %v8870_v35 }
 0x90a   : > { %16335 = vmatprep.mubr.msk.f32.mxu1 %vm985_vm6, %v9128_v54  ;;  %17520 = vmatpush3.bf16.msra.mxu1 %v17517_v62 }
 0x90b   : > { %17522 = vmatprep.subr.bf16.mxu1 %v23345_v59 }
 0x9d0   : > { %v16309_v1 = vpop.f32.mrb[46].mxu1 }
 0x9d1   : > { %v9003_v6 = vadd.f32 %v16309_v1, %v13951_v15  ;;  %v8948_v14 = vpop.f32.mrb[47].mxu1  ;;  %v9104_v1 = vld [vmem:[#allocation16 + $0x10] sm:$0xff] }
 0x9d2   : > { %v9002_v12 = vadd.f32 %v13951_v15, %v8948_v14 }
 0x9d3   : > { %v23349_v25 = vadd.f32 %v22566_v36, %v9003_v6 }
 0x9d4   : > { %v23352_v20 = vadd.f32 %v22563_v39, %v9002_v12  ;;  %v16312_v27 = vpop.f32.mrb[48].mxu1 }
 0x9d5   : > { %v13953_v55 = vmul.f32 -1.442695, %v23349_v25  ;;  %v9005_v43 = vadd.f32 %v16312_v27, %v13951_v15  ;;  %v8958_v26 = vpop.f32.mrb[49].mxu1  ;;  %v9105_v27 = vld [vmem:[#allocation16 + $0x18] sm:$0xff] }
 0x9d6   : > { %v13952_v3 = vmul.f32 -1.442695, %v23352_v20  ;;  %v9004_v56 = vadd.f32 %v13951_v15, %v8958_v26 }
 0x9d7   : > { %18872 = vpow2.f32 %v13953_v55  ;;  %v23357_v7 = vadd.f32 %v22572_v61, %v9005_v43 }
 0x9d8   : > { %18874 = vpow2.f32 %v13952_v3  ;;  %v23360_v51 = vadd.f32 %v22569_v33, %v9004_v56  ;;  %v16315_v36 = vpop.f32.mrb[50].mxu1 }
 0x9d9   : > { %v13955_v39 = vmul.f32 -1.442695, %v23357_v7  ;;  %v9007_v63 = vadd.f32 %v16315_v36, %v13951_v15  ;;  %v8968_v44 = vpop.f32.mrb[51].mxu1 }
 0x9da   : > { %v13954_v10 = vmul.f32 -1.442695, %v23360_v51  ;;  %v9006_v11 = vadd.f32 %v13951_v15, %v8968_v44  ;;  %v17525_v44 = vpack.c.bf16 %v9105_v27, %v9104_v1  ;;  %v9428_v1 = vld [vmem:[#allocation16 + $0x90] sm:$0xff] }
 0x9db   : > { %18876 = vpow2.f32 %v13955_v39  ;;  %v23365_v28 = vadd.f32 %v22578_v5, %v9007_v63 }
 0x9dc   : > { %18878 = vpow2.f32 %v13954_v10  ;;  %v23368_v61 = vadd.f32 %v22575_v38, %v9006_v11  ;;  %v16318_v24 = vpop.f32.mrb[52].mxu1  ;;  %v9106_v10 = vld [vmem:[#allocation16 + $0x20] sm:$0xff] }
 0x9dd   : > { %v13957_v33 = vmul.f32 -1.442695, %v23365_v28  ;;  %v9009_v57 = vadd.f32 %v16318_v24, %v13951_v15  ;;  %v8978_v22 = vpop.f32.mrb[53].mxu1 }
 0x9de   : > { %v13956_v17 = vmul.f32 -1.442695, %v23368_v61  ;;  %v9008_v23 = vadd.f32 %v13951_v15, %v8978_v22 }
 0x9df   : > { %18880 = vpow2.f32 %v13957_v33  ;;  %v23373_v21 = vadd.f32 %v22585_v0, %v9009_v57  ;;  %v9107_v57 = vld [vmem:[#allocation16 + $0x28] sm:$0xff] }
 0x9e0   : > { %18882 = vpow2.f32 %v13956_v17  ;;  %v23376_v5 = vadd.f32 %v22581_v2, %v9008_v23 }
 0x9e1   : > { %v18873_v34 = vpop.eup %18872  ;;  %v13959_v38 = vmul.f32 -1.442695, %v23373_v21 }
 0x9e2   : > { %v18875_v19 = vpop.eup %18874  ;;  %v9043_v13 = vadd.f32 1.0, %v18873_v34  ;;  %v13958_v60 = vmul.f32 -1.442695, %v23376_v5 }
 0x9e3   : > { %v9042_v18 = vadd.f32 1.0, %v18875_v19  ;;  %18884 = vpow2.f32 %v13959_v38 }
 0x9e4   : > { %18886 = vrcp.f32 %v9043_v13 }
 0x9e5   : > { %v18877_v53 = vpop.eup %18876  ;;  %18888 = vrcp.f32 %v9042_v18 }
 0x9e6   : > { %v18879_v48 = vpop.eup %18878  ;;  %v9045_v40 = vadd.f32 1.0, %v18877_v53  ;;  %18890 = vpow2.f32 %v13958_v60  ;;  %v17529_v53 = vpack.c.bf16 %v9107_v57, %v9106_v10  ;;  %v9402_v10 = vrot.slane %v23337_v31, 2  ;;  %v9564_v57 = vld [vmem:[#allocation16 + $0xc0] sm:$0xff]  ;;  %v9566_v31 = vld [vmem:[#allocation16 + $0xd0] sm:$0xff] }
 0x9e7   : > { %v9044_v0 = vadd.f32 1.0, %v18879_v48  ;;  %v9108_v48 = vld [vmem:[#allocation16 + $0x30] sm:$0xff] }
 0x9e8   : > { %18892 = vrcp.f32 %v9045_v40 }
 0x9e9   : > { %v18881_v35 = vpop.eup %18880  ;;  %18894 = vrcp.f32 %v9044_v0 }
 0x9ea   : > { %v18883_v2 = vpop.eup %18882  ;;  %v9047_v16 = vadd.f32 1.0, %v18881_v35 }
 0x9eb   : > { %v9046_v32 = vadd.f32 1.0, %v18883_v2  ;;  %v9109_v2 = vld [vmem:[#allocation16 + $0x38] sm:$0xff] }
 0x9ec   : > { %18896 = vrcp.f32 %v9047_v16 }
 0x9ed   : > { %v18885_v29 = vpop.eup %18884  ;;  %18898 = vrcp.f32 %v9046_v32 }
 0x9ee   : > { %v18887_v37 = vpop.eup %18886  ;;  %v9049_v47 = vadd.f32 1.0, %v18885_v29 }
 0x9ef   : > { %v18889_v58 = vpop.eup %18888  ;;  %v9067_v8 = vmul.f32 %v18887_v37, %v23349_v25 }
 0x9f0   : > { %v18891_v52 = vpop.eup %18890  ;;  %v9066_v4 = vmul.f32 %v18889_v58, %v23352_v20  ;;  %18900 = vrcp.f32 %v9049_v47 }
 0x9f1   : > { %9075 = vst.msk [vmem:[#allocation4 + $0x21] sm:$0xff] %vm985_vm6, %v9067_v8  ;;  %v9048_v41 = vadd.f32 1.0, %v18891_v52  ;;  %v17533_v8 = vpack.c.bf16 %v9109_v2, %v9108_v48 }
 0x9f2   : > { %v18893_v30 = vpop.eup %18892  ;;  %9074 = vst.msk [vmem:[#allocation4 + $0x11] sm:$0xff] %vm985_vm6, %v9066_v4  ;;  %v9426_v4 = vld [vmem:[#allocation16 + $0x80] sm:$0xff] }
 0x9f3   : > { %v18895_v45 = vpop.eup %18894  ;;  %v9069_v54 = vmul.f32 %v18893_v30, %v23357_v7  ;;  %18902 = vrcp.f32 %v9048_v41  ;;  %v9427_v41 = vld [vmem:[#allocation16 + $0x88] sm:$0xff] }
 0x9f4   : > { %v9068_v62 = vmul.f32 %v18895_v45, %v23360_v51 }
 0x9f5   : > { %9077 = vst.msk [vmem:[#allocation4 + $0x41] sm:$0xff] %vm985_vm6, %v9069_v54 }
 0x9f6   : > { %v18897_v46 = vpop.eup %18896  ;;  %9076 = vst.msk [vmem:[#allocation4 + $0x31] sm:$0xff] %vm985_vm6, %v9068_v62  ;;  %v17537_v62 = vpack.c.bf16 %v9427_v41, %v9426_v4 }
 0x9f7   : > { %v18899_v42 = vpop.eup %18898  ;;  %v9071_v15 = vmul.f32 %v18897_v46, %v23365_v28 }
 0x9f8   : > { %v9070_v6 = vmul.f32 %v18899_v42, %v23368_v61  ;;  %v23390_v14 = vld [vmem:[#allocation4 + $0x20] sm:$0xff]  ;;  %v23392_v12 = vld [vmem:[#allocation4 + $0x28] sm:$0x3] }
 0x9f9   : > { %9079 = vst.msk [vmem:[#allocation4 + $0x61] sm:$0xff] %vm985_vm6, %v9071_v15  ;;  %v23395_v55 = vld [vmem:[#allocation4 + $0x10] sm:$0xff]  ;;  %v23397_v43 = vld [vmem:[#allocation4 + $0x18] sm:$0x3]  ;;  %v9132_v26 = vrot.slane %v23390_v14, 1  ;;  %v9133_v3 = vrot.slane %v23392_v12, 1 }
 0x9fa   : > { %v18901_v56 = vpop.eup %18900  ;;  %9078 = vst.msk [vmem:[#allocation4 + $0x51] sm:$0xff] %vm985_vm6, %v9070_v6  ;;  %v9129_v36 = vrot.slane %v23395_v55, 1  ;;  %v9130_v39 = vrot.slane %v23397_v43, 1  ;;  %v9429_v6 = vld [vmem:[#allocation16 + $0x98] sm:$0xff]  ;;  %v9408_v48 = vrot.slane %v23392_v12, 2 }
 0x9fb   : > { %v9073_v63 = vmul.f32 %v18901_v56, %v23373_v21  ;;  %v23416_v17 = vsel %vm1541_vm4, %v9132_v26, %v9133_v3  ;;  %v17541_v27 = vpack.c.bf16 %v9429_v6, %v9428_v1  ;;  %v9430_v26 = vld [vmem:[#allocation16 + $0xa0] sm:$0xff]  ;;  %v9431_v3 = vld [vmem:[#allocation16 + $0xa8] sm:$0xff]  ;;  %v9571_v1 = vld [vmem:[#allocation16 + $0xf8] sm:$0xff] }
 0x9fc   : > { %v23406_v11 = vsel %vm1541_vm4, %v9129_v36, %v9130_v39  ;;  %v23408_v24 = vld [vmem:[#allocation4 + $0x40] sm:$0xff]  ;;  %v23410_v33 = vld [vmem:[#allocation4 + $0x48] sm:$0x3]  ;;  %v17545_v56 = vpack.c.bf16 %v9431_v3, %v9430_v26  ;;  %v9433_v39 = vld [vmem:[#allocation16 + $0xb8] sm:$0xff] }
 0x9fd   : > { %v18903_v22 = vpop.eup %18902  ;;  %9081 = vst.msk [vmem:[#allocation4 + $0x81] sm:$0xff] %vm985_vm6, %v9073_v63  ;;  %16336 = vmatmul.mubr.msk.f32.vlgmr.msra.gmra.mrb[54].mxu1 %vm985_vm6, %v23406_v11  ;;  %v23418_v23 = vld [vmem:[#allocation4 + $0x30] sm:$0xff]  ;;  %v23420_v34 = vld [vmem:[#allocation4 + $0x38] sm:$0x3]  ;;  %v9138_v38 = vrot.slane %v23408_v24, 1  ;;  %v9139_v19 = vrot.slane %v23410_v33, 1 }
 0x9fe   : > { %v9072_v13 = vmul.f32 %v18903_v22, %v23376_v5  ;;  %16338 = vmatprep.mubr.msk.f32.mxu1 %vm985_vm6, %v23416_v17  ;;  %17524 = vmatpush3.bf16.msra.mxu1 %v23345_v59  ;;  %v9135_v60 = vrot.slane %v23418_v23, 1  ;;  %v9136_v18 = vrot.slane %v23420_v34, 1  ;;  %v9432_v36 = vld [vmem:[#allocation16 + $0xb0] sm:$0xff]  ;;  %v9565_v22 = vld [vmem:[#allocation16 + $0xc8] sm:$0xff]  ;;  %v9413_v12 = vrot.slane %v23408_v24, 2 }
 0x9ff   : > { %17526 = vmatprep.subr.bf16.mxu1 %v17525_v44  ;;  %v23441_v59 = vsel %vm1541_vm4, %v9138_v38, %v9139_v19  ;;  %v17549_v63 = vpack.c.bf16 %v9433_v39, %v9432_v36  ;;  %v17553_v19 = vpack.c.bf16 %v9565_v22, %v9564_v57  ;;  %v9414_v4 = vrot.slane %v23410_v33, 2  ;;  %v9693_v36 = vld [vmem:[#allocation16 + $0x100] sm:$0xff]  ;;  %v9694_v39 = vld [vmem:[#allocation16 + $0x108] sm:$0xff]  ;;  %v9695_v57 = vld [vmem:[#allocation16 + $0x110] sm:$0xff] }
 0xa00   : > { %9080 = vst.msk [vmem:[#allocation4 + $0x71] sm:$0xff] %vm985_vm6, %v9072_v13  ;;  %v23432_v40 = vsel %vm1541_vm4, %v9135_v60, %v9136_v18  ;;  %v23434_v0 = vld [vmem:[#allocation4 + $0x60] sm:$0xff]  ;;  %v23436_v35 = vld [vmem:[#allocation4 + $0x68] sm:$0x3]  ;;  %v9404_v13 = vrot.slane %v23395_v55, 2  ;;  %v9405_v60 = vrot.slane %v23397_v43, 2 }
 0xa01   : > { %16339 = vmatmul.mubr.msk.f32.gmra.mrb[56].mxu1 %vm985_vm6, %v23432_v40  ;;  %v23443_v16 = vld [vmem:[#allocation4 + $0x50] sm:$0xff]  ;;  %v23445_v32 = vld [vmem:[#allocation4 + $0x58] sm:$0x3]  ;;  %v9144_v29 = vrot.slane %v23434_v0, 1  ;;  %v9145_v37 = vrot.slane %v23436_v35, 1  ;;  %v9411_v43 = vrot.slane %v23420_v34, 2  ;;  %v23522_v33 = vsel %vm1790_vm5, %v9413_v12, %v9414_v4 }
 0xa02   : > { %16341 = vmatprep.mubr.msk.f32.mxu1 %vm985_vm6, %v23441_v59  ;;  %17528 = vmatpush3.bf16.msra.mxu1 %v17525_v44  ;;  %v9141_v47 = vrot.slane %v23443_v16, 1  ;;  %v9142_v58 = vrot.slane %v23445_v32, 1  ;;  %v9401_v44 = vrot.slane %v23335_v9, 2  ;;  %v9567_v18 = vld [vmem:[#allocation16 + $0xd8] sm:$0xff]  ;;  %v9419_v6 = vrot.slane %v23434_v0, 2  ;;  %v9825_v12 = vld [vmem:[#allocation16 + $0x168] sm:$0xff] }
 0xa03   : > { %17530 = vmatprep.subr.bf16.mxu1 %v17529_v53  ;;  %v23459_v30 = vsel %vm1541_vm4, %v9144_v29, %v9145_v37  ;;  %v17557_v2 = vpack.c.bf16 %v9567_v18, %v9566_v31  ;;  %v23501_v29 = vsel %vm1790_vm5, %v9404_v13, %v9405_v60  ;;  %v9410_v37 = vrot.slane %v23418_v23, 2  ;;  %v9696_v22 = vld [vmem:[#allocation16 + $0x118] sm:$0xff]  ;;  %v9699_v60 = vld [vmem:[#allocation16 + $0x130] sm:$0xff]  ;;  %v9820_v18 = vld [vmem:[#allocation16 + $0x140] sm:$0xff] }
 0xa04   : > { %v23454_v52 = vsel %vm1541_vm4, %v9141_v47, %v9142_v58  ;;  %v9403_v38 = vsel %vm1790_vm5, %v9401_v44, %v9402_v10  ;;  %v9568_v47 = vld [vmem:[#allocation16 + $0xe0] sm:$0xff]  ;;  %v9569_v58 = vld [vmem:[#allocation16 + $0xe8] sm:$0xff]  ;;  %v9700_v31 = vld [vmem:[#allocation16 + $0x138] sm:$0xff] }
 0xa05   : > { %16342 = vmatmul.mubr.msk.f32.gmra.mrb[58].mxu1 %vm985_vm6, %v23454_v52  ;;  %v17561_v41 = vpack.c.bf16 %v9569_v58, %v9568_v47  ;;  %v23515_v34 = vsel %vm1790_vm5, %v9410_v37, %v9411_v43  ;;  %v9822_v37 = vld [vmem:[#allocation16 + $0x150] sm:$0xff]  ;;  %v9823_v43 = vld [vmem:[#allocation16 + $0x158] sm:$0xff]  ;;  %v9824_v58 = vld [vmem:[#allocation16 + $0x160] sm:$0xff] }
 0xa06   : > { %16344 = vmatprep.mubr.msk.f32.mxu1 %vm985_vm6, %v23459_v30  ;;  %17532 = vmatpush3.bf16.msra.mxu1 %v17529_v53  ;;  %v9407_v53 = vrot.slane %v23390_v14, 2  ;;  %v17589_v47 = vpack.c.bf16 %v9823_v43, %v9822_v37  ;;  %v17593_v4 = vpack.c.bf16 %v9825_v12, %v9824_v58  ;;  %v10077_v43 = vld [vmem:[#allocation16 + $0x1e0] sm:$0xff]  ;;  %v10079_v12 = vld [vmem:[#allocation16 + $0x1f0] sm:$0xff] }
 0xa07   : > { %v23463_v45 = vld [vmem:[#allocation4 + $0x70] sm:$0xff]  ;;  %v23465_v54 = vld [vmem:[#allocation4 + $0x78] sm:$0x3]  ;;  %17534 = vmatprep.subr.bf16.mxu1 %v17533_v8 }
 0xa08   : > { %v9147_v46 = vrot.slane %v23463_v45, 1  ;;  %v9148_v42 = vrot.slane %v23465_v54, 1  ;;  %v9422_v3 = vrot.slane %v23463_v45, 2 }
 0xa0a   : > { %v23470_v15 = vsel %vm1541_vm4, %v9147_v46, %v9148_v42  ;;  %17536 = vmatpush3.bf16.msra.mxu1 %v17533_v8  ;;  %v23508_v8 = vsel %vm1790_vm5, %v9407_v53, %v9408_v48  ;;  %v9417_v46 = vrot.slane %v23445_v32, 2  ;;  %v9570_v42 = vld [vmem:[#allocation16 + $0xf0] sm:$0xff]  ;;  %v9821_v53 = vld [vmem:[#allocation16 + $0x148] sm:$0xff] }
 0xa0b   : > { %16345 = vmatmul.mubr.msk.f32.gmra.mrb[60].mxu1 %vm985_vm6, %v23470_v15  ;;  %17538 = vmatprep.subr.bf16.mxu1 %v17537_v62  ;;  %v17565_v26 = vpack.c.bf16 %v9571_v1, %v9570_v42  ;;  %v17585_v48 = vpack.c.bf16 %v9821_v53, %v9820_v18  ;;  %v10075_v53 = vld [vmem:[#allocation16 + $0x1d0] sm:$0xff] }
 0xa0c   : > { %16363 = vmatprep.mubr.msk.f32.mxu1 %vm985_vm6, %v23335_v9 }
 0xa0f   : > { %16364 = vmatmul.mubr.msk.f32.vlgmr.msra.gmra.mrb[54].mxu1 %vm985_vm6, %v23395_v55 }
 0xa10   : > { %16366 = vmatprep.mubr.msk.f32.mxu1 %vm985_vm6, %v23390_v14  ;;  %17540 = vmatpush3.bf16.msra.mxu1 %v17537_v62  ;;  %v9416_v62 = vrot.slane %v23443_v16, 2 }
 0xa11   : > { %17542 = vmatprep.subr.bf16.mxu1 %v17541_v27 }
 0xa12   : > { %v23529_v32 = vsel %vm1790_vm5, %v9416_v62, %v9417_v46  ;;  %v9827_v62 = vld [vmem:[#allocation16 + $0x178] sm:$0xff]  ;;  %v9099_v46 = vld [vmem:[#allocation4 + $0x88] sm:$0x3] }
 0xa13   : > { %16367 = vmatmul.mubr.msk.f32.gmra.mrb[56].mxu1 %vm985_vm6, %v23418_v23  ;;  %v9690_v1 = vrot.slane %v9099_v46, 1 }
 0xa14   : > { %16369 = vmatprep.mubr.msk.f32.mxu1 %vm985_vm6, %v23408_v24  ;;  %17544 = vmatpush3.bf16.msra.mxu1 %v17541_v27  ;;  %v9420_v27 = vrot.slane %v23436_v35, 2 }
 0xa15   : > { %17546 = vmatprep.subr.bf16.mxu1 %v17545_v56 }
 0xa16   : > { %v23536_v35 = vsel %vm1790_vm5, %v9419_v6, %v9420_v27  ;;  %v9944_v6 = vld [vmem:[#allocation16 + $0x180] sm:$0xff]  ;;  %v9945_v27 = vld [vmem:[#allocation16 + $0x188] sm:$0xff] }
 0xa17   : > { %16370 = vmatmul.mubr.msk.f32.gmra.mrb[58].mxu1 %vm985_vm6, %v23443_v16 }
 0xa18   : > { %16372 = vmatprep.mubr.msk.f32.mxu1 %vm985_vm6, %v23434_v0  ;;  %17548 = vmatpush3.bf16.msra.mxu1 %v17545_v56  ;;  %v9423_v56 = vrot.slane %v23465_v54, 2  ;;  %v17573_v54 = vpack.c.bf16 %v9696_v22, %v9695_v57  ;;  %v9949_v57 = vld [vmem:[#allocation16 + $0x1a8] sm:$0xff] }
 0xa19   : > { %17550 = vmatprep.subr.bf16.mxu1 %v17549_v63 }
 0xa1a   : > { %v23541_v10 = vsel %vm1790_vm5, %v9422_v3, %v9423_v56  ;;  %v9946_v56 = vld [vmem:[#allocation16 + $0x190] sm:$0xff] }
 0xa1b   : > { %16373 = vmatmul.mubr.msk.f32.gmra.mrb[60].mxu1 %vm985_vm6, %v23463_v45 }
 0xa1c   : > { %17552 = vmatpush3.bf16.msra.mxu1 %v17549_v63  ;;  %16391 = vmatprep.mubr.msk.f32.mxu1 %vm985_vm6, %v9403_v38  ;;  %v17569_v63 = vpack.c.bf16 %v9694_v39, %v9693_v36  ;;  %v9697_v38 = vld [vmem:[#allocation16 + $0x120] sm:$0xff]  ;;  %v9947_v36 = vld [vmem:[#allocation16 + $0x198] sm:$0xff] }
 0xa1d   : > { %17554 = vmatprep.subr.bf16.mxu1 %v17553_v19  ;;  %v17605_v39 = vpack.c.bf16 %v9947_v36, %v9946_v56  ;;  %v10491_v56 = vld [vmem:[#allocation17 + $0x68] sm:$0xff]  ;;  %v23659_v36 = vld [vmem:[#allocation4 + $0x8] sm:$0x3] }
 0xa1f   : > { %16392 = vmatmul.mubr.msk.f32.vlgmr.msra.gmra.mrb[54].mxu1 %vm985_vm6, %v23501_v29 }
 0xa20   : > { %16394 = vmatprep.mubr.msk.f32.mxu1 %vm985_vm6, %v23508_v8  ;;  %17556 = vmatpush3.bf16.msra.mxu1 %v17553_v19  ;;  %v9698_v19 = vld [vmem:[#allocation16 + $0x128] sm:$0xff] }
 0xa21   : > { %17558 = vmatprep.subr.bf16.mxu1 %v17557_v2  ;;  %v17577_v13 = vpack.c.bf16 %v9698_v19, %v9697_v38  ;;  %v9951_v38 = vld [vmem:[#allocation16 + $0x1b8] sm:$0xff] }
 0xa23   : > { %16395 = vmatmul.mubr.msk.f32.gmra.mrb[56].mxu1 %vm985_vm6, %v23515_v34 }
 0xa24   : > { %16397 = vmatprep.mubr.msk.f32.mxu1 %vm985_vm6, %v23522_v33  ;;  %17560 = vmatpush3.bf16.msra.mxu1 %v17557_v2  ;;  %v23559_v2 = vld [vmem:[#allocation4 + $0x80] sm:$0xff] }
 0xa25   : > { %17562 = vmatprep.subr.bf16.mxu1 %v17561_v41  ;;  %v9689_v42 = vrot.slane %v23559_v2, 1  ;;  %v9816_v19 = vrot.slane %v23559_v2, 2 }
 0xa27   : > { %16398 = vmatmul.mubr.msk.f32.gmra.mrb[58].mxu1 %vm985_vm6, %v23529_v32  ;;  %v23579_v3 = vsel %vm1541_vm4, %v9689_v42, %v9690_v1  ;;  %v9101_v42 = vld [vmem:[#allocation4 + $0x98] sm:$0x3]  ;;  %v10206_v1 = vld [vmem:[#allocation16 + $0x230] sm:$0xff] }
 0xa28   : > { %16400 = vmatprep.mubr.msk.f32.mxu1 %vm985_vm6, %v23536_v35  ;;  %17564 = vmatpush3.bf16.msra.mxu1 %v17561_v41  ;;  %v9826_v41 = vld [vmem:[#allocation16 + $0x170] sm:$0xff] }
 0xa29   : > { %17566 = vmatprep.subr.bf16.mxu1 %v17565_v26 }
 0xa2b   : > { %16401 = vmatmul.mubr.msk.f32.gmra.mrb[60].mxu1 %vm985_vm6, %v23541_v10 }
 0xa2c   : > { %17568 = vmatpush3.bf16.msra.mxu1 %v17565_v26  ;;  %16419 = vmatprep.mubr.msk.f32.mxu1 %vm985_vm6, %v23395_v55  ;;  %v17581_v55 = vpack.c.bf16 %v9700_v31, %v9699_v60  ;;  %v17601_v26 = vpack.c.bf16 %v9945_v27, %v9944_v6  ;;  %v10073_v60 = vld [vmem:[#allocation16 + $0x1c0] sm:$0xff]  ;;  %v10074_v31 = vld [vmem:[#allocation16 + $0x1c8] sm:$0xff]  ;;  %v10207_v6 = vld [vmem:[#allocation16 + $0x238] sm:$0xff]  ;;  %v10070_v27 = vrot.slane %v9101_v42, 1 }
 0xa2d   : > { %17570 = vmatprep.subr.bf16.mxu1 %v17569_v63 }
 0xa2f   : > { %16420 = vmatmul.mubr.msk.f32.vlgmr.msra.gmra.mrb[54].mxu1 %vm985_vm6, %v23390_v14 }
 0xa30   : > { %16422 = vmatprep.mubr.msk.f32.mxu1 %vm985_vm6, %v23418_v23  ;;  %17572 = vmatpush3.bf16.msra.mxu1 %v17569_v63  ;;  %v9948_v63 = vld [vmem:[#allocation16 + $0x1a0] sm:$0xff] }
 0xa31   : > { %17574 = vmatprep.subr.bf16.mxu1 %v17573_v54  ;;  %v17609_v22 = vpack.c.bf16 %v9949_v57, %v9948_v63  ;;  %v10492_v57 = vld [vmem:[#allocation17 + $0x70] sm:$0xff] }
 0xa33   : > { %16423 = vmatmul.mubr.msk.f32.gmra.mrb[56].mxu1 %vm985_vm6, %v23408_v24 }
 0xa34   : > { %16425 = vmatprep.mubr.msk.f32.mxu1 %vm985_vm6, %v23443_v16  ;;  %17576 = vmatpush3.bf16.msra.mxu1 %v17573_v54  ;;  %v9950_v54 = vld [vmem:[#allocation16 + $0x1b0] sm:$0xff] }
 0xa35   : > { %17578 = vmatprep.subr.bf16.mxu1 %v17577_v13 }
 0xa37   : > { %16426 = vmatmul.mubr.msk.f32.gmra.mrb[58].mxu1 %vm985_vm6, %v23434_v0 }
 0xa38   : > { %16428 = vmatprep.mubr.msk.f32.mxu1 %vm985_vm6, %v23463_v45  ;;  %17580 = vmatpush3.bf16.msra.mxu1 %v17577_v13  ;;  %v9817_v13 = vrot.slane %v9099_v46, 2  ;;  %v10203_v46 = vld [vmem:[#allocation16 + $0x218] sm:$0xff] }
 0xa39   : > { %17582 = vmatprep.subr.bf16.mxu1 %v17581_v55 }
 0xa3a   : > { %v23599_v18 = vsel %vm1790_vm5, %v9816_v19, %v9817_v13 }
 0xa3b   : > { %16429 = vmatmul.mubr.msk.f32.gmra.mrb[60].mxu1 %vm985_vm6, %v23559_v2 }
 0xa3c   : > { %17584 = vmatpush3.bf16.msra.mxu1 %v17581_v55  ;;  %16447 = vmatprep.mubr.msk.f32.mxu1 %vm985_vm6, %v23406_v11  ;;  %v17597_v11 = vpack.c.bf16 %v9827_v62, %v9826_v41  ;;  %v17617_v55 = vpack.c.bf16 %v10074_v31, %v10073_v60  ;;  %v10200_v41 = vld [vmem:[#allocation16 + $0x200] sm:$0xff]  ;;  %v10201_v62 = vld [vmem:[#allocation16 + $0x208] sm:$0xff] }
 0xa3d   : > { %17586 = vmatprep.subr.bf16.mxu1 %v17585_v48  ;;  %v14033_v60 = vld [vmem:[%s869_s6] ss:$0 sm:$0xff] }
 0xa3f   : > { %16448 = vmatmul.mubr.msk.f32.vlgmr.msra.gmra.mrb[54].mxu1 %vm985_vm6, %v23416_v17 }
 0xa40   : > { %16450 = vmatprep.mubr.msk.f32.mxu1 %vm985_vm6, %v23432_v40  ;;  %17588 = vmatpush3.bf16.msra.mxu1 %v17585_v48  ;;  %v10076_v48 = vld [vmem:[#allocation16 + $0x1d8] sm:$0xff] }
 0xa41   : > { %17590 = vmatprep.subr.bf16.mxu1 %v17589_v47  ;;  %v17621_v37 = vpack.c.bf16 %v10076_v48, %v10075_v53 }
 0xa43   : > { %16451 = vmatmul.mubr.msk.f32.gmra.mrb[56].mxu1 %vm985_vm6, %v23441_v59 }
 0xa44   : > { %16453 = vmatprep.mubr.msk.f32.mxu1 %vm985_vm6, %v23454_v52  ;;  %17592 = vmatpush3.bf16.msra.mxu1 %v17589_v47  ;;  %v10078_v47 = vld [vmem:[#allocation16 + $0x1e8] sm:$0xff] }
 0xa45   : > { %17594 = vmatprep.subr.bf16.mxu1 %v17593_v4  ;;  %v17625_v58 = vpack.c.bf16 %v10078_v47, %v10077_v43 }
 0xa47   : > { %16454 = vmatmul.mubr.msk.f32.gmra.mrb[58].mxu1 %vm985_vm6, %v23459_v30 }
 0xa48   : > { %16456 = vmatprep.mubr.msk.f32.mxu1 %vm985_vm6, %v23470_v15  ;;  %17596 = vmatpush3.bf16.msra.mxu1 %v17593_v4  ;;  %v10080_v4 = vld [vmem:[#allocation16 + $0x1f8] sm:$0xff] }
 0xa49   : > { %17598 = vmatprep.subr.bf16.mxu1 %v17597_v11 }
 0xa4b   : > { %16457 = vmatmul.mubr.msk.f32.gmra.mrb[60].mxu1 %vm985_vm6, %v23579_v3 }
 0xa4c   : > { %17600 = vmatpush3.bf16.msra.mxu1 %v17597_v11  ;;  %16475 = vmatprep.mubr.msk.f32.mxu1 %vm985_vm6, %v23501_v29  ;;  %v17613_v29 = vpack.c.bf16 %v9951_v38, %v9950_v54  ;;  %v10205_v11 = vld [vmem:[#allocation16 + $0x228] sm:$0xff]  ;;  %v10437_v38 = vld [vmem:[#allocation17] sm:$0xff] }
 0xa4d   : > { %17602 = vmatprep.subr.bf16.mxu1 %v17601_v26 }
 0xa4f   : > { %16476 = vmatmul.mubr.msk.f32.vlgmr.msra.gmra.mrb[54].mxu1 %vm985_vm6, %v23508_v8 }
 0xa50   : > { %16478 = vmatprep.mubr.msk.f32.mxu1 %vm985_vm6, %v23515_v34  ;;  %17604 = vmatpush3.bf16.msra.mxu1 %v17601_v26  ;;  %v10489_v26 = vld [vmem:[#allocation17 + $0x58] sm:$0xff] }
 0xa51   : > { %17606 = vmatprep.subr.bf16.mxu1 %v17605_v39 }
 0xa53   : > { %16479 = vmatmul.mubr.msk.f32.gmra.mrb[56].mxu1 %vm985_vm6, %v23522_v33 }
 0xa54   : > { %16481 = vmatprep.mubr.msk.f32.mxu1 %vm985_vm6, %v23529_v32  ;;  %17608 = vmatpush3.bf16.msra.mxu1 %v17605_v39 }
 0xa55   : > { %17610 = vmatprep.subr.bf16.mxu1 %v17609_v22 }
 0xa57   : > { %16482 = vmatmul.mubr.msk.f32.gmra.mrb[58].mxu1 %vm985_vm6, %v23536_v35 }
 0xa58   : > { %16484 = vmatprep.mubr.msk.f32.mxu1 %vm985_vm6, %v23541_v10  ;;  %17612 = vmatpush3.bf16.msra.mxu1 %v17609_v22  ;;  %v10493_v22 = vld [vmem:[#allocation17 + $0x78] sm:$0xff] }
 0xa59   : > { %17614 = vmatprep.subr.bf16.mxu1 %v17613_v29  ;;  %v17661_v54 = vpack.c.bf16 %v10493_v22, %v10492_v57 }
 0xa5b   : > { %16485 = vmatmul.mubr.msk.f32.gmra.mrb[60].mxu1 %vm985_vm6, %v23599_v18 }
 0xa5c   : > { %17616 = vmatpush3.bf16.msra.mxu1 %v17613_v29  ;;  %16503 = vmatprep.mubr.msk.f32.mxu1 %vm985_vm6, %v23390_v14  ;;  %v17629_v14 = vpack.c.bf16 %v10080_v4, %v10079_v12  ;;  %v10438_v29 = vld [vmem:[#allocation17 + $0x8] sm:$0xff] }
 0xa5d   : > { %17618 = vmatprep.subr.bf16.mxu1 %v17617_v55  ;;  %v23666_v19 = vpack.c.bf16 %v10438_v29, %v10437_v38 }
 0xa5f   : > { %16504 = vmatmul.mubr.msk.f32.vlgmr.msra.gmra.mrb[54].mxu1 %vm985_vm6, %v23418_v23  ;;  %v17633_v23 = vpack.c.bf16 %v10201_v62, %v10200_v41 }
 0xa60   : > { %16506 = vmatprep.mubr.msk.f32.mxu1 %vm985_vm6, %v23408_v24  ;;  %17620 = vmatpush3.bf16.msra.mxu1 %v17617_v55  ;;  %v23617_v24 = vld [vmem:[#allocation4 + $0x90] sm:$0xff] }
 0xa61   : > { %17622 = vmatprep.subr.bf16.mxu1 %v17621_v37 }
 0xa63   : > { %16507 = vmatmul.mubr.msk.f32.gmra.mrb[56].mxu1 %vm985_vm6, %v23443_v16  ;;  %v10202_v16 = vld [vmem:[#allocation16 + $0x210] sm:$0xff] }
 0xa64   : > { %16509 = vmatprep.mubr.msk.f32.mxu1 %vm985_vm6, %v23434_v0  ;;  %17624 = vmatpush3.bf16.msra.mxu1 %v17621_v37  ;;  %v17637_v0 = vpack.c.bf16 %v10203_v46, %v10202_v16 }
 0xa65   : > { %17626 = vmatprep.subr.bf16.mxu1 %v17625_v58 }
 0xa67   : > { %16510 = vmatmul.mubr.msk.f32.gmra.mrb[58].mxu1 %vm985_vm6, %v23463_v45  ;;  %v10204_v45 = vld [vmem:[#allocation16 + $0x220] sm:$0xff] }
 0xa68   : > { %16512 = vmatprep.mubr.msk.f32.mxu1 %vm985_vm6, %v23559_v2  ;;  %17628 = vmatpush3.bf16.msra.mxu1 %v17625_v58  ;;  %v17641_v2 = vpack.c.bf16 %v10205_v11, %v10204_v45 }
 0xa69   : > { %17630 = vmatprep.subr.bf16.mxu1 %v17629_v14 }
 0xa6b   : > { %16513 = vmatmul.mubr.msk.f32.gmra.mrb[60].mxu1 %vm985_vm6, %v23617_v24 }
 0xa6c   : > { %17632 = vmatpush3.bf16.msra.mxu1 %v17629_v14  ;;  %16531 = vmatprep.mubr.msk.f32.mxu1 %vm985_vm6, %v23416_v17  ;;  %v10069_v17 = vrot.slane %v23617_v24, 1 }
 0xa6d   : > { %17634 = vmatprep.subr.bf16.mxu1 %v17633_v23 }
 0xa6f   : > { %16532 = vmatmul.mubr.msk.f32.vlgmr.msra.gmra.mrb[54].mxu1 %vm985_vm6, %v23432_v40  ;;  %v17645_v40 = vpack.c.bf16 %v10207_v6, %v10206_v1 }
 0xa70   : > { %16534 = vmatprep.mubr.msk.f32.mxu1 %vm985_vm6, %v23441_v59  ;;  %17636 = vmatpush3.bf16.msra.mxu1 %v17633_v23  ;;  %v10071_v59 = vsel %vm1541_vm4, %v10069_v17, %v10070_v27 }
 0xa71   : > { %17638 = vmatprep.subr.bf16.mxu1 %v17637_v0 }
 0xa73   : > { %16535 = vmatmul.mubr.msk.f32.gmra.mrb[56].mxu1 %vm985_vm6, %v23454_v52  ;;  %v10196_v52 = vrot.slane %v23617_v24, 2 }
 0xa74   : > { %16537 = vmatprep.mubr.msk.f32.mxu1 %vm985_vm6, %v23459_v30  ;;  %17640 = vmatpush3.bf16.msra.mxu1 %v17637_v0  ;;  %v10197_v30 = vrot.slane %v9101_v42, 2 }
 0xa75   : > { %17642 = vmatprep.subr.bf16.mxu1 %v17641_v2 }
 0xa77   : > { %16538 = vmatmul.mubr.msk.f32.gmra.mrb[58].mxu1 %vm985_vm6, %v23470_v15  ;;  %v10198_v15 = vsel %vm1790_vm5, %v10196_v52, %v10197_v30 }
 0xa78   : > { %16540 = vmatprep.mubr.msk.f32.mxu1 %vm985_vm6, %v23579_v3  ;;  %17644 = vmatpush3.bf16.msra.mxu1 %v17641_v2 }
 0xa79   : > { %17646 = vmatprep.subr.bf16.mxu1 %v17645_v40 }
 0xa7b   : > { %16541 = vmatmul.mubr.msk.f32.gmra.mrb[60].mxu1 %vm985_vm6, %v10071_v59 }
 0xa7c   : > { %17648 = vmatpush3.bf16.msra.mxu1 %v17645_v40  ;;  %16559 = vmatprep.mubr.msk.f32.mxu1 %vm985_vm6, %v23508_v8  ;;  %v10486_v8 = vld [vmem:[#allocation17 + $0x40] sm:$0xff] }
 0xa7f   : > { %16560 = vmatmul.mubr.msk.f32.vlgmr.msra.gmra.mrb[54].mxu1 %vm985_vm6, %v23515_v34  ;;  %v10487_v34 = vld [vmem:[#allocation17 + $0x48] sm:$0xff] }
 0xa80   : > { %16562 = vmatprep.mubr.msk.f32.mxu1 %vm985_vm6, %v23522_v33  ;;  %v10488_v33 = vld [vmem:[#allocation17 + $0x50] sm:$0xff] }
 0xa81   : > { %v17653_v3 = vpack.c.bf16 %v10489_v26, %v10488_v33 }
 0xa83   : > { %16563 = vmatmul.mubr.msk.f32.gmra.mrb[56].mxu1 %vm985_vm6, %v23529_v32  ;;  %v17649_v32 = vpack.c.bf16 %v10487_v34, %v10486_v8 }
 0xa84   : > { %16565 = vmatprep.mubr.msk.f32.mxu1 %vm985_vm6, %v23536_v35  ;;  %v10490_v35 = vld [vmem:[#allocation17 + $0x60] sm:$0xff] }
 0xa85   : > { %17650 = vmatprep.subr.bf16.mxu1 %v17649_v32  ;;  %v17657_v39 = vpack.c.bf16 %v10491_v56, %v10490_v35 }
 0xa86   : > { %17652 = vmatpush3.bf16.msra.mxu1 %v17649_v32 }
 0xa87   : > { %16566 = vmatmul.mubr.msk.f32.gmra.mrb[58].mxu1 %vm985_vm6, %v23541_v10  ;;  %v10462_v10 = vrot.slane %v23659_v36, 1  ;;  %17654 = vmatprep.subr.bf16.mxu1 %v17653_v3 }
 0xa88   : > { %16568 = vmatprep.mubr.msk.f32.mxu1 %vm985_vm6, %v23599_v18 }
 0xa89   : > { %v10463_v63 = vsel %vm1541_vm4, %v9126_v49, %v10462_v10  ;;  %v14032_v49 = vld [vmem:[%s24282_s13] ss:$0 sm:$0xff] }
 0xa8a   : > { %17656 = vmatpush3.bf16.msra.mxu1 %v17653_v3 }
 0xa8b   : > { %16569 = vmatmul.mubr.msk.f32.gmra.mrb[60].mxu1 %vm985_vm6, %v10198_v15  ;;  %17658 = vmatprep.subr.bf16.mxu1 %v17657_v39 }
 0xa8c   : > { %16587 = vmatprep.mubr.msk.f32.mxu1 %vm985_vm6, %v10463_v63 }
 0xa8e   : > { %17660 = vmatpush3.bf16.msra.mxu1 %v17657_v39 }
 0xa8f   : > { %17662 = vmatprep.subr.bf16.mxu1 %v17661_v54 }
 0xa92   : > { %17664 = vmatpush3.bf16.msra.mxu1 %v17661_v54 }
 0xa93   : > { %17666 = vmatprep.subr.bf16.mxu1 %v23666_v19 }
 0xb52   : > { %v16561_v13 = vpop.f32.mrb[54].mxu1 }
 0xb53   : > { %v10331_v31 = vadd.f32 %v16561_v13, %v14032_v49  ;;  %v10276_v55 = vpop.f32.mrb[55].mxu1 }
 0xb54   : > { %v10330_v18 = vadd.f32 %v14032_v49, %v10276_v55 }
 0xb55   : > { %v10346_v53 = vadd.f32 %v14033_v60, %v10331_v31 }
 0xb56   : > { %v10345_v48 = vadd.f32 %v14033_v60, %v10330_v18  ;;  %v16564_v37 = vpop.f32.mrb[56].mxu1 }
 0xb57   : > { %v14035_v43 = vmul.f32 -1.442695, %v10346_v53  ;;  %v10333_v47 = vadd.f32 %v16564_v37, %v14032_v49  ;;  %v10286_v58 = vpop.f32.mrb[57].mxu1 }
 0xb58   : > { %v14034_v12 = vmul.f32 -1.442695, %v10345_v48  ;;  %v10332_v4 = vadd.f32 %v14032_v49, %v10286_v58 }
 0xb59   : > { %18904 = vpow2.f32 %v14035_v43  ;;  %v10348_v14 = vadd.f32 %v14033_v60, %v10333_v47 }
 0xb5a   : > { %18906 = vpow2.f32 %v14034_v12  ;;  %v10347_v41 = vadd.f32 %v14033_v60, %v10332_v4  ;;  %v16567_v62 = vpop.f32.mrb[58].mxu1 }
 0xb5b   : > { %v14037_v23 = vmul.f32 -1.442695, %v10348_v14  ;;  %v10335_v16 = vadd.f32 %v16567_v62, %v14032_v49  ;;  %v10296_v46 = vpop.f32.mrb[59].mxu1  ;;  %v10439_v62 = vld [vmem:[#allocation17 + $0x10] sm:$0xff] }
 0xb5c   : > { %v14036_v0 = vmul.f32 -1.442695, %v10347_v41  ;;  %v10334_v45 = vadd.f32 %v14032_v49, %v10296_v46  ;;  %v10440_v46 = vld [vmem:[#allocation17 + $0x18] sm:$0xff] }
 0xb5d   : > { %18908 = vpow2.f32 %v14037_v23  ;;  %v10350_v11 = vadd.f32 %v14033_v60, %v10335_v16 }
 0xb5e   : > { %18910 = vpow2.f32 %v14036_v0  ;;  %v10349_v2 = vadd.f32 %v14033_v60, %v10334_v45  ;;  %v16570_v42 = vpop.f32.mrb[60].mxu1 }
 0xb5f   : > { %v14039_v1 = vmul.f32 -1.442695, %v10350_v11  ;;  %v10337_v6 = vadd.f32 %v16570_v42, %v14032_v49  ;;  %v10306_v27 = vpop.f32.mrb[61].mxu1 }
 0xb60   : > { %v14038_v40 = vmul.f32 -1.442695, %v10349_v2  ;;  %v10336_v59 = vadd.f32 %v14032_v49, %v10306_v27  ;;  %v10441_v27 = vld [vmem:[#allocation17 + $0x20] sm:$0xff] }
 0xb61   : > { %18912 = vpow2.f32 %v14039_v1  ;;  %v10352_v30 = vadd.f32 %v14033_v60, %v10337_v6  ;;  %v17669_v6 = vpack.c.bf16 %v10440_v46, %v10439_v62 }
 0xb62   : > { %18914 = vpow2.f32 %v14038_v40  ;;  %v23676_v15 = vadd.f32 %v14033_v60, %v10336_v59 }
 0xb63   : > { %v18905_v8 = vpop.eup %18904  ;;  %v14041_v34 = vmul.f32 -1.442695, %v10352_v30 }
 0xb64   : > { %v18907_v33 = vpop.eup %18906  ;;  %v10378_v32 = vadd.f32 1.0, %v18905_v8  ;;  %v14040_v26 = vmul.f32 -1.442695, %v23676_v15 }
 0xb65   : > { %v10377_v3 = vadd.f32 1.0, %v18907_v33  ;;  %18916 = vpow2.f32 %v14041_v34  ;;  %v10442_v34 = vld [vmem:[#allocation17 + $0x28] sm:$0xff] }
 0xb66   : > { %18918 = vrcp.f32 %v10378_v32 }
 0xb67   : > { %v18909_v35 = vpop.eup %18908  ;;  %18920 = vrcp.f32 %v10377_v3 }
 0xb68   : > { %v18911_v56 = vpop.eup %18910  ;;  %v10380_v10 = vadd.f32 1.0, %v18909_v35  ;;  %18922 = vpow2.f32 %v14040_v26 }
 0xb69   : > { %v10379_v39 = vadd.f32 1.0, %v18911_v56 }
 0xb6a   : > { %18924 = vrcp.f32 %v10380_v10 }
 0xb6b   : > { %v18913_v63 = vpop.eup %18912  ;;  %18926 = vrcp.f32 %v10379_v39 }
 0xb6c   : > { %v18915_v57 = vpop.eup %18914  ;;  %v10382_v22 = vadd.f32 1.0, %v18913_v63  ;;  %v17673_v63 = vpack.c.bf16 %v10442_v34, %v10441_v27  ;;  %v11761_v27 = vld [vmem:[#allocation19 + $0x58] sm:$0xff] }
 0xb6d   : > { %v10381_v54 = vadd.f32 1.0, %v18915_v57  ;;  %v10443_v57 = vld [vmem:[#allocation17 + $0x30] sm:$0xff] }
 0xb6e   : > { %18928 = vrcp.f32 %v10382_v22 }
 0xb6f   : > { %v18917_v38 = vpop.eup %18916  ;;  %18930 = vrcp.f32 %v10381_v54 }
 0xb70   : > { %v18919_v29 = vpop.eup %18918  ;;  %v10384_v49 = vadd.f32 1.0, %v18917_v38  ;;  %v10444_v38 = vld [vmem:[#allocation17 + $0x38] sm:$0xff] }
 0xb71   : > { %v18921_v13 = vpop.eup %18920  ;;  %v10402_v60 = vmul.f32 %v18919_v29, %v10346_v53 }
 0xb72   : > { %v18923_v31 = vpop.eup %18922  ;;  %v10401_v55 = vmul.f32 %v18921_v13, %v10345_v48  ;;  %18932 = vrcp.f32 %v10384_v49 }
 0xb73   : > { %10410 = vst.msk [vmem:[#allocation4 + $0x21] sm:$0xff] %vm985_vm6, %v10402_v60  ;;  %v10383_v18 = vadd.f32 1.0, %v18923_v31 }
 0xb74   : > { %v18925_v37 = vpop.eup %18924  ;;  %10409 = vst.msk [vmem:[#allocation4 + $0x11] sm:$0xff] %vm985_vm6, %v10401_v55 }
 0xb75   : > { %v18927_v43 = vpop.eup %18926  ;;  %v10404_v47 = vmul.f32 %v18925_v37, %v10348_v14  ;;  %18934 = vrcp.f32 %v10383_v18  ;;  %v17677_v18 = vpack.c.bf16 %v10444_v38, %v10443_v57  ;;  %v10767_v57 = vld [vmem:[#allocation17 + $0xb0] sm:$0xff]  ;;  %v10768_v38 = vld [vmem:[#allocation17 + $0xb8] sm:$0xff] }
 0xb76   : > { %v10403_v58 = vmul.f32 %v18927_v43, %v10347_v41  ;;  %v10761_v43 = vld [vmem:[#allocation17 + $0x80] sm:$0xff] }
 0xb77   : > { %10412 = vst.msk [vmem:[#allocation4 + $0x41] sm:$0xff] %vm985_vm6, %v10404_v47  ;;  %v10762_v47 = vld [vmem:[#allocation17 + $0x88] sm:$0xff] }
 0xb78   : > { %v18929_v12 = vpop.eup %18928  ;;  %10411 = vst.msk [vmem:[#allocation4 + $0x31] sm:$0xff] %vm985_vm6, %v10403_v58 }
 0xb79   : > { %v18931_v4 = vpop.eup %18930  ;;  %v10406_v53 = vmul.f32 %v18929_v12, %v10350_v11 }
 0xb7a   : > { %v10405_v48 = vmul.f32 %v18931_v4, %v10349_v2  ;;  %v23683_v23 = vld [vmem:[#allocation4 + $0x20] sm:$0xff]  ;;  %v23685_v16 = vld [vmem:[#allocation4 + $0x28] sm:$0x3] }
 0xb7b   : > { %10414 = vst.msk [vmem:[#allocation4 + $0x61] sm:$0xff] %vm985_vm6, %v10406_v53  ;;  %v23688_v0 = vld [vmem:[#allocation4 + $0x10] sm:$0xff]  ;;  %v23690_v14 = vld [vmem:[#allocation4 + $0x18] sm:$0x3]  ;;  %v10467_v41 = vrot.slane %v23683_v23, 1  ;;  %v10468_v45 = vrot.slane %v23685_v16, 1  ;;  %v17681_v53 = vpack.c.bf16 %v10762_v47, %v10761_v43 }
 0xb7c   : > { %v18933_v42 = vpop.eup %18932  ;;  %10413 = vst.msk [vmem:[#allocation4 + $0x51] sm:$0xff] %vm985_vm6, %v10405_v48  ;;  %v10464_v11 = vrot.slane %v23688_v0, 1  ;;  %v10465_v2 = vrot.slane %v23690_v14, 1  ;;  %v10739_v47 = vrot.slane %v23688_v0, 2 }
 0xb7d   : > { %v10408_v1 = vmul.f32 %v18933_v42, %v10352_v30  ;;  %v23708_v32 = vsel %vm1541_vm4, %v10467_v41, %v10468_v45  ;;  %v10763_v41 = vld [vmem:[#allocation17 + $0x90] sm:$0xff]  ;;  %v10764_v45 = vld [vmem:[#allocation17 + $0x98] sm:$0xff]  ;;  %v11758_v42 = vld [vmem:[#allocation19 + $0x40] sm:$0xff] }
 0xb7e   : > { %v23698_v40 = vsel %vm1541_vm4, %v10464_v11, %v10465_v2  ;;  %v23700_v59 = vld [vmem:[#allocation4 + $0x40] sm:$0xff]  ;;  %v23702_v8 = vld [vmem:[#allocation4 + $0x48] sm:$0x3]  ;;  %v17685_v34 = vpack.c.bf16 %v10764_v45, %v10763_v41  ;;  %v10743_v41 = vrot.slane %v23685_v16, 2 }
 0xb7f   : > { %v18935_v33 = vpop.eup %18934  ;;  %10416 = vst.msk [vmem:[#allocation4 + $0x81] sm:$0xff] %vm985_vm6, %v10408_v1  ;;  %16588 = vmatmul.mubr.msk.f32.vlgmr.msra.gmra.mrb[62].mxu1 %vm985_vm6, %v23698_v40  ;;  %v23710_v30 = vld [vmem:[#allocation4 + $0x30] sm:$0xff]  ;;  %v23712_v26 = vld [vmem:[#allocation4 + $0x38] sm:$0x3]  ;;  %v10473_v3 = vrot.slane %v23700_v59, 1  ;;  %v10474_v35 = vrot.slane %v23702_v8, 1 }
 0xb80   : > { %v10407_v56 = vmul.f32 %v18935_v33, %v23676_v15  ;;  %16590 = vmatprep.mubr.msk.f32.mxu1 %vm985_vm6, %v23708_v32  ;;  %17668 = vmatpush3.bf16.msra.mxu1 %v23666_v19  ;;  %v10470_v10 = vrot.slane %v23710_v30, 1  ;;  %v10471_v39 = vrot.slane %v23712_v26, 1  ;;  %v11759_v11 = vld [vmem:[#allocation19 + $0x48] sm:$0xff]  ;;  %v11760_v2 = vld [vmem:[#allocation19 + $0x50] sm:$0xff]  ;;  %v10765_v33 = vld [vmem:[#allocation17 + $0xa0] sm:$0xff]  ;;  %v10745_v45 = vrot.slane %v23710_v30, 2 }
 0xb81   : > { %17670 = vmatprep.subr.bf16.mxu1 %v17669_v6  ;;  %v23733_v19 = vsel %vm1541_vm4, %v10473_v3, %v10474_v35  ;;  %v18996_v1 = vld [vmem:[#allocation4] sm:$0xff]  ;;  %v17797_v3 = vpack.c.bf16 %v11761_v27, %v11760_v2  ;;  %v10748_v16 = vrot.slane %v23700_v59, 2 }
 0xb82   : > { %10415 = vst.msk [vmem:[#allocation4 + $0x71] sm:$0xff] %vm985_vm6, %v10407_v56  ;;  %v23724_v22 = vsel %vm1541_vm4, %v10470_v10, %v10471_v39  ;;  %v23726_v54 = vld [vmem:[#allocation4 + $0x60] sm:$0xff]  ;;  %v23728_v15 = vld [vmem:[#allocation4 + $0x68] sm:$0x3]  ;;  %v11762_v56 = vld [vmem:[#allocation19 + $0x60] sm:$0xff] }
 0xb83   : > { %16591 = vmatmul.mubr.msk.f32.gmra.mrb[64].mxu1 %vm985_vm6, %v23724_v22  ;;  %v23735_v29 = vld [vmem:[#allocation4 + $0x50] sm:$0xff]  ;;  %v23737_v49 = vld [vmem:[#allocation4 + $0x58] sm:$0x3]  ;;  %v10479_v13 = vrot.slane %v23726_v54, 1  ;;  %v10480_v60 = vrot.slane %v23728_v15, 1  ;;  %v10766_v35 = vld [vmem:[#allocation17 + $0xa8] sm:$0xff] }
 0xb84   : > { %16593 = vmatprep.mubr.msk.f32.mxu1 %vm985_vm6, %v23733_v19  ;;  %17672 = vmatpush3.bf16.msra.mxu1 %v17669_v6  ;;  %v10476_v31 = vrot.slane %v23735_v29, 1  ;;  %v10477_v55 = vrot.slane %v23737_v49, 1  ;;  %v17793_v6 = vpack.c.bf16 %v11759_v11, %v11758_v42  ;;  %v11763_v10 = vld [vmem:[#allocation19 + $0x68] sm:$0xff]  ;;  %v17689_v39 = vpack.c.bf16 %v10766_v35, %v10765_v33  ;;  %v10903_v42 = vld [vmem:[#allocation17 + $0xe0] sm:$0xff]  ;;  %v10905_v33 = vld [vmem:[#allocation17 + $0xf0] sm:$0xff] }
 0xb85   : > { %17674 = vmatprep.subr.bf16.mxu1 %v17673_v63  ;;  %v23751_v58 = vsel %vm1541_vm4, %v10479_v13, %v10480_v60  ;;  %v17693_v13 = vpack.c.bf16 %v10768_v38, %v10767_v57  ;;  %v10737_v60 = vrot.slane %v23659_v36, 2  ;;  %v10740_v36 = vrot.slane %v23690_v14, 2  ;;  %v10904_v11 = vld [vmem:[#allocation17 + $0xe8] sm:$0xff]  ;;  %v11028_v57 = vld [vmem:[#allocation17 + $0x100] sm:$0xff] }
 0xb86   : > { %v23746_v37 = vsel %vm1541_vm4, %v10476_v31, %v10477_v55  ;;  %17794 = vmatprep.subr.bf16.mxu0 %v17793_v6  ;;  %v10899_v31 = vld [vmem:[#allocation17 + $0xc0] sm:$0xff]  ;;  %v10900_v55 = vld [vmem:[#allocation17 + $0xc8] sm:$0xff]  ;;  %v10746_v14 = vrot.slane %v23712_v26, 2  ;;  %v10751_v27 = vrot.slane %v23735_v29, 2  ;;  %v10754_v35 = vrot.slane %v23726_v54, 2 }
 0xb87   : > { %16594 = vmatmul.mubr.msk.f32.gmra.mrb[66].mxu1 %vm985_vm6, %v23746_v37  ;;  %17796 = vmatpush3.bf16.msra.mxu0 %v17793_v6  ;;  %v17697_v43 = vpack.c.bf16 %v10900_v55, %v10899_v31  ;;  %v17705_v6 = vpack.c.bf16 %v10904_v11, %v10903_v42  ;;  %v11029_v38 = vld [vmem:[#allocation17 + $0x108] sm:$0xff]  ;;  %v11030_v31 = vld [vmem:[#allocation17 + $0x110] sm:$0xff]  ;;  %v11031_v55 = vld [vmem:[#allocation17 + $0x118] sm:$0xff] }
 0xb88   : > { %16596 = vmatprep.mubr.msk.f32.mxu1 %vm985_vm6, %v23751_v58  ;;  %17676 = vmatpush3.bf16.msra.mxu1 %v17673_v63  ;;  %v17801_v63 = vpack.c.bf16 %v11763_v10, %v11762_v56  ;;  %v23805_v26 = vsel %vm1790_vm5, %v10745_v45, %v10746_v14  ;;  %v10755_v56 = vrot.slane %v23728_v15, 2  ;;  %v11157_v45 = vld [vmem:[#allocation17 + $0x150] sm:$0xff]  ;;  %v11158_v14 = vld [vmem:[#allocation17 + $0x158] sm:$0xff]  ;;  %v11159_v11 = vld [vmem:[#allocation17 + $0x160] sm:$0xff] }
 0xb89   : > { %v23755_v12 = vld [vmem:[#allocation4 + $0x70] sm:$0xff]  ;;  %v23757_v4 = vld [vmem:[#allocation4 + $0x78] sm:$0x3]  ;;  %17678 = vmatprep.subr.bf16.mxu1 %v17677_v18  ;;  %17798 = vmatprep.subr.bf16.mxu0 %v17797_v3  ;;  %v17733_v42 = vpack.c.bf16 %v11158_v14, %v11157_v45 }
 0xb8a   : > { %v10482_v62 = vrot.slane %v23755_v12, 1  ;;  %v10483_v48 = vrot.slane %v23757_v4, 1  ;;  %v23826_v15 = vsel %vm1790_vm5, %v10754_v35, %v10755_v56  ;;  %v11279_v35 = vld [vmem:[#allocation17 + $0x180] sm:$0xff]  ;;  %v11280_v56 = vld [vmem:[#allocation17 + $0x188] sm:$0xff] }
 0xb8b   : > { %17800 = vmatpush3.bf16.msra.mxu0 %v17797_v3  ;;  %v10906_v3 = vld [vmem:[#allocation17 + $0xf8] sm:$0xff]  ;;  %v11412_v14 = vld [vmem:[#allocation17 + $0x1e0] sm:$0xff] }
 0xb8c   : > { %v23762_v46 = vsel %vm1541_vm4, %v10482_v62, %v10483_v48  ;;  %17680 = vmatpush3.bf16.msra.mxu1 %v17677_v18  ;;  %17802 = vmatprep.subr.bf16.mxu0 %v17801_v63  ;;  %v10738_v18 = vsel %vm1790_vm5, %v9401_v44, %v10737_v60  ;;  %v10902_v62 = vld [vmem:[#allocation17 + $0xd8] sm:$0xff]  ;;  %v10742_v48 = vrot.slane %v23683_v23, 2  ;;  %v23791_v44 = vsel %vm1790_vm5, %v10739_v47, %v10740_v36  ;;  %v11034_v36 = vld [vmem:[#allocation17 + $0x130] sm:$0xff] }
 0xb8d   : > { %16597 = vmatmul.mubr.msk.f32.gmra.mrb[68].mxu1 %vm985_vm6, %v23762_v46  ;;  %17682 = vmatprep.subr.bf16.mxu1 %v17681_v53  ;;  %v17709_v10 = vpack.c.bf16 %v10906_v3, %v10905_v33 }
 0xb8e   : > { %16615 = vmatprep.mubr.msk.f32.mxu1 %vm985_vm6, %v18996_v1  ;;  %v23798_v2 = vsel %vm1790_vm5, %v10742_v48, %v10743_v41  ;;  %v10749_v1 = vrot.slane %v23702_v8, 2  ;;  %v11156_v48 = vld [vmem:[#allocation17 + $0x148] sm:$0xff] }
 0xb8f   : > { %17804 = vmatpush3.bf16.msra.mxu0 %v17801_v63  ;;  %v10758_v63 = vrot.slane %v23757_v4, 2  ;;  %v17717_v4 = vpack.c.bf16 %v11031_v55, %v11030_v31  ;;  %v11284_v31 = vld [vmem:[#allocation17 + $0x1a8] sm:$0xff] }
 0xb90   : > { %v23812_v8 = vsel %vm1790_vm5, %v10748_v16, %v10749_v1  ;;  %v11160_v16 = vld [vmem:[#allocation17 + $0x168] sm:$0xff] }
 0xb91   : > { %16616 = vmatmul.mubr.msk.f32.vlgmr.msra.gmra.mrb[62].mxu1 %vm985_vm6, %v23688_v0  ;;  %v17737_v1 = vpack.c.bf16 %v11160_v16, %v11159_v11  ;;  %v11414_v16 = vld [vmem:[#allocation17 + $0x1f0] sm:$0xff] }
 0xb92   : > { %16618 = vmatprep.mubr.msk.f32.mxu1 %vm985_vm6, %v23683_v23  ;;  %17684 = vmatpush3.bf16.msra.mxu1 %v17681_v53  ;;  %v10901_v53 = vld [vmem:[#allocation17 + $0xd0] sm:$0xff] }
 0xb93   : > { %17686 = vmatprep.subr.bf16.mxu1 %v17685_v34  ;;  %v17701_v9 = vpack.c.bf16 %v10902_v62, %v10901_v53  ;;  %v11035_v53 = vld [vmem:[#allocation17 + $0x138] sm:$0xff]  ;;  %v11155_v62 = vld [vmem:[#allocation17 + $0x140] sm:$0xff] }
 0xb94   : > { %v17729_v41 = vpack.c.bf16 %v11156_v48, %v11155_v62  ;;  %v11410_v48 = vld [vmem:[#allocation17 + $0x1d0] sm:$0xff] }
 0xb95   : > { %16619 = vmatmul.mubr.msk.f32.gmra.mrb[64].mxu1 %vm985_vm6, %v23710_v30 }
 0xb96   : > { %16621 = vmatprep.mubr.msk.f32.mxu1 %vm985_vm6, %v23700_v59  ;;  %17688 = vmatpush3.bf16.msra.mxu1 %v17685_v34  ;;  %v10752_v34 = vrot.slane %v23737_v49, 2 }
 0xb97   : > { %17690 = vmatprep.subr.bf16.mxu1 %v17689_v39 }
 0xb98   : > { %v23819_v49 = vsel %vm1790_vm5, %v10751_v27, %v10752_v34  ;;  %v11162_v27 = vld [vmem:[#allocation17 + $0x178] sm:$0xff]  ;;  %v10434_v34 = vld [vmem:[#allocation4 + $0x88] sm:$0x3] }
 0xb99   : > { %16622 = vmatmul.mubr.msk.f32.gmra.mrb[66].mxu1 %vm985_vm6, %v23735_v29  ;;  %v11025_v3 = vrot.slane %v10434_v34, 1 }
 0xb9a   : > { %16624 = vmatprep.mubr.msk.f32.mxu1 %vm985_vm6, %v23726_v54  ;;  %17692 = vmatpush3.bf16.msra.mxu1 %v17689_v39  ;;  %v10757_v39 = vrot.slane %v23755_v12, 2 }
 0xb9b   : > { %17694 = vmatprep.subr.bf16.mxu1 %v17693_v13 }
 0xb9c   : > { %v23831_v60 = vsel %vm1790_vm5, %v10757_v39, %v10758_v63  ;;  %v11281_v63 = vld [vmem:[#allocation17 + $0x190] sm:$0xff] }
 0xb9d   : > { %16625 = vmatmul.mubr.msk.f32.gmra.mrb[68].mxu1 %vm985_vm6, %v23755_v12 }
 0xb9e   : > { %17696 = vmatpush3.bf16.msra.mxu1 %v17693_v13  ;;  %16643 = vmatprep.mubr.msk.f32.mxu1 %vm985_vm6, %v10738_v18  ;;  %v17713_v13 = vpack.c.bf16 %v11029_v38, %v11028_v57  ;;  %v11032_v18 = vld [vmem:[#allocation17 + $0x120] sm:$0xff]  ;;  %v11282_v57 = vld [vmem:[#allocation17 + $0x198] sm:$0xff] }
 0xb9f   : > { %17698 = vmatprep.subr.bf16.mxu1 %v17697_v43  ;;  %v17749_v38 = vpack.c.bf16 %v11282_v57, %v11281_v63 }
 0xba1   : > { %16644 = vmatmul.mubr.msk.f32.vlgmr.msra.gmra.mrb[62].mxu1 %vm985_vm6, %v23791_v44 }
 0xba2   : > { %16646 = vmatprep.mubr.msk.f32.mxu1 %vm985_vm6, %v23798_v2  ;;  %17700 = vmatpush3.bf16.msra.mxu1 %v17697_v43  ;;  %v11033_v43 = vld [vmem:[#allocation17 + $0x128] sm:$0xff] }
 0xba3   : > { %17702 = vmatprep.subr.bf16.mxu1 %v17701_v9  ;;  %v17721_v47 = vpack.c.bf16 %v11033_v43, %v11032_v18  ;;  %v11286_v18 = vld [vmem:[#allocation17 + $0x1b8] sm:$0xff] }
 0xba5   : > { %16647 = vmatmul.mubr.msk.f32.gmra.mrb[64].mxu1 %vm985_vm6, %v23805_v26 }
 0xba6   : > { %16649 = vmatprep.mubr.msk.f32.mxu1 %vm985_vm6, %v23812_v8  ;;  %17704 = vmatpush3.bf16.msra.mxu1 %v17701_v9  ;;  %v23849_v9 = vld [vmem:[#allocation4 + $0x80] sm:$0xff] }
 0xba7   : > { %17706 = vmatprep.subr.bf16.mxu1 %v17705_v6  ;;  %v11024_v33 = vrot.slane %v23849_v9, 1  ;;  %v11151_v43 = vrot.slane %v23849_v9, 2 }
 0xba9   : > { %16650 = vmatmul.mubr.msk.f32.gmra.mrb[66].mxu1 %vm985_vm6, %v23819_v49  ;;  %v23869_v39 = vsel %vm1541_vm4, %v11024_v33, %v11025_v3  ;;  %v11541_v33 = vld [vmem:[#allocation17 + $0x230] sm:$0xff]  ;;  %v11542_v3 = vld [vmem:[#allocation17 + $0x238] sm:$0xff] }
 0xbaa   : > { %16652 = vmatprep.mubr.msk.f32.mxu1 %vm985_vm6, %v23826_v15  ;;  %17708 = vmatpush3.bf16.msra.mxu1 %v17705_v6  ;;  %v11161_v6 = vld [vmem:[#allocation17 + $0x170] sm:$0xff] }
 0xbab   : > { %17710 = vmatprep.subr.bf16.mxu1 %v17709_v10 }
 0xbad   : > { %16653 = vmatmul.mubr.msk.f32.gmra.mrb[68].mxu1 %vm985_vm6, %v23831_v60 }
 0xbae   : > { %17712 = vmatpush3.bf16.msra.mxu1 %v17709_v10  ;;  %16671 = vmatprep.mubr.msk.f32.mxu1 %vm985_vm6, %v23688_v0  ;;  %v17725_v0 = vpack.c.bf16 %v11035_v53, %v11034_v36  ;;  %v17745_v10 = vpack.c.bf16 %v11280_v56, %v11279_v35  ;;  %v11408_v36 = vld [vmem:[#allocation17 + $0x1c0] sm:$0xff]  ;;  %v11409_v53 = vld [vmem:[#allocation17 + $0x1c8] sm:$0xff]  ;;  %v17789_v35 = vpack.c.bf16 %v11542_v3, %v11541_v33 }
 0xbaf   : > { %17714 = vmatprep.subr.bf16.mxu1 %v17713_v13 }
 0xbb1   : > { %16672 = vmatmul.mubr.msk.f32.vlgmr.msra.gmra.mrb[62].mxu1 %vm985_vm6, %v23683_v23 }
 0xbb2   : > { %16674 = vmatprep.mubr.msk.f32.mxu1 %vm985_vm6, %v23710_v30  ;;  %17716 = vmatpush3.bf16.msra.mxu1 %v17713_v13  ;;  %v11283_v13 = vld [vmem:[#allocation17 + $0x1a0] sm:$0xff] }
 0xbb3   : > { %17718 = vmatprep.subr.bf16.mxu1 %v17717_v4  ;;  %v17753_v55 = vpack.c.bf16 %v11284_v31, %v11283_v13 }
 0xbb5   : > { %16675 = vmatmul.mubr.msk.f32.gmra.mrb[64].mxu1 %vm985_vm6, %v23700_v59 }
 0xbb6   : > { %16677 = vmatprep.mubr.msk.f32.mxu1 %vm985_vm6, %v23735_v29  ;;  %17720 = vmatpush3.bf16.msra.mxu1 %v17717_v4  ;;  %v11285_v4 = vld [vmem:[#allocation17 + $0x1b0] sm:$0xff] }
 0xbb7   : > { %17722 = vmatprep.subr.bf16.mxu1 %v17721_v47 }
 0xbb9   : > { %16678 = vmatmul.mubr.msk.f32.gmra.mrb[66].mxu1 %vm985_vm6, %v23726_v54 }
 0xbba   : > { %16680 = vmatprep.mubr.msk.f32.mxu1 %vm985_vm6, %v23755_v12  ;;  %17724 = vmatpush3.bf16.msra.mxu1 %v17721_v47  ;;  %v11152_v47 = vrot.slane %v10434_v34, 2  ;;  %v11538_v34 = vld [vmem:[#allocation17 + $0x218] sm:$0xff] }
 0xbbb   : > { %17726 = vmatprep.subr.bf16.mxu1 %v17725_v0 }
 0xbbc   : > { %v23889_v62 = vsel %vm1790_vm5, %v11151_v43, %v11152_v47 }
 0xbbd   : > { %16681 = vmatmul.mubr.msk.f32.gmra.mrb[68].mxu1 %vm985_vm6, %v23849_v9 }
 0xbbe   : > { %17728 = vmatpush3.bf16.msra.mxu1 %v17725_v0  ;;  %16699 = vmatprep.mubr.msk.f32.mxu1 %vm985_vm6, %v23698_v40  ;;  %v17741_v40 = vpack.c.bf16 %v11162_v27, %v11161_v6  ;;  %v17761_v0 = vpack.c.bf16 %v11409_v53, %v11408_v36  ;;  %v11535_v6 = vld [vmem:[#allocation17 + $0x200] sm:$0xff]  ;;  %v11536_v27 = vld [vmem:[#allocation17 + $0x208] sm:$0xff] }
 0xbbf   : > { %17730 = vmatprep.subr.bf16.mxu1 %v17729_v41 }
 0xbc1   : > { %16700 = vmatmul.mubr.msk.f32.vlgmr.msra.gmra.mrb[62].mxu1 %vm985_vm6, %v23708_v32 }
 0xbc2   : > { %16702 = vmatprep.mubr.msk.f32.mxu1 %vm985_vm6, %v23724_v22  ;;  %17732 = vmatpush3.bf16.msra.mxu1 %v17729_v41  ;;  %v11411_v41 = vld [vmem:[#allocation17 + $0x1d8] sm:$0xff] }
 0xbc3   : > { %17734 = vmatprep.subr.bf16.mxu1 %v17733_v42  ;;  %v17765_v45 = vpack.c.bf16 %v11411_v41, %v11410_v48 }
 0xbc5   : > { %16703 = vmatmul.mubr.msk.f32.gmra.mrb[64].mxu1 %vm985_vm6, %v23733_v19 }
 0xbc6   : > { %16705 = vmatprep.mubr.msk.f32.mxu1 %vm985_vm6, %v23746_v37  ;;  %17736 = vmatpush3.bf16.msra.mxu1 %v17733_v42  ;;  %v11413_v42 = vld [vmem:[#allocation17 + $0x1e8] sm:$0xff] }
 0xbc7   : > { %17738 = vmatprep.subr.bf16.mxu1 %v17737_v1  ;;  %v17769_v11 = vpack.c.bf16 %v11413_v42, %v11412_v14 }
 0xbc9   : > { %16706 = vmatmul.mubr.msk.f32.gmra.mrb[66].mxu1 %vm985_vm6, %v23751_v58 }
 0xbca   : > { %16708 = vmatprep.mubr.msk.f32.mxu1 %vm985_vm6, %v23762_v46  ;;  %17740 = vmatpush3.bf16.msra.mxu1 %v17737_v1  ;;  %v11415_v1 = vld [vmem:[#allocation17 + $0x1f8] sm:$0xff] }
 0xbcb   : > { %17742 = vmatprep.subr.bf16.mxu1 %v17741_v40 }
 0xbcd   : > { %16709 = vmatmul.mubr.msk.f32.gmra.mrb[68].mxu1 %vm985_vm6, %v23869_v39 }
 0xbce   : > { %17744 = vmatpush3.bf16.msra.mxu1 %v17741_v40  ;;  %16727 = vmatprep.mubr.msk.f32.mxu1 %vm985_vm6, %v23791_v44  ;;  %v17757_v44 = vpack.c.bf16 %v11286_v18, %v11285_v4  ;;  %v11540_v40 = vld [vmem:[#allocation17 + $0x228] sm:$0xff] }
 0xbcf   : > { %17746 = vmatprep.subr.bf16.mxu1 %v17745_v10 }
 0xbd1   : > { %16728 = vmatmul.mubr.msk.f32.vlgmr.msra.gmra.mrb[62].mxu1 %vm985_vm6, %v23798_v2 }
 0xbd2   : > { %16730 = vmatprep.mubr.msk.f32.mxu1 %vm985_vm6, %v23805_v26  ;;  %17748 = vmatpush3.bf16.msra.mxu1 %v17745_v10 }
 0xbd3   : > { %17750 = vmatprep.subr.bf16.mxu1 %v17749_v38 }
 0xbd5   : > { %16731 = vmatmul.mubr.msk.f32.gmra.mrb[64].mxu1 %vm985_vm6, %v23812_v8 }
 0xbd6   : > { %16733 = vmatprep.mubr.msk.f32.mxu1 %vm985_vm6, %v23819_v49  ;;  %17752 = vmatpush3.bf16.msra.mxu1 %v17749_v38 }
 0xbd7   : > { %17754 = vmatprep.subr.bf16.mxu1 %v17753_v55 }
 0xbd9   : > { %16734 = vmatmul.mubr.msk.f32.gmra.mrb[66].mxu1 %vm985_vm6, %v23826_v15 }
 0xbda   : > { %16736 = vmatprep.mubr.msk.f32.mxu1 %vm985_vm6, %v23831_v60  ;;  %17756 = vmatpush3.bf16.msra.mxu1 %v17753_v55 }
 0xbdb   : > { %17758 = vmatprep.subr.bf16.mxu1 %v17757_v44 }
 0xbdd   : > { %16737 = vmatmul.mubr.msk.f32.gmra.mrb[68].mxu1 %vm985_vm6, %v23889_v62 }
 0xbde   : > { %17760 = vmatpush3.bf16.msra.mxu1 %v17757_v44  ;;  %16755 = vmatprep.mubr.msk.f32.mxu1 %vm985_vm6, %v23683_v23  ;;  %v17773_v23 = vpack.c.bf16 %v11415_v1, %v11414_v16 }
 0xbdf   : > { %17762 = vmatprep.subr.bf16.mxu1 %v17761_v0 }
 0xbe1   : > { %16756 = vmatmul.mubr.msk.f32.vlgmr.msra.gmra.mrb[62].mxu1 %vm985_vm6, %v23710_v30  ;;  %v11537_v30 = vld [vmem:[#allocation17 + $0x210] sm:$0xff] }
 0xbe2   : > { %16758 = vmatprep.mubr.msk.f32.mxu1 %vm985_vm6, %v23700_v59  ;;  %17764 = vmatpush3.bf16.msra.mxu1 %v17761_v0  ;;  %v17777_v59 = vpack.c.bf16 %v11536_v27, %v11535_v6  ;;  %v11711_v0 = vld [vmem:[#allocation19 + $0x10] sm:$0xff] }
 0xbe3   : > { %17766 = vmatprep.subr.bf16.mxu1 %v17765_v45 }
 0xbe5   : > { %16759 = vmatmul.mubr.msk.f32.gmra.mrb[64].mxu1 %vm985_vm6, %v23735_v29  ;;  %v11539_v29 = vld [vmem:[#allocation17 + $0x220] sm:$0xff] }
 0xbe6   : > { %16761 = vmatprep.mubr.msk.f32.mxu1 %vm985_vm6, %v23726_v54  ;;  %17768 = vmatpush3.bf16.msra.mxu1 %v17765_v45  ;;  %v17781_v54 = vpack.c.bf16 %v11538_v34, %v11537_v30 }
 0xbe7   : > { %17770 = vmatprep.subr.bf16.mxu1 %v17769_v11 }
 0xbe9   : > { %16762 = vmatmul.mubr.msk.f32.gmra.mrb[66].mxu1 %vm985_vm6, %v23755_v12  ;;  %v17785_v12 = vpack.c.bf16 %v11540_v40, %v11539_v29  ;;  %v11714_v40 = vld [vmem:[#allocation19 + $0x28] sm:$0xff] }
 0xbea   : > { %16764 = vmatprep.mubr.msk.f32.mxu1 %vm985_vm6, %v23849_v9  ;;  %17772 = vmatpush3.bf16.msra.mxu1 %v17769_v11  ;;  %v10436_v9 = vld [vmem:[#allocation4 + $0x98] sm:$0x3] }
 0xbeb   : > { %17774 = vmatprep.subr.bf16.mxu1 %v17773_v23 }
 0xbed   : > { %16765 = vmatmul.mubr.msk.f32.gmra.mrb[68].mxu1 %vm985_vm6, %v23617_v24 }
 0xbee   : > { %17776 = vmatpush3.bf16.msra.mxu1 %v17773_v23  ;;  %16783 = vmatprep.mubr.msk.f32.mxu1 %vm985_vm6, %v23708_v32  ;;  %v11405_v32 = vrot.slane %v10436_v9, 1 }
 0xbef   : > { %17778 = vmatprep.subr.bf16.mxu1 %v17777_v59 }
 0xbf1   : > { %16784 = vmatmul.mubr.msk.f32.vlgmr.msra.gmra.mrb[62].mxu1 %vm985_vm6, %v23724_v22  ;;  %v11406_v22 = vsel %vm1541_vm4, %v10069_v17, %v11405_v32  ;;  %v11532_v17 = vrot.slane %v10436_v9, 2 }
 0xbf2   : > { %16786 = vmatprep.mubr.msk.f32.mxu1 %vm985_vm6, %v23733_v19  ;;  %17780 = vmatpush3.bf16.msra.mxu1 %v17777_v59  ;;  %v11713_v59 = vld [vmem:[#allocation19 + $0x20] sm:$0xff] }
 0xbf3   : > { %17782 = vmatprep.subr.bf16.mxu1 %v17781_v54  ;;  %v11533_v19 = vsel %vm1790_vm5, %v10196_v52, %v11532_v17  ;;  %v14114_v52 = vld [vmem:[%s24284_s15] ss:$0 sm:$0xff] }
 0xbf5   : > { %16787 = vmatmul.mubr.msk.f32.gmra.mrb[64].mxu1 %vm985_vm6, %v23746_v37  ;;  %v11764_v37 = vld [vmem:[#allocation19 + $0x70] sm:$0xff] }
 0xbf6   : > { %16789 = vmatprep.mubr.msk.f32.mxu1 %vm985_vm6, %v23751_v58  ;;  %17784 = vmatpush3.bf16.msra.mxu1 %v17781_v54  ;;  %v11765_v58 = vld [vmem:[#allocation19 + $0x78] sm:$0xff] }
 0xbf7   : > { %17786 = vmatprep.subr.bf16.mxu1 %v17785_v12 }
 0xbf9   : > { %16790 = vmatmul.mubr.msk.f32.gmra.mrb[66].mxu1 %vm985_vm6, %v23762_v46  ;;  %v23945_v46 = vld [vmem:[#allocation4] sm:$0xff] }
 0xbfa   : > { %16792 = vmatprep.mubr.msk.f32.mxu1 %vm985_vm6, %v23869_v39  ;;  %17788 = vmatpush3.bf16.msra.mxu1 %v17785_v12 }
 0xbfb   : > { %17790 = vmatprep.subr.bf16.mxu1 %v17789_v35 }
 0xbfd   : > { %16793 = vmatmul.mubr.msk.f32.gmra.mrb[68].mxu1 %vm985_vm6, %v11406_v22  ;;  %v11715_v22 = vld [vmem:[#allocation19 + $0x30] sm:$0xff] }
 0xbfe   : > { %17792 = vmatpush3.bf16.msra.mxu1 %v17789_v35  ;;  %16811 = vmatprep.mubr.msk.f32.mxu1 %vm985_vm6, %v23798_v2  ;;  %v17805_v2 = vpack.c.bf16 %v11765_v58, %v11764_v37  ;;  %v17817_v35 = vpack.c.bf16 %v11714_v40, %v11713_v59  ;;  %v11716_v58 = vld [vmem:[#allocation19 + $0x38] sm:$0xff]  ;;  %v12175_v40 = vld [vmem:[#allocation19 + $0xe0] sm:$0xff] }
 0xc00   : > { %17806 = vmatprep.subr.bf16.mxu0 %v17805_v2 }
 0xc01   : > { %16812 = vmatmul.mubr.msk.f32.vlgmr.msra.gmra.mrb[62].mxu1 %vm985_vm6, %v23805_v26  ;;  %v23947_v26 = vld [vmem:[#allocation4 + $0x8] sm:$0x3]  ;;  %17808 = vmatpush3.bf16.msra.mxu0 %v17805_v2 }
 0xc02   : > { %16814 = vmatprep.mubr.msk.f32.mxu1 %vm985_vm6, %v23812_v8  ;;  %v11733_v8 = vrot.slane %v23945_v46, 1 }
 0xc05   : > { %16815 = vmatmul.mubr.msk.f32.gmra.mrb[64].mxu1 %vm985_vm6, %v23819_v49  ;;  %v11709_v49 = vld [vmem:[#allocation19] sm:$0xff] }
 0xc06   : > { %16817 = vmatprep.mubr.msk.f32.mxu1 %vm985_vm6, %v23826_v15  ;;  %v11710_v15 = vld [vmem:[#allocation19 + $0x8] sm:$0xff] }
 0xc07   : > { %v17809_v56 = vpack.c.bf16 %v11710_v15, %v11709_v49 }
 0xc09   : > { %16818 = vmatmul.mubr.msk.f32.gmra.mrb[66].mxu1 %vm985_vm6, %v23831_v60  ;;  %v11734_v60 = vrot.slane %v23947_v26, 1  ;;  %17810 = vmatprep.subr.bf16.mxu0 %v17809_v56 }
 0xc0a   : > { %16820 = vmatprep.mubr.msk.f32.mxu1 %vm985_vm6, %v23889_v62 }
 0xc0b   : > { %v11735_v24 = vsel %vm1541_vm4, %v11733_v8, %v11734_v60 }
 0xc0c   : > { %16839 = vmatprep.mubr.msk.f32.mxu0 %vm985_vm6, %v11735_v24 }
 0xc0d   : > { %16821 = vmatmul.mubr.msk.f32.gmra.mrb[68].mxu1 %vm985_vm6, %v11533_v19 }
 0xc0e   : > { %17091 = vmatprep.mubr.msk.f32.mxu1 %vm19388_vm8, %v24603_v50 }
 0xcd4   : > { %v16813_v10 = vpop.f32.mrb[62].mxu1 }
 0xcd5   : > { %v11666_v39 = vadd.f32 %v16813_v10, %v14114_v52  ;;  %v11611_v63 = vpop.f32.mrb[63].mxu1 }
 0xcd6   : > { %v11665_v57 = vadd.f32 %v14114_v52, %v11611_v63  ;;  %v12034_v63 = vld [vmem:[#allocation19 + $0x88] sm:$0xff] }
 0xcd7   : > { %v11674_v38 = vadd.f32 %v11666_v39, %v23349_v25  ;;  %v12033_v39 = vld [vmem:[#allocation19 + $0x80] sm:$0xff] }
 0xcd8   : > { %v11673_v13 = vadd.f32 %v11665_v57, %v23352_v20  ;;  %v16816_v31 = vpop.f32.mrb[64].mxu1 }
 0xcd9   : > { %11682 = vst.msk [vmem:[#allocation4 + $0x21] sm:$0xff] %vm985_vm6, %v11674_v38  ;;  %v11668_v55 = vadd.f32 %v16816_v31, %v14114_v52  ;;  %v11621_v4 = vpop.f32.mrb[65].mxu1 }
 0xcda   : > { %11681 = vst.msk [vmem:[#allocation4 + $0x11] sm:$0xff] %vm985_vm6, %v11673_v13  ;;  %v11667_v18 = vadd.f32 %v14114_v52, %v11621_v4  ;;  %v17825_v4 = vpack.c.bf16 %v12034_v63, %v12033_v39  ;;  %v12300_v63 = vld [vmem:[#allocation19 + $0x100] sm:$0xff] }
 0xcdb   : > { %v11676_v44 = vadd.f32 %v11668_v55, %v23357_v7  ;;  %v11712_v7 = vld [vmem:[#allocation19 + $0x18] sm:$0xff] }
 0xcdc   : > { %v11675_v43 = vadd.f32 %v11667_v18, %v23360_v51  ;;  %v16819_v47 = vpop.f32.mrb[66].mxu1  ;;  %v17813_v27 = vpack.c.bf16 %v11712_v7, %v11711_v0  ;;  %v12040_v0 = vld [vmem:[#allocation19 + $0xb8] sm:$0xff]  ;;  %v12009_v7 = vrot.slane %v23947_v26, 2 }
 0xcdd   : > { %11684 = vst.msk [vmem:[#allocation4 + $0x41] sm:$0xff] %vm985_vm6, %v11676_v44  ;;  %v11670_v36 = vadd.f32 %v16819_v47, %v14114_v52  ;;  %v11631_v53 = vpop.f32.mrb[67].mxu1  ;;  %v12035_v44 = vld [vmem:[#allocation19 + $0x90] sm:$0xff] }
 0xcde   : > { %11683 = vst.msk [vmem:[#allocation4 + $0x31] sm:$0xff] %vm985_vm6, %v11675_v43  ;;  %v11669_v25 = vadd.f32 %v14114_v52, %v11631_v53  ;;  %v12036_v43 = vld [vmem:[#allocation19 + $0x98] sm:$0xff]  ;;  %v12038_v53 = vld [vmem:[#allocation19 + $0xa8] sm:$0xff] }
 0xcdf   : > { %v11678_v20 = vadd.f32 %v11670_v36, %v23365_v28  ;;  %v17829_v47 = vpack.c.bf16 %v12036_v43, %v12035_v44  ;;  %v12037_v36 = vld [vmem:[#allocation19 + $0xa0] sm:$0xff]  ;;  %v12302_v44 = vld [vmem:[#allocation19 + $0x110] sm:$0xff]  ;;  %v12303_v43 = vld [vmem:[#allocation19 + $0x118] sm:$0xff] }
 0xce0   : > { %v11677_v62 = vadd.f32 %v11669_v25, %v23368_v61  ;;  %v16822_v48 = vpop.f32.mrb[68].mxu1  ;;  %v23966_v41 = vld [vmem:[#allocation4 + $0x20] sm:$0xff]  ;;  %v23968_v45 = vld [vmem:[#allocation4 + $0x28] sm:$0x3]  ;;  %v17833_v25 = vpack.c.bf16 %v12038_v53, %v12037_v36 }
 0xce1   : > { %11686 = vst.msk [vmem:[#allocation4 + $0x61] sm:$0xff] %vm985_vm6, %v11678_v20  ;;  %v11672_v51 = vadd.f32 %v16822_v48, %v14114_v52  ;;  %v11641_v14 = vpop.f32.mrb[69].mxu1  ;;  %v23971_v42 = vld [vmem:[#allocation4 + $0x10] sm:$0xff]  ;;  %v23973_v11 = vld [vmem:[#allocation4 + $0x18] sm:$0x3]  ;;  %v11739_v16 = vrot.slane %v23966_v41, 1 }
 0xce2   : > { %v11740_v28 = vrot.slane %v23968_v45, 1  ;;  %11685 = vst.msk [vmem:[#allocation4 + $0x51] sm:$0xff] %vm985_vm6, %v11677_v62  ;;  %v11671_v61 = vadd.f32 %v14114_v52, %v11641_v14  ;;  %v11736_v1 = vrot.slane %v23971_v42, 1  ;;  %v11737_v23 = vrot.slane %v23973_v11, 1  ;;  %v12039_v20 = vld [vmem:[#allocation19 + $0xb0] sm:$0xff]  ;;  %v12172_v14 = vld [vmem:[#allocation19 + $0xc8] sm:$0xff] }
 0xce3   : > { %v11680_v6 = vadd.f32 %v11672_v51, %v23373_v21  ;;  %v17821_v52 = vpack.c.bf16 %v11716_v58, %v11715_v22  ;;  %v17837_v62 = vpack.c.bf16 %v12040_v0, %v12039_v20  ;;  %v12008_v48 = vrot.slane %v23945_v46, 2  ;;  %v12171_v51 = vld [vmem:[#allocation19 + $0xc0] sm:$0xff]  ;;  %v12177_v58 = vld [vmem:[#allocation19 + $0xf0] sm:$0xff]  ;;  %v12305_v36 = vld [vmem:[#allocation19 + $0x128] sm:$0xff] }
 0xce4   : > { %v11679_v30 = vadd.f32 %v11671_v61, %v23376_v5  ;;  %v23983_v34 = vsel %vm1541_vm4, %v11736_v1, %v11737_v23  ;;  %v23985_v54 = vld [vmem:[#allocation4 + $0x40] sm:$0xff]  ;;  %v23987_v29 = vld [vmem:[#allocation4 + $0x48] sm:$0x3]  ;;  %v23993_v12 = vsel %vm1541_vm4, %v11739_v16, %v11740_v28  ;;  %v17841_v28 = vpack.c.bf16 %v12172_v14, %v12171_v51  ;;  %v12174_v23 = vld [vmem:[#allocation19 + $0xd8] sm:$0xff] }
 0xce5   : > { %11688 = vst.msk [vmem:[#allocation4 + $0x81] sm:$0xff] %vm985_vm6, %v11680_v6  ;;  %16840 = vmatmul.mubr.msk.f32.vlgmr.msra.gmra.mrb[32].mxu0 %vm985_vm6, %v23983_v34  ;;  %v23995_v21 = vld [vmem:[#allocation4 + $0x30] sm:$0xff]  ;;  %v23997_v9 = vld [vmem:[#allocation4 + $0x38] sm:$0x3]  ;;  %v11745_v5 = vrot.slane %v23985_v54, 1  ;;  %v11746_v33 = vrot.slane %v23987_v29, 1  ;;  %v12010_v16 = vsel %vm1790_vm5, %v12008_v48, %v12009_v7 }
 0xce6   : > { %11687 = vst.msk [vmem:[#allocation4 + $0x71] sm:$0xff] %vm985_vm6, %v11679_v30  ;;  %16842 = vmatprep.mubr.msk.f32.mxu0 %vm985_vm6, %v23993_v12  ;;  %17812 = vmatpush3.bf16.msra.mxu0 %v17809_v56  ;;  %v11742_v3 = vrot.slane %v23995_v21, 1  ;;  %v11743_v32 = vrot.slane %v23997_v9, 1  ;;  %v12011_v61 = vrot.slane %v23971_v42, 2  ;;  %v12012_v1 = vrot.slane %v23973_v11, 2  ;;  %v12307_v20 = vld [vmem:[#allocation19 + $0x138] sm:$0xff] }
 0xce7   : > { %17814 = vmatprep.subr.bf16.mxu0 %v17813_v27  ;;  %v24016_v2 = vsel %vm1541_vm4, %v11745_v5, %v11746_v33  ;;  %v12014_v26 = vrot.slane %v23966_v41, 2  ;;  %v12015_v6 = vrot.slane %v23968_v45, 2  ;;  %v12017_v30 = vrot.slane %v23995_v21, 2  ;;  %v12176_v5 = vld [vmem:[#allocation19 + $0xe8] sm:$0xff]  ;;  %v12427_v0 = vld [vmem:[#allocation19 + $0x140] sm:$0xff]  ;;  %v12429_v51 = vld [vmem:[#allocation19 + $0x150] sm:$0xff] }
 0xce8   : > { %v24007_v17 = vsel %vm1541_vm4, %v11742_v3, %v11743_v32  ;;  %v24009_v19 = vld [vmem:[#allocation4 + $0x60] sm:$0xff]  ;;  %v24011_v37 = vld [vmem:[#allocation4 + $0x68] sm:$0x3]  ;;  %v24074_v59 = vsel %vm1790_vm5, %v12011_v61, %v12012_v1  ;;  %v12018_v11 = vrot.slane %v23997_v9, 2  ;;  %v12020_v45 = vrot.slane %v23985_v54, 2  ;;  %v12430_v14 = vld [vmem:[#allocation19 + $0x158] sm:$0xff] }
 0xce9   : > { %16843 = vmatmul.mubr.msk.f32.gmra.mrb[34].mxu0 %vm985_vm6, %v24007_v17  ;;  %v24018_v8 = vld [vmem:[#allocation4 + $0x50] sm:$0xff]  ;;  %v24020_v49 = vld [vmem:[#allocation4 + $0x58] sm:$0x3]  ;;  %v11751_v15 = vrot.slane %v24009_v19, 1  ;;  %v11752_v60 = vrot.slane %v24011_v37, 1  ;;  %v24081_v33 = vsel %vm1790_vm5, %v12014_v26, %v12015_v6  ;;  %v12021_v3 = vrot.slane %v23987_v29, 2 }
 0xcea   : > { %16845 = vmatprep.mubr.msk.f32.mxu0 %vm985_vm6, %v24016_v2  ;;  %17816 = vmatpush3.bf16.msra.mxu0 %v17813_v27  ;;  %v11748_v56 = vrot.slane %v24018_v8, 1  ;;  %v11749_v24 = vrot.slane %v24020_v49, 1  ;;  %v17849_v32 = vpack.c.bf16 %v12176_v5, %v12175_v40  ;;  %v24088_v9 = vsel %vm1790_vm5, %v12017_v30, %v12018_v11  ;;  %v12432_v61 = vld [vmem:[#allocation19 + $0x168] sm:$0xff]  ;;  %v12551_v30 = vld [vmem:[#allocation19 + $0x180] sm:$0xff] }
 0xceb   : > { %17818 = vmatprep.subr.bf16.mxu0 %v17817_v35  ;;  %v24034_v57 = vsel %vm1541_vm4, %v11751_v15, %v11752_v60  ;;  %v12024_v22 = vrot.slane %v24020_v49, 2  ;;  %v12178_v15 = vld [vmem:[#allocation19 + $0xf8] sm:$0xff]  ;;  %v24095_v29 = vsel %vm1790_vm5, %v12020_v45, %v12021_v3  ;;  %v12026_v60 = vrot.slane %v24009_v19, 2  ;;  %v12552_v11 = vld [vmem:[#allocation19 + $0x188] sm:$0xff]  ;;  %v12553_v45 = vld [vmem:[#allocation19 + $0x190] sm:$0xff] }
 0xcec   : > { %v24029_v10 = vsel %vm1541_vm4, %v11748_v56, %v11749_v24  ;;  %v12027_v56 = vrot.slane %v24011_v37, 2  ;;  %v17853_v24 = vpack.c.bf16 %v12178_v15, %v12177_v58  ;;  %v24132_v7 = vld [vmem:[#allocation4 + $0x80] sm:$0xff]  ;;  %v11706_v26 = vld [vmem:[#allocation4 + $0x88] sm:$0x3]  ;;  %v17889_v40 = vpack.c.bf16 %v12552_v11, %v12551_v30  ;;  %v12554_v3 = vld [vmem:[#allocation19 + $0x198] sm:$0xff] }
 0xced   : > { %16846 = vmatmul.mubr.msk.f32.gmra.mrb[36].mxu0 %vm985_vm6, %v24029_v10  ;;  %v24036_v38 = vld [vmem:[#allocation4 + $0x70] sm:$0xff]  ;;  %v24038_v13 = vld [vmem:[#allocation4 + $0x78] sm:$0x3]  ;;  %v12296_v6 = vrot.slane %v24132_v7, 1  ;;  %v12557_v15 = vld [vmem:[#allocation19 + $0x1b0] sm:$0xff] }
 0xcee   : > { %16848 = vmatprep.mubr.msk.f32.mxu0 %vm985_vm6, %v24034_v57  ;;  %17820 = vmatpush3.bf16.msra.mxu0 %v17817_v35  ;;  %v11754_v31 = vrot.slane %v24036_v38, 1  ;;  %v11755_v55 = vrot.slane %v24038_v13, 1  ;;  %v12023_v35 = vrot.slane %v24018_v8, 2  ;;  %v12030_v39 = vrot.slane %v24038_v13, 2 }
 0xcef   : > { %17822 = vmatprep.subr.bf16.mxu0 %v17821_v52  ;;  %v24109_v37 = vsel %vm1790_vm5, %v12026_v60, %v12027_v56  ;;  %v17861_v13 = vpack.c.bf16 %v12303_v43, %v12302_v44  ;;  %v12558_v60 = vld [vmem:[#allocation19 + $0x1b8] sm:$0xff]  ;;  %v12423_v56 = vrot.slane %v24132_v7, 2 }
 0xcf0   : > { %v24045_v18 = vsel %vm1541_vm4, %v11754_v31, %v11755_v55  ;;  %v24102_v49 = vsel %vm1790_vm5, %v12023_v35, %v12024_v22  ;;  %v12301_v31 = vld [vmem:[#allocation19 + $0x108] sm:$0xff]  ;;  %v12555_v35 = vld [vmem:[#allocation19 + $0x1a0] sm:$0xff]  ;;  %v12683_v44 = vld [vmem:[#allocation19 + $0x1d8] sm:$0xff] }
 0xcf1   : > { %16849 = vmatmul.mubr.msk.f32.gmra.mrb[38].mxu0 %vm985_vm6, %v24045_v18  ;;  %v17857_v55 = vpack.c.bf16 %v12301_v31, %v12300_v63  ;;  %v12556_v22 = vld [vmem:[#allocation19 + $0x1a8] sm:$0xff] }
 0xcf2   : > { %17824 = vmatpush3.bf16.msra.mxu0 %v17821_v52  ;;  %16867 = vmatprep.mubr.msk.f32.mxu0 %vm985_vm6, %v23945_v46  ;;  %v12173_v46 = vld [vmem:[#allocation19 + $0xd0] sm:$0xff]  ;;  %v12029_v52 = vrot.slane %v24036_v38, 2  ;;  %v17897_v58 = vpack.c.bf16 %v12556_v22, %v12555_v35 }
 0xcf3   : > { %17826 = vmatprep.subr.bf16.mxu0 %v17825_v4  ;;  %v17845_v27 = vpack.c.bf16 %v12174_v23, %v12173_v46  ;;  %v12433_v46 = vld [vmem:[#allocation19 + $0x170] sm:$0xff]  ;;  %v12434_v23 = vld [vmem:[#allocation19 + $0x178] sm:$0xff] }
 0xcf5   : > { %16868 = vmatmul.mubr.msk.f32.vlgmr.msra.gmra.mrb[32].mxu0 %vm985_vm6, %v23971_v42 }
 0xcf6   : > { %16870 = vmatprep.mubr.msk.f32.mxu0 %vm985_vm6, %v23966_v41  ;;  %17828 = vmatpush3.bf16.msra.mxu0 %v17825_v4  ;;  %v24114_v4 = vsel %vm1790_vm5, %v12029_v52, %v12030_v39  ;;  %v12680_v52 = vld [vmem:[#allocation19 + $0x1c0] sm:$0xff]  ;;  %v12681_v39 = vld [vmem:[#allocation19 + $0x1c8] sm:$0xff] }
 0xcf7   : > { %17830 = vmatprep.subr.bf16.mxu0 %v17829_v47  ;;  %v17905_v63 = vpack.c.bf16 %v12681_v39, %v12680_v52 }
 0xcf9   : > { %16871 = vmatmul.mubr.msk.f32.gmra.mrb[34].mxu0 %vm985_vm6, %v23995_v21 }
 0xcfa   : > { %16873 = vmatprep.mubr.msk.f32.mxu0 %vm985_vm6, %v23985_v54  ;;  %17832 = vmatpush3.bf16.msra.mxu0 %v17829_v47  ;;  %v12304_v47 = vld [vmem:[#allocation19 + $0x120] sm:$0xff] }
 0xcfb   : > { %17834 = vmatprep.subr.bf16.mxu0 %v17833_v25  ;;  %v17865_v53 = vpack.c.bf16 %v12305_v36, %v12304_v47  ;;  %v12685_v47 = vld [vmem:[#allocation19 + $0x1e8] sm:$0xff] }
 0xcfd   : > { %16874 = vmatmul.mubr.msk.f32.gmra.mrb[36].mxu0 %vm985_vm6, %v24018_v8 }
 0xcfe   : > { %16876 = vmatprep.mubr.msk.f32.mxu0 %vm985_vm6, %v24009_v19  ;;  %17836 = vmatpush3.bf16.msra.mxu0 %v17833_v25  ;;  %v12306_v25 = vld [vmem:[#allocation19 + $0x130] sm:$0xff] }
 0xcff   : > { %17838 = vmatprep.subr.bf16.mxu0 %v17837_v62 }
 0xd01   : > { %16877 = vmatmul.mubr.msk.f32.gmra.mrb[38].mxu0 %vm985_vm6, %v24036_v38 }
 0xd02   : > { %17840 = vmatpush3.bf16.msra.mxu0 %v17837_v62  ;;  %16895 = vmatprep.mubr.msk.f32.mxu0 %vm985_vm6, %v12010_v16  ;;  %v12428_v62 = vld [vmem:[#allocation19 + $0x148] sm:$0xff]  ;;  %v17877_v16 = vpack.c.bf16 %v12430_v14, %v12429_v51  ;;  %v12813_v51 = vld [vmem:[#allocation19 + $0x230] sm:$0xff]  ;;  %v12814_v14 = vld [vmem:[#allocation19 + $0x238] sm:$0xff] }
 0xd03   : > { %17842 = vmatprep.subr.bf16.mxu0 %v17841_v28  ;;  %v17873_v48 = vpack.c.bf16 %v12428_v62, %v12427_v0  ;;  %v12809_v0 = vld [vmem:[#allocation19 + $0x210] sm:$0xff]  ;;  %v12811_v62 = vld [vmem:[#allocation19 + $0x220] sm:$0xff] }
 0xd05   : > { %16896 = vmatmul.mubr.msk.f32.vlgmr.msra.gmra.mrb[32].mxu0 %vm985_vm6, %v24074_v59 }
 0xd06   : > { %16898 = vmatprep.mubr.msk.f32.mxu0 %vm985_vm6, %v24081_v33  ;;  %17844 = vmatpush3.bf16.msra.mxu0 %v17841_v28  ;;  %v12431_v28 = vld [vmem:[#allocation19 + $0x160] sm:$0xff] }
 0xd07   : > { %17846 = vmatprep.subr.bf16.mxu0 %v17845_v27  ;;  %v17881_v1 = vpack.c.bf16 %v12432_v61, %v12431_v28 }
 0xd09   : > { %16899 = vmatmul.mubr.msk.f32.gmra.mrb[34].mxu0 %vm985_vm6, %v24088_v9 }
 0xd0a   : > { %16901 = vmatprep.mubr.msk.f32.mxu0 %vm985_vm6, %v24095_v29  ;;  %17848 = vmatpush3.bf16.msra.mxu0 %v17845_v27  ;;  %v12297_v27 = vrot.slane %v11706_v26, 1 }
 0xd0b   : > { %17850 = vmatprep.subr.bf16.mxu0 %v17849_v32 }
 0xd0c   : > { %v24152_v5 = vsel %vm1541_vm4, %v12296_v6, %v12297_v27 }
 0xd0d   : > { %16902 = vmatmul.mubr.msk.f32.gmra.mrb[36].mxu0 %vm985_vm6, %v24102_v49 }
 0xd0e   : > { %16904 = vmatprep.mubr.msk.f32.mxu0 %vm985_vm6, %v24109_v37  ;;  %17852 = vmatpush3.bf16.msra.mxu0 %v17849_v32  ;;  %v17893_v32 = vpack.c.bf16 %v12554_v3, %v12553_v45 }
 0xd0f   : > { %17854 = vmatprep.subr.bf16.mxu0 %v17853_v24 }
 0xd11   : > { %16905 = vmatmul.mubr.msk.f32.gmra.mrb[38].mxu0 %vm985_vm6, %v24114_v4 }
 0xd12   : > { %17856 = vmatpush3.bf16.msra.mxu0 %v17853_v24  ;;  %16923 = vmatprep.mubr.msk.f32.mxu0 %vm985_vm6, %v23971_v42  ;;  %v17869_v42 = vpack.c.bf16 %v12307_v20, %v12306_v25  ;;  %v12424_v24 = vrot.slane %v11706_v26, 2  ;;  %v12687_v25 = vld [vmem:[#allocation19 + $0x1f8] sm:$0xff]  ;;  %v12807_v20 = vld [vmem:[#allocation19 + $0x200] sm:$0xff] }
 0xd13   : > { %17858 = vmatprep.subr.bf16.mxu0 %v17857_v55 }
 0xd14   : > { %v24172_v31 = vsel %vm1790_vm5, %v12423_v56, %v12424_v24 }
 0xd15   : > { %16924 = vmatmul.mubr.msk.f32.vlgmr.msra.gmra.mrb[32].mxu0 %vm985_vm6, %v23966_v41 }
 0xd16   : > { %16926 = vmatprep.mubr.msk.f32.mxu0 %vm985_vm6, %v23995_v21  ;;  %17860 = vmatpush3.bf16.msra.mxu0 %v17857_v55  ;;  %v12682_v55 = vld [vmem:[#allocation19 + $0x1d0] sm:$0xff] }
 0xd17   : > { %17862 = vmatprep.subr.bf16.mxu0 %v17861_v13  ;;  %v17909_v43 = vpack.c.bf16 %v12683_v44, %v12682_v55 }
 0xd19   : > { %16927 = vmatmul.mubr.msk.f32.gmra.mrb[34].mxu0 %vm985_vm6, %v23985_v54 }
 0xd1a   : > { %16929 = vmatprep.mubr.msk.f32.mxu0 %vm985_vm6, %v24018_v8  ;;  %17864 = vmatpush3.bf16.msra.mxu0 %v17861_v13  ;;  %v12684_v13 = vld [vmem:[#allocation19 + $0x1e0] sm:$0xff] }
 0xd1b   : > { %17866 = vmatprep.subr.bf16.mxu0 %v17865_v53  ;;  %v17913_v36 = vpack.c.bf16 %v12685_v47, %v12684_v13 }
 0xd1d   : > { %16930 = vmatmul.mubr.msk.f32.gmra.mrb[36].mxu0 %vm985_vm6, %v24009_v19 }
 0xd1e   : > { %16932 = vmatprep.mubr.msk.f32.mxu0 %vm985_vm6, %v24036_v38  ;;  %17868 = vmatpush3.bf16.msra.mxu0 %v17865_v53  ;;  %v12686_v53 = vld [vmem:[#allocation19 + $0x1f0] sm:$0xff] }
 0xd1f   : > { %17870 = vmatprep.subr.bf16.mxu0 %v17869_v42 }
 0xd21   : > { %16933 = vmatmul.mubr.msk.f32.gmra.mrb[38].mxu0 %vm985_vm6, %v24132_v7 }
 0xd22   : > { %17872 = vmatpush3.bf16.msra.mxu0 %v17869_v42  ;;  %16951 = vmatprep.mubr.msk.f32.mxu0 %vm985_vm6, %v23983_v34  ;;  %v17885_v34 = vpack.c.bf16 %v12434_v23, %v12433_v46  ;;  %v12808_v42 = vld [vmem:[#allocation19 + $0x208] sm:$0xff] }
 0xd23   : > { %17874 = vmatprep.subr.bf16.mxu0 %v17873_v48 }
 0xd25   : > { %16952 = vmatmul.mubr.msk.f32.vlgmr.msra.gmra.mrb[32].mxu0 %vm985_vm6, %v23993_v12 }
 0xd26   : > { %16954 = vmatprep.mubr.msk.f32.mxu0 %vm985_vm6, %v24007_v17  ;;  %17876 = vmatpush3.bf16.msra.mxu0 %v17873_v48  ;;  %v12812_v48 = vld [vmem:[#allocation19 + $0x228] sm:$0xff] }
 0xd27   : > { %17878 = vmatprep.subr.bf16.mxu0 %v17877_v16 }
 0xd29   : > { %16955 = vmatmul.mubr.msk.f32.gmra.mrb[34].mxu0 %vm985_vm6, %v24016_v2 }
 0xd2a   : > { %16957 = vmatprep.mubr.msk.f32.mxu0 %vm985_vm6, %v24029_v10  ;;  %17880 = vmatpush3.bf16.msra.mxu0 %v17877_v16 }
 0xd2b   : > { %17882 = vmatprep.subr.bf16.mxu0 %v17881_v1 }
 0xd2d   : > { %16958 = vmatmul.mubr.msk.f32.gmra.mrb[36].mxu0 %vm985_vm6, %v24034_v57 }
 0xd2e   : > { %16960 = vmatprep.mubr.msk.f32.mxu0 %vm985_vm6, %v24045_v18  ;;  %17884 = vmatpush3.bf16.msra.mxu0 %v17881_v1 }
 0xd2f   : > { %17886 = vmatprep.subr.bf16.mxu0 %v17885_v34 }
 0xd31   : > { %16961 = vmatmul.mubr.msk.f32.gmra.mrb[38].mxu0 %vm985_vm6, %v24152_v5 }
 0xd32   : > { %17888 = vmatpush3.bf16.msra.mxu0 %v17885_v34  ;;  %16979 = vmatprep.mubr.msk.f32.mxu0 %vm985_vm6, %v24074_v59  ;;  %v17901_v59 = vpack.c.bf16 %v12558_v60, %v12557_v15 }
 0xd33   : > { %17890 = vmatprep.subr.bf16.mxu0 %v17889_v40 }
 0xd35   : > { %16980 = vmatmul.mubr.msk.f32.vlgmr.msra.gmra.mrb[32].mxu0 %vm985_vm6, %v24081_v33 }
 0xd36   : > { %16982 = vmatprep.mubr.msk.f32.mxu0 %vm985_vm6, %v24088_v9  ;;  %17892 = vmatpush3.bf16.msra.mxu0 %v17889_v40 }
 0xd37   : > { %17894 = vmatprep.subr.bf16.mxu0 %v17893_v32 }
 0xd39   : > { %16983 = vmatmul.mubr.msk.f32.gmra.mrb[34].mxu0 %vm985_vm6, %v24095_v29 }
 0xd3a   : > { %16985 = vmatprep.mubr.msk.f32.mxu0 %vm985_vm6, %v24102_v49  ;;  %17896 = vmatpush3.bf16.msra.mxu0 %v17893_v32 }
 0xd3b   : > { %17898 = vmatprep.subr.bf16.mxu0 %v17897_v58 }
 0xd3d   : > { %16986 = vmatmul.mubr.msk.f32.gmra.mrb[36].mxu0 %vm985_vm6, %v24109_v37 }
 0xd3e   : > { %16988 = vmatprep.mubr.msk.f32.mxu0 %vm985_vm6, %v24114_v4  ;;  %17900 = vmatpush3.bf16.msra.mxu0 %v17897_v58 }
 0xd3f   : > { %17902 = vmatprep.subr.bf16.mxu0 %v17901_v59 }
 0xd41   : > { %16989 = vmatmul.mubr.msk.f32.gmra.mrb[38].mxu0 %vm985_vm6, %v24172_v31 }
 0xd42   : > { %17904 = vmatpush3.bf16.msra.mxu0 %v17901_v59  ;;  %17007 = vmatprep.mubr.msk.f32.mxu0 %vm985_vm6, %v23966_v41  ;;  %v17917_v41 = vpack.c.bf16 %v12687_v25, %v12686_v53  ;;  %v12982_v25 = vld [vmem:[#allocation22] sm:$0xff] }
 0xd43   : > { %17906 = vmatprep.subr.bf16.mxu0 %v17905_v63 }
 0xd45   : > { %17008 = vmatmul.mubr.msk.f32.vlgmr.msra.gmra.mrb[32].mxu0 %vm985_vm6, %v23995_v21  ;;  %v17921_v21 = vpack.c.bf16 %v12808_v42, %v12807_v20  ;;  %v12984_v20 = vld [vmem:[#allocation22 + $0x10] sm:$0xff]  ;;  %v19387_v42 = vmov 0.0|0.0  }
 0xd46   : > { %17010 = vmatprep.mubr.msk.f32.mxu0 %vm985_vm6, %v23985_v54  ;;  %17908 = vmatpush3.bf16.msra.mxu0 %v17905_v63  ;;  %v11707_v54 = vld [vmem:[#allocation4 + $0x90] sm:$0xff] }
 0xd47   : > { %17910 = vmatprep.subr.bf16.mxu0 %v17909_v43  ;;  %17937 = vmatprep.subr.bf16.mxu1 %v19387_v42 }
 0xd49   : > { %17011 = vmatmul.mubr.msk.f32.gmra.mrb[34].mxu0 %vm985_vm6, %v24018_v8  ;;  %v12810_v8 = vld [vmem:[#allocation19 + $0x218] sm:$0xff] }
 0xd4a   : > { %17013 = vmatprep.mubr.msk.f32.mxu0 %vm985_vm6, %v24009_v19  ;;  %17912 = vmatpush3.bf16.msra.mxu0 %v17909_v43  ;;  %v17925_v19 = vpack.c.bf16 %v12810_v8, %v12809_v0  ;;  %v12986_v8 = vld [vmem:[#allocation22 + $0x20] sm:$0xff] }
 0xd4b   : > { %17914 = vmatprep.subr.bf16.mxu0 %v17913_v36 }
 0xd4d   : > { %17014 = vmatmul.mubr.msk.f32.gmra.mrb[36].mxu0 %vm985_vm6, %v24036_v38  ;;  %v17929_v38 = vpack.c.bf16 %v12812_v48, %v12811_v62  ;;  %v12988_v48 = vld [vmem:[#allocation22 + $0x30] sm:$0xff] }
 0xd4e   : > { %17016 = vmatprep.mubr.msk.f32.mxu0 %vm985_vm6, %v24132_v7  ;;  %17916 = vmatpush3.bf16.msra.mxu0 %v17913_v36  ;;  %v11708_v7 = vld [vmem:[#allocation4 + $0x98] sm:$0x3] }
 0xd4f   : > { %17918 = vmatprep.subr.bf16.mxu0 %v17917_v41  ;;  %v12677_v16 = vrot.slane %v11708_v7, 1 }
 0xd51   : > { %17017 = vmatmul.mubr.msk.f32.gmra.mrb[38].mxu0 %vm985_vm6, %v11707_v54 }
 0xd52   : > { %17920 = vmatpush3.bf16.msra.mxu0 %v17917_v41  ;;  %17035 = vmatprep.mubr.msk.f32.mxu0 %vm985_vm6, %v23993_v12  ;;  %v12676_v12 = vrot.slane %v11707_v54, 1  ;;  %v12983_v41 = vld [vmem:[#allocation22 + $0x8] sm:$0xff] }
 0xd53   : > { %17922 = vmatprep.subr.bf16.mxu0 %v17921_v21 }
 0xd55   : > { %17036 = vmatmul.mubr.msk.f32.vlgmr.msra.gmra.mrb[32].mxu0 %vm985_vm6, %v24007_v17  ;;  %v17933_v17 = vpack.c.bf16 %v12814_v14, %v12813_v51 }
 0xd56   : > { %17038 = vmatprep.mubr.msk.f32.mxu0 %vm985_vm6, %v24016_v2  ;;  %17924 = vmatpush3.bf16.msra.mxu0 %v17921_v21  ;;  %v12678_v2 = vsel %vm1541_vm4, %v12676_v12, %v12677_v16  ;;  %v12985_v21 = vld [vmem:[#allocation22 + $0x18] sm:$0xff] }
 0xd57   : > { %17926 = vmatprep.subr.bf16.mxu0 %v17925_v19  ;;  %v17941_v0 = vpack.c.bf16 %v12985_v21, %v12984_v20 }
 0xd59   : > { %17039 = vmatmul.mubr.msk.f32.gmra.mrb[34].mxu0 %vm985_vm6, %v24029_v10  ;;  %v12803_v10 = vrot.slane %v11707_v54, 2  ;;  %v17938_v54 = vpack.c.bf16 %v12983_v41, %v12982_v25 }
 0xd5a   : > { %17041 = vmatprep.mubr.msk.f32.mxu0 %vm985_vm6, %v24034_v57  ;;  %17928 = vmatpush3.bf16.msra.mxu0 %v17925_v19  ;;  %v12804_v57 = vrot.slane %v11708_v7, 2  ;;  %v12987_v19 = vld [vmem:[#allocation22 + $0x28] sm:$0xff] }
 0xd5b   : > { %17930 = vmatprep.subr.bf16.mxu0 %v17929_v38  ;;  %17939 = vmatpush3.bf16.msra.mxu1 %v17938_v54  ;;  %v17944_v62 = vpack.c.bf16 %v12987_v19, %v12986_v8 }
 0xd5c   : > { %17940 = vmatprep.subr.bf16.mxu1 %v19387_v42 }
 0xd5d   : > { %17042 = vmatmul.mubr.msk.f32.gmra.mrb[36].mxu0 %vm985_vm6, %v24045_v18  ;;  %v12805_v18 = vsel %vm1790_vm5, %v12803_v10, %v12804_v57  ;;  %v13065_v57 = vld [vmem:[%s24606_s3] sm:$0xff] }
 0xd5e   : > { %17044 = vmatprep.mubr.msk.f32.mxu0 %vm985_vm6, %v24152_v5  ;;  %17932 = vmatpush3.bf16.msra.mxu0 %v17929_v38  ;;  %v12989_v38 = vld [vmem:[#allocation22 + $0x38] sm:$0xff] }
 0xd5f   : > { %17934 = vmatprep.subr.bf16.mxu0 %v17933_v17  ;;  %17942 = vmatpush3.bf16.msra.mxu1 %v17941_v0  ;;  %v17947_v7 = vpack.c.bf16 %v12989_v38, %v12988_v48 }
 0xd60   : > { %17943 = vmatprep.subr.bf16.mxu1 %v19387_v42 }
 0xd61   : > { %17045 = vmatmul.mubr.msk.f32.gmra.mrb[38].mxu0 %vm985_vm6, %v12678_v2 }
 0xd62   : > { %17936 = vmatpush3.bf16.msra.mxu0 %v17933_v17  ;;  %17063 = vmatprep.mubr.msk.f32.mxu0 %vm985_vm6, %v24081_v33  ;;  %v14187_v33 = vld [vmem:[#allocation20] ss:$0 sm:$0xff] }
 0xd63   : > { %17945 = vmatpush3.bf16.msra.mxu1 %v17944_v62 }
 0xd64   : > { %17946 = vmatprep.subr.bf16.mxu1 %v19387_v42 }
 0xd65   : > { %17064 = vmatmul.mubr.msk.f32.vlgmr.msra.gmra.mrb[32].mxu0 %vm985_vm6, %v24088_v9 }
 0xd66   : > { %17066 = vmatprep.mubr.msk.f32.mxu0 %vm985_vm6, %v24095_v29 }
 0xd67   : > { %17948 = vmatpush3.bf16.msra.mxu1 %v17947_v7 }
 0xd68   : > { %17949 = vmatprep.subr.bf16.mxu1 %v19387_v42 }
 0xd69   : > { %17067 = vmatmul.mubr.msk.f32.gmra.mrb[34].mxu0 %vm985_vm6, %v24102_v49 }
 0xd6a   : > { %17069 = vmatprep.mubr.msk.f32.mxu0 %vm985_vm6, %v24109_v37 }
 0xd6d   : > { %17070 = vmatmul.mubr.msk.f32.gmra.mrb[36].mxu0 %vm985_vm6, %v24114_v4 }
 0xd6e   : > { %17072 = vmatprep.mubr.msk.f32.mxu0 %vm985_vm6, %v24172_v31 }
 0xd71   : > { %17073 = vmatmul.mubr.msk.f32.gmra.mrb[38].mxu0 %vm985_vm6, %v12805_v18  ;;  %v13066_v18 = vld [vmem:[%s24606_s3 + $0x8] sm:$0xff] }
 0xe38   : > { %v17065_v9 = vpop.f32.mrb[32].mxu0 }
 0xe39   : > { %v12938_v29 = vadd.f32 %v17065_v9, %v14187_v33  ;;  %v12883_v28 = vpop.f32.mrb[33].mxu0  ;;  %v17950_v9 = vpack.c.bf16 %v13066_v18, %v13065_v57 }
 0xe3a   : > { %v12937_v49 = vadd.f32 %v14187_v33, %v12883_v28  ;;  %v13067_v28 = vld [vmem:[%s24606_s3 + $0x10] sm:$0xff] }
 0xe3b   : > { %v12946_v61 = vsel %vm985_vm6, %v12938_v29, 0.0 }
 0xe3c   : > { %v12945_v37 = vsel %vm985_vm6, %v12937_v49, 0.0  ;;  %v17068_v1 = vpop.f32.mrb[34].mxu0  ;;  %v13068_v49 = vld [vmem:[%s24606_s3 + $0x18] sm:$0xff] }
 0xe3d   : > { %v12947_v46 = vadd.f32 %v12946_v61, %v12945_v37  ;;  %v12893_v23 = vpop.f32.mrb[35].mxu0  ;;  %v12940_v4 = vadd.f32 %v17068_v1, %v14187_v33  ;;  %v17953_v61 = vpack.c.bf16 %v13068_v49, %v13067_v28  ;;  %v13069_v37 = vld [vmem:[%s24606_s3 + $0x20] sm:$0xff]  ;;  %v13070_v1 = vld [vmem:[%s24606_s3 + $0x28] sm:$0xff] }
 0xe3e   : > { %v12939_v26 = vadd.f32 %v14187_v33, %v12893_v23  ;;  %v13071_v23 = vld [vmem:[%s24606_s3 + $0x30] sm:$0xff] }
 0xe3f   : > { %v12950_v11 = vsel %vm985_vm6, %v12940_v4, 0.0 }
 0xe40   : > { %v12948_v34 = vsel %vm985_vm6, %v12939_v26, 0.0  ;;  %v17071_v6 = vpop.f32.mrb[36].mxu0  ;;  %v12990_v26 = vld [vmem:[#allocation23] sm:$0x1] }
 0xe41   : > { %v12949_v27 = vadd.f32 %v12948_v34, %v12947_v46  ;;  %v12903_v30 = vpop.f32.mrb[37].mxu0  ;;  %v12942_v40 = vadd.f32 %v17071_v6, %v14187_v33  ;;  %v17956_v46 = vpack.c.bf16 %v13070_v1, %v13069_v37 }
 0xe42   : > { %v12941_v5 = vadd.f32 %v14187_v33, %v12903_v30 }
 0xe43   : > { %v12951_v45 = vadd.f32 %v12950_v11, %v12949_v27  ;;  %v12954_v58 = vsel %vm985_vm6, %v12942_v40, 0.0  ;;  %v13073_v11 = vld [vmem:[#allocation5] sm:$0x1] }
 0xe44   : > { %v12952_v3 = vsel %vm985_vm6, %v12941_v5, 0.0  ;;  %v17074_v32 = vpop.f32.mrb[38].mxu0 }
 0xe45   : > { %v12953_v35 = vadd.f32 %v12952_v3, %v12951_v45  ;;  %v12913_v22 = vpop.f32.mrb[39].mxu0  ;;  %v12944_v15 = vadd.f32 %v17074_v32, %v14187_v33 }
 0xe46   : > { %v12943_v60 = vadd.f32 %v14187_v33, %v12913_v22 }
 0xe47   : > { %v12955_v59 = vadd.f32 %v12954_v58, %v12953_v35  ;;  %v12958_v52 = vsel %vm985_vm6, %v12944_v15, 0.0 }
 0xe48   : > { %v12956_v56 = vsel %vm985_vm6, %v12943_v60, 0.0 }
 0xe49   : > { %v12957_v24 = vadd.f32 %v12956_v56, %v12955_v59 }
 0xe4b   : > { %v12959_v39 = vadd.f32 %v12958_v52, %v12957_v24 }
 0xe4d   : > { %v12960_v63 = vrot.slane %v12959_v39, 4 }
 0xe4f   : > { %v12961_v31 = vadd.f32 %v12960_v63, %v12959_v39 }
 0xe51   : > { %v12962_v55 = vrot.slane %v12961_v31, 2 }
 0xe53   : > { %v12963_v44 = vadd.f32 %v12962_v55, %v12961_v31 }
 0xe55   : > { %v12964_v43 = vrot.slane %v12963_v44, 1 }
 0xe57   : > { %v12965_v13 = vadd.f32 %v12964_v43, %v12963_v44 }
 0xe59   : > { %v12967_v47 = vmul.f32 0.015625, %v12965_v13 }
 0xe5b   : > { %v12968_v36 = vmul.f32 %v12967_v47, %v12967_v47 }
 0xe5d   : > { %v12969_v53 = vsel %vm985_vm6, %v12968_v36, 0.0 }
 0xe5e   : > { %12970 = vadd.xlane.f32.xlu0 %v12969_v53 }
 0xeeb   : > { %v12971_v51 = vpop.xlane.xlu0 %12970 }
 0xeec   : > { %18936 = vrsqrt.f32 %v12971_v51  ;;  %vm12974_vm9 = vcmp.eq.f32.partialorder %v12971_v51, inf  ;;  %v12977_v16 = vand.u32 2147483648, %v12971_v51  ;;  %vm12976_vm10 = vcmp.eq.f32.partialorder %v12971_v51, 0.0 }
 0xef6   : > { %v18937_v14 = vpop.eup %18936 }
 0xef7   : > { %v12973_v12 = vmul.f32 %v18937_v14, %v12971_v51 }
 0xef9   : > { %v12975_v17 = vsel %vm12974_vm9, %v12971_v51, %v12973_v12 }
 0xefa   : > { %v12978_v2 = vsel %vm12976_vm10, %v12977_v16, %v12975_v17 }
 0xefb   : > { %v12979_v10 = vadd.f32 1e-06, %v12978_v2 }
 0xefd   : > { %18938 = vrcp.f32 %v12979_v10 }
 0xf07   : > { %v18939_v33 = vpop.eup %18938 }
 0xf08   : > { %v12981_v29 = vmul.f32 %v18939_v33, %v12967_v47 }
 0xf0a   : > { %17092 = vmatmul.mubr.msk.f32.vlgmr.msra.gmra.mrb[70].mxu1 %vm985_vm6, %v12981_v29 }
 0xf0b   : > { %17951 = vmatpush3.bf16.msra.mxu1 %v17950_v9  ;;  %17110 = vmatprep.mubr.msk.f32.mxu1 %vm19388_vm8, %v24603_v50  ;;  %v13072_v50 = vld [vmem:[%s24606_s3 + $0x38] sm:$0xff] }
 0xf0c   : > { %17952 = vmatprep.subr.bf16.mxu1 %v19387_v42  ;;  %v17959_v4 = vpack.c.bf16 %v13072_v50, %v13071_v23 }
 0xf0f   : > { %17954 = vmatpush3.bf16.msra.mxu1 %v17953_v61 }
 0xf10   : > { %17955 = vmatprep.subr.bf16.mxu1 %v19387_v42 }
 0xf13   : > { %17957 = vmatpush3.bf16.msra.mxu1 %v17956_v46 }
 0xf14   : > { %17958 = vmatprep.subr.bf16.mxu1 %v19387_v42 }
 0xf17   : > { %17960 = vmatpush3.bf16.msra.mxu1 %v17959_v4 }
 0xfdd   : > { %v13060_v34 = vpop.f32.mrb[70].mxu1 }
 0xfde   : > { %v13061_v6 = vadd.f32 %v13060_v34, %v12990_v26  ;;  %v17093_v27 = vpop.f32.mrb[71].mxu1 }
 0xfe0   : > { %v13064_v30 = vmax.f32 %v13061_v6, 0.0 }
 0xfe2   : > { %17111 = vmatmul.mubr.msk.f32.vlgmr.msra.gmra.mrb[72].mxu1 %vm985_vm6, %v13064_v30 }
0x10b5   : > { %v13143_v40 = vpop.f32.mrb[72].mxu1 }
0x10b6   : > { %v13144_v5 = vadd.f32 %v13143_v40, %v13073_v11  ;;  %v17112_v45 = vpop.f32.mrb[73].mxu1 }
0x10b8   : > { %13148 = vst.msk [vmem:[%s872_s29] sm:$0x1] %vm13147_vm11, %v13144_v5 }
0x10b9 PF: > { %s24608_s9 = sld [smem:[#allocation32_spill]] }
0x10bf   : > { %s41_s29 = sadd.s32 1, %s24608_s9  }
0x10c0   : > { %p38_p7 = scmp.ge.s32.totalorder %s41_s29, 4  }
0x10c2   :  { %40 = sbr.rel (!%p38_p7) target bundleno = 20 (0x14), region = 252 }
0x10c9   :  { %13166 = vsyncpa [#allocation7], 1 }
0x10ca   :  { %13168 = vsyncpa [#allocation7 + $0x1], 1 }
0x10cb   :  { %13169 = vsyncpa [#allocation9], 1 }
0x10cc   :  { %13170 = vsyncpa [#allocation12], 1 }
0x10cd   :  { %13171 = vsyncpa [#allocation15], 1 }
0x10ce   :  { %13172 = vsyncpa [#allocation18], 1 }
0x10cf   :  { %13173 = vsyncpa [#allocation21], 1 }
0x10d0   :  { %13174 = vsyncpa [#allocation24], 1 }

</bundles_post_ra>
